<compile_context>
chip_gen: v5e
topology: v5e:2x2
jax: 0.10.0
libtpu: 0.0.40
codegen_flags: <defaults>
</compile_context>

<pallas_src>
import functools

import jax
import jax.numpy as jnp
from jax.experimental import pallas as pl
from jax.experimental.pallas import tpu as pltpu

BN_EPS = 1e-5
ACT_DTYPE = jnp.bfloat16     # inter-layer activation storage dtype
TM_GEMM = 512                # row-tile cap for the conv GEMM
TM_EW = 1024                 # row-tile cap for elementwise kernels (BN apply / maxpool)


def _round_up(v, m):
    return (v + m - 1) // m * m


def _row_tiles(M, cap):
    """Pick a row tile size.  Returns (tm, Mp) with Mp % tm == 0 and tm % 8 == 0
    (or tm == Mp == M, which satisfies the full-dim exemption)."""
    if M <= cap:
        return M, M
    tm = cap
    return tm, _round_up(M, tm)


def _pad_rows(x, Mp, value=0):
    M = x.shape[0]
    if Mp == M:
        return x
    return jnp.pad(x, ((0, Mp - M), (0, 0)), constant_values=value)


# ----------------------------------------------------------------------------
# Pallas kernels
# ----------------------------------------------------------------------------
def _conv_gemm_kernel(a_ref, w_ref, y_ref, s1_ref, s2_ref, acc_ref):
    """Tiled im2col-GEMM.  Grid = (M tiles, Cout tiles, K tiles).

    Emits the raw (pre-BN) conv output tile in bf16 plus per-(M-tile, channel)
    partial sums / sums-of-squares (f32) for the training-mode BN statistics.
    """
    k = pl.program_id(2)

    @pl.when(k == 0)
    def _init():
        acc_ref[...] = jnp.zeros_like(acc_ref)

    acc_ref[...] += jnp.dot(a_ref[...], w_ref[...],
                            preferred_element_type=jnp.float32)

    @pl.when(k == pl.num_programs(2) - 1)
    def _finalize():
        x = acc_ref[...]                                  # (tm, tn) f32
        y_ref[...] = x.astype(y_ref.dtype)                # lane-dense bf16 store
        s1_ref[...] = jnp.sum(x, axis=0, keepdims=True)[None]         # (1,1,tn)
        s2_ref[...] = jnp.sum(x * x, axis=0, keepdims=True)[None]     # (1,1,tn)


def _bn_apply_kernel(*refs, relu, has_res):
    """Elementwise BN apply (+residual)(+ReLU).  Grid = (M tiles,)."""
    if has_res:
        y_ref, sc_ref, sh_ref, r_ref, o_ref = refs
    else:
        y_ref, sc_ref, sh_ref, o_ref = refs
        r_ref = None
    y = y_ref[...].astype(jnp.float32) * sc_ref[...] + sh_ref[...]
    if has_res:
        y = y + r_ref[...].astype(jnp.float32)
    if relu:
        y = jnp.maximum(y, 0.0)
    o_ref[...] = y.astype(o_ref.dtype)


def _maxpool9_kernel(*refs):
    """Running elementwise max over the nine 3x3-window inputs (row-tiled)."""
    o_ref = refs[-1]
    m = refs[0][...]
    for r in refs[1:-1]:
        m = jnp.maximum(m, r[...])
    o_ref[...] = m


def _pool_fc_kernel(x_ref, w_ref, b_ref, o_ref):
    """Global average pool over the spatial axis + final linear layer."""
    pooled = jnp.mean(x_ref[...].astype(jnp.float32), axis=1)        # (N, C)
    o_ref[...] = jnp.dot(pooled, w_ref[...],
                         preferred_element_type=jnp.float32) + b_ref[...]


# ----------------------------------------------------------------------------
# Wrappers
# ----------------------------------------------------------------------------
def _im2col(x, kh, kw, stride, pad):
    """x: (N,H,W,Cin) bf16 NHWC -> (N*oh*ow, kh*kw*Cin) bf16.  Static strides only."""
    N, H, W, Cin = x.shape
    oh = (H + 2 * pad - kh) // stride + 1
    ow = (W + 2 * pad - kw) // stride + 1
    if pad > 0:
        x = jnp.pad(x, ((0, 0), (pad, pad), (pad, pad), (0, 0)))
    cols = []
    for i in range(kh):
        for j in range(kw):
            cols.append(x[:, i:i + oh * stride:stride,
                          j:j + ow * stride:stride, :])
    patches = jnp.concatenate(cols, axis=-1)              # (N,oh,ow,kh*kw*Cin)
    return patches.reshape(N * oh * ow, kh * kw * Cin), oh, ow


# TODO(synk): im2col is still plain-JAX glue (pad + strided slices); a further win
# would be fusing the 3x3 tap extraction into the GEMM grid itself.
def conv_bn(x, w_torch, gamma, beta, *, stride, pad, relu, residual=None):
    """conv2d (im2col + tiled MXU GEMM) + training-mode BN (+residual)(+ReLU).

    x: (N,H,W,Cin) bf16 NHWC.  w_torch: (Cout,Cin,kh,kw) f32 (PyTorch layout).
    gamma/beta: (1,Cout) f32.  residual: optional (N,oh,ow,Cout) bf16.
    Returns (N,oh,ow,Cout) bf16.
    """
    Cout, Cin, kh, kw = w_torch.shape
    N = x.shape[0]
    a, oh, ow = _im2col(x, kh, kw, stride, pad)
    M, K = a.shape

    # ---- tiling / padding: K to 128-multiple, Cout to lane-dense tile width ----
    Kp = _round_up(K, 128)
    tk = next(t for t in (512, 256, 128) if Kp % t == 0)
    tn = 256 if Cout % 256 == 0 else 128          # 256-wide MXU tiles on deep layers
    Cp = _round_up(Cout, tn)
    tm, Mp = _row_tiles(M, TM_GEMM)

    wm = jnp.transpose(w_torch, (2, 3, 1, 0)).reshape(K, Cout).astype(ACT_DTYPE)
    if Kp != K:
        a = jnp.pad(a, ((0, 0), (0, Kp - K)))
        wm = jnp.pad(wm, ((0, Kp - K), (0, 0)))
    if Cp != Cout:
        wm = jnp.pad(wm, ((0, 0), (0, Cp - Cout)))
    a = _pad_rows(a, Mp)

    n_m, n_n, n_k = Mp // tm, Cp // tn, Kp // tk

    # ---- pass 1: GEMM + per-tile partial BN statistics ----
    y_raw, s1_p, s2_p = pl.pallas_call(
        _conv_gemm_kernel,
        grid=(n_m, n_n, n_k),
        in_specs=[
            pl.BlockSpec((tm, tk), lambda m, n, k: (m, k)),     # A tile
            pl.BlockSpec((tk, tn), lambda m, n, k: (k, n)),     # W tile
        ],
        out_specs=[
            pl.BlockSpec((tm, tn), lambda m, n, k: (m, n)),     # raw conv out
            pl.BlockSpec((1, 1, tn), lambda m, n, k: (m, 0, n)),  # partial sum
            pl.BlockSpec((1, 1, tn), lambda m, n, k: (m, 0, n)),  # partial sum sq
        ],
        out_shape=[
            jax.ShapeDtypeStruct((Mp, Cp), ACT_DTYPE),
            jax.ShapeDtypeStruct((n_m, 1, Cp), jnp.float32),
            jax.ShapeDtypeStruct((n_m, 1, Cp), jnp.float32),
        ],
        scratch_shapes=[pltpu.VMEM((tm, tn), jnp.float32)],
        compiler_params=pltpu.CompilerParams(
            dimension_semantics=("parallel", "parallel", "arbitrary")),
    )(a, wm)

    # ---- tiny cross-tile reduction -> per-channel BN scale/shift (XLA glue) ----
    # Zero-padded rows/channels contribute 0 to s1/s2; divide by the *real* M.
    s1 = jnp.sum(s1_p, axis=(0, 1))                         # (Cp,)
    s2 = jnp.sum(s2_p, axis=(0, 1))
    mean = s1 / M
    var = jnp.maximum(s2 / M - mean * mean, 0.0)
    inv = jax.lax.rsqrt(var + BN_EPS)
    gamma_p = jnp.pad(gamma, ((0, 0), (0, Cp - Cout))).astype(jnp.float32)
    beta_p = jnp.pad(beta, ((0, 0), (0, Cp - Cout))).astype(jnp.float32)
    scale = gamma_p * inv[None, :]                          # (1, Cp)
    shift = beta_p - mean[None, :] * scale                  # (1, Cp)

    # ---- pass 2: BN apply (+residual)(+ReLU), row-tiled, lane-dense ----
    has_res = residual is not None
    inputs = [y_raw, scale, shift]
    in_specs = [
        pl.BlockSpec((tm, Cp), lambda m: (m, 0)),
        pl.BlockSpec((1, Cp), lambda m: (0, 0)),
        pl.BlockSpec((1, Cp), lambda m: (0, 0)),
    ]
    if has_res:
        r = residual.reshape(M, Cout).astype(ACT_DTYPE)
        if Cp != Cout:
            r = jnp.pad(r, ((0, 0), (0, Cp - Cout)))
        r = _pad_rows(r, Mp)
        inputs.append(r)
        in_specs.append(pl.BlockSpec((tm, Cp), lambda m: (m, 0)))

    y = pl.pallas_call(
        functools.partial(_bn_apply_kernel, relu=relu, has_res=has_res),
        grid=(n_m,),
        in_specs=in_specs,
        out_specs=pl.BlockSpec((tm, Cp), lambda m: (m, 0)),
        out_shape=jax.ShapeDtypeStruct((Mp, Cp), ACT_DTYPE),
        compiler_params=pltpu.CompilerParams(dimension_semantics=("parallel",)),
    )(*inputs)

    return y[:M, :Cout].reshape(N, oh, ow, Cout)


def maxpool3x3_s2_p1(x):
    """PyTorch MaxPool2d(kernel_size=3, stride=2, padding=1) on NHWC bf16."""
    N, H, W, C = x.shape
    oh = (H + 2 - 3) // 2 + 1
    ow = (W + 2 - 3) // 2 + 1
    neg = jnp.asarray(-jnp.inf, x.dtype)
    xp = jnp.pad(x, ((0, 0), (1, 1), (1, 1), (0, 0)), constant_values=neg)
    M = N * oh * ow
    tm, Mp = _row_tiles(M, TM_EW)
    wins = []
    for i in range(3):
        for j in range(3):
            w_ = xp[:, i:i + oh * 2:2, j:j + ow * 2:2, :].reshape(M, C)
            wins.append(_pad_rows(w_, Mp, value=neg))
    # C here is the stem width (64 < 128): blocks use the full channel dim, which
    # is allowed; padding channels just to get lane-dense stores is not worth the
    # extra HBM traffic for this single small layer.
    out = pl.pallas_call(
        _maxpool9_kernel,
        grid=(Mp // tm,),
        in_specs=[pl.BlockSpec((tm, C), lambda m: (m, 0))] * 9,
        out_specs=pl.BlockSpec((tm, C), lambda m: (m, 0)),
        out_shape=jax.ShapeDtypeStruct((Mp, C), x.dtype),
        compiler_params=pltpu.CompilerParams(dimension_semantics=("parallel",)),
    )(*wins)
    return out[:M].reshape(N, oh, ow, C)


# TODO(synk): could be fused into the final block's BN-apply kernel (emit pooled
# sums there) to save one HBM read of the last activation; kept separate for clarity.
def avgpool_fc(x, fc_w, fc_b):
    """x: (N,H,W,C) bf16 -> global average pool -> linear (C -> out_dim) f32."""
    N, H, W, C = x.shape
    out_dim = fc_w.shape[1]
    Dp = 128                                        # lane-dense padded fc width
    w_p = jnp.pad(fc_w, ((0, 0), (0, Dp - out_dim))).astype(jnp.float32)
    b_p = jnp.pad(fc_b, ((0, 0), (0, Dp - out_dim))).astype(jnp.float32)
    feats = x.reshape(N, H * W, C)
    out = pl.pallas_call(
        _pool_fc_kernel,
        grid=(1,),
        in_specs=[pl.BlockSpec((N, H * W, C), lambda i: (0, 0, 0)),
                  pl.BlockSpec((C, Dp), lambda i: (0, 0)),
                  pl.BlockSpec((1, Dp), lambda i: (0, 0))],
        out_specs=pl.BlockSpec((N, Dp), lambda i: (0, 0)),
        out_shape=jax.ShapeDtypeStruct((N, Dp), jnp.float32),
    )(feats, w_p, b_p)
    return out[:, :out_dim]


# ----------------------------------------------------------------------------
# ResNet-34 definition (structure is static Python; params hold arrays only)
# ----------------------------------------------------------------------------
STAGES = [(64, 3, 1), (128, 4, 2), (256, 6, 2), (512, 3, 2)]  # (ch, blocks, stride)


def make_resnet34_params(key, out_dim=2):
    counter = [0]

    def nk():
        counter[0] += 1
        return jax.random.fold_in(key, counter[0])

    def conv_w(cout, cin, k):
        std = (2.0 / (cin * k * k)) ** 0.5
        return jax.random.normal(nk(), (cout, cin, k, k), jnp.float32) * std

    def bn_params(c):
        return jnp.ones((1, c), jnp.float32), jnp.zeros((1, c), jnp.float32)

    params = {}
    params['conv1'] = conv_w(64, 3, 7)
    params['bn1_g'], params['bn1_b'] = bn_params(64)

    layers = []
    in_ch = 64
    for ch, n_blocks, stride in STAGES:
        stage = []
        for b in range(n_blocks):
            s = stride if b == 0 else 1
            blk = {'conv1_w': conv_w(ch, in_ch, 3),
                   'conv2_w': conv_w(ch, ch, 3)}
            blk['bn1_g'], blk['bn1_b'] = bn_params(ch)
            blk['bn2_g'], blk['bn2_b'] = bn_params(ch)
            if s != 1 or in_ch != ch:
                blk['ds_w'] = conv_w(ch, in_ch, 1)
                blk['ds_bn_g'], blk['ds_bn_b'] = bn_params(ch)
            stage.append(blk)
            in_ch = ch
        layers.append(stage)
    params['layers'] = layers

    params['fc_w'] = (jax.random.normal(nk(), (512, out_dim), jnp.float32)
                      * (1.0 / 512.0) ** 0.5)
    params['fc_b'] = jax.random.normal(nk(), (1, out_dim), jnp.float32) * 0.01
    return params


# TODO(synk): the 1x1-downsample BN-apply could be folded into conv2's BN-apply
# (pass its raw output + its own scale/shift) to save one kernel launch per
# downsampling block.
def basic_block(x, blk, stride):
    if 'ds_w' in blk:
        identity = conv_bn(x, blk['ds_w'], blk['ds_bn_g'], blk['ds_bn_b'],
                           stride=stride, pad=0, relu=False)
    else:
        identity = x
    out = conv_bn(x, blk['conv1_w'], blk['bn1_g'], blk['bn1_b'],
                  stride=stride, pad=1, relu=True)
    # relu(bn2(conv2(out)) + identity), residual fused into the BN-apply pass.
    out = conv_bn(out, blk['conv2_w'], blk['bn2_g'], blk['bn2_b'],
                  stride=1, pad=1, relu=True, residual=identity)
    return out


def backbone_forward(params, x_nchw):
    """Equivalent of BackboneModel.forward.  Input is NCHW float32."""
    # .cuda() transfer in the reference module is a device no-op here.
    # Activations are stored/streamed in bf16 (MXU-native); BN math stays f32.
    x = jnp.transpose(x_nchw, (0, 2, 3, 1)).astype(ACT_DTYPE)     # -> NHWC bf16
    x = conv_bn(x, params['conv1'], params['bn1_g'], params['bn1_b'],
                stride=2, pad=3, relu=True)
    x = maxpool3x3_s2_p1(x)
    for stage_params, (_, _, stage_stride) in zip(params['layers'], STAGES):
        for b, blk in enumerate(stage_params):
            s = stage_stride if b == 0 else 1           # static Python int
            x = basic_block(x, blk, s)
    return avgpool_fc(x, params['fc_w'], params['fc_b'])          # (N, out_dim) f32


# TODO(synk): torchvision `pretrained=True` checkpoint weights are replaced by
# deterministic synthetic initialization (no file / network access allowed).
# TODO(synk): nn.BatchNorm2d running-statistics updates are omitted (forward-only).


if __name__ == "__main__":
    key = jax.random.PRNGKey(0)
    pkey, xkey = jax.random.split(key)

    params = make_resnet34_params(pkey, out_dim=2)
    # Small NCHW input consistent with the resnet34 stem (3 input channels).
    x = jax.random.normal(xkey, (2, 3, 32, 32), jnp.float32)

    fwd = jax.jit(backbone_forward)
    out = jax.block_until_ready(fwd(params, x))

    assert out.shape == (2, 2), out.shape
    assert bool(jnp.all(jnp.isfinite(out)))
    print("KERNEL_OK")
</pallas_src>

<mosaic_0001>
module attributes {stable_mosaic.version = 11 : i64} {
  func.func @_conv_gemm_kernel(%arg0: i32, %arg1: i32, %arg2: i32, %arg3: memref<512x256xbf16, #tpu.memory_space<vmem>>, %arg4: memref<256x128xbf16, #tpu.memory_space<vmem>>, %arg5: memref<512x128xbf16, #tpu.memory_space<vmem>>, %arg6: memref<1x1x128xf32, #tpu.memory_space<vmem>>, %arg7: memref<1x1x128xf32, #tpu.memory_space<vmem>>, %arg8: memref<512x128xf32, #tpu.memory_space<vmem>>) attributes {dimension_semantics = [#tpu.dimension_semantics<parallel>, #tpu.dimension_semantics<parallel>, #tpu.dimension_semantics<arbitrary>], iteration_bounds = array<i64: 1, 1, 1>, scalar_prefetch = 0 : i64, scratch_operands = 1 : i64, tpu.core_type = #tpu.core_type<tc>, window_params = [{transform_indices = @transform_0, window_bounds = array<i64: 512, 256>}, {transform_indices = @transform_1, window_bounds = array<i64: 256, 128>}, {transform_indices = @transform_2, window_bounds = array<i64: 512, 128>}, {transform_indices = @transform_3, window_bounds = array<i64: 1, 1, 128>}, {transform_indices = @transform_4, window_bounds = array<i64: 1, 1, 128>}]} {
    %c0_i32 = arith.constant 0 : i32
    %0 = arith.cmpi eq, %arg2, %c0_i32 : i32
    %1 = arith.extui %0 : i1 to i32
    %c0_i32_0 = arith.constant 0 : i32
    %2 = arith.cmpi ne, %1, %c0_i32_0 : i32
    scf.if %2 {
      %cst_10 = arith.constant 0.000000e+00 : f32
      %12 = vector.broadcast %cst_10 : f32 to vector<512x128xf32>
      %c0_11 = arith.constant 0 : index
      %c0_12 = arith.constant 0 : index
      %13 = vector.load %arg8[%c0_11, %c0_12] : memref<512x128xf32, #tpu.memory_space<vmem>>, vector<512x128xf32>
      tpu.vector_store %arg8[%c0_11, %c0_12], %12 {strides = array<i32>} : memref<512x128xf32, #tpu.memory_space<vmem>>, vector<512x128xf32>,
    } else {
    }
    %c0 = arith.constant 0 : index
    %c0_1 = arith.constant 0 : index
    %3 = vector.load %arg8[%c0, %c0_1] : memref<512x128xf32, #tpu.memory_space<vmem>>, vector<512x128xf32>
    %c0_2 = arith.constant 0 : index
    %c0_3 = arith.constant 0 : index
    %4 = vector.load %arg3[%c0_2, %c0_3] : memref<512x256xbf16, #tpu.memory_space<vmem>>, vector<512x256xbf16>
    %c0_4 = arith.constant 0 : index
    %c0_5 = arith.constant 0 : index
    %5 = vector.load %arg4[%c0_4, %c0_5] : memref<256x128xbf16, #tpu.memory_space<vmem>>, vector<256x128xbf16>
    %cst = arith.constant dense<0.000000e+00> : vector<512x128xf32>
    %6 = tpu.matmul %4, %5, %cst {dimension_numbers = #tpu.dot_dimension_numbers<[1], [0], [0], [1], [0, 0, 1, 1], [], []>} : vector<512x256xbf16>, vector<256x128xbf16>, vector<512x128xf32> -> vector<512x128xf32>
    %7 = arith.addf %3, %6 : vector<512x128xf32>
    %c0_6 = arith.constant 0 : index
    %c0_7 = arith.constant 0 : index
    %8 = vector.load %arg8[%c0_6, %c0_7] : memref<512x128xf32, #tpu.memory_space<vmem>>, vector<512x128xf32>
    tpu.vector_store %arg8[%c0_6, %c0_7], %7 {strides = array<i32>} : memref<512x128xf32, #tpu.memory_space<vmem>>, vector<512x128xf32>,
    %c0_i32_8 = arith.constant 0 : i32
    %9 = arith.cmpi eq, %arg2, %c0_i32_8 : i32
    %10 = arith.extui %9 : i1 to i32
    %c0_i32_9 = arith.constant 0 : i32
    %11 = arith.cmpi ne, %10, %c0_i32_9 : i32
    scf.if %11 {
      %c0_10 = arith.constant 0 : index
      %c0_11 = arith.constant 0 : index
      %12 = vector.load %arg8[%c0_10, %c0_11] : memref<512x128xf32, #tpu.memory_space<vmem>>, vector<512x128xf32>
      %13 = arith.truncf %12 : vector<512x128xf32> to vector<512x128xbf16>
      %c0_12 = arith.constant 0 : index
      %c0_13 = arith.constant 0 : index
      %14 = vector.load %arg5[%c0_12, %c0_13] : memref<512x128xbf16, #tpu.memory_space<vmem>>, vector<512x128xbf16>
      tpu.vector_store %arg5[%c0_12, %c0_13], %13 {strides = array<i32>} : memref<512x128xbf16, #tpu.memory_space<vmem>>, vector<512x128xbf16>,
      %cst_14 = arith.constant dense<0.000000e+00> : vector<128xf32>
      %15 = vector.multi_reduction <add>, %12, %cst_14 [0] : vector<512x128xf32> to vector<128xf32>
      %16 = vector.shape_cast %15 : vector<128xf32> to vector<1x128xf32>
      %17 = vector.shape_cast %16 : vector<1x128xf32> to vector<1x1x128xf32>
      %c0_15 = arith.constant 0 : index
      %c0_16 = arith.constant 0 : index
      %c0_17 = arith.constant 0 : index
      %18 = vector.load %arg6[%c0_15, %c0_16, %c0_17] : memref<1x1x128xf32, #tpu.memory_space<vmem>>, vector<1x1x128xf32>
      tpu.vector_store %arg6[%c0_15, %c0_16, %c0_17], %17 {strides = array<i32>} : memref<1x1x128xf32, #tpu.memory_space<vmem>>, vector<1x1x128xf32>,
      %19 = arith.mulf %12, %12 : vector<512x128xf32>
      %cst_18 = arith.constant dense<0.000000e+00> : vector<128xf32>
      %20 = vector.multi_reduction <add>, %19, %cst_18 [0] : vector<512x128xf32> to vector<128xf32>
      %21 = vector.shape_cast %20 : vector<128xf32> to vector<1x128xf32>
      %22 = vector.shape_cast %21 : vector<1x128xf32> to vector<1x1x128xf32>
      %c0_19 = arith.constant 0 : index
      %c0_20 = arith.constant 0 : index
      %c0_21 = arith.constant 0 : index
      %23 = vector.load %arg7[%c0_19, %c0_20, %c0_21] : memref<1x1x128xf32, #tpu.memory_space<vmem>>, vector<1x1x128xf32>
      tpu.vector_store %arg7[%c0_19, %c0_20, %c0_21], %22 {strides = array<i32>} : memref<1x1x128xf32, #tpu.memory_space<vmem>>, vector<1x1x128xf32>,
    } else {
    }
    return
  }
  func.func @transform_0(%arg0: i32, %arg1: i32, %arg2: i32) -> (i32, i32) {
    %c0_i32 = arith.constant 0 : i32
    return %arg0, %arg2 : i32, i32
  }
  func.func @transform_1(%arg0: i32, %arg1: i32, %arg2: i32) -> (i32, i32) {
    %c0_i32 = arith.constant 0 : i32
    return %arg2, %arg1 : i32, i32
  }
  func.func @transform_2(%arg0: i32, %arg1: i32, %arg2: i32) -> (i32, i32) {
    %c0_i32 = arith.constant 0 : i32
    return %arg0, %arg1 : i32, i32
  }
  func.func @transform_3(%arg0: i32, %arg1: i32, %arg2: i32) -> (i32, i32, i32) {
    %c0_i32 = arith.constant 0 : i32
    %c0_i32_0 = arith.constant 0 : i32
    return %arg0, %c0_i32, %arg1 : i32, i32, i32
  }
  func.func @transform_4(%arg0: i32, %arg1: i32, %arg2: i32) -> (i32, i32, i32) {
    %c0_i32 = arith.constant 0 : i32
    %c0_i32_0 = arith.constant 0 : i32
    return %arg0, %c0_i32, %arg1 : i32, i32, i32
  }
}

module attributes {stable_mosaic.version = 11 : i64} {
  func.func @_bn_apply_kernel(%arg0: i32, %arg1: memref<512x128xbf16, #tpu.memory_space<vmem>>, %arg2: memref<1x128xf32, #tpu.memory_space<vmem>>, %arg3: memref<1x128xf32, #tpu.memory_space<vmem>>, %arg4: memref<512x128xbf16, #tpu.memory_space<vmem>>) attributes {dimension_semantics = [#tpu.dimension_semantics<parallel>], iteration_bounds = array<i64: 1>, scalar_prefetch = 0 : i64, scratch_operands = 0 : i64, tpu.core_type = #tpu.core_type<tc>, window_params = [{transform_indices = @transform_0, window_bounds = array<i64: 512, 128>}, {pipeline_mode = #tpu.pipeline_mode<synchronous>, transform_indices = @transform_1, window_bounds = array<i64: 1, 128>}, {pipeline_mode = #tpu.pipeline_mode<synchronous>, transform_indices = @transform_2, window_bounds = array<i64: 1, 128>}, {transform_indices = @transform_3, window_bounds = array<i64: 512, 128>}]} {
    %c0 = arith.constant 0 : index
    %c0_0 = arith.constant 0 : index
    %0 = vector.load %arg1[%c0, %c0_0] : memref<512x128xbf16, #tpu.memory_space<vmem>>, vector<512x128xbf16>
    %1 = arith.extf %0 : vector<512x128xbf16> to vector<512x128xf32>
    %c0_1 = arith.constant 0 : index
    %c0_2 = arith.constant 0 : index
    %2 = vector.load %arg2[%c0_1, %c0_2] : memref<1x128xf32, #tpu.memory_space<vmem>>, vector<1x128xf32>
    %3 = vector.broadcast %2 : vector<1x128xf32> to vector<512x128xf32>
    %4 = arith.mulf %1, %3 : vector<512x128xf32>
    %c0_3 = arith.constant 0 : index
    %c0_4 = arith.constant 0 : index
    %5 = vector.load %arg3[%c0_3, %c0_4] : memref<1x128xf32, #tpu.memory_space<vmem>>, vector<1x128xf32>
    %6 = vector.broadcast %5 : vector<1x128xf32> to vector<512x128xf32>
    %7 = arith.addf %4, %6 : vector<512x128xf32>
    %cst = arith.constant 0.000000e+00 : f32
    %8 = vector.broadcast %cst : f32 to vector<512x128xf32>
    %9 = arith.maximumf %7, %8 : vector<512x128xf32>
    %10 = arith.truncf %9 : vector<512x128xf32> to vector<512x128xbf16>
    %c0_5 = arith.constant 0 : index
    %c0_6 = arith.constant 0 : index
    %11 = vector.load %arg4[%c0_5, %c0_6] : memref<512x128xbf16, #tpu.memory_space<vmem>>, vector<512x128xbf16>
    tpu.vector_store %arg4[%c0_5, %c0_6], %10 {strides = array<i32>} : memref<512x128xbf16, #tpu.memory_space<vmem>>, vector<512x128xbf16>,
    return
  }
  func.func @transform_0(%arg0: i32) -> (i32, i32) {
    %c0_i32 = arith.constant 0 : i32
    %c0_i32_0 = arith.constant 0 : i32
    return %arg0, %c0_i32 : i32, i32
  }
  func.func @transform_1(%arg0: i32) -> (i32, i32) {
    %c0_i32 = arith.constant 0 : i32
    %c0_i32_0 = arith.constant 0 : i32
    %c0_i32_1 = arith.constant 0 : i32
    return %c0_i32, %c0_i32_0 : i32, i32
  }
  func.func @transform_2(%arg0: i32) -> (i32, i32) {
    %c0_i32 = arith.constant 0 : i32
    %c0_i32_0 = arith.constant 0 : i32
    %c0_i32_1 = arith.constant 0 : i32
    return %c0_i32, %c0_i32_0 : i32, i32
  }
  func.func @transform_3(%arg0: i32) -> (i32, i32) {
    %c0_i32 = arith.constant 0 : i32
    %c0_i32_0 = arith.constant 0 : i32
    return %arg0, %c0_i32 : i32, i32
  }
}

module attributes {stable_mosaic.version = 11 : i64} {
  func.func @_maxpool9_kernel(%arg0: i32, %arg1: memref<128x64xbf16, #tpu.memory_space<vmem>>, %arg2: memref<128x64xbf16, #tpu.memory_space<vmem>>, %arg3: memref<128x64xbf16, #tpu.memory_space<vmem>>, %arg4: memref<128x64xbf16, #tpu.memory_space<vmem>>, %arg5: memref<128x64xbf16, #tpu.memory_space<vmem>>, %arg6: memref<128x64xbf16, #tpu.memory_space<vmem>>, %arg7: memref<128x64xbf16, #tpu.memory_space<vmem>>, %arg8: memref<128x64xbf16, #tpu.memory_space<vmem>>, %arg9: memref<128x64xbf16, #tpu.memory_space<vmem>>, %arg10: memref<128x64xbf16, #tpu.memory_space<vmem>>) attributes {dimension_semantics = [#tpu.dimension_semantics<parallel>], iteration_bounds = array<i64: 1>, scalar_prefetch = 0 : i64, scratch_operands = 0 : i64, tpu.core_type = #tpu.core_type<tc>, window_params = [{transform_indices = @transform_0, window_bounds = array<i64: 128, 64>}, {transform_indices = @transform_1, window_bounds = array<i64: 128, 64>}, {transform_indices = @transform_2, window_bounds = array<i64: 128, 64>}, {transform_indices = @transform_3, window_bounds = array<i64: 128, 64>}, {transform_indices = @transform_4, window_bounds = array<i64: 128, 64>}, {transform_indices = @transform_5, window_bounds = array<i64: 128, 64>}, {transform_indices = @transform_6, window_bounds = array<i64: 128, 64>}, {transform_indices = @transform_7, window_bounds = array<i64: 128, 64>}, {transform_indices = @transform_8, window_bounds = array<i64: 128, 64>}, {transform_indices = @transform_9, window_bounds = array<i64: 128, 64>}]} {
    %c0 = arith.constant 0 : index
    %c0_0 = arith.constant 0 : index
    %0 = vector.load %arg1[%c0, %c0_0] : memref<128x64xbf16, #tpu.memory_space<vmem>>, vector<128x64xbf16>
    %c0_1 = arith.constant 0 : index
    %c0_2 = arith.constant 0 : index
    %1 = vector.load %arg2[%c0_1, %c0_2] : memref<128x64xbf16, #tpu.memory_space<vmem>>, vector<128x64xbf16>
    %2 = arith.maximumf %0, %1 : vector<128x64xbf16>
    %c0_3 = arith.constant 0 : index
    %c0_4 = arith.constant 0 : index
    %3 = vector.load %arg3[%c0_3, %c0_4] : memref<128x64xbf16, #tpu.memory_space<vmem>>, vector<128x64xbf16>
    %4 = arith.maximumf %2, %3 : vector<128x64xbf16>
    %c0_5 = arith.constant 0 : index
    %c0_6 = arith.constant 0 : index
    %5 = vector.load %arg4[%c0_5, %c0_6] : memref<128x64xbf16, #tpu.memory_space<vmem>>, vector<128x64xbf16>
    %6 = arith.maximumf %4, %5 : vector<128x64xbf16>
    %c0_7 = arith.constant 0 : index
    %c0_8 = arith.constant 0 : index
    %7 = vector.load %arg5[%c0_7, %c0_8] : memref<128x64xbf16, #tpu.memory_space<vmem>>, vector<128x64xbf16>
    %8 = arith.maximumf %6, %7 : vector<128x64xbf16>
    %c0_9 = arith.constant 0 : index
    %c0_10 = arith.constant 0 : index
    %9 = vector.load %arg6[%c0_9, %c0_10] : memref<128x64xbf16, #tpu.memory_space<vmem>>, vector<128x64xbf16>
    %10 = arith.maximumf %8, %9 : vector<128x64xbf16>
    %c0_11 = arith.constant 0 : index
    %c0_12 = arith.constant 0 : index
    %11 = vector.load %arg7[%c0_11, %c0_12] : memref<128x64xbf16, #tpu.memory_space<vmem>>, vector<128x64xbf16>
    %12 = arith.maximumf %10, %11 : vector<128x64xbf16>
    %c0_13 = arith.constant 0 : index
    %c0_14 = arith.constant 0 : index
    %13 = vector.load %arg8[%c0_13, %c0_14] : memref<128x64xbf16, #tpu.memory_space<vmem>>, vector<128x64xbf16>
    %14 = arith.maximumf %12, %13 : vector<128x64xbf16>
    %c0_15 = arith.constant 0 : index
    %c0_16 = arith.constant 0 : index
    %15 = vector.load %arg9[%c0_15, %c0_16] : memref<128x64xbf16, #tpu.memory_space<vmem>>, vector<128x64xbf16>
    %16 = arith.maximumf %14, %15 : vector<128x64xbf16>
    %c0_17 = arith.constant 0 : index
    %c0_18 = arith.constant 0 : index
    %17 = vector.load %arg10[%c0_17, %c0_18] : memref<128x64xbf16, #tpu.memory_space<vmem>>, vector<128x64xbf16>
    tpu.vector_store %arg10[%c0_17, %c0_18], %16 {strides = array<i32>} : memref<128x64xbf16, #tpu.memory_space<vmem>>, vector<128x64xbf16>,
    return
  }
  func.func @transform_0(%arg0: i32) -> (i32, i32) {
    %c0_i32 = arith.constant 0 : i32
    %c0_i32_0 = arith.constant 0 : i32
    return %arg0, %c0_i32 : i32, i32
  }
  func.func @transform_1(%arg0: i32) -> (i32, i32) {
    %c0_i32 = arith.constant 0 : i32
    %c0_i32_0 = arith.constant 0 : i32
    return %arg0, %c0_i32 : i32, i32
  }
  func.func @transform_2(%arg0: i32) -> (i32, i32) {
    %c0_i32 = arith.constant 0 : i32
    %c0_i32_0 = arith.constant 0 : i32
    return %arg0, %c0_i32 : i32, i32
  }
  func.func @transform_3(%arg0: i32) -> (i32, i32) {
    %c0_i32 = arith.constant 0 : i32
    %c0_i32_0 = arith.constant 0 : i32
    return %arg0, %c0_i32 : i32, i32
  }
  func.func @transform_4(%arg0: i32) -> (i32, i32) {
    %c0_i32 = arith.constant 0 : i32
    %c0_i32_0 = arith.constant 0 : i32
    return %arg0, %c0_i32 : i32, i32
  }
  func.func @transform_5(%arg0: i32) -> (i32, i32) {
    %c0_i32 = arith.constant 0 : i32
    %c0_i32_0 = arith.constant 0 : i32
    return %arg0, %c0_i32 : i32, i32
  }
  func.func @transform_6(%arg0: i32) -> (i32, i32) {
    %c0_i32 = arith.constant 0 : i32
    %c0_i32_0 = arith.constant 0 : i32
    return %arg0, %c0_i32 : i32, i32
  }
  func.func @transform_7(%arg0: i32) -> (i32, i32) {
    %c0_i32 = arith.constant 0 : i32
    %c0_i32_0 = arith.constant 0 : i32
    return %arg0, %c0_i32 : i32, i32
  }
  func.func @transform_8(%arg0: i32) -> (i32, i32) {
    %c0_i32 = arith.constant 0 : i32
    %c0_i32_0 = arith.constant 0 : i32
    return %arg0, %c0_i32 : i32, i32
  }
  func.func @transform_9(%arg0: i32) -> (i32, i32) {
    %c0_i32 = arith.constant 0 : i32
    %c0_i32_0 = arith.constant 0 : i32
    return %arg0, %c0_i32 : i32, i32
  }
}

module attributes {stable_mosaic.version = 11 : i64} {
  func.func @_conv_gemm_kernel(%arg0: i32, %arg1: i32, %arg2: i32, %arg3: memref<128x128xbf16, #tpu.memory_space<vmem>>, %arg4: memref<128x128xbf16, #tpu.memory_space<vmem>>, %arg5: memref<128x128xbf16, #tpu.memory_space<vmem>>, %arg6: memref<1x1x128xf32, #tpu.memory_space<vmem>>, %arg7: memref<1x1x128xf32, #tpu.memory_space<vmem>>, %arg8: memref<128x128xf32, #tpu.memory_space<vmem>>) attributes {dimension_semantics = [#tpu.dimension_semantics<parallel>, #tpu.dimension_semantics<parallel>, #tpu.dimension_semantics<arbitrary>], iteration_bounds = array<i64: 1, 1, 5>, scalar_prefetch = 0 : i64, scratch_operands = 1 : i64, tpu.core_type = #tpu.core_type<tc>, window_params = [{transform_indices = @transform_0, window_bounds = array<i64: 128, 128>}, {transform_indices = @transform_1, window_bounds = array<i64: 128, 128>}, {transform_indices = @transform_2, window_bounds = array<i64: 128, 128>}, {transform_indices = @transform_3, window_bounds = array<i64: 1, 1, 128>}, {transform_indices = @transform_4, window_bounds = array<i64: 1, 1, 128>}]} {
    %c0_i32 = arith.constant 0 : i32
    %0 = arith.cmpi eq, %arg2, %c0_i32 : i32
    %1 = arith.extui %0 : i1 to i32
    %c0_i32_0 = arith.constant 0 : i32
    %2 = arith.cmpi ne, %1, %c0_i32_0 : i32
    scf.if %2 {
      %cst_9 = arith.constant 0.000000e+00 : f32
      %12 = vector.broadcast %cst_9 : f32 to vector<128x128xf32>
      %c0_10 = arith.constant 0 : index
      %c0_11 = arith.constant 0 : index
      %13 = vector.load %arg8[%c0_10, %c0_11] : memref<128x128xf32, #tpu.memory_space<vmem>>, vector<128x128xf32>
      tpu.vector_store %arg8[%c0_10, %c0_11], %12 {strides = array<i32>} : memref<128x128xf32, #tpu.memory_space<vmem>>, vector<128x128xf32>,
    } else {
    }
    %c0 = arith.constant 0 : index
    %c0_1 = arith.constant 0 : index
    %3 = vector.load %arg8[%c0, %c0_1] : memref<128x128xf32, #tpu.memory_space<vmem>>, vector<128x128xf32>
    %c0_2 = arith.constant 0 : index
    %c0_3 = arith.constant 0 : index
    %4 = vector.load %arg3[%c0_2, %c0_3] : memref<128x128xbf16, #tpu.memory_space<vmem>>, vector<128x128xbf16>
    %c0_4 = arith.constant 0 : index
    %c0_5 = arith.constant 0 : index
    %5 = vector.load %arg4[%c0_4, %c0_5] : memref<128x128xbf16, #tpu.memory_space<vmem>>, vector<128x128xbf16>
    %cst = arith.constant dense<0.000000e+00> : vector<128x128xf32>
    %6 = tpu.matmul %4, %5, %cst {dimension_numbers = #tpu.dot_dimension_numbers<[1], [0], [0], [1], [0, 0, 1, 1], [], []>} : vector<128x128xbf16>, vector<128x128xbf16>, vector<128x128xf32> -> vector<128x128xf32>
    %7 = arith.addf %3, %6 : vector<128x128xf32>
    %c0_6 = arith.constant 0 : index
    %c0_7 = arith.constant 0 : index
    %8 = vector.load %arg8[%c0_6, %c0_7] : memref<128x128xf32, #tpu.memory_space<vmem>>, vector<128x128xf32>
    tpu.vector_store %arg8[%c0_6, %c0_7], %7 {strides = array<i32>} : memref<128x128xf32, #tpu.memory_space<vmem>>, vector<128x128xf32>,
    %c4_i32 = arith.constant 4 : i32
    %9 = arith.cmpi eq, %arg2, %c4_i32 : i32
    %10 = arith.extui %9 : i1 to i32
    %c0_i32_8 = arith.constant 0 : i32
    %11 = arith.cmpi ne, %10, %c0_i32_8 : i32
    scf.if %11 {
      %c0_9 = arith.constant 0 : index
      %c0_10 = arith.constant 0 : index
      %12 = vector.load %arg8[%c0_9, %c0_10] : memref<128x128xf32, #tpu.memory_space<vmem>>, vector<128x128xf32>
      %13 = arith.truncf %12 : vector<128x128xf32> to vector<128x128xbf16>
      %c0_11 = arith.constant 0 : index
      %c0_12 = arith.constant 0 : index
      %14 = vector.load %arg5[%c0_11, %c0_12] : memref<128x128xbf16, #tpu.memory_space<vmem>>, vector<128x128xbf16>
      tpu.vector_store %arg5[%c0_11, %c0_12], %13 {strides = array<i32>} : memref<128x128xbf16, #tpu.memory_space<vmem>>, vector<128x128xbf16>,
      %cst_13 = arith.constant dense<0.000000e+00> : vector<128xf32>
      %15 = vector.multi_reduction <add>, %12, %cst_13 [0] : vector<128x128xf32> to vector<128xf32>
      %16 = vector.shape_cast %15 : vector<128xf32> to vector<1x128xf32>
      %17 = vector.shape_cast %16 : vector<1x128xf32> to vector<1x1x128xf32>
      %c0_14 = arith.constant 0 : index
      %c0_15 = arith.constant 0 : index
      %c0_16 = arith.constant 0 : index
      %18 = vector.load %arg6[%c0_14, %c0_15, %c0_16] : memref<1x1x128xf32, #tpu.memory_space<vmem>>, vector<1x1x128xf32>
      tpu.vector_store %arg6[%c0_14, %c0_15, %c0_16], %17 {strides = array<i32>} : memref<1x1x128xf32, #tpu.memory_space<vmem>>, vector<1x1x128xf32>,
      %19 = arith.mulf %12, %12 : vector<128x128xf32>
      %cst_17 = arith.constant dense<0.000000e+00> : vector<128xf32>
      %20 = vector.multi_reduction <add>, %19, %cst_17 [0] : vector<128x128xf32> to vector<128xf32>
      %21 = vector.shape_cast %20 : vector<128xf32> to vector<1x128xf32>
      %22 = vector.shape_cast %21 : vector<1x128xf32> to vector<1x1x128xf32>
      %c0_18 = arith.constant 0 : index
      %c0_19 = arith.constant 0 : index
      %c0_20 = arith.constant 0 : index
      %23 = vector.load %arg7[%c0_18, %c0_19, %c0_20] : memref<1x1x128xf32, #tpu.memory_space<vmem>>, vector<1x1x128xf32>
      tpu.vector_store %arg7[%c0_18, %c0_19, %c0_20], %22 {strides = array<i32>} : memref<1x1x128xf32, #tpu.memory_space<vmem>>, vector<1x1x128xf32>,
    } else {
    }
    return
  }
  func.func @transform_0(%arg0: i32, %arg1: i32, %arg2: i32) -> (i32, i32) {
    %c0_i32 = arith.constant 0 : i32
    return %arg0, %arg2 : i32, i32
  }
  func.func @transform_1(%arg0: i32, %arg1: i32, %arg2: i32) -> (i32, i32) {
    %c0_i32 = arith.constant 0 : i32
    return %arg2, %arg1 : i32, i32
  }
  func.func @transform_2(%arg0: i32, %arg1: i32, %arg2: i32) -> (i32, i32) {
    %c0_i32 = arith.constant 0 : i32
    return %arg0, %arg1 : i32, i32
  }
  func.func @transform_3(%arg0: i32, %arg1: i32, %arg2: i32) -> (i32, i32, i32) {
    %c0_i32 = arith.constant 0 : i32
    %c0_i32_0 = arith.constant 0 : i32
    return %arg0, %c0_i32, %arg1 : i32, i32, i32
  }
  func.func @transform_4(%arg0: i32, %arg1: i32, %arg2: i32) -> (i32, i32, i32) {
    %c0_i32 = arith.constant 0 : i32
    %c0_i32_0 = arith.constant 0 : i32
    return %arg0, %c0_i32, %arg1 : i32, i32, i32
  }
}

module attributes {stable_mosaic.version = 11 : i64} {
  func.func @_bn_apply_kernel(%arg0: i32, %arg1: memref<128x128xbf16, #tpu.memory_space<vmem>>, %arg2: memref<1x128xf32, #tpu.memory_space<vmem>>, %arg3: memref<1x128xf32, #tpu.memory_space<vmem>>, %arg4: memref<128x128xbf16, #tpu.memory_space<vmem>>) attributes {dimension_semantics = [#tpu.dimension_semantics<parallel>], iteration_bounds = array<i64: 1>, scalar_prefetch = 0 : i64, scratch_operands = 0 : i64, tpu.core_type = #tpu.core_type<tc>, window_params = [{transform_indices = @transform_0, window_bounds = array<i64: 128, 128>}, {pipeline_mode = #tpu.pipeline_mode<synchronous>, transform_indices = @transform_1, window_bounds = array<i64: 1, 128>}, {pipeline_mode = #tpu.pipeline_mode<synchronous>, transform_indices = @transform_2, window_bounds = array<i64: 1, 128>}, {transform_indices = @transform_3, window_bounds = array<i64: 128, 128>}]} {
    %c0 = arith.constant 0 : index
    %c0_0 = arith.constant 0 : index
    %0 = vector.load %arg1[%c0, %c0_0] : memref<128x128xbf16, #tpu.memory_space<vmem>>, vector<128x128xbf16>
    %1 = arith.extf %0 : vector<128x128xbf16> to vector<128x128xf32>
    %c0_1 = arith.constant 0 : index
    %c0_2 = arith.constant 0 : index
    %2 = vector.load %arg2[%c0_1, %c0_2] : memref<1x128xf32, #tpu.memory_space<vmem>>, vector<1x128xf32>
    %3 = vector.broadcast %2 : vector<1x128xf32> to vector<128x128xf32>
    %4 = arith.mulf %1, %3 : vector<128x128xf32>
    %c0_3 = arith.constant 0 : index
    %c0_4 = arith.constant 0 : index
    %5 = vector.load %arg3[%c0_3, %c0_4] : memref<1x128xf32, #tpu.memory_space<vmem>>, vector<1x128xf32>
    %6 = vector.broadcast %5 : vector<1x128xf32> to vector<128x128xf32>
    %7 = arith.addf %4, %6 : vector<128x128xf32>
    %cst = arith.constant 0.000000e+00 : f32
    %8 = vector.broadcast %cst : f32 to vector<128x128xf32>
    %9 = arith.maximumf %7, %8 : vector<128x128xf32>
    %10 = arith.truncf %9 : vector<128x128xf32> to vector<128x128xbf16>
    %c0_5 = arith.constant 0 : index
    %c0_6 = arith.constant 0 : index
    %11 = vector.load %arg4[%c0_5, %c0_6] : memref<128x128xbf16, #tpu.memory_space<vmem>>, vector<128x128xbf16>
    tpu.vector_store %arg4[%c0_5, %c0_6], %10 {strides = array<i32>} : memref<128x128xbf16, #tpu.memory_space<vmem>>, vector<128x128xbf16>,
    return
  }
  func.func @transform_0(%arg0: i32) -> (i32, i32) {
    %c0_i32 = arith.constant 0 : i32
    %c0_i32_0 = arith.constant 0 : i32
    return %arg0, %c0_i32 : i32, i32
  }
  func.func @transform_1(%arg0: i32) -> (i32, i32) {
    %c0_i32 = arith.constant 0 : i32
    %c0_i32_0 = arith.constant 0 : i32
    %c0_i32_1 = arith.constant 0 : i32
    return %c0_i32, %c0_i32_0 : i32, i32
  }
  func.func @transform_2(%arg0: i32) -> (i32, i32) {
    %c0_i32 = arith.constant 0 : i32
    %c0_i32_0 = arith.constant 0 : i32
    %c0_i32_1 = arith.constant 0 : i32
    return %c0_i32, %c0_i32_0 : i32, i32
  }
  func.func @transform_3(%arg0: i32) -> (i32, i32) {
    %c0_i32 = arith.constant 0 : i32
    %c0_i32_0 = arith.constant 0 : i32
    return %arg0, %c0_i32 : i32, i32
  }
}

module attributes {stable_mosaic.version = 11 : i64} {
  func.func @_bn_apply_kernel(%arg0: i32, %arg1: memref<128x128xbf16, #tpu.memory_space<vmem>>, %arg2: memref<1x128xf32, #tpu.memory_space<vmem>>, %arg3: memref<1x128xf32, #tpu.memory_space<vmem>>, %arg4: memref<128x128xbf16, #tpu.memory_space<vmem>>, %arg5: memref<128x128xbf16, #tpu.memory_space<vmem>>) attributes {dimension_semantics = [#tpu.dimension_semantics<parallel>], iteration_bounds = array<i64: 1>, scalar_prefetch = 0 : i64, scratch_operands = 0 : i64, tpu.core_type = #tpu.core_type<tc>, window_params = [{transform_indices = @transform_0, window_bounds = array<i64: 128, 128>}, {pipeline_mode = #tpu.pipeline_mode<synchronous>, transform_indices = @transform_1, window_bounds = array<i64: 1, 128>}, {pipeline_mode = #tpu.pipeline_mode<synchronous>, transform_indices = @transform_2, window_bounds = array<i64: 1, 128>}, {transform_indices = @transform_3, window_bounds = array<i64: 128, 128>}, {transform_indices = @transform_4, window_bounds = array<i64: 128, 128>}]} {
    %c0 = arith.constant 0 : index
    %c0_0 = arith.constant 0 : index
    %0 = vector.load %arg1[%c0, %c0_0] : memref<128x128xbf16, #tpu.memory_space<vmem>>, vector<128x128xbf16>
    %1 = arith.extf %0 : vector<128x128xbf16> to vector<128x128xf32>
    %c0_1 = arith.constant 0 : index
    %c0_2 = arith.constant 0 : index
    %2 = vector.load %arg2[%c0_1, %c0_2] : memref<1x128xf32, #tpu.memory_space<vmem>>, vector<1x128xf32>
    %3 = vector.broadcast %2 : vector<1x128xf32> to vector<128x128xf32>
    %4 = arith.mulf %1, %3 : vector<128x128xf32>
    %c0_3 = arith.constant 0 : index
    %c0_4 = arith.constant 0 : index
    %5 = vector.load %arg3[%c0_3, %c0_4] : memref<1x128xf32, #tpu.memory_space<vmem>>, vector<1x128xf32>
    %6 = vector.broadcast %5 : vector<1x128xf32> to vector<128x128xf32>
    %7 = arith.addf %4, %6 : vector<128x128xf32>
    %c0_5 = arith.constant 0 : index
    %c0_6 = arith.constant 0 : index
    %8 = vector.load %arg4[%c0_5, %c0_6] : memref<128x128xbf16, #tpu.memory_space<vmem>>, vector<128x128xbf16>
    %9 = arith.extf %8 : vector<128x128xbf16> to vector<128x128xf32>
    %10 = arith.addf %7, %9 : vector<128x128xf32>
    %cst = arith.constant 0.000000e+00 : f32
    %11 = vector.broadcast %cst : f32 to vector<128x128xf32>
    %12 = arith.maximumf %10, %11 : vector<128x128xf32>
    %13 = arith.truncf %12 : vector<128x128xf32> to vector<128x128xbf16>
    %c0_7 = arith.constant 0 : index
    %c0_8 = arith.constant 0 : index
    %14 = vector.load %arg5[%c0_7, %c0_8] : memref<128x128xbf16, #tpu.memory_space<vmem>>, vector<128x128xbf16>
    tpu.vector_store %arg5[%c0_7, %c0_8], %13 {strides = array<i32>} : memref<128x128xbf16, #tpu.memory_space<vmem>>, vector<128x128xbf16>,
    return
  }
  func.func @transform_0(%arg0: i32) -> (i32, i32) {
    %c0_i32 = arith.constant 0 : i32
    %c0_i32_0 = arith.constant 0 : i32
    return %arg0, %c0_i32 : i32, i32
  }
  func.func @transform_1(%arg0: i32) -> (i32, i32) {
    %c0_i32 = arith.constant 0 : i32
    %c0_i32_0 = arith.constant 0 : i32
    %c0_i32_1 = arith.constant 0 : i32
    return %c0_i32, %c0_i32_0 : i32, i32
  }
  func.func @transform_2(%arg0: i32) -> (i32, i32) {
    %c0_i32 = arith.constant 0 : i32
    %c0_i32_0 = arith.constant 0 : i32
    %c0_i32_1 = arith.constant 0 : i32
    return %c0_i32, %c0_i32_0 : i32, i32
  }
  func.func @transform_3(%arg0: i32) -> (i32, i32) {
    %c0_i32 = arith.constant 0 : i32
    %c0_i32_0 = arith.constant 0 : i32
    return %arg0, %c0_i32 : i32, i32
  }
  func.func @transform_4(%arg0: i32) -> (i32, i32) {
    %c0_i32 = arith.constant 0 : i32
    %c0_i32_0 = arith.constant 0 : i32
    return %arg0, %c0_i32 : i32, i32
  }
}

module attributes {stable_mosaic.version = 11 : i64} {
  func.func @_conv_gemm_kernel(%arg0: i32, %arg1: i32, %arg2: i32, %arg3: memref<32x128xbf16, #tpu.memory_space<vmem>>, %arg4: memref<128x128xbf16, #tpu.memory_space<vmem>>, %arg5: memref<32x128xbf16, #tpu.memory_space<vmem>>, %arg6: memref<1x1x128xf32, #tpu.memory_space<vmem>>, %arg7: memref<1x1x128xf32, #tpu.memory_space<vmem>>, %arg8: memref<32x128xf32, #tpu.memory_space<vmem>>) attributes {dimension_semantics = [#tpu.dimension_semantics<parallel>, #tpu.dimension_semantics<parallel>, #tpu.dimension_semantics<arbitrary>], iteration_bounds = array<i64: 1, 1, 1>, scalar_prefetch = 0 : i64, scratch_operands = 1 : i64, tpu.core_type = #tpu.core_type<tc>, window_params = [{transform_indices = @transform_0, window_bounds = array<i64: 32, 128>}, {transform_indices = @transform_1, window_bounds = array<i64: 128, 128>}, {transform_indices = @transform_2, window_bounds = array<i64: 32, 128>}, {transform_indices = @transform_3, window_bounds = array<i64: 1, 1, 128>}, {transform_indices = @transform_4, window_bounds = array<i64: 1, 1, 128>}]} {
    %c0_i32 = arith.constant 0 : i32
    %0 = arith.cmpi eq, %arg2, %c0_i32 : i32
    %1 = arith.extui %0 : i1 to i32
    %c0_i32_0 = arith.constant 0 : i32
    %2 = arith.cmpi ne, %1, %c0_i32_0 : i32
    scf.if %2 {
      %cst_10 = arith.constant 0.000000e+00 : f32
      %12 = vector.broadcast %cst_10 : f32 to vector<32x128xf32>
      %c0_11 = arith.constant 0 : index
      %c0_12 = arith.constant 0 : index
      %13 = vector.load %arg8[%c0_11, %c0_12] : memref<32x128xf32, #tpu.memory_space<vmem>>, vector<32x128xf32>
      tpu.vector_store %arg8[%c0_11, %c0_12], %12 {strides = array<i32>} : memref<32x128xf32, #tpu.memory_space<vmem>>, vector<32x128xf32>,
    } else {
    }
    %c0 = arith.constant 0 : index
    %c0_1 = arith.constant 0 : index
    %3 = vector.load %arg8[%c0, %c0_1] : memref<32x128xf32, #tpu.memory_space<vmem>>, vector<32x128xf32>
    %c0_2 = arith.constant 0 : index
    %c0_3 = arith.constant 0 : index
    %4 = vector.load %arg3[%c0_2, %c0_3] : memref<32x128xbf16, #tpu.memory_space<vmem>>, vector<32x128xbf16>
    %c0_4 = arith.constant 0 : index
    %c0_5 = arith.constant 0 : index
    %5 = vector.load %arg4[%c0_4, %c0_5] : memref<128x128xbf16, #tpu.memory_space<vmem>>, vector<128x128xbf16>
    %cst = arith.constant dense<0.000000e+00> : vector<32x128xf32>
    %6 = tpu.matmul %4, %5, %cst {dimension_numbers = #tpu.dot_dimension_numbers<[1], [0], [0], [1], [0, 0, 1, 1], [], []>} : vector<32x128xbf16>, vector<128x128xbf16>, vector<32x128xf32> -> vector<32x128xf32>
    %7 = arith.addf %3, %6 : vector<32x128xf32>
    %c0_6 = arith.constant 0 : index
    %c0_7 = arith.constant 0 : index
    %8 = vector.load %arg8[%c0_6, %c0_7] : memref<32x128xf32, #tpu.memory_space<vmem>>, vector<32x128xf32>
    tpu.vector_store %arg8[%c0_6, %c0_7], %7 {strides = array<i32>} : memref<32x128xf32, #tpu.memory_space<vmem>>, vector<32x128xf32>,
    %c0_i32_8 = arith.constant 0 : i32
    %9 = arith.cmpi eq, %arg2, %c0_i32_8 : i32
    %10 = arith.extui %9 : i1 to i32
    %c0_i32_9 = arith.constant 0 : i32
    %11 = arith.cmpi ne, %10, %c0_i32_9 : i32
    scf.if %11 {
      %c0_10 = arith.constant 0 : index
      %c0_11 = arith.constant 0 : index
      %12 = vector.load %arg8[%c0_10, %c0_11] : memref<32x128xf32, #tpu.memory_space<vmem>>, vector<32x128xf32>
      %13 = arith.truncf %12 : vector<32x128xf32> to vector<32x128xbf16>
      %c0_12 = arith.constant 0 : index
      %c0_13 = arith.constant 0 : index
      %14 = vector.load %arg5[%c0_12, %c0_13] : memref<32x128xbf16, #tpu.memory_space<vmem>>, vector<32x128xbf16>
      tpu.vector_store %arg5[%c0_12, %c0_13], %13 {strides = array<i32>} : memref<32x128xbf16, #tpu.memory_space<vmem>>, vector<32x128xbf16>,
      %cst_14 = arith.constant dense<0.000000e+00> : vector<128xf32>
      %15 = vector.multi_reduction <add>, %12, %cst_14 [0] : vector<32x128xf32> to vector<128xf32>
      %16 = vector.shape_cast %15 : vector<128xf32> to vector<1x128xf32>
      %17 = vector.shape_cast %16 : vector<1x128xf32> to vector<1x1x128xf32>
      %c0_15 = arith.constant 0 : index
      %c0_16 = arith.constant 0 : index
      %c0_17 = arith.constant 0 : index
      %18 = vector.load %arg6[%c0_15, %c0_16, %c0_17] : memref<1x1x128xf32, #tpu.memory_space<vmem>>, vector<1x1x128xf32>
      tpu.vector_store %arg6[%c0_15, %c0_16, %c0_17], %17 {strides = array<i32>} : memref<1x1x128xf32, #tpu.memory_space<vmem>>, vector<1x1x128xf32>,
      %19 = arith.mulf %12, %12 : vector<32x128xf32>
      %cst_18 = arith.constant dense<0.000000e+00> : vector<128xf32>
      %20 = vector.multi_reduction <add>, %19, %cst_18 [0] : vector<32x128xf32> to vector<128xf32>
      %21 = vector.shape_cast %20 : vector<128xf32> to vector<1x128xf32>
      %22 = vector.shape_cast %21 : vector<1x128xf32> to vector<1x1x128xf32>
      %c0_19 = arith.constant 0 : index
      %c0_20 = arith.constant 0 : index
      %c0_21 = arith.constant 0 : index
      %23 = vector.load %arg7[%c0_19, %c0_20, %c0_21] : memref<1x1x128xf32, #tpu.memory_space<vmem>>, vector<1x1x128xf32>
      tpu.vector_store %arg7[%c0_19, %c0_20, %c0_21], %22 {strides = array<i32>} : memref<1x1x128xf32, #tpu.memory_space<vmem>>, vector<1x1x128xf32>,
    } else {
    }
    return
  }
  func.func @transform_0(%arg0: i32, %arg1: i32, %arg2: i32) -> (i32, i32) {
    %c0_i32 = arith.constant 0 : i32
    return %arg0, %arg2 : i32, i32
  }
  func.func @transform_1(%arg0: i32, %arg1: i32, %arg2: i32) -> (i32, i32) {
    %c0_i32 = arith.constant 0 : i32
    return %arg2, %arg1 : i32, i32
  }
  func.func @transform_2(%arg0: i32, %arg1: i32, %arg2: i32) -> (i32, i32) {
    %c0_i32 = arith.constant 0 : i32
    return %arg0, %arg1 : i32, i32
  }
  func.func @transform_3(%arg0: i32, %arg1: i32, %arg2: i32) -> (i32, i32, i32) {
    %c0_i32 = arith.constant 0 : i32
    %c0_i32_0 = arith.constant 0 : i32
    return %arg0, %c0_i32, %arg1 : i32, i32, i32
  }
  func.func @transform_4(%arg0: i32, %arg1: i32, %arg2: i32) -> (i32, i32, i32) {
    %c0_i32 = arith.constant 0 : i32
    %c0_i32_0 = arith.constant 0 : i32
    return %arg0, %c0_i32, %arg1 : i32, i32, i32
  }
}

module attributes {stable_mosaic.version = 11 : i64} {
  func.func @_bn_apply_kernel(%arg0: i32, %arg1: memref<32x128xbf16, #tpu.memory_space<vmem>>, %arg2: memref<1x128xf32, #tpu.memory_space<vmem>>, %arg3: memref<1x128xf32, #tpu.memory_space<vmem>>, %arg4: memref<32x128xbf16, #tpu.memory_space<vmem>>) attributes {dimension_semantics = [#tpu.dimension_semantics<parallel>], iteration_bounds = array<i64: 1>, scalar_prefetch = 0 : i64, scratch_operands = 0 : i64, tpu.core_type = #tpu.core_type<tc>, window_params = [{transform_indices = @transform_0, window_bounds = array<i64: 32, 128>}, {pipeline_mode = #tpu.pipeline_mode<synchronous>, transform_indices = @transform_1, window_bounds = array<i64: 1, 128>}, {pipeline_mode = #tpu.pipeline_mode<synchronous>, transform_indices = @transform_2, window_bounds = array<i64: 1, 128>}, {transform_indices = @transform_3, window_bounds = array<i64: 32, 128>}]} {
    %c0 = arith.constant 0 : index
    %c0_0 = arith.constant 0 : index
    %0 = vector.load %arg1[%c0, %c0_0] : memref<32x128xbf16, #tpu.memory_space<vmem>>, vector<32x128xbf16>
    %1 = arith.extf %0 : vector<32x128xbf16> to vector<32x128xf32>
    %c0_1 = arith.constant 0 : index
    %c0_2 = arith.constant 0 : index
    %2 = vector.load %arg2[%c0_1, %c0_2] : memref<1x128xf32, #tpu.memory_space<vmem>>, vector<1x128xf32>
    %3 = vector.broadcast %2 : vector<1x128xf32> to vector<32x128xf32>
    %4 = arith.mulf %1, %3 : vector<32x128xf32>
    %c0_3 = arith.constant 0 : index
    %c0_4 = arith.constant 0 : index
    %5 = vector.load %arg3[%c0_3, %c0_4] : memref<1x128xf32, #tpu.memory_space<vmem>>, vector<1x128xf32>
    %6 = vector.broadcast %5 : vector<1x128xf32> to vector<32x128xf32>
    %7 = arith.addf %4, %6 : vector<32x128xf32>
    %8 = arith.truncf %7 : vector<32x128xf32> to vector<32x128xbf16>
    %c0_5 = arith.constant 0 : index
    %c0_6 = arith.constant 0 : index
    %9 = vector.load %arg4[%c0_5, %c0_6] : memref<32x128xbf16, #tpu.memory_space<vmem>>, vector<32x128xbf16>
    tpu.vector_store %arg4[%c0_5, %c0_6], %8 {strides = array<i32>} : memref<32x128xbf16, #tpu.memory_space<vmem>>, vector<32x128xbf16>,
    return
  }
  func.func @transform_0(%arg0: i32) -> (i32, i32) {
    %c0_i32 = arith.constant 0 : i32
    %c0_i32_0 = arith.constant 0 : i32
    return %arg0, %c0_i32 : i32, i32
  }
  func.func @transform_1(%arg0: i32) -> (i32, i32) {
    %c0_i32 = arith.constant 0 : i32
    %c0_i32_0 = arith.constant 0 : i32
    %c0_i32_1 = arith.constant 0 : i32
    return %c0_i32, %c0_i32_0 : i32, i32
  }
  func.func @transform_2(%arg0: i32) -> (i32, i32) {
    %c0_i32 = arith.constant 0 : i32
    %c0_i32_0 = arith.constant 0 : i32
    %c0_i32_1 = arith.constant 0 : i32
    return %c0_i32, %c0_i32_0 : i32, i32
  }
  func.func @transform_3(%arg0: i32) -> (i32, i32) {
    %c0_i32 = arith.constant 0 : i32
    %c0_i32_0 = arith.constant 0 : i32
    return %arg0, %c0_i32 : i32, i32
  }
}

module attributes {stable_mosaic.version = 11 : i64} {
  func.func @_bn_apply_kernel(%arg0: i32, %arg1: memref<32x128xbf16, #tpu.memory_space<vmem>>, %arg2: memref<1x128xf32, #tpu.memory_space<vmem>>, %arg3: memref<1x128xf32, #tpu.memory_space<vmem>>, %arg4: memref<32x128xbf16, #tpu.memory_space<vmem>>) attributes {dimension_semantics = [#tpu.dimension_semantics<parallel>], iteration_bounds = array<i64: 1>, scalar_prefetch = 0 : i64, scratch_operands = 0 : i64, tpu.core_type = #tpu.core_type<tc>, window_params = [{transform_indices = @transform_0, window_bounds = array<i64: 32, 128>}, {pipeline_mode = #tpu.pipeline_mode<synchronous>, transform_indices = @transform_1, window_bounds = array<i64: 1, 128>}, {pipeline_mode = #tpu.pipeline_mode<synchronous>, transform_indices = @transform_2, window_bounds = array<i64: 1, 128>}, {transform_indices = @transform_3, window_bounds = array<i64: 32, 128>}]} {
    %c0 = arith.constant 0 : index
    %c0_0 = arith.constant 0 : index
    %0 = vector.load %arg1[%c0, %c0_0] : memref<32x128xbf16, #tpu.memory_space<vmem>>, vector<32x128xbf16>
    %1 = arith.extf %0 : vector<32x128xbf16> to vector<32x128xf32>
    %c0_1 = arith.constant 0 : index
    %c0_2 = arith.constant 0 : index
    %2 = vector.load %arg2[%c0_1, %c0_2] : memref<1x128xf32, #tpu.memory_space<vmem>>, vector<1x128xf32>
    %3 = vector.broadcast %2 : vector<1x128xf32> to vector<32x128xf32>
    %4 = arith.mulf %1, %3 : vector<32x128xf32>
    %c0_3 = arith.constant 0 : index
    %c0_4 = arith.constant 0 : index
    %5 = vector.load %arg3[%c0_3, %c0_4] : memref<1x128xf32, #tpu.memory_space<vmem>>, vector<1x128xf32>
    %6 = vector.broadcast %5 : vector<1x128xf32> to vector<32x128xf32>
    %7 = arith.addf %4, %6 : vector<32x128xf32>
    %cst = arith.constant 0.000000e+00 : f32
    %8 = vector.broadcast %cst : f32 to vector<32x128xf32>
    %9 = arith.maximumf %7, %8 : vector<32x128xf32>
    %10 = arith.truncf %9 : vector<32x128xf32> to vector<32x128xbf16>
    %c0_5 = arith.constant 0 : index
    %c0_6 = arith.constant 0 : index
    %11 = vector.load %arg4[%c0_5, %c0_6] : memref<32x128xbf16, #tpu.memory_space<vmem>>, vector<32x128xbf16>
    tpu.vector_store %arg4[%c0_5, %c0_6], %10 {strides = array<i32>} : memref<32x128xbf16, #tpu.memory_space<vmem>>, vector<32x128xbf16>,
    return
  }
  func.func @transform_0(%arg0: i32) -> (i32, i32) {
    %c0_i32 = arith.constant 0 : i32
    %c0_i32_0 = arith.constant 0 : i32
    return %arg0, %c0_i32 : i32, i32
  }
  func.func @transform_1(%arg0: i32) -> (i32, i32) {
    %c0_i32 = arith.constant 0 : i32
    %c0_i32_0 = arith.constant 0 : i32
    %c0_i32_1 = arith.constant 0 : i32
    return %c0_i32, %c0_i32_0 : i32, i32
  }
  func.func @transform_2(%arg0: i32) -> (i32, i32) {
    %c0_i32 = arith.constant 0 : i32
    %c0_i32_0 = arith.constant 0 : i32
    %c0_i32_1 = arith.constant 0 : i32
    return %c0_i32, %c0_i32_0 : i32, i32
  }
  func.func @transform_3(%arg0: i32) -> (i32, i32) {
    %c0_i32 = arith.constant 0 : i32
    %c0_i32_0 = arith.constant 0 : i32
    return %arg0, %c0_i32 : i32, i32
  }
}

module attributes {stable_mosaic.version = 11 : i64} {
  func.func @_conv_gemm_kernel(%arg0: i32, %arg1: i32, %arg2: i32, %arg3: memref<32x128xbf16, #tpu.memory_space<vmem>>, %arg4: memref<128x128xbf16, #tpu.memory_space<vmem>>, %arg5: memref<32x128xbf16, #tpu.memory_space<vmem>>, %arg6: memref<1x1x128xf32, #tpu.memory_space<vmem>>, %arg7: memref<1x1x128xf32, #tpu.memory_space<vmem>>, %arg8: memref<32x128xf32, #tpu.memory_space<vmem>>) attributes {dimension_semantics = [#tpu.dimension_semantics<parallel>, #tpu.dimension_semantics<parallel>, #tpu.dimension_semantics<arbitrary>], iteration_bounds = array<i64: 1, 1, 5>, scalar_prefetch = 0 : i64, scratch_operands = 1 : i64, tpu.core_type = #tpu.core_type<tc>, window_params = [{transform_indices = @transform_0, window_bounds = array<i64: 32, 128>}, {transform_indices = @transform_1, window_bounds = array<i64: 128, 128>}, {transform_indices = @transform_2, window_bounds = array<i64: 32, 128>}, {transform_indices = @transform_3, window_bounds = array<i64: 1, 1, 128>}, {transform_indices = @transform_4, window_bounds = array<i64: 1, 1, 128>}]} {
    %c0_i32 = arith.constant 0 : i32
    %0 = arith.cmpi eq, %arg2, %c0_i32 : i32
    %1 = arith.extui %0 : i1 to i32
    %c0_i32_0 = arith.constant 0 : i32
    %2 = arith.cmpi ne, %1, %c0_i32_0 : i32
    scf.if %2 {
      %cst_9 = arith.constant 0.000000e+00 : f32
      %12 = vector.broadcast %cst_9 : f32 to vector<32x128xf32>
      %c0_10 = arith.constant 0 : index
      %c0_11 = arith.constant 0 : index
      %13 = vector.load %arg8[%c0_10, %c0_11] : memref<32x128xf32, #tpu.memory_space<vmem>>, vector<32x128xf32>
      tpu.vector_store %arg8[%c0_10, %c0_11], %12 {strides = array<i32>} : memref<32x128xf32, #tpu.memory_space<vmem>>, vector<32x128xf32>,
    } else {
    }
    %c0 = arith.constant 0 : index
    %c0_1 = arith.constant 0 : index
    %3 = vector.load %arg8[%c0, %c0_1] : memref<32x128xf32, #tpu.memory_space<vmem>>, vector<32x128xf32>
    %c0_2 = arith.constant 0 : index
    %c0_3 = arith.constant 0 : index
    %4 = vector.load %arg3[%c0_2, %c0_3] : memref<32x128xbf16, #tpu.memory_space<vmem>>, vector<32x128xbf16>
    %c0_4 = arith.constant 0 : index
    %c0_5 = arith.constant 0 : index
    %5 = vector.load %arg4[%c0_4, %c0_5] : memref<128x128xbf16, #tpu.memory_space<vmem>>, vector<128x128xbf16>
    %cst = arith.constant dense<0.000000e+00> : vector<32x128xf32>
    %6 = tpu.matmul %4, %5, %cst {dimension_numbers = #tpu.dot_dimension_numbers<[1], [0], [0], [1], [0, 0, 1, 1], [], []>} : vector<32x128xbf16>, vector<128x128xbf16>, vector<32x128xf32> -> vector<32x128xf32>
    %7 = arith.addf %3, %6 : vector<32x128xf32>
    %c0_6 = arith.constant 0 : index
    %c0_7 = arith.constant 0 : index
    %8 = vector.load %arg8[%c0_6, %c0_7] : memref<32x128xf32, #tpu.memory_space<vmem>>, vector<32x128xf32>
    tpu.vector_store %arg8[%c0_6, %c0_7], %7 {strides = array<i32>} : memref<32x128xf32, #tpu.memory_space<vmem>>, vector<32x128xf32>,
    %c4_i32 = arith.constant 4 : i32
    %9 = arith.cmpi eq, %arg2, %c4_i32 : i32
    %10 = arith.extui %9 : i1 to i32
    %c0_i32_8 = arith.constant 0 : i32
    %11 = arith.cmpi ne, %10, %c0_i32_8 : i32
    scf.if %11 {
      %c0_9 = arith.constant 0 : index
      %c0_10 = arith.constant 0 : index
      %12 = vector.load %arg8[%c0_9, %c0_10] : memref<32x128xf32, #tpu.memory_space<vmem>>, vector<32x128xf32>
      %13 = arith.truncf %12 : vector<32x128xf32> to vector<32x128xbf16>
      %c0_11 = arith.constant 0 : index
      %c0_12 = arith.constant 0 : index
      %14 = vector.load %arg5[%c0_11, %c0_12] : memref<32x128xbf16, #tpu.memory_space<vmem>>, vector<32x128xbf16>
      tpu.vector_store %arg5[%c0_11, %c0_12], %13 {strides = array<i32>} : memref<32x128xbf16, #tpu.memory_space<vmem>>, vector<32x128xbf16>,
      %cst_13 = arith.constant dense<0.000000e+00> : vector<128xf32>
      %15 = vector.multi_reduction <add>, %12, %cst_13 [0] : vector<32x128xf32> to vector<128xf32>
      %16 = vector.shape_cast %15 : vector<128xf32> to vector<1x128xf32>
      %17 = vector.shape_cast %16 : vector<1x128xf32> to vector<1x1x128xf32>
      %c0_14 = arith.constant 0 : index
      %c0_15 = arith.constant 0 : index
      %c0_16 = arith.constant 0 : index
      %18 = vector.load %arg6[%c0_14, %c0_15, %c0_16] : memref<1x1x128xf32, #tpu.memory_space<vmem>>, vector<1x1x128xf32>
      tpu.vector_store %arg6[%c0_14, %c0_15, %c0_16], %17 {strides = array<i32>} : memref<1x1x128xf32, #tpu.memory_space<vmem>>, vector<1x1x128xf32>,
      %19 = arith.mulf %12, %12 : vector<32x128xf32>
      %cst_17 = arith.constant dense<0.000000e+00> : vector<128xf32>
      %20 = vector.multi_reduction <add>, %19, %cst_17 [0] : vector<32x128xf32> to vector<128xf32>
      %21 = vector.shape_cast %20 : vector<128xf32> to vector<1x128xf32>
      %22 = vector.shape_cast %21 : vector<1x128xf32> to vector<1x1x128xf32>
      %c0_18 = arith.constant 0 : index
      %c0_19 = arith.constant 0 : index
      %c0_20 = arith.constant 0 : index
      %23 = vector.load %arg7[%c0_18, %c0_19, %c0_20] : memref<1x1x128xf32, #tpu.memory_space<vmem>>, vector<1x1x128xf32>
      tpu.vector_store %arg7[%c0_18, %c0_19, %c0_20], %22 {strides = array<i32>} : memref<1x1x128xf32, #tpu.memory_space<vmem>>, vector<1x1x128xf32>,
    } else {
    }
    return
  }
  func.func @transform_0(%arg0: i32, %arg1: i32, %arg2: i32) -> (i32, i32) {
    %c0_i32 = arith.constant 0 : i32
    return %arg0, %arg2 : i32, i32
  }
  func.func @transform_1(%arg0: i32, %arg1: i32, %arg2: i32) -> (i32, i32) {
    %c0_i32 = arith.constant 0 : i32
    return %arg2, %arg1 : i32, i32
  }
  func.func @transform_2(%arg0: i32, %arg1: i32, %arg2: i32) -> (i32, i32) {
    %c0_i32 = arith.constant 0 : i32
    return %arg0, %arg1 : i32, i32
  }
  func.func @transform_3(%arg0: i32, %arg1: i32, %arg2: i32) -> (i32, i32, i32) {
    %c0_i32 = arith.constant 0 : i32
    %c0_i32_0 = arith.constant 0 : i32
    return %arg0, %c0_i32, %arg1 : i32, i32, i32
  }
  func.func @transform_4(%arg0: i32, %arg1: i32, %arg2: i32) -> (i32, i32, i32) {
    %c0_i32 = arith.constant 0 : i32
    %c0_i32_0 = arith.constant 0 : i32
    return %arg0, %c0_i32, %arg1 : i32, i32, i32
  }
}

module attributes {stable_mosaic.version = 11 : i64} {
  func.func @_conv_gemm_kernel(%arg0: i32, %arg1: i32, %arg2: i32, %arg3: memref<32x128xbf16, #tpu.memory_space<vmem>>, %arg4: memref<128x128xbf16, #tpu.memory_space<vmem>>, %arg5: memref<32x128xbf16, #tpu.memory_space<vmem>>, %arg6: memref<1x1x128xf32, #tpu.memory_space<vmem>>, %arg7: memref<1x1x128xf32, #tpu.memory_space<vmem>>, %arg8: memref<32x128xf32, #tpu.memory_space<vmem>>) attributes {dimension_semantics = [#tpu.dimension_semantics<parallel>, #tpu.dimension_semantics<parallel>, #tpu.dimension_semantics<arbitrary>], iteration_bounds = array<i64: 1, 1, 9>, scalar_prefetch = 0 : i64, scratch_operands = 1 : i64, tpu.core_type = #tpu.core_type<tc>, window_params = [{transform_indices = @transform_0, window_bounds = array<i64: 32, 128>}, {transform_indices = @transform_1, window_bounds = array<i64: 128, 128>}, {transform_indices = @transform_2, window_bounds = array<i64: 32, 128>}, {transform_indices = @transform_3, window_bounds = array<i64: 1, 1, 128>}, {transform_indices = @transform_4, window_bounds = array<i64: 1, 1, 128>}]} {
    %c0_i32 = arith.constant 0 : i32
    %0 = arith.cmpi eq, %arg2, %c0_i32 : i32
    %1 = arith.extui %0 : i1 to i32
    %c0_i32_0 = arith.constant 0 : i32
    %2 = arith.cmpi ne, %1, %c0_i32_0 : i32
    scf.if %2 {
      %cst_9 = arith.constant 0.000000e+00 : f32
      %12 = vector.broadcast %cst_9 : f32 to vector<32x128xf32>
      %c0_10 = arith.constant 0 : index
      %c0_11 = arith.constant 0 : index
      %13 = vector.load %arg8[%c0_10, %c0_11] : memref<32x128xf32, #tpu.memory_space<vmem>>, vector<32x128xf32>
      tpu.vector_store %arg8[%c0_10, %c0_11], %12 {strides = array<i32>} : memref<32x128xf32, #tpu.memory_space<vmem>>, vector<32x128xf32>,
    } else {
    }
    %c0 = arith.constant 0 : index
    %c0_1 = arith.constant 0 : index
    %3 = vector.load %arg8[%c0, %c0_1] : memref<32x128xf32, #tpu.memory_space<vmem>>, vector<32x128xf32>
    %c0_2 = arith.constant 0 : index
    %c0_3 = arith.constant 0 : index
    %4 = vector.load %arg3[%c0_2, %c0_3] : memref<32x128xbf16, #tpu.memory_space<vmem>>, vector<32x128xbf16>
    %c0_4 = arith.constant 0 : index
    %c0_5 = arith.constant 0 : index
    %5 = vector.load %arg4[%c0_4, %c0_5] : memref<128x128xbf16, #tpu.memory_space<vmem>>, vector<128x128xbf16>
    %cst = arith.constant dense<0.000000e+00> : vector<32x128xf32>
    %6 = tpu.matmul %4, %5, %cst {dimension_numbers = #tpu.dot_dimension_numbers<[1], [0], [0], [1], [0, 0, 1, 1], [], []>} : vector<32x128xbf16>, vector<128x128xbf16>, vector<32x128xf32> -> vector<32x128xf32>
    %7 = arith.addf %3, %6 : vector<32x128xf32>
    %c0_6 = arith.constant 0 : index
    %c0_7 = arith.constant 0 : index
    %8 = vector.load %arg8[%c0_6, %c0_7] : memref<32x128xf32, #tpu.memory_space<vmem>>, vector<32x128xf32>
    tpu.vector_store %arg8[%c0_6, %c0_7], %7 {strides = array<i32>} : memref<32x128xf32, #tpu.memory_space<vmem>>, vector<32x128xf32>,
    %c8_i32 = arith.constant 8 : i32
    %9 = arith.cmpi eq, %arg2, %c8_i32 : i32
    %10 = arith.extui %9 : i1 to i32
    %c0_i32_8 = arith.constant 0 : i32
    %11 = arith.cmpi ne, %10, %c0_i32_8 : i32
    scf.if %11 {
      %c0_9 = arith.constant 0 : index
      %c0_10 = arith.constant 0 : index
      %12 = vector.load %arg8[%c0_9, %c0_10] : memref<32x128xf32, #tpu.memory_space<vmem>>, vector<32x128xf32>
      %13 = arith.truncf %12 : vector<32x128xf32> to vector<32x128xbf16>
      %c0_11 = arith.constant 0 : index
      %c0_12 = arith.constant 0 : index
      %14 = vector.load %arg5[%c0_11, %c0_12] : memref<32x128xbf16, #tpu.memory_space<vmem>>, vector<32x128xbf16>
      tpu.vector_store %arg5[%c0_11, %c0_12], %13 {strides = array<i32>} : memref<32x128xbf16, #tpu.memory_space<vmem>>, vector<32x128xbf16>,
      %cst_13 = arith.constant dense<0.000000e+00> : vector<128xf32>
      %15 = vector.multi_reduction <add>, %12, %cst_13 [0] : vector<32x128xf32> to vector<128xf32>
      %16 = vector.shape_cast %15 : vector<128xf32> to vector<1x128xf32>
      %17 = vector.shape_cast %16 : vector<1x128xf32> to vector<1x1x128xf32>
      %c0_14 = arith.constant 0 : index
      %c0_15 = arith.constant 0 : index
      %c0_16 = arith.constant 0 : index
      %18 = vector.load %arg6[%c0_14, %c0_15, %c0_16] : memref<1x1x128xf32, #tpu.memory_space<vmem>>, vector<1x1x128xf32>
      tpu.vector_store %arg6[%c0_14, %c0_15, %c0_16], %17 {strides = array<i32>} : memref<1x1x128xf32, #tpu.memory_space<vmem>>, vector<1x1x128xf32>,
      %19 = arith.mulf %12, %12 : vector<32x128xf32>
      %cst_17 = arith.constant dense<0.000000e+00> : vector<128xf32>
      %20 = vector.multi_reduction <add>, %19, %cst_17 [0] : vector<32x128xf32> to vector<128xf32>
      %21 = vector.shape_cast %20 : vector<128xf32> to vector<1x128xf32>
      %22 = vector.shape_cast %21 : vector<1x128xf32> to vector<1x1x128xf32>
      %c0_18 = arith.constant 0 : index
      %c0_19 = arith.constant 0 : index
      %c0_20 = arith.constant 0 : index
      %23 = vector.load %arg7[%c0_18, %c0_19, %c0_20] : memref<1x1x128xf32, #tpu.memory_space<vmem>>, vector<1x1x128xf32>
      tpu.vector_store %arg7[%c0_18, %c0_19, %c0_20], %22 {strides = array<i32>} : memref<1x1x128xf32, #tpu.memory_space<vmem>>, vector<1x1x128xf32>,
    } else {
    }
    return
  }
  func.func @transform_0(%arg0: i32, %arg1: i32, %arg2: i32) -> (i32, i32) {
    %c0_i32 = arith.constant 0 : i32
    return %arg0, %arg2 : i32, i32
  }
  func.func @transform_1(%arg0: i32, %arg1: i32, %arg2: i32) -> (i32, i32) {
    %c0_i32 = arith.constant 0 : i32
    return %arg2, %arg1 : i32, i32
  }
  func.func @transform_2(%arg0: i32, %arg1: i32, %arg2: i32) -> (i32, i32) {
    %c0_i32 = arith.constant 0 : i32
    return %arg0, %arg1 : i32, i32
  }
  func.func @transform_3(%arg0: i32, %arg1: i32, %arg2: i32) -> (i32, i32, i32) {
    %c0_i32 = arith.constant 0 : i32
    %c0_i32_0 = arith.constant 0 : i32
    return %arg0, %c0_i32, %arg1 : i32, i32, i32
  }
  func.func @transform_4(%arg0: i32, %arg1: i32, %arg2: i32) -> (i32, i32, i32) {
    %c0_i32 = arith.constant 0 : i32
    %c0_i32_0 = arith.constant 0 : i32
    return %arg0, %c0_i32, %arg1 : i32, i32, i32
  }
}

module attributes {stable_mosaic.version = 11 : i64} {
  func.func @_bn_apply_kernel(%arg0: i32, %arg1: memref<32x128xbf16, #tpu.memory_space<vmem>>, %arg2: memref<1x128xf32, #tpu.memory_space<vmem>>, %arg3: memref<1x128xf32, #tpu.memory_space<vmem>>, %arg4: memref<32x128xbf16, #tpu.memory_space<vmem>>, %arg5: memref<32x128xbf16, #tpu.memory_space<vmem>>) attributes {dimension_semantics = [#tpu.dimension_semantics<parallel>], iteration_bounds = array<i64: 1>, scalar_prefetch = 0 : i64, scratch_operands = 0 : i64, tpu.core_type = #tpu.core_type<tc>, window_params = [{transform_indices = @transform_0, window_bounds = array<i64: 32, 128>}, {pipeline_mode = #tpu.pipeline_mode<synchronous>, transform_indices = @transform_1, window_bounds = array<i64: 1, 128>}, {pipeline_mode = #tpu.pipeline_mode<synchronous>, transform_indices = @transform_2, window_bounds = array<i64: 1, 128>}, {transform_indices = @transform_3, window_bounds = array<i64: 32, 128>}, {transform_indices = @transform_4, window_bounds = array<i64: 32, 128>}]} {
    %c0 = arith.constant 0 : index
    %c0_0 = arith.constant 0 : index
    %0 = vector.load %arg1[%c0, %c0_0] : memref<32x128xbf16, #tpu.memory_space<vmem>>, vector<32x128xbf16>
    %1 = arith.extf %0 : vector<32x128xbf16> to vector<32x128xf32>
    %c0_1 = arith.constant 0 : index
    %c0_2 = arith.constant 0 : index
    %2 = vector.load %arg2[%c0_1, %c0_2] : memref<1x128xf32, #tpu.memory_space<vmem>>, vector<1x128xf32>
    %3 = vector.broadcast %2 : vector<1x128xf32> to vector<32x128xf32>
    %4 = arith.mulf %1, %3 : vector<32x128xf32>
    %c0_3 = arith.constant 0 : index
    %c0_4 = arith.constant 0 : index
    %5 = vector.load %arg3[%c0_3, %c0_4] : memref<1x128xf32, #tpu.memory_space<vmem>>, vector<1x128xf32>
    %6 = vector.broadcast %5 : vector<1x128xf32> to vector<32x128xf32>
    %7 = arith.addf %4, %6 : vector<32x128xf32>
    %c0_5 = arith.constant 0 : index
    %c0_6 = arith.constant 0 : index
    %8 = vector.load %arg4[%c0_5, %c0_6] : memref<32x128xbf16, #tpu.memory_space<vmem>>, vector<32x128xbf16>
    %9 = arith.extf %8 : vector<32x128xbf16> to vector<32x128xf32>
    %10 = arith.addf %7, %9 : vector<32x128xf32>
    %cst = arith.constant 0.000000e+00 : f32
    %11 = vector.broadcast %cst : f32 to vector<32x128xf32>
    %12 = arith.maximumf %10, %11 : vector<32x128xf32>
    %13 = arith.truncf %12 : vector<32x128xf32> to vector<32x128xbf16>
    %c0_7 = arith.constant 0 : index
    %c0_8 = arith.constant 0 : index
    %14 = vector.load %arg5[%c0_7, %c0_8] : memref<32x128xbf16, #tpu.memory_space<vmem>>, vector<32x128xbf16>
    tpu.vector_store %arg5[%c0_7, %c0_8], %13 {strides = array<i32>} : memref<32x128xbf16, #tpu.memory_space<vmem>>, vector<32x128xbf16>,
    return
  }
  func.func @transform_0(%arg0: i32) -> (i32, i32) {
    %c0_i32 = arith.constant 0 : i32
    %c0_i32_0 = arith.constant 0 : i32
    return %arg0, %c0_i32 : i32, i32
  }
  func.func @transform_1(%arg0: i32) -> (i32, i32) {
    %c0_i32 = arith.constant 0 : i32
    %c0_i32_0 = arith.constant 0 : i32
    %c0_i32_1 = arith.constant 0 : i32
    return %c0_i32, %c0_i32_0 : i32, i32
  }
  func.func @transform_2(%arg0: i32) -> (i32, i32) {
    %c0_i32 = arith.constant 0 : i32
    %c0_i32_0 = arith.constant 0 : i32
    %c0_i32_1 = arith.constant 0 : i32
    return %c0_i32, %c0_i32_0 : i32, i32
  }
  func.func @transform_3(%arg0: i32) -> (i32, i32) {
    %c0_i32 = arith.constant 0 : i32
    %c0_i32_0 = arith.constant 0 : i32
    return %arg0, %c0_i32 : i32, i32
  }
  func.func @transform_4(%arg0: i32) -> (i32, i32) {
    %c0_i32 = arith.constant 0 : i32
    %c0_i32_0 = arith.constant 0 : i32
    return %arg0, %c0_i32 : i32, i32
  }
}

module attributes {stable_mosaic.version = 11 : i64} {
  func.func @_bn_apply_kernel(%arg0: i32, %arg1: memref<8x256xbf16, #tpu.memory_space<vmem>>, %arg2: memref<1x256xf32, #tpu.memory_space<vmem>>, %arg3: memref<1x256xf32, #tpu.memory_space<vmem>>, %arg4: memref<8x256xbf16, #tpu.memory_space<vmem>>) attributes {dimension_semantics = [#tpu.dimension_semantics<parallel>], iteration_bounds = array<i64: 1>, scalar_prefetch = 0 : i64, scratch_operands = 0 : i64, tpu.core_type = #tpu.core_type<tc>, window_params = [{transform_indices = @transform_0, window_bounds = array<i64: 8, 256>}, {pipeline_mode = #tpu.pipeline_mode<synchronous>, transform_indices = @transform_1, window_bounds = array<i64: 1, 256>}, {pipeline_mode = #tpu.pipeline_mode<synchronous>, transform_indices = @transform_2, window_bounds = array<i64: 1, 256>}, {transform_indices = @transform_3, window_bounds = array<i64: 8, 256>}]} {
    %c0 = arith.constant 0 : index
    %c0_0 = arith.constant 0 : index
    %0 = vector.load %arg1[%c0, %c0_0] : memref<8x256xbf16, #tpu.memory_space<vmem>>, vector<8x256xbf16>
    %1 = arith.extf %0 : vector<8x256xbf16> to vector<8x256xf32>
    %c0_1 = arith.constant 0 : index
    %c0_2 = arith.constant 0 : index
    %2 = vector.load %arg2[%c0_1, %c0_2] : memref<1x256xf32, #tpu.memory_space<vmem>>, vector<1x256xf32>
    %3 = vector.broadcast %2 : vector<1x256xf32> to vector<8x256xf32>
    %4 = arith.mulf %1, %3 : vector<8x256xf32>
    %c0_3 = arith.constant 0 : index
    %c0_4 = arith.constant 0 : index
    %5 = vector.load %arg3[%c0_3, %c0_4] : memref<1x256xf32, #tpu.memory_space<vmem>>, vector<1x256xf32>
    %6 = vector.broadcast %5 : vector<1x256xf32> to vector<8x256xf32>
    %7 = arith.addf %4, %6 : vector<8x256xf32>
    %8 = arith.truncf %7 : vector<8x256xf32> to vector<8x256xbf16>
    %c0_5 = arith.constant 0 : index
    %c0_6 = arith.constant 0 : index
    %9 = vector.load %arg4[%c0_5, %c0_6] : memref<8x256xbf16, #tpu.memory_space<vmem>>, vector<8x256xbf16>
    tpu.vector_store %arg4[%c0_5, %c0_6], %8 {strides = array<i32>} : memref<8x256xbf16, #tpu.memory_space<vmem>>, vector<8x256xbf16>,
    return
  }
  func.func @transform_0(%arg0: i32) -> (i32, i32) {
    %c0_i32 = arith.constant 0 : i32
    %c0_i32_0 = arith.constant 0 : i32
    return %arg0, %c0_i32 : i32, i32
  }
  func.func @transform_1(%arg0: i32) -> (i32, i32) {
    %c0_i32 = arith.constant 0 : i32
    %c0_i32_0 = arith.constant 0 : i32
    %c0_i32_1 = arith.constant 0 : i32
    return %c0_i32, %c0_i32_0 : i32, i32
  }
  func.func @transform_2(%arg0: i32) -> (i32, i32) {
    %c0_i32 = arith.constant 0 : i32
    %c0_i32_0 = arith.constant 0 : i32
    %c0_i32_1 = arith.constant 0 : i32
    return %c0_i32, %c0_i32_0 : i32, i32
  }
  func.func @transform_3(%arg0: i32) -> (i32, i32) {
    %c0_i32 = arith.constant 0 : i32
    %c0_i32_0 = arith.constant 0 : i32
    return %arg0, %c0_i32 : i32, i32
  }
}

module attributes {stable_mosaic.version = 11 : i64} {
  func.func @_conv_gemm_kernel(%arg0: i32, %arg1: i32, %arg2: i32, %arg3: memref<8x128xbf16, #tpu.memory_space<vmem>>, %arg4: memref<128x256xbf16, #tpu.memory_space<vmem>>, %arg5: memref<8x256xbf16, #tpu.memory_space<vmem>>, %arg6: memref<1x1x256xf32, #tpu.memory_space<vmem>>, %arg7: memref<1x1x256xf32, #tpu.memory_space<vmem>>, %arg8: memref<8x256xf32, #tpu.memory_space<vmem>>) attributes {dimension_semantics = [#tpu.dimension_semantics<parallel>, #tpu.dimension_semantics<parallel>, #tpu.dimension_semantics<arbitrary>], iteration_bounds = array<i64: 1, 1, 1>, scalar_prefetch = 0 : i64, scratch_operands = 1 : i64, tpu.core_type = #tpu.core_type<tc>, window_params = [{transform_indices = @transform_0, window_bounds = array<i64: 8, 128>}, {transform_indices = @transform_1, window_bounds = array<i64: 128, 256>}, {transform_indices = @transform_2, window_bounds = array<i64: 8, 256>}, {transform_indices = @transform_3, window_bounds = array<i64: 1, 1, 256>}, {transform_indices = @transform_4, window_bounds = array<i64: 1, 1, 256>}]} {
    %c0_i32 = arith.constant 0 : i32
    %0 = arith.cmpi eq, %arg2, %c0_i32 : i32
    %1 = arith.extui %0 : i1 to i32
    %c0_i32_0 = arith.constant 0 : i32
    %2 = arith.cmpi ne, %1, %c0_i32_0 : i32
    scf.if %2 {
      %cst_10 = arith.constant 0.000000e+00 : f32
      %12 = vector.broadcast %cst_10 : f32 to vector<8x256xf32>
      %c0_11 = arith.constant 0 : index
      %c0_12 = arith.constant 0 : index
      %13 = vector.load %arg8[%c0_11, %c0_12] : memref<8x256xf32, #tpu.memory_space<vmem>>, vector<8x256xf32>
      tpu.vector_store %arg8[%c0_11, %c0_12], %12 {strides = array<i32>} : memref<8x256xf32, #tpu.memory_space<vmem>>, vector<8x256xf32>,
    } else {
    }
    %c0 = arith.constant 0 : index
    %c0_1 = arith.constant 0 : index
    %3 = vector.load %arg8[%c0, %c0_1] : memref<8x256xf32, #tpu.memory_space<vmem>>, vector<8x256xf32>
    %c0_2 = arith.constant 0 : index
    %c0_3 = arith.constant 0 : index
    %4 = vector.load %arg3[%c0_2, %c0_3] : memref<8x128xbf16, #tpu.memory_space<vmem>>, vector<8x128xbf16>
    %c0_4 = arith.constant 0 : index
    %c0_5 = arith.constant 0 : index
    %5 = vector.load %arg4[%c0_4, %c0_5] : memref<128x256xbf16, #tpu.memory_space<vmem>>, vector<128x256xbf16>
    %cst = arith.constant dense<0.000000e+00> : vector<8x256xf32>
    %6 = tpu.matmul %4, %5, %cst {dimension_numbers = #tpu.dot_dimension_numbers<[1], [0], [0], [1], [0, 0, 1, 1], [], []>} : vector<8x128xbf16>, vector<128x256xbf16>, vector<8x256xf32> -> vector<8x256xf32>
    %7 = arith.addf %3, %6 : vector<8x256xf32>
    %c0_6 = arith.constant 0 : index
    %c0_7 = arith.constant 0 : index
    %8 = vector.load %arg8[%c0_6, %c0_7] : memref<8x256xf32, #tpu.memory_space<vmem>>, vector<8x256xf32>
    tpu.vector_store %arg8[%c0_6, %c0_7], %7 {strides = array<i32>} : memref<8x256xf32, #tpu.memory_space<vmem>>, vector<8x256xf32>,
    %c0_i32_8 = arith.constant 0 : i32
    %9 = arith.cmpi eq, %arg2, %c0_i32_8 : i32
    %10 = arith.extui %9 : i1 to i32
    %c0_i32_9 = arith.constant 0 : i32
    %11 = arith.cmpi ne, %10, %c0_i32_9 : i32
    scf.if %11 {
      %c0_10 = arith.constant 0 : index
      %c0_11 = arith.constant 0 : index
      %12 = vector.load %arg8[%c0_10, %c0_11] : memref<8x256xf32, #tpu.memory_space<vmem>>, vector<8x256xf32>
      %13 = arith.truncf %12 : vector<8x256xf32> to vector<8x256xbf16>
      %c0_12 = arith.constant 0 : index
      %c0_13 = arith.constant 0 : index
      %14 = vector.load %arg5[%c0_12, %c0_13] : memref<8x256xbf16, #tpu.memory_space<vmem>>, vector<8x256xbf16>
      tpu.vector_store %arg5[%c0_12, %c0_13], %13 {strides = array<i32>} : memref<8x256xbf16, #tpu.memory_space<vmem>>, vector<8x256xbf16>,
      %cst_14 = arith.constant dense<0.000000e+00> : vector<256xf32>
      %15 = vector.multi_reduction <add>, %12, %cst_14 [0] : vector<8x256xf32> to vector<256xf32>
      %16 = vector.shape_cast %15 : vector<256xf32> to vector<1x256xf32>
      %17 = vector.shape_cast %16 : vector<1x256xf32> to vector<1x1x256xf32>
      %c0_15 = arith.constant 0 : index
      %c0_16 = arith.constant 0 : index
      %c0_17 = arith.constant 0 : index
      %18 = vector.load %arg6[%c0_15, %c0_16, %c0_17] : memref<1x1x256xf32, #tpu.memory_space<vmem>>, vector<1x1x256xf32>
      tpu.vector_store %arg6[%c0_15, %c0_16, %c0_17], %17 {strides = array<i32>} : memref<1x1x256xf32, #tpu.memory_space<vmem>>, vector<1x1x256xf32>,
      %19 = arith.mulf %12, %12 : vector<8x256xf32>
      %cst_18 = arith.constant dense<0.000000e+00> : vector<256xf32>
      %20 = vector.multi_reduction <add>, %19, %cst_18 [0] : vector<8x256xf32> to vector<256xf32>
      %21 = vector.shape_cast %20 : vector<256xf32> to vector<1x256xf32>
      %22 = vector.shape_cast %21 : vector<1x256xf32> to vector<1x1x256xf32>
      %c0_19 = arith.constant 0 : index
      %c0_20 = arith.constant 0 : index
      %c0_21 = arith.constant 0 : index
      %23 = vector.load %arg7[%c0_19, %c0_20, %c0_21] : memref<1x1x256xf32, #tpu.memory_space<vmem>>, vector<1x1x256xf32>
      tpu.vector_store %arg7[%c0_19, %c0_20, %c0_21], %22 {strides = array<i32>} : memref<1x1x256xf32, #tpu.memory_space<vmem>>, vector<1x1x256xf32>,
    } else {
    }
    return
  }
  func.func @transform_0(%arg0: i32, %arg1: i32, %arg2: i32) -> (i32, i32) {
    %c0_i32 = arith.constant 0 : i32
    return %arg0, %arg2 : i32, i32
  }
  func.func @transform_1(%arg0: i32, %arg1: i32, %arg2: i32) -> (i32, i32) {
    %c0_i32 = arith.constant 0 : i32
    return %arg2, %arg1 : i32, i32
  }
  func.func @transform_2(%arg0: i32, %arg1: i32, %arg2: i32) -> (i32, i32) {
    %c0_i32 = arith.constant 0 : i32
    return %arg0, %arg1 : i32, i32
  }
  func.func @transform_3(%arg0: i32, %arg1: i32, %arg2: i32) -> (i32, i32, i32) {
    %c0_i32 = arith.constant 0 : i32
    %c0_i32_0 = arith.constant 0 : i32
    return %arg0, %c0_i32, %arg1 : i32, i32, i32
  }
  func.func @transform_4(%arg0: i32, %arg1: i32, %arg2: i32) -> (i32, i32, i32) {
    %c0_i32 = arith.constant 0 : i32
    %c0_i32_0 = arith.constant 0 : i32
    return %arg0, %c0_i32, %arg1 : i32, i32, i32
  }
}

module attributes {stable_mosaic.version = 11 : i64} {
  func.func @_conv_gemm_kernel(%arg0: i32, %arg1: i32, %arg2: i32, %arg3: memref<8x128xbf16, #tpu.memory_space<vmem>>, %arg4: memref<128x256xbf16, #tpu.memory_space<vmem>>, %arg5: memref<8x256xbf16, #tpu.memory_space<vmem>>, %arg6: memref<1x1x256xf32, #tpu.memory_space<vmem>>, %arg7: memref<1x1x256xf32, #tpu.memory_space<vmem>>, %arg8: memref<8x256xf32, #tpu.memory_space<vmem>>) attributes {dimension_semantics = [#tpu.dimension_semantics<parallel>, #tpu.dimension_semantics<parallel>, #tpu.dimension_semantics<arbitrary>], iteration_bounds = array<i64: 1, 1, 9>, scalar_prefetch = 0 : i64, scratch_operands = 1 : i64, tpu.core_type = #tpu.core_type<tc>, window_params = [{transform_indices = @transform_0, window_bounds = array<i64: 8, 128>}, {transform_indices = @transform_1, window_bounds = array<i64: 128, 256>}, {transform_indices = @transform_2, window_bounds = array<i64: 8, 256>}, {transform_indices = @transform_3, window_bounds = array<i64: 1, 1, 256>}, {transform_indices = @transform_4, window_bounds = array<i64: 1, 1, 256>}]} {
    %c0_i32 = arith.constant 0 : i32
    %0 = arith.cmpi eq, %arg2, %c0_i32 : i32
    %1 = arith.extui %0 : i1 to i32
    %c0_i32_0 = arith.constant 0 : i32
    %2 = arith.cmpi ne, %1, %c0_i32_0 : i32
    scf.if %2 {
      %cst_9 = arith.constant 0.000000e+00 : f32
      %12 = vector.broadcast %cst_9 : f32 to vector<8x256xf32>
      %c0_10 = arith.constant 0 : index
      %c0_11 = arith.constant 0 : index
      %13 = vector.load %arg8[%c0_10, %c0_11] : memref<8x256xf32, #tpu.memory_space<vmem>>, vector<8x256xf32>
      tpu.vector_store %arg8[%c0_10, %c0_11], %12 {strides = array<i32>} : memref<8x256xf32, #tpu.memory_space<vmem>>, vector<8x256xf32>,
    } else {
    }
    %c0 = arith.constant 0 : index
    %c0_1 = arith.constant 0 : index
    %3 = vector.load %arg8[%c0, %c0_1] : memref<8x256xf32, #tpu.memory_space<vmem>>, vector<8x256xf32>
    %c0_2 = arith.constant 0 : index
    %c0_3 = arith.constant 0 : index
    %4 = vector.load %arg3[%c0_2, %c0_3] : memref<8x128xbf16, #tpu.memory_space<vmem>>, vector<8x128xbf16>
    %c0_4 = arith.constant 0 : index
    %c0_5 = arith.constant 0 : index
    %5 = vector.load %arg4[%c0_4, %c0_5] : memref<128x256xbf16, #tpu.memory_space<vmem>>, vector<128x256xbf16>
    %cst = arith.constant dense<0.000000e+00> : vector<8x256xf32>
    %6 = tpu.matmul %4, %5, %cst {dimension_numbers = #tpu.dot_dimension_numbers<[1], [0], [0], [1], [0, 0, 1, 1], [], []>} : vector<8x128xbf16>, vector<128x256xbf16>, vector<8x256xf32> -> vector<8x256xf32>
    %7 = arith.addf %3, %6 : vector<8x256xf32>
    %c0_6 = arith.constant 0 : index
    %c0_7 = arith.constant 0 : index
    %8 = vector.load %arg8[%c0_6, %c0_7] : memref<8x256xf32, #tpu.memory_space<vmem>>, vector<8x256xf32>
    tpu.vector_store %arg8[%c0_6, %c0_7], %7 {strides = array<i32>} : memref<8x256xf32, #tpu.memory_space<vmem>>, vector<8x256xf32>,
    %c8_i32 = arith.constant 8 : i32
    %9 = arith.cmpi eq, %arg2, %c8_i32 : i32
    %10 = arith.extui %9 : i1 to i32
    %c0_i32_8 = arith.constant 0 : i32
    %11 = arith.cmpi ne, %10, %c0_i32_8 : i32
    scf.if %11 {
      %c0_9 = arith.constant 0 : index
      %c0_10 = arith.constant 0 : index
      %12 = vector.load %arg8[%c0_9, %c0_10] : memref<8x256xf32, #tpu.memory_space<vmem>>, vector<8x256xf32>
      %13 = arith.truncf %12 : vector<8x256xf32> to vector<8x256xbf16>
      %c0_11 = arith.constant 0 : index
      %c0_12 = arith.constant 0 : index
      %14 = vector.load %arg5[%c0_11, %c0_12] : memref<8x256xbf16, #tpu.memory_space<vmem>>, vector<8x256xbf16>
      tpu.vector_store %arg5[%c0_11, %c0_12], %13 {strides = array<i32>} : memref<8x256xbf16, #tpu.memory_space<vmem>>, vector<8x256xbf16>,
      %cst_13 = arith.constant dense<0.000000e+00> : vector<256xf32>
      %15 = vector.multi_reduction <add>, %12, %cst_13 [0] : vector<8x256xf32> to vector<256xf32>
      %16 = vector.shape_cast %15 : vector<256xf32> to vector<1x256xf32>
      %17 = vector.shape_cast %16 : vector<1x256xf32> to vector<1x1x256xf32>
      %c0_14 = arith.constant 0 : index
      %c0_15 = arith.constant 0 : index
      %c0_16 = arith.constant 0 : index
      %18 = vector.load %arg6[%c0_14, %c0_15, %c0_16] : memref<1x1x256xf32, #tpu.memory_space<vmem>>, vector<1x1x256xf32>
      tpu.vector_store %arg6[%c0_14, %c0_15, %c0_16], %17 {strides = array<i32>} : memref<1x1x256xf32, #tpu.memory_space<vmem>>, vector<1x1x256xf32>,
      %19 = arith.mulf %12, %12 : vector<8x256xf32>
      %cst_17 = arith.constant dense<0.000000e+00> : vector<256xf32>
      %20 = vector.multi_reduction <add>, %19, %cst_17 [0] : vector<8x256xf32> to vector<256xf32>
      %21 = vector.shape_cast %20 : vector<256xf32> to vector<1x256xf32>
      %22 = vector.shape_cast %21 : vector<1x256xf32> to vector<1x1x256xf32>
      %c0_18 = arith.constant 0 : index
      %c0_19 = arith.constant 0 : index
      %c0_20 = arith.constant 0 : index
      %23 = vector.load %arg7[%c0_18, %c0_19, %c0_20] : memref<1x1x256xf32, #tpu.memory_space<vmem>>, vector<1x1x256xf32>
      tpu.vector_store %arg7[%c0_18, %c0_19, %c0_20], %22 {strides = array<i32>} : memref<1x1x256xf32, #tpu.memory_space<vmem>>, vector<1x1x256xf32>,
    } else {
    }
    return
  }
  func.func @transform_0(%arg0: i32, %arg1: i32, %arg2: i32) -> (i32, i32) {
    %c0_i32 = arith.constant 0 : i32
    return %arg0, %arg2 : i32, i32
  }
  func.func @transform_1(%arg0: i32, %arg1: i32, %arg2: i32) -> (i32, i32) {
    %c0_i32 = arith.constant 0 : i32
    return %arg2, %arg1 : i32, i32
  }
  func.func @transform_2(%arg0: i32, %arg1: i32, %arg2: i32) -> (i32, i32) {
    %c0_i32 = arith.constant 0 : i32
    return %arg0, %arg1 : i32, i32
  }
  func.func @transform_3(%arg0: i32, %arg1: i32, %arg2: i32) -> (i32, i32, i32) {
    %c0_i32 = arith.constant 0 : i32
    %c0_i32_0 = arith.constant 0 : i32
    return %arg0, %c0_i32, %arg1 : i32, i32, i32
  }
  func.func @transform_4(%arg0: i32, %arg1: i32, %arg2: i32) -> (i32, i32, i32) {
    %c0_i32 = arith.constant 0 : i32
    %c0_i32_0 = arith.constant 0 : i32
    return %arg0, %c0_i32, %arg1 : i32, i32, i32
  }
}

module attributes {stable_mosaic.version = 11 : i64} {
  func.func @_bn_apply_kernel(%arg0: i32, %arg1: memref<8x256xbf16, #tpu.memory_space<vmem>>, %arg2: memref<1x256xf32, #tpu.memory_space<vmem>>, %arg3: memref<1x256xf32, #tpu.memory_space<vmem>>, %arg4: memref<8x256xbf16, #tpu.memory_space<vmem>>) attributes {dimension_semantics = [#tpu.dimension_semantics<parallel>], iteration_bounds = array<i64: 1>, scalar_prefetch = 0 : i64, scratch_operands = 0 : i64, tpu.core_type = #tpu.core_type<tc>, window_params = [{transform_indices = @transform_0, window_bounds = array<i64: 8, 256>}, {pipeline_mode = #tpu.pipeline_mode<synchronous>, transform_indices = @transform_1, window_bounds = array<i64: 1, 256>}, {pipeline_mode = #tpu.pipeline_mode<synchronous>, transform_indices = @transform_2, window_bounds = array<i64: 1, 256>}, {transform_indices = @transform_3, window_bounds = array<i64: 8, 256>}]} {
    %c0 = arith.constant 0 : index
    %c0_0 = arith.constant 0 : index
    %0 = vector.load %arg1[%c0, %c0_0] : memref<8x256xbf16, #tpu.memory_space<vmem>>, vector<8x256xbf16>
    %1 = arith.extf %0 : vector<8x256xbf16> to vector<8x256xf32>
    %c0_1 = arith.constant 0 : index
    %c0_2 = arith.constant 0 : index
    %2 = vector.load %arg2[%c0_1, %c0_2] : memref<1x256xf32, #tpu.memory_space<vmem>>, vector<1x256xf32>
    %3 = vector.broadcast %2 : vector<1x256xf32> to vector<8x256xf32>
    %4 = arith.mulf %1, %3 : vector<8x256xf32>
    %c0_3 = arith.constant 0 : index
    %c0_4 = arith.constant 0 : index
    %5 = vector.load %arg3[%c0_3, %c0_4] : memref<1x256xf32, #tpu.memory_space<vmem>>, vector<1x256xf32>
    %6 = vector.broadcast %5 : vector<1x256xf32> to vector<8x256xf32>
    %7 = arith.addf %4, %6 : vector<8x256xf32>
    %cst = arith.constant 0.000000e+00 : f32
    %8 = vector.broadcast %cst : f32 to vector<8x256xf32>
    %9 = arith.maximumf %7, %8 : vector<8x256xf32>
    %10 = arith.truncf %9 : vector<8x256xf32> to vector<8x256xbf16>
    %c0_5 = arith.constant 0 : index
    %c0_6 = arith.constant 0 : index
    %11 = vector.load %arg4[%c0_5, %c0_6] : memref<8x256xbf16, #tpu.memory_space<vmem>>, vector<8x256xbf16>
    tpu.vector_store %arg4[%c0_5, %c0_6], %10 {strides = array<i32>} : memref<8x256xbf16, #tpu.memory_space<vmem>>, vector<8x256xbf16>,
    return
  }
  func.func @transform_0(%arg0: i32) -> (i32, i32) {
    %c0_i32 = arith.constant 0 : i32
    %c0_i32_0 = arith.constant 0 : i32
    return %arg0, %c0_i32 : i32, i32
  }
  func.func @transform_1(%arg0: i32) -> (i32, i32) {
    %c0_i32 = arith.constant 0 : i32
    %c0_i32_0 = arith.constant 0 : i32
    %c0_i32_1 = arith.constant 0 : i32
    return %c0_i32, %c0_i32_0 : i32, i32
  }
  func.func @transform_2(%arg0: i32) -> (i32, i32) {
    %c0_i32 = arith.constant 0 : i32
    %c0_i32_0 = arith.constant 0 : i32
    %c0_i32_1 = arith.constant 0 : i32
    return %c0_i32, %c0_i32_0 : i32, i32
  }
  func.func @transform_3(%arg0: i32) -> (i32, i32) {
    %c0_i32 = arith.constant 0 : i32
    %c0_i32_0 = arith.constant 0 : i32
    return %arg0, %c0_i32 : i32, i32
  }
}

module attributes {stable_mosaic.version = 11 : i64} {
  func.func @_bn_apply_kernel(%arg0: i32, %arg1: memref<8x256xbf16, #tpu.memory_space<vmem>>, %arg2: memref<1x256xf32, #tpu.memory_space<vmem>>, %arg3: memref<1x256xf32, #tpu.memory_space<vmem>>, %arg4: memref<8x256xbf16, #tpu.memory_space<vmem>>, %arg5: memref<8x256xbf16, #tpu.memory_space<vmem>>) attributes {dimension_semantics = [#tpu.dimension_semantics<parallel>], iteration_bounds = array<i64: 1>, scalar_prefetch = 0 : i64, scratch_operands = 0 : i64, tpu.core_type = #tpu.core_type<tc>, window_params = [{transform_indices = @transform_0, window_bounds = array<i64: 8, 256>}, {pipeline_mode = #tpu.pipeline_mode<synchronous>, transform_indices = @transform_1, window_bounds = array<i64: 1, 256>}, {pipeline_mode = #tpu.pipeline_mode<synchronous>, transform_indices = @transform_2, window_bounds = array<i64: 1, 256>}, {transform_indices = @transform_3, window_bounds = array<i64: 8, 256>}, {transform_indices = @transform_4, window_bounds = array<i64: 8, 256>}]} {
    %c0 = arith.constant 0 : index
    %c0_0 = arith.constant 0 : index
    %0 = vector.load %arg1[%c0, %c0_0] : memref<8x256xbf16, #tpu.memory_space<vmem>>, vector<8x256xbf16>
    %1 = arith.extf %0 : vector<8x256xbf16> to vector<8x256xf32>
    %c0_1 = arith.constant 0 : index
    %c0_2 = arith.constant 0 : index
    %2 = vector.load %arg2[%c0_1, %c0_2] : memref<1x256xf32, #tpu.memory_space<vmem>>, vector<1x256xf32>
    %3 = vector.broadcast %2 : vector<1x256xf32> to vector<8x256xf32>
    %4 = arith.mulf %1, %3 : vector<8x256xf32>
    %c0_3 = arith.constant 0 : index
    %c0_4 = arith.constant 0 : index
    %5 = vector.load %arg3[%c0_3, %c0_4] : memref<1x256xf32, #tpu.memory_space<vmem>>, vector<1x256xf32>
    %6 = vector.broadcast %5 : vector<1x256xf32> to vector<8x256xf32>
    %7 = arith.addf %4, %6 : vector<8x256xf32>
    %c0_5 = arith.constant 0 : index
    %c0_6 = arith.constant 0 : index
    %8 = vector.load %arg4[%c0_5, %c0_6] : memref<8x256xbf16, #tpu.memory_space<vmem>>, vector<8x256xbf16>
    %9 = arith.extf %8 : vector<8x256xbf16> to vector<8x256xf32>
    %10 = arith.addf %7, %9 : vector<8x256xf32>
    %cst = arith.constant 0.000000e+00 : f32
    %11 = vector.broadcast %cst : f32 to vector<8x256xf32>
    %12 = arith.maximumf %10, %11 : vector<8x256xf32>
    %13 = arith.truncf %12 : vector<8x256xf32> to vector<8x256xbf16>
    %c0_7 = arith.constant 0 : index
    %c0_8 = arith.constant 0 : index
    %14 = vector.load %arg5[%c0_7, %c0_8] : memref<8x256xbf16, #tpu.memory_space<vmem>>, vector<8x256xbf16>
    tpu.vector_store %arg5[%c0_7, %c0_8], %13 {strides = array<i32>} : memref<8x256xbf16, #tpu.memory_space<vmem>>, vector<8x256xbf16>,
    return
  }
  func.func @transform_0(%arg0: i32) -> (i32, i32) {
    %c0_i32 = arith.constant 0 : i32
    %c0_i32_0 = arith.constant 0 : i32
    return %arg0, %c0_i32 : i32, i32
  }
  func.func @transform_1(%arg0: i32) -> (i32, i32) {
    %c0_i32 = arith.constant 0 : i32
    %c0_i32_0 = arith.constant 0 : i32
    %c0_i32_1 = arith.constant 0 : i32
    return %c0_i32, %c0_i32_0 : i32, i32
  }
  func.func @transform_2(%arg0: i32) -> (i32, i32) {
    %c0_i32 = arith.constant 0 : i32
    %c0_i32_0 = arith.constant 0 : i32
    %c0_i32_1 = arith.constant 0 : i32
    return %c0_i32, %c0_i32_0 : i32, i32
  }
  func.func @transform_3(%arg0: i32) -> (i32, i32) {
    %c0_i32 = arith.constant 0 : i32
    %c0_i32_0 = arith.constant 0 : i32
    return %arg0, %c0_i32 : i32, i32
  }
  func.func @transform_4(%arg0: i32) -> (i32, i32) {
    %c0_i32 = arith.constant 0 : i32
    %c0_i32_0 = arith.constant 0 : i32
    return %arg0, %c0_i32 : i32, i32
  }
}

module attributes {stable_mosaic.version = 11 : i64} {
  func.func @_conv_gemm_kernel(%arg0: i32, %arg1: i32, %arg2: i32, %arg3: memref<8x256xbf16, #tpu.memory_space<vmem>>, %arg4: memref<256x256xbf16, #tpu.memory_space<vmem>>, %arg5: memref<8x256xbf16, #tpu.memory_space<vmem>>, %arg6: memref<1x1x256xf32, #tpu.memory_space<vmem>>, %arg7: memref<1x1x256xf32, #tpu.memory_space<vmem>>, %arg8: memref<8x256xf32, #tpu.memory_space<vmem>>) attributes {dimension_semantics = [#tpu.dimension_semantics<parallel>, #tpu.dimension_semantics<parallel>, #tpu.dimension_semantics<arbitrary>], iteration_bounds = array<i64: 1, 1, 9>, scalar_prefetch = 0 : i64, scratch_operands = 1 : i64, tpu.core_type = #tpu.core_type<tc>, window_params = [{transform_indices = @transform_0, window_bounds = array<i64: 8, 256>}, {transform_indices = @transform_1, window_bounds = array<i64: 256, 256>}, {transform_indices = @transform_2, window_bounds = array<i64: 8, 256>}, {transform_indices = @transform_3, window_bounds = array<i64: 1, 1, 256>}, {transform_indices = @transform_4, window_bounds = array<i64: 1, 1, 256>}]} {
    %c0_i32 = arith.constant 0 : i32
    %0 = arith.cmpi eq, %arg2, %c0_i32 : i32
    %1 = arith.extui %0 : i1 to i32
    %c0_i32_0 = arith.constant 0 : i32
    %2 = arith.cmpi ne, %1, %c0_i32_0 : i32
    scf.if %2 {
      %cst_9 = arith.constant 0.000000e+00 : f32
      %12 = vector.broadcast %cst_9 : f32 to vector<8x256xf32>
      %c0_10 = arith.constant 0 : index
      %c0_11 = arith.constant 0 : index
      %13 = vector.load %arg8[%c0_10, %c0_11] : memref<8x256xf32, #tpu.memory_space<vmem>>, vector<8x256xf32>
      tpu.vector_store %arg8[%c0_10, %c0_11], %12 {strides = array<i32>} : memref<8x256xf32, #tpu.memory_space<vmem>>, vector<8x256xf32>,
    } else {
    }
    %c0 = arith.constant 0 : index
    %c0_1 = arith.constant 0 : index
    %3 = vector.load %arg8[%c0, %c0_1] : memref<8x256xf32, #tpu.memory_space<vmem>>, vector<8x256xf32>
    %c0_2 = arith.constant 0 : index
    %c0_3 = arith.constant 0 : index
    %4 = vector.load %arg3[%c0_2, %c0_3] : memref<8x256xbf16, #tpu.memory_space<vmem>>, vector<8x256xbf16>
    %c0_4 = arith.constant 0 : index
    %c0_5 = arith.constant 0 : index
    %5 = vector.load %arg4[%c0_4, %c0_5] : memref<256x256xbf16, #tpu.memory_space<vmem>>, vector<256x256xbf16>
    %cst = arith.constant dense<0.000000e+00> : vector<8x256xf32>
    %6 = tpu.matmul %4, %5, %cst {dimension_numbers = #tpu.dot_dimension_numbers<[1], [0], [0], [1], [0, 0, 1, 1], [], []>} : vector<8x256xbf16>, vector<256x256xbf16>, vector<8x256xf32> -> vector<8x256xf32>
    %7 = arith.addf %3, %6 : vector<8x256xf32>
    %c0_6 = arith.constant 0 : index
    %c0_7 = arith.constant 0 : index
    %8 = vector.load %arg8[%c0_6, %c0_7] : memref<8x256xf32, #tpu.memory_space<vmem>>, vector<8x256xf32>
    tpu.vector_store %arg8[%c0_6, %c0_7], %7 {strides = array<i32>} : memref<8x256xf32, #tpu.memory_space<vmem>>, vector<8x256xf32>,
    %c8_i32 = arith.constant 8 : i32
    %9 = arith.cmpi eq, %arg2, %c8_i32 : i32
    %10 = arith.extui %9 : i1 to i32
    %c0_i32_8 = arith.constant 0 : i32
    %11 = arith.cmpi ne, %10, %c0_i32_8 : i32
    scf.if %11 {
      %c0_9 = arith.constant 0 : index
      %c0_10 = arith.constant 0 : index
      %12 = vector.load %arg8[%c0_9, %c0_10] : memref<8x256xf32, #tpu.memory_space<vmem>>, vector<8x256xf32>
      %13 = arith.truncf %12 : vector<8x256xf32> to vector<8x256xbf16>
      %c0_11 = arith.constant 0 : index
      %c0_12 = arith.constant 0 : index
      %14 = vector.load %arg5[%c0_11, %c0_12] : memref<8x256xbf16, #tpu.memory_space<vmem>>, vector<8x256xbf16>
      tpu.vector_store %arg5[%c0_11, %c0_12], %13 {strides = array<i32>} : memref<8x256xbf16, #tpu.memory_space<vmem>>, vector<8x256xbf16>,
      %cst_13 = arith.constant dense<0.000000e+00> : vector<256xf32>
      %15 = vector.multi_reduction <add>, %12, %cst_13 [0] : vector<8x256xf32> to vector<256xf32>
      %16 = vector.shape_cast %15 : vector<256xf32> to vector<1x256xf32>
      %17 = vector.shape_cast %16 : vector<1x256xf32> to vector<1x1x256xf32>
      %c0_14 = arith.constant 0 : index
      %c0_15 = arith.constant 0 : index
      %c0_16 = arith.constant 0 : index
      %18 = vector.load %arg6[%c0_14, %c0_15, %c0_16] : memref<1x1x256xf32, #tpu.memory_space<vmem>>, vector<1x1x256xf32>
      tpu.vector_store %arg6[%c0_14, %c0_15, %c0_16], %17 {strides = array<i32>} : memref<1x1x256xf32, #tpu.memory_space<vmem>>, vector<1x1x256xf32>,
      %19 = arith.mulf %12, %12 : vector<8x256xf32>
      %cst_17 = arith.constant dense<0.000000e+00> : vector<256xf32>
      %20 = vector.multi_reduction <add>, %19, %cst_17 [0] : vector<8x256xf32> to vector<256xf32>
      %21 = vector.shape_cast %20 : vector<256xf32> to vector<1x256xf32>
      %22 = vector.shape_cast %21 : vector<1x256xf32> to vector<1x1x256xf32>
      %c0_18 = arith.constant 0 : index
      %c0_19 = arith.constant 0 : index
      %c0_20 = arith.constant 0 : index
      %23 = vector.load %arg7[%c0_18, %c0_19, %c0_20] : memref<1x1x256xf32, #tpu.memory_space<vmem>>, vector<1x1x256xf32>
      tpu.vector_store %arg7[%c0_18, %c0_19, %c0_20], %22 {strides = array<i32>} : memref<1x1x256xf32, #tpu.memory_space<vmem>>, vector<1x1x256xf32>,
    } else {
    }
    return
  }
  func.func @transform_0(%arg0: i32, %arg1: i32, %arg2: i32) -> (i32, i32) {
    %c0_i32 = arith.constant 0 : i32
    return %arg0, %arg2 : i32, i32
  }
  func.func @transform_1(%arg0: i32, %arg1: i32, %arg2: i32) -> (i32, i32) {
    %c0_i32 = arith.constant 0 : i32
    return %arg2, %arg1 : i32, i32
  }
  func.func @transform_2(%arg0: i32, %arg1: i32, %arg2: i32) -> (i32, i32) {
    %c0_i32 = arith.constant 0 : i32
    return %arg0, %arg1 : i32, i32
  }
  func.func @transform_3(%arg0: i32, %arg1: i32, %arg2: i32) -> (i32, i32, i32) {
    %c0_i32 = arith.constant 0 : i32
    %c0_i32_0 = arith.constant 0 : i32
    return %arg0, %c0_i32, %arg1 : i32, i32, i32
  }
  func.func @transform_4(%arg0: i32, %arg1: i32, %arg2: i32) -> (i32, i32, i32) {
    %c0_i32 = arith.constant 0 : i32
    %c0_i32_0 = arith.constant 0 : i32
    return %arg0, %c0_i32, %arg1 : i32, i32, i32
  }
}

module attributes {stable_mosaic.version = 11 : i64} {
  func.func @_conv_gemm_kernel(%arg0: i32, %arg1: i32, %arg2: i32, %arg3: memref<2x256xbf16, #tpu.memory_space<vmem>>, %arg4: memref<256x256xbf16, #tpu.memory_space<vmem>>, %arg5: memref<2x256xbf16, #tpu.memory_space<vmem>>, %arg6: memref<1x1x256xf32, #tpu.memory_space<vmem>>, %arg7: memref<1x1x256xf32, #tpu.memory_space<vmem>>, %arg8: memref<2x256xf32, #tpu.memory_space<vmem>>) attributes {dimension_semantics = [#tpu.dimension_semantics<parallel>, #tpu.dimension_semantics<parallel>, #tpu.dimension_semantics<arbitrary>], iteration_bounds = array<i64: 1, 2, 1>, scalar_prefetch = 0 : i64, scratch_operands = 1 : i64, tpu.core_type = #tpu.core_type<tc>, window_params = [{transform_indices = @transform_0, window_bounds = array<i64: 2, 256>}, {transform_indices = @transform_1, window_bounds = array<i64: 256, 256>}, {transform_indices = @transform_2, window_bounds = array<i64: 2, 256>}, {transform_indices = @transform_3, window_bounds = array<i64: 1, 1, 256>}, {transform_indices = @transform_4, window_bounds = array<i64: 1, 1, 256>}]} {
    %c0_i32 = arith.constant 0 : i32
    %0 = arith.cmpi eq, %arg2, %c0_i32 : i32
    %1 = arith.extui %0 : i1 to i32
    %c0_i32_0 = arith.constant 0 : i32
    %2 = arith.cmpi ne, %1, %c0_i32_0 : i32
    scf.if %2 {
      %cst_10 = arith.constant 0.000000e+00 : f32
      %12 = vector.broadcast %cst_10 : f32 to vector<2x256xf32>
      %c0_11 = arith.constant 0 : index
      %c0_12 = arith.constant 0 : index
      %13 = vector.load %arg8[%c0_11, %c0_12] : memref<2x256xf32, #tpu.memory_space<vmem>>, vector<2x256xf32>
      tpu.vector_store %arg8[%c0_11, %c0_12], %12 {strides = array<i32>} : memref<2x256xf32, #tpu.memory_space<vmem>>, vector<2x256xf32>,
    } else {
    }
    %c0 = arith.constant 0 : index
    %c0_1 = arith.constant 0 : index
    %3 = vector.load %arg8[%c0, %c0_1] : memref<2x256xf32, #tpu.memory_space<vmem>>, vector<2x256xf32>
    %c0_2 = arith.constant 0 : index
    %c0_3 = arith.constant 0 : index
    %4 = vector.load %arg3[%c0_2, %c0_3] : memref<2x256xbf16, #tpu.memory_space<vmem>>, vector<2x256xbf16>
    %c0_4 = arith.constant 0 : index
    %c0_5 = arith.constant 0 : index
    %5 = vector.load %arg4[%c0_4, %c0_5] : memref<256x256xbf16, #tpu.memory_space<vmem>>, vector<256x256xbf16>
    %cst = arith.constant dense<0.000000e+00> : vector<2x256xf32>
    %6 = tpu.matmul %4, %5, %cst {dimension_numbers = #tpu.dot_dimension_numbers<[1], [0], [0], [1], [0, 0, 1, 1], [], []>} : vector<2x256xbf16>, vector<256x256xbf16>, vector<2x256xf32> -> vector<2x256xf32>
    %7 = arith.addf %3, %6 : vector<2x256xf32>
    %c0_6 = arith.constant 0 : index
    %c0_7 = arith.constant 0 : index
    %8 = vector.load %arg8[%c0_6, %c0_7] : memref<2x256xf32, #tpu.memory_space<vmem>>, vector<2x256xf32>
    tpu.vector_store %arg8[%c0_6, %c0_7], %7 {strides = array<i32>} : memref<2x256xf32, #tpu.memory_space<vmem>>, vector<2x256xf32>,
    %c0_i32_8 = arith.constant 0 : i32
    %9 = arith.cmpi eq, %arg2, %c0_i32_8 : i32
    %10 = arith.extui %9 : i1 to i32
    %c0_i32_9 = arith.constant 0 : i32
    %11 = arith.cmpi ne, %10, %c0_i32_9 : i32
    scf.if %11 {
      %c0_10 = arith.constant 0 : index
      %c0_11 = arith.constant 0 : index
      %12 = vector.load %arg8[%c0_10, %c0_11] : memref<2x256xf32, #tpu.memory_space<vmem>>, vector<2x256xf32>
      %13 = arith.truncf %12 : vector<2x256xf32> to vector<2x256xbf16>
      %c0_12 = arith.constant 0 : index
      %c0_13 = arith.constant 0 : index
      %14 = vector.load %arg5[%c0_12, %c0_13] : memref<2x256xbf16, #tpu.memory_space<vmem>>, vector<2x256xbf16>
      tpu.vector_store %arg5[%c0_12, %c0_13], %13 {strides = array<i32>} : memref<2x256xbf16, #tpu.memory_space<vmem>>, vector<2x256xbf16>,
      %cst_14 = arith.constant dense<0.000000e+00> : vector<256xf32>
      %15 = vector.multi_reduction <add>, %12, %cst_14 [0] : vector<2x256xf32> to vector<256xf32>
      %16 = vector.shape_cast %15 : vector<256xf32> to vector<1x256xf32>
      %17 = vector.shape_cast %16 : vector<1x256xf32> to vector<1x1x256xf32>
      %c0_15 = arith.constant 0 : index
      %c0_16 = arith.constant 0 : index
      %c0_17 = arith.constant 0 : index
      %18 = vector.load %arg6[%c0_15, %c0_16, %c0_17] : memref<1x1x256xf32, #tpu.memory_space<vmem>>, vector<1x1x256xf32>
      tpu.vector_store %arg6[%c0_15, %c0_16, %c0_17], %17 {strides = array<i32>} : memref<1x1x256xf32, #tpu.memory_space<vmem>>, vector<1x1x256xf32>,
      %19 = arith.mulf %12, %12 : vector<2x256xf32>
      %cst_18 = arith.constant dense<0.000000e+00> : vector<256xf32>
      %20 = vector.multi_reduction <add>, %19, %cst_18 [0] : vector<2x256xf32> to vector<256xf32>
      %21 = vector.shape_cast %20 : vector<256xf32> to vector<1x256xf32>
      %22 = vector.shape_cast %21 : vector<1x256xf32> to vector<1x1x256xf32>
      %c0_19 = arith.constant 0 : index
      %c0_20 = arith.constant 0 : index
      %c0_21 = arith.constant 0 : index
      %23 = vector.load %arg7[%c0_19, %c0_20, %c0_21] : memref<1x1x256xf32, #tpu.memory_space<vmem>>, vector<1x1x256xf32>
      tpu.vector_store %arg7[%c0_19, %c0_20, %c0_21], %22 {strides = array<i32>} : memref<1x1x256xf32, #tpu.memory_space<vmem>>, vector<1x1x256xf32>,
    } else {
    }
    return
  }
  func.func @transform_0(%arg0: i32, %arg1: i32, %arg2: i32) -> (i32, i32) {
    %c0_i32 = arith.constant 0 : i32
    return %arg0, %arg2 : i32, i32
  }
  func.func @transform_1(%arg0: i32, %arg1: i32, %arg2: i32) -> (i32, i32) {
    %c0_i32 = arith.constant 0 : i32
    return %arg2, %arg1 : i32, i32
  }
  func.func @transform_2(%arg0: i32, %arg1: i32, %arg2: i32) -> (i32, i32) {
    %c0_i32 = arith.constant 0 : i32
    return %arg0, %arg1 : i32, i32
  }
  func.func @transform_3(%arg0: i32, %arg1: i32, %arg2: i32) -> (i32, i32, i32) {
    %c0_i32 = arith.constant 0 : i32
    %c0_i32_0 = arith.constant 0 : i32
    return %arg0, %c0_i32, %arg1 : i32, i32, i32
  }
  func.func @transform_4(%arg0: i32, %arg1: i32, %arg2: i32) -> (i32, i32, i32) {
    %c0_i32 = arith.constant 0 : i32
    %c0_i32_0 = arith.constant 0 : i32
    return %arg0, %c0_i32, %arg1 : i32, i32, i32
  }
}

module attributes {stable_mosaic.version = 11 : i64} {
  func.func @_bn_apply_kernel(%arg0: i32, %arg1: memref<2x512xbf16, #tpu.memory_space<vmem>>, %arg2: memref<1x512xf32, #tpu.memory_space<vmem>>, %arg3: memref<1x512xf32, #tpu.memory_space<vmem>>, %arg4: memref<2x512xbf16, #tpu.memory_space<vmem>>) attributes {dimension_semantics = [#tpu.dimension_semantics<parallel>], iteration_bounds = array<i64: 1>, scalar_prefetch = 0 : i64, scratch_operands = 0 : i64, tpu.core_type = #tpu.core_type<tc>, window_params = [{transform_indices = @transform_0, window_bounds = array<i64: 2, 512>}, {pipeline_mode = #tpu.pipeline_mode<synchronous>, transform_indices = @transform_1, window_bounds = array<i64: 1, 512>}, {pipeline_mode = #tpu.pipeline_mode<synchronous>, transform_indices = @transform_2, window_bounds = array<i64: 1, 512>}, {transform_indices = @transform_3, window_bounds = array<i64: 2, 512>}]} {
    %c0 = arith.constant 0 : index
    %c0_0 = arith.constant 0 : index
    %0 = vector.load %arg1[%c0, %c0_0] : memref<2x512xbf16, #tpu.memory_space<vmem>>, vector<2x512xbf16>
    %1 = arith.extf %0 : vector<2x512xbf16> to vector<2x512xf32>
    %c0_1 = arith.constant 0 : index
    %c0_2 = arith.constant 0 : index
    %2 = vector.load %arg2[%c0_1, %c0_2] : memref<1x512xf32, #tpu.memory_space<vmem>>, vector<1x512xf32>
    %3 = vector.broadcast %2 : vector<1x512xf32> to vector<2x512xf32>
    %4 = arith.mulf %1, %3 : vector<2x512xf32>
    %c0_3 = arith.constant 0 : index
    %c0_4 = arith.constant 0 : index
    %5 = vector.load %arg3[%c0_3, %c0_4] : memref<1x512xf32, #tpu.memory_space<vmem>>, vector<1x512xf32>
    %6 = vector.broadcast %5 : vector<1x512xf32> to vector<2x512xf32>
    %7 = arith.addf %4, %6 : vector<2x512xf32>
    %8 = arith.truncf %7 : vector<2x512xf32> to vector<2x512xbf16>
    %c0_5 = arith.constant 0 : index
    %c0_6 = arith.constant 0 : index
    %9 = vector.load %arg4[%c0_5, %c0_6] : memref<2x512xbf16, #tpu.memory_space<vmem>>, vector<2x512xbf16>
    tpu.vector_store %arg4[%c0_5, %c0_6], %8 {strides = array<i32>} : memref<2x512xbf16, #tpu.memory_space<vmem>>, vector<2x512xbf16>,
    return
  }
  func.func @transform_0(%arg0: i32) -> (i32, i32) {
    %c0_i32 = arith.constant 0 : i32
    %c0_i32_0 = arith.constant 0 : i32
    return %arg0, %c0_i32 : i32, i32
  }
  func.func @transform_1(%arg0: i32) -> (i32, i32) {
    %c0_i32 = arith.constant 0 : i32
    %c0_i32_0 = arith.constant 0 : i32
    %c0_i32_1 = arith.constant 0 : i32
    return %c0_i32, %c0_i32_0 : i32, i32
  }
  func.func @transform_2(%arg0: i32) -> (i32, i32) {
    %c0_i32 = arith.constant 0 : i32
    %c0_i32_0 = arith.constant 0 : i32
    %c0_i32_1 = arith.constant 0 : i32
    return %c0_i32, %c0_i32_0 : i32, i32
  }
  func.func @transform_3(%arg0: i32) -> (i32, i32) {
    %c0_i32 = arith.constant 0 : i32
    %c0_i32_0 = arith.constant 0 : i32
    return %arg0, %c0_i32 : i32, i32
  }
}

module attributes {stable_mosaic.version = 11 : i64} {
  func.func @_conv_gemm_kernel(%arg0: i32, %arg1: i32, %arg2: i32, %arg3: memref<2x256xbf16, #tpu.memory_space<vmem>>, %arg4: memref<256x256xbf16, #tpu.memory_space<vmem>>, %arg5: memref<2x256xbf16, #tpu.memory_space<vmem>>, %arg6: memref<1x1x256xf32, #tpu.memory_space<vmem>>, %arg7: memref<1x1x256xf32, #tpu.memory_space<vmem>>, %arg8: memref<2x256xf32, #tpu.memory_space<vmem>>) attributes {dimension_semantics = [#tpu.dimension_semantics<parallel>, #tpu.dimension_semantics<parallel>, #tpu.dimension_semantics<arbitrary>], iteration_bounds = array<i64: 1, 2, 9>, scalar_prefetch = 0 : i64, scratch_operands = 1 : i64, tpu.core_type = #tpu.core_type<tc>, window_params = [{transform_indices = @transform_0, window_bounds = array<i64: 2, 256>}, {transform_indices = @transform_1, window_bounds = array<i64: 256, 256>}, {transform_indices = @transform_2, window_bounds = array<i64: 2, 256>}, {transform_indices = @transform_3, window_bounds = array<i64: 1, 1, 256>}, {transform_indices = @transform_4, window_bounds = array<i64: 1, 1, 256>}]} {
    %c0_i32 = arith.constant 0 : i32
    %0 = arith.cmpi eq, %arg2, %c0_i32 : i32
    %1 = arith.extui %0 : i1 to i32
    %c0_i32_0 = arith.constant 0 : i32
    %2 = arith.cmpi ne, %1, %c0_i32_0 : i32
    scf.if %2 {
      %cst_9 = arith.constant 0.000000e+00 : f32
      %12 = vector.broadcast %cst_9 : f32 to vector<2x256xf32>
      %c0_10 = arith.constant 0 : index
      %c0_11 = arith.constant 0 : index
      %13 = vector.load %arg8[%c0_10, %c0_11] : memref<2x256xf32, #tpu.memory_space<vmem>>, vector<2x256xf32>
      tpu.vector_store %arg8[%c0_10, %c0_11], %12 {strides = array<i32>} : memref<2x256xf32, #tpu.memory_space<vmem>>, vector<2x256xf32>,
    } else {
    }
    %c0 = arith.constant 0 : index
    %c0_1 = arith.constant 0 : index
    %3 = vector.load %arg8[%c0, %c0_1] : memref<2x256xf32, #tpu.memory_space<vmem>>, vector<2x256xf32>
    %c0_2 = arith.constant 0 : index
    %c0_3 = arith.constant 0 : index
    %4 = vector.load %arg3[%c0_2, %c0_3] : memref<2x256xbf16, #tpu.memory_space<vmem>>, vector<2x256xbf16>
    %c0_4 = arith.constant 0 : index
    %c0_5 = arith.constant 0 : index
    %5 = vector.load %arg4[%c0_4, %c0_5] : memref<256x256xbf16, #tpu.memory_space<vmem>>, vector<256x256xbf16>
    %cst = arith.constant dense<0.000000e+00> : vector<2x256xf32>
    %6 = tpu.matmul %4, %5, %cst {dimension_numbers = #tpu.dot_dimension_numbers<[1], [0], [0], [1], [0, 0, 1, 1], [], []>} : vector<2x256xbf16>, vector<256x256xbf16>, vector<2x256xf32> -> vector<2x256xf32>
    %7 = arith.addf %3, %6 : vector<2x256xf32>
    %c0_6 = arith.constant 0 : index
    %c0_7 = arith.constant 0 : index
    %8 = vector.load %arg8[%c0_6, %c0_7] : memref<2x256xf32, #tpu.memory_space<vmem>>, vector<2x256xf32>
    tpu.vector_store %arg8[%c0_6, %c0_7], %7 {strides = array<i32>} : memref<2x256xf32, #tpu.memory_space<vmem>>, vector<2x256xf32>,
    %c8_i32 = arith.constant 8 : i32
    %9 = arith.cmpi eq, %arg2, %c8_i32 : i32
    %10 = arith.extui %9 : i1 to i32
    %c0_i32_8 = arith.constant 0 : i32
    %11 = arith.cmpi ne, %10, %c0_i32_8 : i32
    scf.if %11 {
      %c0_9 = arith.constant 0 : index
      %c0_10 = arith.constant 0 : index
      %12 = vector.load %arg8[%c0_9, %c0_10] : memref<2x256xf32, #tpu.memory_space<vmem>>, vector<2x256xf32>
      %13 = arith.truncf %12 : vector<2x256xf32> to vector<2x256xbf16>
      %c0_11 = arith.constant 0 : index
      %c0_12 = arith.constant 0 : index
      %14 = vector.load %arg5[%c0_11, %c0_12] : memref<2x256xbf16, #tpu.memory_space<vmem>>, vector<2x256xbf16>
      tpu.vector_store %arg5[%c0_11, %c0_12], %13 {strides = array<i32>} : memref<2x256xbf16, #tpu.memory_space<vmem>>, vector<2x256xbf16>,
      %cst_13 = arith.constant dense<0.000000e+00> : vector<256xf32>
      %15 = vector.multi_reduction <add>, %12, %cst_13 [0] : vector<2x256xf32> to vector<256xf32>
      %16 = vector.shape_cast %15 : vector<256xf32> to vector<1x256xf32>
      %17 = vector.shape_cast %16 : vector<1x256xf32> to vector<1x1x256xf32>
      %c0_14 = arith.constant 0 : index
      %c0_15 = arith.constant 0 : index
      %c0_16 = arith.constant 0 : index
      %18 = vector.load %arg6[%c0_14, %c0_15, %c0_16] : memref<1x1x256xf32, #tpu.memory_space<vmem>>, vector<1x1x256xf32>
      tpu.vector_store %arg6[%c0_14, %c0_15, %c0_16], %17 {strides = array<i32>} : memref<1x1x256xf32, #tpu.memory_space<vmem>>, vector<1x1x256xf32>,
      %19 = arith.mulf %12, %12 : vector<2x256xf32>
      %cst_17 = arith.constant dense<0.000000e+00> : vector<256xf32>
      %20 = vector.multi_reduction <add>, %19, %cst_17 [0] : vector<2x256xf32> to vector<256xf32>
      %21 = vector.shape_cast %20 : vector<256xf32> to vector<1x256xf32>
      %22 = vector.shape_cast %21 : vector<1x256xf32> to vector<1x1x256xf32>
      %c0_18 = arith.constant 0 : index
      %c0_19 = arith.constant 0 : index
      %c0_20 = arith.constant 0 : index
      %23 = vector.load %arg7[%c0_18, %c0_19, %c0_20] : memref<1x1x256xf32, #tpu.memory_space<vmem>>, vector<1x1x256xf32>
      tpu.vector_store %arg7[%c0_18, %c0_19, %c0_20], %22 {strides = array<i32>} : memref<1x1x256xf32, #tpu.memory_space<vmem>>, vector<1x1x256xf32>,
    } else {
    }
    return
  }
  func.func @transform_0(%arg0: i32, %arg1: i32, %arg2: i32) -> (i32, i32) {
    %c0_i32 = arith.constant 0 : i32
    return %arg0, %arg2 : i32, i32
  }
  func.func @transform_1(%arg0: i32, %arg1: i32, %arg2: i32) -> (i32, i32) {
    %c0_i32 = arith.constant 0 : i32
    return %arg2, %arg1 : i32, i32
  }
  func.func @transform_2(%arg0: i32, %arg1: i32, %arg2: i32) -> (i32, i32) {
    %c0_i32 = arith.constant 0 : i32
    return %arg0, %arg1 : i32, i32
  }
  func.func @transform_3(%arg0: i32, %arg1: i32, %arg2: i32) -> (i32, i32, i32) {
    %c0_i32 = arith.constant 0 : i32
    %c0_i32_0 = arith.constant 0 : i32
    return %arg0, %c0_i32, %arg1 : i32, i32, i32
  }
  func.func @transform_4(%arg0: i32, %arg1: i32, %arg2: i32) -> (i32, i32, i32) {
    %c0_i32 = arith.constant 0 : i32
    %c0_i32_0 = arith.constant 0 : i32
    return %arg0, %c0_i32, %arg1 : i32, i32, i32
  }
}

module attributes {stable_mosaic.version = 11 : i64} {
  func.func @_bn_apply_kernel(%arg0: i32, %arg1: memref<2x512xbf16, #tpu.memory_space<vmem>>, %arg2: memref<1x512xf32, #tpu.memory_space<vmem>>, %arg3: memref<1x512xf32, #tpu.memory_space<vmem>>, %arg4: memref<2x512xbf16, #tpu.memory_space<vmem>>) attributes {dimension_semantics = [#tpu.dimension_semantics<parallel>], iteration_bounds = array<i64: 1>, scalar_prefetch = 0 : i64, scratch_operands = 0 : i64, tpu.core_type = #tpu.core_type<tc>, window_params = [{transform_indices = @transform_0, window_bounds = array<i64: 2, 512>}, {pipeline_mode = #tpu.pipeline_mode<synchronous>, transform_indices = @transform_1, window_bounds = array<i64: 1, 512>}, {pipeline_mode = #tpu.pipeline_mode<synchronous>, transform_indices = @transform_2, window_bounds = array<i64: 1, 512>}, {transform_indices = @transform_3, window_bounds = array<i64: 2, 512>}]} {
    %c0 = arith.constant 0 : index
    %c0_0 = arith.constant 0 : index
    %0 = vector.load %arg1[%c0, %c0_0] : memref<2x512xbf16, #tpu.memory_space<vmem>>, vector<2x512xbf16>
    %1 = arith.extf %0 : vector<2x512xbf16> to vector<2x512xf32>
    %c0_1 = arith.constant 0 : index
    %c0_2 = arith.constant 0 : index
    %2 = vector.load %arg2[%c0_1, %c0_2] : memref<1x512xf32, #tpu.memory_space<vmem>>, vector<1x512xf32>
    %3 = vector.broadcast %2 : vector<1x512xf32> to vector<2x512xf32>
    %4 = arith.mulf %1, %3 : vector<2x512xf32>
    %c0_3 = arith.constant 0 : index
    %c0_4 = arith.constant 0 : index
    %5 = vector.load %arg3[%c0_3, %c0_4] : memref<1x512xf32, #tpu.memory_space<vmem>>, vector<1x512xf32>
    %6 = vector.broadcast %5 : vector<1x512xf32> to vector<2x512xf32>
    %7 = arith.addf %4, %6 : vector<2x512xf32>
    %cst = arith.constant 0.000000e+00 : f32
    %8 = vector.broadcast %cst : f32 to vector<2x512xf32>
    %9 = arith.maximumf %7, %8 : vector<2x512xf32>
    %10 = arith.truncf %9 : vector<2x512xf32> to vector<2x512xbf16>
    %c0_5 = arith.constant 0 : index
    %c0_6 = arith.constant 0 : index
    %11 = vector.load %arg4[%c0_5, %c0_6] : memref<2x512xbf16, #tpu.memory_space<vmem>>, vector<2x512xbf16>
    tpu.vector_store %arg4[%c0_5, %c0_6], %10 {strides = array<i32>} : memref<2x512xbf16, #tpu.memory_space<vmem>>, vector<2x512xbf16>,
    return
  }
  func.func @transform_0(%arg0: i32) -> (i32, i32) {
    %c0_i32 = arith.constant 0 : i32
    %c0_i32_0 = arith.constant 0 : i32
    return %arg0, %c0_i32 : i32, i32
  }
  func.func @transform_1(%arg0: i32) -> (i32, i32) {
    %c0_i32 = arith.constant 0 : i32
    %c0_i32_0 = arith.constant 0 : i32
    %c0_i32_1 = arith.constant 0 : i32
    return %c0_i32, %c0_i32_0 : i32, i32
  }
  func.func @transform_2(%arg0: i32) -> (i32, i32) {
    %c0_i32 = arith.constant 0 : i32
    %c0_i32_0 = arith.constant 0 : i32
    %c0_i32_1 = arith.constant 0 : i32
    return %c0_i32, %c0_i32_0 : i32, i32
  }
  func.func @transform_3(%arg0: i32) -> (i32, i32) {
    %c0_i32 = arith.constant 0 : i32
    %c0_i32_0 = arith.constant 0 : i32
    return %arg0, %c0_i32 : i32, i32
  }
}

module attributes {stable_mosaic.version = 11 : i64} {
  func.func @_conv_gemm_kernel(%arg0: i32, %arg1: i32, %arg2: i32, %arg3: memref<2x512xbf16, #tpu.memory_space<vmem>>, %arg4: memref<512x256xbf16, #tpu.memory_space<vmem>>, %arg5: memref<2x256xbf16, #tpu.memory_space<vmem>>, %arg6: memref<1x1x256xf32, #tpu.memory_space<vmem>>, %arg7: memref<1x1x256xf32, #tpu.memory_space<vmem>>, %arg8: memref<2x256xf32, #tpu.memory_space<vmem>>) attributes {dimension_semantics = [#tpu.dimension_semantics<parallel>, #tpu.dimension_semantics<parallel>, #tpu.dimension_semantics<arbitrary>], iteration_bounds = array<i64: 1, 2, 9>, scalar_prefetch = 0 : i64, scratch_operands = 1 : i64, tpu.core_type = #tpu.core_type<tc>, window_params = [{transform_indices = @transform_0, window_bounds = array<i64: 2, 512>}, {transform_indices = @transform_1, window_bounds = array<i64: 512, 256>}, {transform_indices = @transform_2, window_bounds = array<i64: 2, 256>}, {transform_indices = @transform_3, window_bounds = array<i64: 1, 1, 256>}, {transform_indices = @transform_4, window_bounds = array<i64: 1, 1, 256>}]} {
    %c0_i32 = arith.constant 0 : i32
    %0 = arith.cmpi eq, %arg2, %c0_i32 : i32
    %1 = arith.extui %0 : i1 to i32
    %c0_i32_0 = arith.constant 0 : i32
    %2 = arith.cmpi ne, %1, %c0_i32_0 : i32
    scf.if %2 {
      %cst_9 = arith.constant 0.000000e+00 : f32
      %12 = vector.broadcast %cst_9 : f32 to vector<2x256xf32>
      %c0_10 = arith.constant 0 : index
      %c0_11 = arith.constant 0 : index
      %13 = vector.load %arg8[%c0_10, %c0_11] : memref<2x256xf32, #tpu.memory_space<vmem>>, vector<2x256xf32>
      tpu.vector_store %arg8[%c0_10, %c0_11], %12 {strides = array<i32>} : memref<2x256xf32, #tpu.memory_space<vmem>>, vector<2x256xf32>,
    } else {
    }
    %c0 = arith.constant 0 : index
    %c0_1 = arith.constant 0 : index
    %3 = vector.load %arg8[%c0, %c0_1] : memref<2x256xf32, #tpu.memory_space<vmem>>, vector<2x256xf32>
    %c0_2 = arith.constant 0 : index
    %c0_3 = arith.constant 0 : index
    %4 = vector.load %arg3[%c0_2, %c0_3] : memref<2x512xbf16, #tpu.memory_space<vmem>>, vector<2x512xbf16>
    %c0_4 = arith.constant 0 : index
    %c0_5 = arith.constant 0 : index
    %5 = vector.load %arg4[%c0_4, %c0_5] : memref<512x256xbf16, #tpu.memory_space<vmem>>, vector<512x256xbf16>
    %cst = arith.constant dense<0.000000e+00> : vector<2x256xf32>
    %6 = tpu.matmul %4, %5, %cst {dimension_numbers = #tpu.dot_dimension_numbers<[1], [0], [0], [1], [0, 0, 1, 1], [], []>} : vector<2x512xbf16>, vector<512x256xbf16>, vector<2x256xf32> -> vector<2x256xf32>
    %7 = arith.addf %3, %6 : vector<2x256xf32>
    %c0_6 = arith.constant 0 : index
    %c0_7 = arith.constant 0 : index
    %8 = vector.load %arg8[%c0_6, %c0_7] : memref<2x256xf32, #tpu.memory_space<vmem>>, vector<2x256xf32>
    tpu.vector_store %arg8[%c0_6, %c0_7], %7 {strides = array<i32>} : memref<2x256xf32, #tpu.memory_space<vmem>>, vector<2x256xf32>,
    %c8_i32 = arith.constant 8 : i32
    %9 = arith.cmpi eq, %arg2, %c8_i32 : i32
    %10 = arith.extui %9 : i1 to i32
    %c0_i32_8 = arith.constant 0 : i32
    %11 = arith.cmpi ne, %10, %c0_i32_8 : i32
    scf.if %11 {
      %c0_9 = arith.constant 0 : index
      %c0_10 = arith.constant 0 : index
      %12 = vector.load %arg8[%c0_9, %c0_10] : memref<2x256xf32, #tpu.memory_space<vmem>>, vector<2x256xf32>
      %13 = arith.truncf %12 : vector<2x256xf32> to vector<2x256xbf16>
      %c0_11 = arith.constant 0 : index
      %c0_12 = arith.constant 0 : index
      %14 = vector.load %arg5[%c0_11, %c0_12] : memref<2x256xbf16, #tpu.memory_space<vmem>>, vector<2x256xbf16>
      tpu.vector_store %arg5[%c0_11, %c0_12], %13 {strides = array<i32>} : memref<2x256xbf16, #tpu.memory_space<vmem>>, vector<2x256xbf16>,
      %cst_13 = arith.constant dense<0.000000e+00> : vector<256xf32>
      %15 = vector.multi_reduction <add>, %12, %cst_13 [0] : vector<2x256xf32> to vector<256xf32>
      %16 = vector.shape_cast %15 : vector<256xf32> to vector<1x256xf32>
      %17 = vector.shape_cast %16 : vector<1x256xf32> to vector<1x1x256xf32>
      %c0_14 = arith.constant 0 : index
      %c0_15 = arith.constant 0 : index
      %c0_16 = arith.constant 0 : index
      %18 = vector.load %arg6[%c0_14, %c0_15, %c0_16] : memref<1x1x256xf32, #tpu.memory_space<vmem>>, vector<1x1x256xf32>
      tpu.vector_store %arg6[%c0_14, %c0_15, %c0_16], %17 {strides = array<i32>} : memref<1x1x256xf32, #tpu.memory_space<vmem>>, vector<1x1x256xf32>,
      %19 = arith.mulf %12, %12 : vector<2x256xf32>
      %cst_17 = arith.constant dense<0.000000e+00> : vector<256xf32>
      %20 = vector.multi_reduction <add>, %19, %cst_17 [0] : vector<2x256xf32> to vector<256xf32>
      %21 = vector.shape_cast %20 : vector<256xf32> to vector<1x256xf32>
      %22 = vector.shape_cast %21 : vector<1x256xf32> to vector<1x1x256xf32>
      %c0_18 = arith.constant 0 : index
      %c0_19 = arith.constant 0 : index
      %c0_20 = arith.constant 0 : index
      %23 = vector.load %arg7[%c0_18, %c0_19, %c0_20] : memref<1x1x256xf32, #tpu.memory_space<vmem>>, vector<1x1x256xf32>
      tpu.vector_store %arg7[%c0_18, %c0_19, %c0_20], %22 {strides = array<i32>} : memref<1x1x256xf32, #tpu.memory_space<vmem>>, vector<1x1x256xf32>,
    } else {
    }
    return
  }
  func.func @transform_0(%arg0: i32, %arg1: i32, %arg2: i32) -> (i32, i32) {
    %c0_i32 = arith.constant 0 : i32
    return %arg0, %arg2 : i32, i32
  }
  func.func @transform_1(%arg0: i32, %arg1: i32, %arg2: i32) -> (i32, i32) {
    %c0_i32 = arith.constant 0 : i32
    return %arg2, %arg1 : i32, i32
  }
  func.func @transform_2(%arg0: i32, %arg1: i32, %arg2: i32) -> (i32, i32) {
    %c0_i32 = arith.constant 0 : i32
    return %arg0, %arg1 : i32, i32
  }
  func.func @transform_3(%arg0: i32, %arg1: i32, %arg2: i32) -> (i32, i32, i32) {
    %c0_i32 = arith.constant 0 : i32
    %c0_i32_0 = arith.constant 0 : i32
    return %arg0, %c0_i32, %arg1 : i32, i32, i32
  }
  func.func @transform_4(%arg0: i32, %arg1: i32, %arg2: i32) -> (i32, i32, i32) {
    %c0_i32 = arith.constant 0 : i32
    %c0_i32_0 = arith.constant 0 : i32
    return %arg0, %c0_i32, %arg1 : i32, i32, i32
  }
}

module attributes {stable_mosaic.version = 11 : i64} {
  func.func @_bn_apply_kernel(%arg0: i32, %arg1: memref<2x512xbf16, #tpu.memory_space<vmem>>, %arg2: memref<1x512xf32, #tpu.memory_space<vmem>>, %arg3: memref<1x512xf32, #tpu.memory_space<vmem>>, %arg4: memref<2x512xbf16, #tpu.memory_space<vmem>>, %arg5: memref<2x512xbf16, #tpu.memory_space<vmem>>) attributes {dimension_semantics = [#tpu.dimension_semantics<parallel>], iteration_bounds = array<i64: 1>, scalar_prefetch = 0 : i64, scratch_operands = 0 : i64, tpu.core_type = #tpu.core_type<tc>, window_params = [{transform_indices = @transform_0, window_bounds = array<i64: 2, 512>}, {pipeline_mode = #tpu.pipeline_mode<synchronous>, transform_indices = @transform_1, window_bounds = array<i64: 1, 512>}, {pipeline_mode = #tpu.pipeline_mode<synchronous>, transform_indices = @transform_2, window_bounds = array<i64: 1, 512>}, {transform_indices = @transform_3, window_bounds = array<i64: 2, 512>}, {transform_indices = @transform_4, window_bounds = array<i64: 2, 512>}]} {
    %c0 = arith.constant 0 : index
    %c0_0 = arith.constant 0 : index
    %0 = vector.load %arg1[%c0, %c0_0] : memref<2x512xbf16, #tpu.memory_space<vmem>>, vector<2x512xbf16>
    %1 = arith.extf %0 : vector<2x512xbf16> to vector<2x512xf32>
    %c0_1 = arith.constant 0 : index
    %c0_2 = arith.constant 0 : index
    %2 = vector.load %arg2[%c0_1, %c0_2] : memref<1x512xf32, #tpu.memory_space<vmem>>, vector<1x512xf32>
    %3 = vector.broadcast %2 : vector<1x512xf32> to vector<2x512xf32>
    %4 = arith.mulf %1, %3 : vector<2x512xf32>
    %c0_3 = arith.constant 0 : index
    %c0_4 = arith.constant 0 : index
    %5 = vector.load %arg3[%c0_3, %c0_4] : memref<1x512xf32, #tpu.memory_space<vmem>>, vector<1x512xf32>
    %6 = vector.broadcast %5 : vector<1x512xf32> to vector<2x512xf32>
    %7 = arith.addf %4, %6 : vector<2x512xf32>
    %c0_5 = arith.constant 0 : index
    %c0_6 = arith.constant 0 : index
    %8 = vector.load %arg4[%c0_5, %c0_6] : memref<2x512xbf16, #tpu.memory_space<vmem>>, vector<2x512xbf16>
    %9 = arith.extf %8 : vector<2x512xbf16> to vector<2x512xf32>
    %10 = arith.addf %7, %9 : vector<2x512xf32>
    %cst = arith.constant 0.000000e+00 : f32
    %11 = vector.broadcast %cst : f32 to vector<2x512xf32>
    %12 = arith.maximumf %10, %11 : vector<2x512xf32>
    %13 = arith.truncf %12 : vector<2x512xf32> to vector<2x512xbf16>
    %c0_7 = arith.constant 0 : index
    %c0_8 = arith.constant 0 : index
    %14 = vector.load %arg5[%c0_7, %c0_8] : memref<2x512xbf16, #tpu.memory_space<vmem>>, vector<2x512xbf16>
    tpu.vector_store %arg5[%c0_7, %c0_8], %13 {strides = array<i32>} : memref<2x512xbf16, #tpu.memory_space<vmem>>, vector<2x512xbf16>,
    return
  }
  func.func @transform_0(%arg0: i32) -> (i32, i32) {
    %c0_i32 = arith.constant 0 : i32
    %c0_i32_0 = arith.constant 0 : i32
    return %arg0, %c0_i32 : i32, i32
  }
  func.func @transform_1(%arg0: i32) -> (i32, i32) {
    %c0_i32 = arith.constant 0 : i32
    %c0_i32_0 = arith.constant 0 : i32
    %c0_i32_1 = arith.constant 0 : i32
    return %c0_i32, %c0_i32_0 : i32, i32
  }
  func.func @transform_2(%arg0: i32) -> (i32, i32) {
    %c0_i32 = arith.constant 0 : i32
    %c0_i32_0 = arith.constant 0 : i32
    %c0_i32_1 = arith.constant 0 : i32
    return %c0_i32, %c0_i32_0 : i32, i32
  }
  func.func @transform_3(%arg0: i32) -> (i32, i32) {
    %c0_i32 = arith.constant 0 : i32
    %c0_i32_0 = arith.constant 0 : i32
    return %arg0, %c0_i32 : i32, i32
  }
  func.func @transform_4(%arg0: i32) -> (i32, i32) {
    %c0_i32 = arith.constant 0 : i32
    %c0_i32_0 = arith.constant 0 : i32
    return %arg0, %c0_i32 : i32, i32
  }
}

module attributes {stable_mosaic.version = 11 : i64} {
  func.func @_pool_fc_kernel(%arg0: i32, %arg1: memref<2x1x512xbf16, #tpu.memory_space<vmem>>, %arg2: memref<512x128xf32, #tpu.memory_space<vmem>>, %arg3: memref<1x128xf32, #tpu.memory_space<vmem>>, %arg4: memref<2x128xf32, #tpu.memory_space<vmem>>) attributes {dimension_semantics = [#tpu.dimension_semantics<arbitrary>], iteration_bounds = array<i64: 1>, scalar_prefetch = 0 : i64, scratch_operands = 0 : i64, tpu.core_type = #tpu.core_type<tc>, window_params = [{pipeline_mode = #tpu.pipeline_mode<synchronous>, transform_indices = @transform_0, window_bounds = array<i64: 2, 1, 512>}, {pipeline_mode = #tpu.pipeline_mode<synchronous>, transform_indices = @transform_1, window_bounds = array<i64: 512, 128>}, {pipeline_mode = #tpu.pipeline_mode<synchronous>, transform_indices = @transform_2, window_bounds = array<i64: 1, 128>}, {pipeline_mode = #tpu.pipeline_mode<synchronous>, transform_indices = @transform_3, window_bounds = array<i64: 2, 128>}]} {
    %c0 = arith.constant 0 : index
    %c0_0 = arith.constant 0 : index
    %c0_1 = arith.constant 0 : index
    %0 = vector.load %arg1[%c0, %c0_0, %c0_1] : memref<2x1x512xbf16, #tpu.memory_space<vmem>>, vector<2x1x512xbf16>
    %1 = arith.extf %0 : vector<2x1x512xbf16> to vector<2x1x512xf32>
    %cst = arith.constant dense<0.000000e+00> : vector<2x512xf32>
    %2 = vector.multi_reduction <add>, %1, %cst [1] : vector<2x1x512xf32> to vector<2x512xf32>
    %cst_2 = arith.constant 1.000000e+00 : f32
    %3 = vector.broadcast %cst_2 : f32 to vector<2x512xf32>
    %4 = arith.divf %2, %3 : vector<2x512xf32>
    %c0_3 = arith.constant 0 : index
    %c0_4 = arith.constant 0 : index
    %5 = vector.load %arg2[%c0_3, %c0_4] : memref<512x128xf32, #tpu.memory_space<vmem>>, vector<512x128xf32>
    %cst_5 = arith.constant dense<0.000000e+00> : vector<2x128xf32>
    %6 = tpu.matmul %4, %5, %cst_5 {dimension_numbers = #tpu.dot_dimension_numbers<[1], [0], [0], [1], [0, 0, 1, 1], [], []>} : vector<2x512xf32>, vector<512x128xf32>, vector<2x128xf32> -> vector<2x128xf32>
    %c0_6 = arith.constant 0 : index
    %c0_7 = arith.constant 0 : index
    %7 = vector.load %arg3[%c0_6, %c0_7] : memref<1x128xf32, #tpu.memory_space<vmem>>, vector<1x128xf32>
    %8 = vector.broadcast %7 : vector<1x128xf32> to vector<2x128xf32>
    %9 = arith.addf %6, %8 : vector<2x128xf32>
    %c0_8 = arith.constant 0 : index
    %c0_9 = arith.constant 0 : index
    %10 = vector.load %arg4[%c0_8, %c0_9] : memref<2x128xf32, #tpu.memory_space<vmem>>, vector<2x128xf32>
    tpu.vector_store %arg4[%c0_8, %c0_9], %9 {strides = array<i32>} : memref<2x128xf32, #tpu.memory_space<vmem>>, vector<2x128xf32>,
    return
  }
  func.func @transform_0(%arg0: i32) -> (i32, i32, i32) {
    %c0_i32 = arith.constant 0 : i32
    %c0_i32_0 = arith.constant 0 : i32
    %c0_i32_1 = arith.constant 0 : i32
    %c0_i32_2 = arith.constant 0 : i32
    return %c0_i32, %c0_i32_0, %c0_i32_1 : i32, i32, i32
  }
  func.func @transform_1(%arg0: i32) -> (i32, i32) {
    %c0_i32 = arith.constant 0 : i32
    %c0_i32_0 = arith.constant 0 : i32
    %c0_i32_1 = arith.constant 0 : i32
    return %c0_i32, %c0_i32_0 : i32, i32
  }
  func.func @transform_2(%arg0: i32) -> (i32, i32) {
    %c0_i32 = arith.constant 0 : i32
    %c0_i32_0 = arith.constant 0 : i32
    %c0_i32_1 = arith.constant 0 : i32
    return %c0_i32, %c0_i32_0 : i32, i32
  }
  func.func @transform_3(%arg0: i32) -> (i32, i32) {
    %c0_i32 = arith.constant 0 : i32
    %c0_i32_0 = arith.constant 0 : i32
    %c0_i32_1 = arith.constant 0 : i32
    return %c0_i32, %c0_i32_0 : i32, i32
  }
}

</mosaic_0001>

<bundles_post_ra>
// kernel: backbone_forward.75
= control target key start
LH: loop header
LB: loop body
LE: loop exit
PB: predicated region body
PF: predicated region fallthrough
CT: control target
= control target key end

     0   :  { %s1176_s0 = inlined_call_operand.vmem [shape: bf16[512,128], index: 0, kind: input, shape index: {}]   ;;  %s1177_s1 = inlined_call_operand.vmem [shape: f32[1,128], index: 1, kind: input, shape index: {}]   ;;  %s1178_s2 = inlined_call_operand.vmem [shape: f32[1,128], index: 2, kind: input, shape index: {}]   ;;  %s1179_s3 = inlined_call_operand.vmem [shape: bf16[512,128], index: 3, kind: output, shape index: {}]  }
   0x1   :  { %v475_v0 = vld [vmem:[%s1176_s0] sm:$0xff]   ;;  %v762_v5 = vld [vmem:[%s1176_s0 + $0x8] sm:$0xff]   ;;  %v763_v8 = vld [vmem:[%s1176_s0 + $0x10] sm:$0xff]  }
   0x2   :  { %v852_v1 = vld [vmem:[%s1177_s1] ss:$0 sm:$0xff]  ;;  %v476_v2 = vunpack.c.l.bf16 %v475_v0  ;;  %v477_v3 = vunpack.c.h.bf16 %v475_v0  ;;  %v480_v6 = vunpack.c.l.bf16 %v762_v5  ;;  %v481_v7 = vunpack.c.h.bf16 %v762_v5  ;;  %v764_v9 = vld [vmem:[%s1176_s0 + $0x18] sm:$0xff]   ;;  %v766_v35 = vld [vmem:[%s1176_s0 + $0x28] sm:$0xff]  }
   0x3   :  { %v857_v4 = vld [vmem:[%s1178_s2] ss:$0 sm:$0xff]  ;;  %v484_v12 = vunpack.c.l.bf16 %v763_v8  ;;  %v485_v13 = vunpack.c.h.bf16 %v763_v8  ;;  %v488_v16 = vunpack.c.l.bf16 %v764_v9  ;;  %v489_v17 = vunpack.c.h.bf16 %v764_v9  ;;  %v767_v40 = vld [vmem:[%s1176_s0 + $0x30] sm:$0xff]   ;;  %v768_v45 = vld [vmem:[%s1176_s0 + $0x38] sm:$0xff]  }
   0x4   :  { %v146_v10 = vmul.f32 %v852_v1, %v476_v2  ;;  %v147_v11 = vmul.f32 %v852_v1, %v477_v3  ;;  %v148_v14 = vmul.f32 %v852_v1, %v480_v6  ;;  %v149_v15 = vmul.f32 %v852_v1, %v481_v7  ;;  %v765_v26 = vld [vmem:[%s1176_s0 + $0x20] sm:$0xff]  }
   0x5   :  { %v150_v20 = vmul.f32 %v852_v1, %v484_v12  ;;  %v151_v21 = vmul.f32 %v852_v1, %v485_v13  ;;  %v152_v24 = vmul.f32 %v852_v1, %v488_v16  ;;  %v153_v25 = vmul.f32 %v852_v1, %v489_v17  ;;  %v769_v62 = vld [vmem:[%s1176_s0 + $0x40] sm:$0xff]   ;;  %v770_v13 = vld [vmem:[%s1176_s0 + $0x48] sm:$0xff]  }
   0x6   :  { %v214_v18 = vadd.f32 %v857_v4, %v146_v10  ;;  %v215_v19 = vadd.f32 %v857_v4, %v147_v11  ;;  %v216_v22 = vadd.f32 %v857_v4, %v148_v14  ;;  %v217_v23 = vadd.f32 %v857_v4, %v149_v15 }
   0x7   :  { %v218_v29 = vadd.f32 %v857_v4, %v150_v20  ;;  %v219_v30 = vadd.f32 %v857_v4, %v151_v21  ;;  %v220_v33 = vadd.f32 %v857_v4, %v152_v24  ;;  %v221_v34 = vadd.f32 %v857_v4, %v153_v25 }
   0x8   :  { %v278_v27 = vmax.f32 %v214_v18, 0.0  ;;  %v279_v28 = vmax.f32 %v215_v19, 0.0  ;;  %v280_v31 = vmax.f32 %v216_v22, 0.0  ;;  %v281_v32 = vmax.f32 %v217_v23, 0.0  ;;  %v771_v18 = vld [vmem:[%s1176_s0 + $0x50] sm:$0xff]   ;;  %v772_v23 = vld [vmem:[%s1176_s0 + $0x58] sm:$0xff]  }
   0x9   :  { %v282_v37 = vmax.f32 %v218_v29, 0.0  ;;  %v283_v38 = vmax.f32 %v219_v30, 0.0  ;;  %v492_v39 = vunpack.c.l.bf16 %v765_v26  ;;  %v284_v42 = vmax.f32 %v220_v33, 0.0 }
   0xa   :  { %v605_v36 = vpack.c.bf16 %v279_v28, %v278_v27  ;;  %v610_v41 = vpack.c.bf16 %v281_v32, %v280_v31  ;;  %v285_v43 = vmax.f32 %v221_v34, 0.0  ;;  %v493_v44 = vunpack.c.h.bf16 %v765_v26 }
   0xb   :  { %v615_v46 = vpack.c.bf16 %v283_v38, %v282_v37  ;;  %v154_v47 = vmul.f32 %v852_v1, %v492_v39  ;;  %v496_v48 = vunpack.c.l.bf16 %v766_v35  ;;  %v497_v49 = vunpack.c.h.bf16 %v766_v35 }
   0xc   :  { %606 = vst [vmem:[%s1179_s3] sm:$0xff] %v605_v36   ;;  %v620_v50 = vpack.c.bf16 %v285_v43, %v284_v42  ;;  %v155_v51 = vmul.f32 %v852_v1, %v493_v44  ;;  %v500_v52 = vunpack.c.l.bf16 %v767_v40  ;;  %v501_v53 = vunpack.c.h.bf16 %v767_v40  ;;  %v773_v36 = vld [vmem:[%s1176_s0 + $0x60] sm:$0xff]  }
   0xd   :  { %793 = vst [vmem:[%s1179_s3 + $0x8] sm:$0xff] %v610_v41   ;;  %v222_v54 = vadd.f32 %v857_v4, %v154_v47  ;;  %v156_v55 = vmul.f32 %v852_v1, %v496_v48  ;;  %v157_v56 = vmul.f32 %v852_v1, %v497_v49  ;;  %v504_v57 = vunpack.c.l.bf16 %v768_v45 }
   0xe   :  { %794 = vst [vmem:[%s1179_s3 + $0x10] sm:$0xff] %v615_v46   ;;  %v223_v58 = vadd.f32 %v857_v4, %v155_v51  ;;  %v158_v59 = vmul.f32 %v852_v1, %v500_v52  ;;  %v159_v60 = vmul.f32 %v852_v1, %v501_v53  ;;  %v505_v61 = vunpack.c.h.bf16 %v768_v45  ;;  %v774_v53 = vld [vmem:[%s1176_s0 + $0x68] sm:$0xff]  }
   0xf   :  { %795 = vst [vmem:[%s1179_s3 + $0x18] sm:$0xff] %v620_v50   ;;  %v286_v63 = vmax.f32 %v222_v54, 0.0  ;;  %v224_v0 = vadd.f32 %v857_v4, %v156_v55  ;;  %v225_v2 = vadd.f32 %v857_v4, %v157_v56  ;;  %v160_v3 = vmul.f32 %v852_v1, %v504_v57 }
  0x10   :  { %v287_v5 = vmax.f32 %v223_v58, 0.0  ;;  %v226_v6 = vadd.f32 %v857_v4, %v158_v59  ;;  %v227_v7 = vadd.f32 %v857_v4, %v159_v60  ;;  %v161_v8 = vmul.f32 %v852_v1, %v505_v61  ;;  %v775_v58 = vld [vmem:[%s1176_s0 + $0x70] sm:$0xff]  }
  0x11   :  { %v288_v9 = vmax.f32 %v224_v0, 0.0  ;;  %v289_v10 = vmax.f32 %v225_v2, 0.0  ;;  %v228_v11 = vadd.f32 %v857_v4, %v160_v3  ;;  %v508_v12 = vunpack.c.l.bf16 %v769_v62 }
  0x12   :  { %v625_v14 = vpack.c.bf16 %v287_v5, %v286_v63  ;;  %v290_v15 = vmax.f32 %v226_v6, 0.0  ;;  %v291_v16 = vmax.f32 %v227_v7, 0.0  ;;  %v229_v17 = vadd.f32 %v857_v4, %v161_v8  ;;  %v776_v63 = vld [vmem:[%s1176_s0 + $0x78] sm:$0xff]  }
  0x13   :  { %v630_v19 = vpack.c.bf16 %v289_v10, %v288_v9  ;;  %v292_v20 = vmax.f32 %v228_v11, 0.0  ;;  %v509_v21 = vunpack.c.h.bf16 %v769_v62  ;;  %v162_v22 = vmul.f32 %v852_v1, %v508_v12 }
  0x14   :  { %796 = vst [vmem:[%s1179_s3 + $0x20] sm:$0xff] %v625_v14   ;;  %v635_v24 = vpack.c.bf16 %v291_v16, %v290_v15  ;;  %v293_v25 = vmax.f32 %v229_v17, 0.0  ;;  %v512_v26 = vunpack.c.l.bf16 %v770_v13  ;;  %v513_v27 = vunpack.c.h.bf16 %v770_v13  ;;  %v777_v14 = vld [vmem:[%s1176_s0 + $0x80] sm:$0xff]  }
  0x15   :  { %797 = vst [vmem:[%s1179_s3 + $0x28] sm:$0xff] %v630_v19   ;;  %v163_v28 = vmul.f32 %v852_v1, %v509_v21  ;;  %v230_v29 = vadd.f32 %v857_v4, %v162_v22  ;;  %v516_v30 = vunpack.c.l.bf16 %v771_v18  ;;  %v517_v31 = vunpack.c.h.bf16 %v771_v18 }
  0x16   :  { %798 = vst [vmem:[%s1179_s3 + $0x30] sm:$0xff] %v635_v24   ;;  %v640_v32 = vpack.c.bf16 %v293_v25, %v292_v20  ;;  %v164_v33 = vmul.f32 %v852_v1, %v512_v26  ;;  %v165_v34 = vmul.f32 %v852_v1, %v513_v27  ;;  %v520_v35 = vunpack.c.l.bf16 %v772_v23  ;;  %v778_v27 = vld [vmem:[%s1176_s0 + $0x88] sm:$0xff]  }
  0x17   :  { %v231_v37 = vadd.f32 %v857_v4, %v163_v28  ;;  %v294_v38 = vmax.f32 %v230_v29, 0.0  ;;  %v166_v39 = vmul.f32 %v852_v1, %v516_v30  ;;  %v167_v40 = vmul.f32 %v852_v1, %v517_v31 }
  0x18   :  { %799 = vst [vmem:[%s1179_s3 + $0x38] sm:$0xff] %v640_v32   ;;  %v232_v41 = vadd.f32 %v857_v4, %v164_v33  ;;  %v233_v42 = vadd.f32 %v857_v4, %v165_v34  ;;  %v521_v43 = vunpack.c.h.bf16 %v772_v23  ;;  %v168_v44 = vmul.f32 %v852_v1, %v520_v35 }
  0x19   :  { %v295_v45 = vmax.f32 %v231_v37, 0.0  ;;  %v234_v46 = vadd.f32 %v857_v4, %v166_v39  ;;  %v235_v47 = vadd.f32 %v857_v4, %v167_v40  ;;  %v524_v48 = vunpack.c.l.bf16 %v773_v36 }
  0x1a   :  { %v296_v49 = vmax.f32 %v232_v41, 0.0  ;;  %v297_v50 = vmax.f32 %v233_v42, 0.0  ;;  %v169_v51 = vmul.f32 %v852_v1, %v521_v43  ;;  %v236_v52 = vadd.f32 %v857_v4, %v168_v44  ;;  %v780_v41 = vld [vmem:[%s1176_s0 + $0x98] sm:$0xff]  }
  0x1b   :  { %v645_v54 = vpack.c.bf16 %v295_v45, %v294_v38  ;;  %v298_v55 = vmax.f32 %v234_v46, 0.0  ;;  %v299_v56 = vmax.f32 %v235_v47, 0.0  ;;  %v525_v57 = vunpack.c.h.bf16 %v773_v36  ;;  %v779_v36 = vld [vmem:[%s1176_s0 + $0x90] sm:$0xff]  }
  0x1c   :  { %v650_v59 = vpack.c.bf16 %v297_v50, %v296_v49  ;;  %v237_v60 = vadd.f32 %v857_v4, %v169_v51  ;;  %v300_v61 = vmax.f32 %v236_v52, 0.0  ;;  %v170_v62 = vmul.f32 %v852_v1, %v524_v48 }
  0x1d   :  { %800 = vst [vmem:[%s1179_s3 + $0x40] sm:$0xff] %v645_v54   ;;  %v655_v0 = vpack.c.bf16 %v299_v56, %v298_v55  ;;  %v171_v2 = vmul.f32 %v852_v1, %v525_v57  ;;  %v528_v3 = vunpack.c.l.bf16 %v774_v53  ;;  %v529_v5 = vunpack.c.h.bf16 %v774_v53  ;;  %v781_v54 = vld [vmem:[%s1176_s0 + $0xa0] sm:$0xff]  }
  0x1e   :  { %801 = vst [vmem:[%s1179_s3 + $0x48] sm:$0xff] %v650_v59   ;;  %v301_v6 = vmax.f32 %v237_v60, 0.0  ;;  %v238_v7 = vadd.f32 %v857_v4, %v170_v62  ;;  %v532_v8 = vunpack.c.l.bf16 %v775_v58  ;;  %v533_v9 = vunpack.c.h.bf16 %v775_v58 }
  0x1f   :  { %802 = vst [vmem:[%s1179_s3 + $0x50] sm:$0xff] %v655_v0   ;;  %v239_v10 = vadd.f32 %v857_v4, %v171_v2  ;;  %v172_v11 = vmul.f32 %v852_v1, %v528_v3  ;;  %v173_v12 = vmul.f32 %v852_v1, %v529_v5  ;;  %v536_v13 = vunpack.c.l.bf16 %v776_v63  ;;  %v782_v5 = vld [vmem:[%s1176_s0 + $0xa8] sm:$0xff]  }
  0x20   :  { %v660_v15 = vpack.c.bf16 %v301_v6, %v300_v61  ;;  %v302_v16 = vmax.f32 %v238_v7, 0.0  ;;  %v174_v17 = vmul.f32 %v852_v1, %v532_v8  ;;  %v175_v18 = vmul.f32 %v852_v1, %v533_v9 }
  0x21   :  { %v303_v19 = vmax.f32 %v239_v10, 0.0  ;;  %v240_v20 = vadd.f32 %v857_v4, %v172_v11  ;;  %v241_v21 = vadd.f32 %v857_v4, %v173_v12  ;;  %v537_v22 = vunpack.c.h.bf16 %v776_v63 }
  0x22   :  { %803 = vst [vmem:[%s1179_s3 + $0x58] sm:$0xff] %v660_v15   ;;  %v242_v23 = vadd.f32 %v857_v4, %v174_v17  ;;  %v243_v24 = vadd.f32 %v857_v4, %v175_v18  ;;  %v176_v25 = vmul.f32 %v852_v1, %v536_v13  ;;  %v540_v26 = vunpack.c.l.bf16 %v777_v14 }
  0x23   :  { %v665_v28 = vpack.c.bf16 %v303_v19, %v302_v16  ;;  %v304_v29 = vmax.f32 %v240_v20, 0.0  ;;  %v305_v30 = vmax.f32 %v241_v21, 0.0  ;;  %v177_v31 = vmul.f32 %v852_v1, %v537_v22 }
  0x24   :  { %v306_v32 = vmax.f32 %v242_v23, 0.0  ;;  %v307_v33 = vmax.f32 %v243_v24, 0.0  ;;  %v244_v34 = vadd.f32 %v857_v4, %v176_v25  ;;  %v541_v35 = vunpack.c.h.bf16 %v777_v14  ;;  %v783_v14 = vld [vmem:[%s1176_s0 + $0xb0] sm:$0xff]   ;;  %v784_v23 = vld [vmem:[%s1176_s0 + $0xb8] sm:$0xff]  }
  0x25   :  { %804 = vst [vmem:[%s1179_s3 + $0x60] sm:$0xff] %v665_v28   ;;  %v670_v37 = vpack.c.bf16 %v305_v30, %v304_v29  ;;  %v245_v38 = vadd.f32 %v857_v4, %v177_v31  ;;  %v178_v39 = vmul.f32 %v852_v1, %v540_v26  ;;  %v544_v40 = vunpack.c.l.bf16 %v778_v27 }
  0x26   :  { %v675_v42 = vpack.c.bf16 %v307_v33, %v306_v32  ;;  %v308_v43 = vmax.f32 %v244_v34, 0.0  ;;  %v179_v44 = vmul.f32 %v852_v1, %v541_v35  ;;  %v545_v45 = vunpack.c.h.bf16 %v778_v27  ;;  %v785_v32 = vld [vmem:[%s1176_s0 + $0xc0] sm:$0xff]  }
  0x27   :  { %805 = vst [vmem:[%s1179_s3 + $0x68] sm:$0xff] %v670_v37   ;;  %v309_v46 = vmax.f32 %v245_v38, 0.0  ;;  %v246_v47 = vadd.f32 %v857_v4, %v178_v39  ;;  %v180_v48 = vmul.f32 %v852_v1, %v544_v40  ;;  %v548_v49 = vunpack.c.l.bf16 %v779_v36 }
  0x28   :  { %806 = vst [vmem:[%s1179_s3 + $0x70] sm:$0xff] %v675_v42   ;;  %v247_v50 = vadd.f32 %v857_v4, %v179_v44  ;;  %v181_v51 = vmul.f32 %v852_v1, %v545_v45  ;;  %v549_v52 = vunpack.c.h.bf16 %v779_v36  ;;  %v552_v53 = vunpack.c.l.bf16 %v780_v41  ;;  %v786_v45 = vld [vmem:[%s1176_s0 + $0xc8] sm:$0xff]  }
  0x29   :  { %v680_v55 = vpack.c.bf16 %v309_v46, %v308_v43  ;;  %v310_v56 = vmax.f32 %v246_v47, 0.0  ;;  %v248_v57 = vadd.f32 %v857_v4, %v180_v48  ;;  %v182_v58 = vmul.f32 %v852_v1, %v548_v49 }
  0x2a   :  { %v311_v59 = vmax.f32 %v247_v50, 0.0  ;;  %v249_v60 = vadd.f32 %v857_v4, %v181_v51  ;;  %v183_v61 = vmul.f32 %v852_v1, %v549_v52  ;;  %v553_v62 = vunpack.c.h.bf16 %v780_v41 }
  0x2b   :  { %807 = vst [vmem:[%s1179_s3 + $0x78] sm:$0xff] %v680_v55   ;;  %v312_v63 = vmax.f32 %v248_v57, 0.0  ;;  %v250_v0 = vadd.f32 %v857_v4, %v182_v58  ;;  %v184_v2 = vmul.f32 %v852_v1, %v552_v53  ;;  %v556_v3 = vunpack.c.l.bf16 %v781_v54 }
  0x2c   :  { %v685_v6 = vpack.c.bf16 %v311_v59, %v310_v56  ;;  %v313_v7 = vmax.f32 %v249_v60, 0.0  ;;  %v251_v8 = vadd.f32 %v857_v4, %v183_v61  ;;  %v185_v9 = vmul.f32 %v852_v1, %v553_v62 }
  0x2d   :  { %v314_v10 = vmax.f32 %v250_v0, 0.0  ;;  %v252_v11 = vadd.f32 %v857_v4, %v184_v2  ;;  %v557_v12 = vunpack.c.h.bf16 %v781_v54  ;;  %v186_v13 = vmul.f32 %v852_v1, %v556_v3  ;;  %v787_v54 = vld [vmem:[%s1176_s0 + $0xd0] sm:$0xff]  }
  0x2e   :  { %808 = vst [vmem:[%s1179_s3 + $0x80] sm:$0xff] %v685_v6   ;;  %v690_v15 = vpack.c.bf16 %v313_v7, %v312_v63  ;;  %v315_v16 = vmax.f32 %v251_v8, 0.0  ;;  %v253_v17 = vadd.f32 %v857_v4, %v185_v9  ;;  %v560_v18 = vunpack.c.l.bf16 %v782_v5  ;;  %v788_v63 = vld [vmem:[%s1176_s0 + $0xd8] sm:$0xff]  }
  0x2f   :  { %v316_v19 = vmax.f32 %v252_v11, 0.0  ;;  %v187_v20 = vmul.f32 %v852_v1, %v557_v12  ;;  %v254_v21 = vadd.f32 %v857_v4, %v186_v13  ;;  %v561_v22 = vunpack.c.h.bf16 %v782_v5 }
  0x30   :  { %809 = vst [vmem:[%s1179_s3 + $0x88] sm:$0xff] %v690_v15   ;;  %v695_v24 = vpack.c.bf16 %v315_v16, %v314_v10  ;;  %v317_v25 = vmax.f32 %v253_v17, 0.0  ;;  %v188_v26 = vmul.f32 %v852_v1, %v560_v18  ;;  %v564_v27 = vunpack.c.l.bf16 %v783_v14  ;;  %v789_v10 = vld [vmem:[%s1176_s0 + $0xe0] sm:$0xff]  }
  0x31   :  { %v255_v28 = vadd.f32 %v857_v4, %v187_v20  ;;  %v318_v29 = vmax.f32 %v254_v21, 0.0  ;;  %v189_v30 = vmul.f32 %v852_v1, %v561_v22  ;;  %v565_v31 = vunpack.c.h.bf16 %v783_v14 }
  0x32   :  { %810 = vst [vmem:[%s1179_s3 + $0x90] sm:$0xff] %v695_v24   ;;  %v700_v33 = vpack.c.bf16 %v317_v25, %v316_v19  ;;  %v256_v34 = vadd.f32 %v857_v4, %v188_v26  ;;  %v190_v35 = vmul.f32 %v852_v1, %v564_v27  ;;  %v568_v36 = vunpack.c.l.bf16 %v784_v23 }
  0x33   :  { %v319_v37 = vmax.f32 %v255_v28, 0.0  ;;  %v257_v38 = vadd.f32 %v857_v4, %v189_v30  ;;  %v191_v39 = vmul.f32 %v852_v1, %v565_v31  ;;  %v569_v40 = vunpack.c.h.bf16 %v784_v23  ;;  %v790_v23 = vld [vmem:[%s1176_s0 + $0xe8] sm:$0xff]  }
  0x34   :  { %811 = vst [vmem:[%s1179_s3 + $0x98] sm:$0xff] %v700_v33   ;;  %v320_v41 = vmax.f32 %v256_v34, 0.0  ;;  %v258_v42 = vadd.f32 %v857_v4, %v190_v35  ;;  %v192_v43 = vmul.f32 %v852_v1, %v568_v36  ;;  %v572_v44 = vunpack.c.l.bf16 %v785_v32 }
  0x35   :  { %v705_v46 = vpack.c.bf16 %v319_v37, %v318_v29  ;;  %v321_v47 = vmax.f32 %v257_v38, 0.0  ;;  %v259_v48 = vadd.f32 %v857_v4, %v191_v39  ;;  %v193_v49 = vmul.f32 %v852_v1, %v569_v40 }
  0x36   :  { %v322_v50 = vmax.f32 %v258_v42, 0.0  ;;  %v260_v51 = vadd.f32 %v857_v4, %v192_v43  ;;  %v573_v52 = vunpack.c.h.bf16 %v785_v32  ;;  %v194_v53 = vmul.f32 %v852_v1, %v572_v44  ;;  %v791_v32 = vld [vmem:[%s1176_s0 + $0xf0] sm:$0xff]  }
  0x37   :  { %812 = vst [vmem:[%s1179_s3 + $0xa0] sm:$0xff] %v705_v46   ;;  %v710_v55 = vpack.c.bf16 %v321_v47, %v320_v41  ;;  %v323_v56 = vmax.f32 %v259_v48, 0.0  ;;  %v261_v57 = vadd.f32 %v857_v4, %v193_v49  ;;  %v576_v58 = vunpack.c.l.bf16 %v786_v45  ;;  %v792_v41 = vld [vmem:[%s1176_s0 + $0xf8] sm:$0xff]  }
  0x38   :  { %v324_v59 = vmax.f32 %v260_v51, 0.0  ;;  %v195_v60 = vmul.f32 %v852_v1, %v573_v52  ;;  %v262_v61 = vadd.f32 %v857_v4, %v194_v53  ;;  %v577_v62 = vunpack.c.h.bf16 %v786_v45 }
  0x39   :  { %813 = vst [vmem:[%s1179_s3 + $0xa8] sm:$0xff] %v710_v55   ;;  %v715_v0 = vpack.c.bf16 %v323_v56, %v322_v50  ;;  %v325_v2 = vmax.f32 %v261_v57, 0.0  ;;  %v196_v3 = vmul.f32 %v852_v1, %v576_v58  ;;  %v580_v5 = vunpack.c.l.bf16 %v787_v54 }
  0x3a   :  { %v263_v6 = vadd.f32 %v857_v4, %v195_v60  ;;  %v326_v7 = vmax.f32 %v262_v61, 0.0  ;;  %v197_v8 = vmul.f32 %v852_v1, %v577_v62  ;;  %v581_v9 = vunpack.c.h.bf16 %v787_v54 }
  0x3b   :  { %814 = vst [vmem:[%s1179_s3 + $0xb0] sm:$0xff] %v715_v0   ;;  %v720_v11 = vpack.c.bf16 %v325_v2, %v324_v59  ;;  %v264_v12 = vadd.f32 %v857_v4, %v196_v3  ;;  %v198_v13 = vmul.f32 %v852_v1, %v580_v5  ;;  %v584_v14 = vunpack.c.l.bf16 %v788_v63 }
  0x3c   :  { %v327_v15 = vmax.f32 %v263_v6, 0.0  ;;  %v265_v16 = vadd.f32 %v857_v4, %v197_v8  ;;  %v199_v17 = vmul.f32 %v852_v1, %v581_v9  ;;  %v585_v18 = vunpack.c.h.bf16 %v788_v63 }
  0x3d   :  { %815 = vst [vmem:[%s1179_s3 + $0xb8] sm:$0xff] %v720_v11   ;;  %v328_v19 = vmax.f32 %v264_v12, 0.0  ;;  %v266_v20 = vadd.f32 %v857_v4, %v198_v13  ;;  %v200_v21 = vmul.f32 %v852_v1, %v584_v14  ;;  %v588_v22 = vunpack.c.l.bf16 %v789_v10 }
  0x3e   :  { %v725_v24 = vpack.c.bf16 %v327_v15, %v326_v7  ;;  %v329_v25 = vmax.f32 %v265_v16, 0.0  ;;  %v267_v26 = vadd.f32 %v857_v4, %v199_v17  ;;  %v201_v27 = vmul.f32 %v852_v1, %v585_v18 }
  0x3f   :  { %v330_v28 = vmax.f32 %v266_v20, 0.0  ;;  %v268_v29 = vadd.f32 %v857_v4, %v200_v21  ;;  %v589_v30 = vunpack.c.h.bf16 %v789_v10  ;;  %v202_v31 = vmul.f32 %v852_v1, %v588_v22 }
  0x40   :  { %816 = vst [vmem:[%s1179_s3 + $0xc0] sm:$0xff] %v725_v24   ;;  %v730_v33 = vpack.c.bf16 %v329_v25, %v328_v19  ;;  %v331_v34 = vmax.f32 %v267_v26, 0.0  ;;  %v269_v35 = vadd.f32 %v857_v4, %v201_v27  ;;  %v592_v36 = vunpack.c.l.bf16 %v790_v23 }
  0x41   :  { %v332_v37 = vmax.f32 %v268_v29, 0.0  ;;  %v203_v38 = vmul.f32 %v852_v1, %v589_v30  ;;  %v270_v39 = vadd.f32 %v857_v4, %v202_v31  ;;  %v593_v40 = vunpack.c.h.bf16 %v790_v23 }
  0x42   :  { %817 = vst [vmem:[%s1179_s3 + $0xc8] sm:$0xff] %v730_v33   ;;  %v735_v42 = vpack.c.bf16 %v331_v34, %v330_v28  ;;  %v333_v43 = vmax.f32 %v269_v35, 0.0  ;;  %v204_v44 = vmul.f32 %v852_v1, %v592_v36  ;;  %v596_v45 = vunpack.c.l.bf16 %v791_v32 }
  0x43   :  { %v271_v46 = vadd.f32 %v857_v4, %v203_v38  ;;  %v334_v47 = vmax.f32 %v270_v39, 0.0  ;;  %v205_v48 = vmul.f32 %v852_v1, %v593_v40  ;;  %v597_v49 = vunpack.c.h.bf16 %v791_v32 }
  0x44   :  { %818 = vst [vmem:[%s1179_s3 + $0xd0] sm:$0xff] %v735_v42   ;;  %v740_v50 = vpack.c.bf16 %v333_v43, %v332_v37  ;;  %v272_v51 = vadd.f32 %v857_v4, %v204_v44  ;;  %v206_v52 = vmul.f32 %v852_v1, %v596_v45  ;;  %v600_v53 = vunpack.c.l.bf16 %v792_v41 }
  0x45   :  { %v335_v54 = vmax.f32 %v271_v46, 0.0  ;;  %v273_v55 = vadd.f32 %v857_v4, %v205_v48  ;;  %v207_v56 = vmul.f32 %v852_v1, %v597_v49  ;;  %v601_v57 = vunpack.c.h.bf16 %v792_v41 }
  0x46   :  { %819 = vst [vmem:[%s1179_s3 + $0xd8] sm:$0xff] %v740_v50   ;;  %v336_v58 = vmax.f32 %v272_v51, 0.0  ;;  %v274_v59 = vadd.f32 %v857_v4, %v206_v52  ;;  %v208_v60 = vmul.f32 %v852_v1, %v600_v53 }
  0x47   :  { %v745_v61 = vpack.c.bf16 %v335_v54, %v334_v47  ;;  %v337_v62 = vmax.f32 %v273_v55, 0.0  ;;  %v275_v63 = vadd.f32 %v857_v4, %v207_v56  ;;  %v209_v0 = vmul.f32 %v852_v1, %v601_v57 }
  0x48   :  { %v338_v2 = vmax.f32 %v274_v59, 0.0  ;;  %v276_v3 = vadd.f32 %v857_v4, %v208_v60 }
  0x49   :  { %820 = vst [vmem:[%s1179_s3 + $0xe0] sm:$0xff] %v745_v61   ;;  %v750_v5 = vpack.c.bf16 %v337_v62, %v336_v58  ;;  %v339_v6 = vmax.f32 %v275_v63, 0.0  ;;  %v277_v7 = vadd.f32 %v857_v4, %v209_v0 }
  0x4a   :  { %v340_v8 = vmax.f32 %v276_v3, 0.0 }
  0x4b   :  { %821 = vst [vmem:[%s1179_s3 + $0xe8] sm:$0xff] %v750_v5   ;;  %v755_v9 = vpack.c.bf16 %v339_v6, %v338_v2  ;;  %v341_v10 = vmax.f32 %v277_v7, 0.0 }
  0x4d   :  { %822 = vst [vmem:[%s1179_s3 + $0xf0] sm:$0xff] %v755_v9   ;;  %v760_v1 = vpack.c.bf16 %v341_v10, %v340_v8 }
  0x4f   :  { %823 = vst [vmem:[%s1179_s3 + $0xf8] sm:$0xff] %v760_v1  }

// kernel: backbone_forward.74
= control target key start
LH: loop header
LB: loop body
LE: loop exit
PB: predicated region body
PF: predicated region fallthrough
CT: control target
= control target key end

     0   :  { %s2911_s1 = inlined_call_operand.vmem [shape: bf16[256,128], index: 1, kind: input, shape index: {}]   ;;  %s2912_s0 = inlined_call_operand.vmem [shape: bf16[512,256], index: 0, kind: input, shape index: {}]   ;;  %s2913_s2 = inlined_call_operand.vmem [shape: bf16[512,128], index: 2, kind: output, shape index: {0}]   ;;  %s2914_s3 = inlined_call_operand.vmem [shape: f32[1,1,128], index: 3, kind: output, shape index: {1}]   ;;  %s2915_s4 = inlined_call_operand.vmem [shape: f32[1,1,128], index: 4, kind: output, shape index: {2}]  }
   0x1   :  { %v1926_v0 = vld [vmem:[%s2911_s1 + $0x38] sm:$0xff]  ;;  %v1925_v2 = vld [vmem:[%s2911_s1 + $0x30] sm:$0xff]  ;;  %v1924_v4 = vld [vmem:[%s2911_s1 + $0x28] sm:$0xff] }
   0x2   :  { %v1934_v1 = vld [vmem:[%s2911_s1 + $0x78] sm:$0xff]  ;;  %658 = vmatpush.bf16.msra.mxu0 %v1926_v0  ;;  %v1933_v3 = vld [vmem:[%s2911_s1 + $0x70] sm:$0xff]  ;;  %2126 = vmatpush.bf16.msra.mxu2 %v1926_v0  ;;  %v1932_v5 = vld [vmem:[%s2911_s1 + $0x68] sm:$0xff] }
   0x3   :  { %827 = vmatpush.bf16.msra.mxu1 %v1934_v1  ;;  %2134 = vmatpush.bf16.msra.mxu3 %v1934_v1  ;;  %v1923_v6 = vld [vmem:[%s2911_s1 + $0x20] sm:$0xff]  ;;  %v1922_v8 = vld [vmem:[%s2911_s1 + $0x18] sm:$0xff]  ;;  %v1921_v10 = vld [vmem:[%s2911_s1 + $0x10] sm:$0xff] }
   0x4   :  { %v1931_v7 = vld [vmem:[%s2911_s1 + $0x60] sm:$0xff]  ;;  %v1930_v9 = vld [vmem:[%s2911_s1 + $0x58] sm:$0xff]  ;;  %v1929_v11 = vld [vmem:[%s2911_s1 + $0x50] sm:$0xff] }
   0x5   :  { %v1920_v12 = vld [vmem:[%s2911_s1 + $0x8] sm:$0xff]  ;;  %v1919_v14 = vld [vmem:[%s2911_s1] sm:$0xff]  ;;  %v1545_v22 = vld [vmem:[%s2912_s0 + $0x10] sm:$0xf] }
   0x6   :  { %659 = vmatpush.bf16.msra.mxu0 %v1925_v2  ;;  %2127 = vmatpush.bf16.msra.mxu2 %v1925_v2  ;;  %v1928_v13 = vld [vmem:[%s2911_s1 + $0x48] sm:$0xff]  ;;  %v1927_v15 = vld [vmem:[%s2911_s1 + $0x40] sm:$0xff]  ;;  %v1858_v23 = vld [vmem:[%s2912_s0 + $0x14] sm:$0xf0] }
   0x7   :  { %828 = vmatpush.bf16.msra.mxu1 %v1933_v3  ;;  %2135 = vmatpush.bf16.msra.mxu3 %v1933_v3  ;;  %v1537_v16 = vld [vmem:[%s2912_s0] sm:$0xf]  ;;  %v1856_v17 = vld [vmem:[%s2912_s0 + $0x4] sm:$0xf0]  ;;  %v1855_v18 = vld [vmem:[%s2912_s0 + $0x4] sm:$0xf]  ;;  %v1546_v26 = vor.u32 %v1858_v23, %v1545_v22 }
   0x8   :  { %v1539_v19 = vld [vmem:[%s2912_s0 + $0x8] sm:$0xf0]  ;;  %v1538_v20 = vor.u32 %v1856_v17, %v1537_v16  ;;  %v1857_v24 = vld [vmem:[%s2912_s0 + $0x14] sm:$0xf]  ;;  %v1547_v25 = vld [vmem:[%s2912_s0 + $0x18] sm:$0xf0] }
   0x9   :  { %v1542_v21 = vor.u32 %v1855_v18, %v1539_v19  ;;  %v1550_v27 = vor.u32 %v1857_v24, %v1547_v25  ;;  %v1665_v28 = vld [vmem:[%s2912_s0 + $0x100] sm:$0xf]  ;;  %v1888_v29 = vld [vmem:[%s2912_s0 + $0x104] sm:$0xf0]  ;;  %v1887_v30 = vld [vmem:[%s2912_s0 + $0x104] sm:$0xf] }
   0xa   :  { %660 = vmatpush.bf16.msra.mxu0 %v1924_v4  ;;  %2128 = vmatpush.bf16.msra.mxu2 %v1924_v4  ;;  %v1666_v31 = vor.u32 %v1888_v29, %v1665_v28  ;;  %v1667_v32 = vld [vmem:[%s2912_s0 + $0x108] sm:$0xf0]  ;;  %v1553_v34 = vld [vmem:[%s2912_s0 + $0x20] sm:$0xf]  ;;  %v1860_v35 = vld [vmem:[%s2912_s0 + $0x24] sm:$0xf0] }
   0xb   :  { %829 = vmatpush.bf16.msra.mxu1 %v1932_v5  ;;  %2136 = vmatpush.bf16.msra.mxu3 %v1932_v5  ;;  %v1670_v33 = vor.u32 %v1887_v30, %v1667_v32  ;;  %v1859_v36 = vld [vmem:[%s2912_s0 + $0x24] sm:$0xf]  ;;  %v1555_v37 = vld [vmem:[%s2912_s0 + $0x28] sm:$0xf0]  ;;  %v1554_v38 = vor.u32 %v1860_v35, %v1553_v34  ;;  %v1673_v40 = vld [vmem:[%s2912_s0 + $0x110] sm:$0xf] }
   0xc   :  { %v1558_v39 = vor.u32 %v1859_v36, %v1555_v37  ;;  %v1890_v41 = vld [vmem:[%s2912_s0 + $0x114] sm:$0xf0]  ;;  %v1889_v42 = vld [vmem:[%s2912_s0 + $0x114] sm:$0xf]  ;;  %v1675_v44 = vld [vmem:[%s2912_s0 + $0x118] sm:$0xf0] }
   0xd   :  { %v1674_v43 = vor.u32 %v1890_v41, %v1673_v40  ;;  %v1678_v45 = vor.u32 %v1889_v42, %v1675_v44  ;;  %v1561_v46 = vld [vmem:[%s2912_s0 + $0x30] sm:$0xf]  ;;  %v1862_v47 = vld [vmem:[%s2912_s0 + $0x34] sm:$0xf0]  ;;  %v1861_v48 = vld [vmem:[%s2912_s0 + $0x34] sm:$0xf] }
   0xe   :  { %661 = vmatpush.bf16.msra.mxu0 %v1923_v6  ;;  %2129 = vmatpush.bf16.msra.mxu2 %v1923_v6  ;;  %v1563_v49 = vld [vmem:[%s2912_s0 + $0x38] sm:$0xf0]  ;;  %v1562_v50 = vor.u32 %v1862_v47, %v1561_v46  ;;  %v1681_v52 = vld [vmem:[%s2912_s0 + $0x120] sm:$0xf]  ;;  %v1892_v53 = vld [vmem:[%s2912_s0 + $0x124] sm:$0xf0] }
   0xf   :  { %830 = vmatpush.bf16.msra.mxu1 %v1931_v7  ;;  %2137 = vmatpush.bf16.msra.mxu3 %v1931_v7  ;;  %v1566_v51 = vor.u32 %v1861_v48, %v1563_v49  ;;  %v1891_v54 = vld [vmem:[%s2912_s0 + $0x124] sm:$0xf]  ;;  %v1682_v55 = vor.u32 %v1892_v53, %v1681_v52  ;;  %v1683_v56 = vld [vmem:[%s2912_s0 + $0x128] sm:$0xf0]  ;;  %v1569_v58 = vld [vmem:[%s2912_s0 + $0x40] sm:$0xf] }
  0x10   :  { %v1686_v57 = vor.u32 %v1891_v54, %v1683_v56  ;;  %v1864_v59 = vld [vmem:[%s2912_s0 + $0x44] sm:$0xf0]  ;;  %v1863_v60 = vld [vmem:[%s2912_s0 + $0x44] sm:$0xf]  ;;  %v1571_v61 = vld [vmem:[%s2912_s0 + $0x48] sm:$0xf0] }
  0x11   :  { %v1570_v62 = vor.u32 %v1864_v59, %v1569_v58  ;;  %v1574_v63 = vor.u32 %v1863_v60, %v1571_v61  ;;  %v1689_v0 = vld [vmem:[%s2912_s0 + $0x130] sm:$0xf]  ;;  %v1894_v1 = vld [vmem:[%s2912_s0 + $0x134] sm:$0xf0]  ;;  %v1893_v2 = vld [vmem:[%s2912_s0 + $0x134] sm:$0xf] }
  0x12   :  { %662 = vmatpush.bf16.msra.mxu0 %v1922_v8  ;;  %2130 = vmatpush.bf16.msra.mxu2 %v1922_v8  ;;  %v1690_v3 = vor.u32 %v1894_v1, %v1689_v0  ;;  %v1691_v4 = vld [vmem:[%s2912_s0 + $0x138] sm:$0xf0]  ;;  %v1577_v6 = vld [vmem:[%s2912_s0 + $0x50] sm:$0xf]  ;;  %v1866_v7 = vld [vmem:[%s2912_s0 + $0x54] sm:$0xf0] }
  0x13   :  { %831 = vmatpush.bf16.msra.mxu1 %v1930_v9  ;;  %2138 = vmatpush.bf16.msra.mxu3 %v1930_v9  ;;  %v1694_v5 = vor.u32 %v1893_v2, %v1691_v4  ;;  %v1865_v8 = vld [vmem:[%s2912_s0 + $0x54] sm:$0xf]  ;;  %v1579_v9 = vld [vmem:[%s2912_s0 + $0x58] sm:$0xf0]  ;;  %v1699_v16 = vld [vmem:[%s2912_s0 + $0x148] sm:$0xf0] }
  0x14   :  { %v1585_v18 = vld [vmem:[%s2912_s0 + $0x60] sm:$0xf]  ;;  %v1868_v19 = vld [vmem:[%s2912_s0 + $0x64] sm:$0xf0]  ;;  %v1705_v24 = vld [vmem:[%s2912_s0 + $0x150] sm:$0xf] }
  0x15   :  { %v1586_v22 = vor.u32 %v1868_v19, %v1585_v18  ;;  %v1898_v25 = vld [vmem:[%s2912_s0 + $0x154] sm:$0xf0]  ;;  %v1707_v28 = vld [vmem:[%s2912_s0 + $0x158] sm:$0xf0]  ;;  %v1593_v30 = vld [vmem:[%s2912_s0 + $0x70] sm:$0xf] }
  0x16   :  { %663 = vmatpush.bf16.msra.mxu0 %v1921_v10  ;;  %2131 = vmatpush.bf16.msra.mxu2 %v1921_v10  ;;  %v1578_v10 = vor.u32 %v1866_v7, %v1577_v6  ;;  %v1869_v32 = vld [vmem:[%s2912_s0 + $0x74] sm:$0xf]  ;;  %v1713_v36 = vld [vmem:[%s2912_s0 + $0x160] sm:$0xf]  ;;  %v1900_v37 = vld [vmem:[%s2912_s0 + $0x164] sm:$0xf0] }
  0x17   :  { %832 = vmatpush.bf16.msra.mxu1 %v1929_v11  ;;  %2139 = vmatpush.bf16.msra.mxu3 %v1929_v11  ;;  %v1582_v11 = vor.u32 %v1865_v8, %v1579_v9  ;;  %v1715_v40 = vld [vmem:[%s2912_s0 + $0x168] sm:$0xf0]  ;;  %v1601_v42 = vld [vmem:[%s2912_s0 + $0x80] sm:$0xf]  ;;  %v1871_v44 = vld [vmem:[%s2912_s0 + $0x84] sm:$0xf] }
  0x18   :  { %v1901_v52 = vld [vmem:[%s2912_s0 + $0x174] sm:$0xf]  ;;  %v1723_v54 = vld [vmem:[%s2912_s0 + $0x178] sm:$0xf0]  ;;  %v1609_v0 = vld [vmem:[%s2912_s0 + $0x90] sm:$0xf] }
  0x19   :  { %v1874_v1 = vld [vmem:[%s2912_s0 + $0x94] sm:$0xf0]  ;;  %v1873_v2 = vld [vmem:[%s2912_s0 + $0x94] sm:$0xf] }
  0x1a   :  { %664 = vmatpush.bf16.msra.mxu0 %v1920_v12  ;;  %2132 = vmatpush.bf16.msra.mxu2 %v1920_v12  ;;  %v1697_v12 = vld [vmem:[%s2912_s0 + $0x140] sm:$0xf] }
  0x1b   :  { %833 = vmatpush.bf16.msra.mxu1 %v1928_v13  ;;  %2140 = vmatpush.bf16.msra.mxu3 %v1928_v13  ;;  %v1896_v13 = vld [vmem:[%s2912_s0 + $0x144] sm:$0xf0] }
  0x1e   :  { %665 = vmatpush.bf16.msra.mxu0 %v1919_v14  ;;  %2133 = vmatpush.bf16.msra.mxu2 %v1919_v14  ;;  %v1895_v14 = vld [vmem:[%s2912_s0 + $0x144] sm:$0xf] }
  0x1f   :  { %834 = vmatpush.bf16.msra.mxu1 %v1927_v15  ;;  %2141 = vmatpush.bf16.msra.mxu3 %v1927_v15  ;;  %v1698_v15 = vor.u32 %v1896_v13, %v1697_v12  ;;  %v1702_v17 = vor.u32 %v1895_v14, %v1699_v16  ;;  %v1903_v12 = vld [vmem:[%s2912_s0 + $0x184] sm:$0xf]  ;;  %v1731_v16 = vld [vmem:[%s2912_s0 + $0x188] sm:$0xf0] }
  0x21   :  { %666 = vmatmul.bf16.vlgmr.msra.gmra.mxu0 %v1538_v20  ;;  %746 = vmatmul.bf16.vlgmr.msra.gmra.mxu2 %v1666_v31  ;;  %v1867_v20 = vld [vmem:[%s2912_s0 + $0x64] sm:$0xf]  ;;  %v1870_v31 = vld [vmem:[%s2912_s0 + $0x74] sm:$0xf0] }
  0x22   :  { %835 = vmatmul.bf16.vlgmr.msra.gmra.mxu1 %v1542_v21  ;;  %915 = vmatmul.bf16.vlgmr.msra.gmra.mxu3 %v1670_v33  ;;  %v1587_v21 = vld [vmem:[%s2912_s0 + $0x68] sm:$0xf0]  ;;  %v1595_v33 = vld [vmem:[%s2912_s0 + $0x78] sm:$0xf0]  ;;  %v1594_v34 = vor.u32 %v1870_v31, %v1593_v30 }
  0x23   :  { %v1590_v23 = vor.u32 %v1867_v20, %v1587_v21  ;;  %v1598_v35 = vor.u32 %v1869_v32, %v1595_v33  ;;  %v1619_v30 = vld [vmem:[%s2912_s0 + $0xa8] sm:$0xf0] }
  0x31   :  { %671 = vmatmul.bf16.gmra.mxu0 %v1546_v26  ;;  %751 = vmatmul.bf16.gmra.mxu2 %v1674_v43  ;;  %v1897_v26 = vld [vmem:[%s2912_s0 + $0x154] sm:$0xf]  ;;  %v1872_v43 = vld [vmem:[%s2912_s0 + $0x84] sm:$0xf0] }
  0x32   :  { %840 = vmatmul.bf16.gmra.mxu1 %v1550_v27  ;;  %920 = vmatmul.bf16.gmra.mxu3 %v1678_v45  ;;  %v1706_v27 = vor.u32 %v1898_v25, %v1705_v24  ;;  %v1710_v29 = vor.u32 %v1897_v26, %v1707_v28  ;;  %v1603_v45 = vld [vmem:[%s2912_s0 + $0x88] sm:$0xf0]  ;;  %v1602_v46 = vor.u32 %v1872_v43, %v1601_v42  ;;  %v1876_v28 = vld [vmem:[%s2912_s0 + $0xa4] sm:$0xf0]  ;;  %v1906_v42 = vld [vmem:[%s2912_s0 + $0x194] sm:$0xf0] }
  0x33   :  { %v1606_v47 = vor.u32 %v1871_v44, %v1603_v45  ;;  %v1905_v43 = vld [vmem:[%s2912_s0 + $0x194] sm:$0xf] }
  0x41   :  { %676 = vmatmul.bf16.gmra.mxu0 %v1554_v38  ;;  %756 = vmatmul.bf16.gmra.mxu2 %v1682_v55  ;;  %v1899_v38 = vld [vmem:[%s2912_s0 + $0x164] sm:$0xf]  ;;  %v1726_v55 = vor.u32 %v1901_v52, %v1723_v54 }
  0x42   :  { %845 = vmatmul.bf16.gmra.mxu1 %v1558_v39  ;;  %925 = vmatmul.bf16.gmra.mxu3 %v1686_v57  ;;  %v1714_v39 = vor.u32 %v1900_v37, %v1713_v36  ;;  %v1718_v41 = vor.u32 %v1899_v38, %v1715_v40 }
  0x51   :  { %681 = vmatmul.bf16.gmra.mxu0 %v1562_v50  ;;  %761 = vmatmul.bf16.gmra.mxu2 %v1690_v3  ;;  %v1721_v50 = vld [vmem:[%s2912_s0 + $0x170] sm:$0xf]  ;;  %v1611_v3 = vld [vmem:[%s2912_s0 + $0x98] sm:$0xf0] }
  0x52   :  { %850 = vmatmul.bf16.gmra.mxu1 %v1566_v51  ;;  %930 = vmatmul.bf16.gmra.mxu3 %v1694_v5  ;;  %v1902_v51 = vld [vmem:[%s2912_s0 + $0x174] sm:$0xf0]  ;;  %v1610_v5 = vor.u32 %v1874_v1, %v1609_v0  ;;  %v1614_v6 = vor.u32 %v1873_v2, %v1611_v3 }
  0x53   :  { %v1722_v53 = vor.u32 %v1902_v51, %v1721_v50 }
  0x61   :  { %686 = vmatmul.bf16.gmra.mxu0 %v1570_v62  ;;  %766 = vmatmul.bf16.gmra.mxu2 %v1698_v15 }
  0x62   :  { %855 = vmatmul.bf16.gmra.mxu1 %v1574_v63  ;;  %935 = vmatmul.bf16.gmra.mxu3 %v1702_v17  ;;  %v1734_v17 = vor.u32 %v1903_v12, %v1731_v16 }
  0x71   :  { %691 = vmatmul.bf16.gmra.mxu0 %v1578_v10  ;;  %771 = vmatmul.bf16.gmra.mxu2 %v1706_v27  ;;  %v1729_v10 = vld [vmem:[%s2912_s0 + $0x180] sm:$0xf] }
  0x72   :  { %860 = vmatmul.bf16.gmra.mxu1 %v1582_v11  ;;  %940 = vmatmul.bf16.gmra.mxu3 %v1710_v29  ;;  %v1904_v11 = vld [vmem:[%s2912_s0 + $0x184] sm:$0xf0]  ;;  %v1617_v27 = vld [vmem:[%s2912_s0 + $0xa0] sm:$0xf]  ;;  %v1875_v29 = vld [vmem:[%s2912_s0 + $0xa4] sm:$0xf] }
  0x73   :  { %v1730_v15 = vor.u32 %v1904_v11, %v1729_v10  ;;  %v1618_v32 = vor.u32 %v1876_v28, %v1617_v27  ;;  %v1622_v33 = vor.u32 %v1875_v29, %v1619_v30  ;;  %v1908_v10 = vld [vmem:[%s2912_s0 + $0x1a4] sm:$0xf0]  ;;  %v1907_v11 = vld [vmem:[%s2912_s0 + $0x1a4] sm:$0xf]  ;;  %v1633_v27 = vld [vmem:[%s2912_s0 + $0xc0] sm:$0xf] }
  0x74   :  { %v1880_v28 = vld [vmem:[%s2912_s0 + $0xc4] sm:$0xf0]  ;;  %v1879_v29 = vld [vmem:[%s2912_s0 + $0xc4] sm:$0xf]  ;;  %v1635_v30 = vld [vmem:[%s2912_s0 + $0xc8] sm:$0xf0] }
  0x81   :  { %696 = vmatmul.bf16.gmra.mxu0 %v1586_v22  ;;  %776 = vmatmul.bf16.gmra.mxu2 %v1714_v39 }
  0x82   :  { %865 = vmatmul.bf16.gmra.mxu1 %v1590_v23  ;;  %945 = vmatmul.bf16.gmra.mxu3 %v1718_v41  ;;  %v1737_v41 = vld [vmem:[%s2912_s0 + $0x190] sm:$0xf] }
  0x91   :  { %701 = vmatmul.bf16.gmra.mxu0 %v1594_v34  ;;  %781 = vmatmul.bf16.gmra.mxu2 %v1722_v53 }
  0x92   :  { %870 = vmatmul.bf16.gmra.mxu1 %v1598_v35  ;;  %950 = vmatmul.bf16.gmra.mxu3 %v1726_v55 }
  0x9e   :  { %v667_v48 = vpop.f32.mrf.mxu0 }
  0x9f   :  { %v836_v49 = vpop.f32.mrf.mxu1 }
  0xa0   :  { %v837_v56 = vadd.f32 %v836_v49, %v667_v48 }
  0xa1   :  { %706 = vmatmul.bf16.gmra.mxu0 %v1602_v46  ;;  %786 = vmatmul.bf16.gmra.mxu2 %v1730_v15  ;;  %v1738_v46 = vor.u32 %v1906_v42, %v1737_v41  ;;  %v1747_v15 = vld [vmem:[%s2912_s0 + $0x1a8] sm:$0xf0] }
  0xa2   :  { %875 = vmatmul.bf16.gmra.mxu1 %v1606_v47  ;;  %v1389_v60 = vmul.f32 %v837_v56, %v837_v56  ;;  %955 = vmatmul.bf16.gmra.mxu3 %v1734_v17  ;;  %v1739_v47 = vld [vmem:[%s2912_s0 + $0x198] sm:$0xf0]  ;;  %v1750_v17 = vor.u32 %v1907_v11, %v1747_v15  ;;  %v1911_v15 = vld [vmem:[%s2912_s0 + $0x1c4] sm:$0xf] }
  0xa3   :  { %v1742_v49 = vor.u32 %v1905_v43, %v1739_v47  ;;  %v1753_v43 = vld [vmem:[%s2912_s0 + $0x1b0] sm:$0xf] }
  0xa4   :  { %v747_v22 = vpop.f32.mrf.mxu2 }
  0xa5   :  { %v916_v23 = vpop.f32.mrf.mxu3 }
  0xa6   :  { %v669_v57 = vpop.f32.mrf.mxu0  ;;  %v2461_v36 = vadd.f32 %v916_v23, %v747_v22 }
  0xa7   :  { %v838_v58 = vpop.f32.mrf.mxu1 }
  0xa8   :  { %v839_v59 = vadd.f32 %v838_v58, %v669_v57 }
  0xaa   :  { %v1938_v61 = vpack.c.bf16 %v839_v59, %v837_v56  ;;  %v1319_v62 = vadd.f32 %v839_v59, %v837_v56  ;;  %v1390_v63 = vmul.f32 %v839_v59, %v839_v59  ;;  %v1625_v59 = vld [vmem:[%s2912_s0 + $0xb0] sm:$0xf] }
  0xac   :  { %1939 = vst [vmem:[%s2913_s2] sm:$0xff] %v1938_v61   ;;  %v1453_v4 = vadd.f32 %v1390_v63, %v1389_v60  ;;  %v749_v38 = vpop.f32.mrf.mxu2  ;;  %v1878_v60 = vld [vmem:[%s2912_s0 + $0xb4] sm:$0xf0]  ;;  %v1877_v61 = vld [vmem:[%s2912_s0 + $0xb4] sm:$0xf] }
  0xad   :  { %v918_v39 = vpop.f32.mrf.mxu3  ;;  %v1626_v0 = vor.u32 %v1878_v60, %v1625_v59 }
  0xae   :  { %v672_v7 = vpop.f32.mrf.mxu0  ;;  %v2463_v40 = vadd.f32 %v918_v39, %v749_v38 }
  0xaf   :  { %v841_v8 = vpop.f32.mrf.mxu1 }
  0xb0   :  { %v842_v9 = vadd.f32 %v841_v8, %v672_v7  ;;  %v2018_v48 = vpack.c.bf16 %v2463_v40, %v2461_v36 }
  0xb1   :  { %711 = vmatmul.bf16.gmra.mxu0 %v1610_v5  ;;  %791 = vmatmul.bf16.gmra.mxu2 %v1738_v46 }
  0xb2   :  { %v1320_v13 = vadd.f32 %v1319_v62, %v842_v9  ;;  %v1391_v14 = vmul.f32 %v842_v9, %v842_v9  ;;  %880 = vmatmul.bf16.gmra.mxu1 %v1614_v6  ;;  %2110 = vst [vmem:[%s2913_s2 + $0x80] sm:$0xff] %v2018_v48   ;;  %960 = vmatmul.bf16.gmra.mxu3 %v1742_v49  ;;  %v1627_v62 = vld [vmem:[%s2912_s0 + $0xb8] sm:$0xf0] }
  0xb3   :  { %v1630_v1 = vor.u32 %v1877_v61, %v1627_v62  ;;  %v1755_v49 = vld [vmem:[%s2912_s0 + $0x1b8] sm:$0xf0]  ;;  %v1641_v61 = vld [vmem:[%s2912_s0 + $0xd0] sm:$0xf]  ;;  %v1882_v62 = vld [vmem:[%s2912_s0 + $0xd4] sm:$0xf0] }
  0xb4   :  { %v1454_v18 = vadd.f32 %v1453_v4, %v1391_v14  ;;  %v752_v54 = vpop.f32.mrf.mxu2 }
  0xb5   :  { %v921_v55 = vpop.f32.mrf.mxu3 }
  0xb6   :  { %v674_v19 = vpop.f32.mrf.mxu0  ;;  %v2497_v4 = vadd.f32 %v921_v55, %v752_v54 }
  0xb7   :  { %v843_v20 = vpop.f32.mrf.mxu1 }
  0xb8   :  { %v844_v21 = vadd.f32 %v843_v20, %v674_v19 }
  0xba   :  { %v1943_v24 = vpack.c.bf16 %v844_v21, %v842_v9  ;;  %v1321_v25 = vadd.f32 %v1320_v13, %v844_v21  ;;  %v1392_v26 = vmul.f32 %v844_v21, %v844_v21  ;;  %v1745_v9 = vld [vmem:[%s2912_s0 + $0x1a0] sm:$0xf] }
  0xbb   :  { %v1746_v14 = vor.u32 %v1908_v10, %v1745_v9 }
  0xbc   :  { %2095 = vst [vmem:[%s2913_s2 + $0x8] sm:$0xff] %v1943_v24   ;;  %v1455_v31 = vadd.f32 %v1454_v18, %v1392_v26  ;;  %v754_v6 = vpop.f32.mrf.mxu2 }
  0xbd   :  { %v923_v7 = vpop.f32.mrf.mxu3 }
  0xbe   :  { %v677_v34 = vpop.f32.mrf.mxu0  ;;  %v2499_v8 = vadd.f32 %v923_v7, %v754_v6 }
  0xbf   :  { %v846_v35 = vpop.f32.mrf.mxu1 }
  0xc0   :  { %v847_v37 = vadd.f32 %v846_v35, %v677_v34  ;;  %v2023_v16 = vpack.c.bf16 %v2499_v8, %v2497_v4 }
  0xc1   :  { %716 = vmatmul.bf16.gmra.mxu0 %v1618_v32  ;;  %796 = vmatmul.bf16.gmra.mxu2 %v1746_v14  ;;  %v1634_v32 = vor.u32 %v1880_v28, %v1633_v27  ;;  %v1912_v14 = vld [vmem:[%s2912_s0 + $0x1c4] sm:$0xf0] }
  0xc2   :  { %v1322_v44 = vadd.f32 %v1321_v25, %v847_v37  ;;  %v1393_v45 = vmul.f32 %v847_v37, %v847_v37  ;;  %885 = vmatmul.bf16.gmra.mxu1 %v1622_v33  ;;  %2111 = vst [vmem:[%s2913_s2 + $0x88] sm:$0xff] %v2023_v16   ;;  %965 = vmatmul.bf16.gmra.mxu3 %v1750_v17 }
  0xc3   :  { %v1638_v33 = vor.u32 %v1879_v29, %v1635_v30 }
  0xc4   :  { %v1456_v50 = vadd.f32 %v1455_v31, %v1393_v45  ;;  %v757_v22 = vpop.f32.mrf.mxu2  ;;  %v1909_v45 = vld [vmem:[%s2912_s0 + $0x1b4] sm:$0xf] }
  0xc5   :  { %v926_v23 = vpop.f32.mrf.mxu3 }
  0xc6   :  { %v679_v51 = vpop.f32.mrf.mxu0 }
  0xc7   :  { %v848_v52 = vpop.f32.mrf.mxu1 }
  0xc8   :  { %v849_v53 = vadd.f32 %v848_v52, %v679_v51  ;;  %v1758_v51 = vor.u32 %v1909_v45, %v1755_v49  ;;  %v1769_v49 = vld [vmem:[%s2912_s0 + $0x1d0] sm:$0xf] }
  0xca   :  { %v1948_v56 = vpack.c.bf16 %v849_v53, %v847_v37  ;;  %v1323_v57 = vadd.f32 %v1322_v44, %v849_v53  ;;  %v1394_v58 = vmul.f32 %v849_v53, %v849_v53  ;;  %v2533_v37 = vadd.f32 %v926_v23, %v757_v22  ;;  %v1910_v44 = vld [vmem:[%s2912_s0 + $0x1b4] sm:$0xf0] }
  0xcb   :  { %v1754_v48 = vor.u32 %v1910_v44, %v1753_v43 }
  0xcc   :  { %2096 = vst [vmem:[%s2913_s2 + $0x10] sm:$0xff] %v1948_v56   ;;  %v1457_v63 = vadd.f32 %v1456_v50, %v1394_v58  ;;  %v759_v39 = vpop.f32.mrf.mxu2 }
  0xcd   :  { %v928_v41 = vpop.f32.mrf.mxu3 }
  0xce   :  { %v682_v2 = vpop.f32.mrf.mxu0  ;;  %v2535_v42 = vadd.f32 %v928_v41, %v759_v39 }
  0xcf   :  { %v851_v3 = vpop.f32.mrf.mxu1 }
  0xd0   :  { %v852_v5 = vadd.f32 %v851_v3, %v682_v2  ;;  %v2028_v50 = vpack.c.bf16 %v2535_v42, %v2533_v37  ;;  %v1642_v2 = vor.u32 %v1882_v62, %v1641_v61 }
  0xd1   :  { %721 = vmatmul.bf16.gmra.mxu0 %v1626_v0  ;;  %801 = vmatmul.bf16.gmra.mxu2 %v1754_v48  ;;  %v1643_v0 = vld [vmem:[%s2912_s0 + $0xd8] sm:$0xf0] }
  0xd2   :  { %v1324_v12 = vadd.f32 %v1323_v57, %v852_v5  ;;  %v1395_v13 = vmul.f32 %v852_v5, %v852_v5  ;;  %890 = vmatmul.bf16.gmra.mxu1 %v1630_v1  ;;  %2112 = vst [vmem:[%s2913_s2 + $0x90] sm:$0xff] %v2028_v50   ;;  %970 = vmatmul.bf16.gmra.mxu3 %v1758_v51  ;;  %v1914_v50 = vld [vmem:[%s2912_s0 + $0x1d4] sm:$0xf0]  ;;  %v1913_v51 = vld [vmem:[%s2912_s0 + $0x1d4] sm:$0xf] }
  0xd4   :  { %v1458_v18 = vadd.f32 %v1457_v63, %v1395_v13  ;;  %v762_v56 = vpop.f32.mrf.mxu2  ;;  %v1881_v63 = vld [vmem:[%s2912_s0 + $0xd4] sm:$0xf]  ;;  %v1761_v13 = vld [vmem:[%s2912_s0 + $0x1c0] sm:$0xf] }
  0xd5   :  { %v931_v57 = vpop.f32.mrf.mxu3  ;;  %v1646_v3 = vor.u32 %v1881_v63, %v1643_v0 }
  0xd6   :  { %v684_v19 = vpop.f32.mrf.mxu0  ;;  %v2569_v7 = vadd.f32 %v931_v57, %v762_v56 }
  0xd7   :  { %v853_v20 = vpop.f32.mrf.mxu1 }
  0xd8   :  { %v854_v21 = vadd.f32 %v853_v20, %v684_v19  ;;  %v1763_v19 = vld [vmem:[%s2912_s0 + $0x1c8] sm:$0xf0] }
  0xda   :  { %v1953_v24 = vpack.c.bf16 %v854_v21, %v852_v5  ;;  %v1325_v25 = vadd.f32 %v1324_v12, %v854_v21  ;;  %v1396_v26 = vmul.f32 %v854_v21, %v854_v21  ;;  %v1766_v21 = vor.u32 %v1911_v15, %v1763_v19 }
  0xdc   :  { %2097 = vst [vmem:[%s2913_s2 + $0x18] sm:$0xff] %v1953_v24   ;;  %v1459_v31 = vadd.f32 %v1458_v18, %v1396_v26  ;;  %v764_v10 = vpop.f32.mrf.mxu2  ;;  %v1762_v18 = vor.u32 %v1912_v14, %v1761_v13 }
  0xdd   :  { %v933_v11 = vpop.f32.mrf.mxu3 }
  0xde   :  { %v687_v34 = vpop.f32.mrf.mxu0  ;;  %v2571_v12 = vadd.f32 %v933_v11, %v764_v10 }
  0xdf   :  { %v856_v35 = vpop.f32.mrf.mxu1 }
  0xe0   :  { %v857_v38 = vadd.f32 %v856_v35, %v687_v34  ;;  %v2033_v20 = vpack.c.bf16 %v2571_v12, %v2569_v7  ;;  %v1651_v34 = vld [vmem:[%s2912_s0 + $0xe8] sm:$0xf0] }
  0xe1   :  { %726 = vmatmul.bf16.gmra.mxu0 %v1634_v32  ;;  %806 = vmatmul.bf16.gmra.mxu2 %v1762_v18  ;;  %v1884_v32 = vld [vmem:[%s2912_s0 + $0xe4] sm:$0xf0] }
  0xe2   :  { %v1326_v46 = vadd.f32 %v1325_v25, %v857_v38  ;;  %v1397_v47 = vmul.f32 %v857_v38, %v857_v38  ;;  %895 = vmatmul.bf16.gmra.mxu1 %v1638_v33  ;;  %2113 = vst [vmem:[%s2913_s2 + $0x98] sm:$0xff] %v2033_v20   ;;  %975 = vmatmul.bf16.gmra.mxu3 %v1766_v21  ;;  %v1883_v33 = vld [vmem:[%s2912_s0 + $0xe4] sm:$0xf]  ;;  %v1777_v21 = vld [vmem:[%s2912_s0 + $0x1e0] sm:$0xf] }
  0xe3   :  { %v1654_v39 = vor.u32 %v1883_v33, %v1651_v34 }
  0xe4   :  { %v1460_v52 = vadd.f32 %v1459_v31, %v1397_v47  ;;  %v767_v26 = vpop.f32.mrf.mxu2  ;;  %v1649_v31 = vld [vmem:[%s2912_s0 + $0xe0] sm:$0xf] }
  0xe5   :  { %v936_v27 = vpop.f32.mrf.mxu3 }
  0xe6   :  { %v689_v53 = vpop.f32.mrf.mxu0  ;;  %v2605_v44 = vadd.f32 %v936_v27, %v767_v26  ;;  %v1779_v27 = vld [vmem:[%s2912_s0 + $0x1e8] sm:$0xf0] }
  0xe7   :  { %v858_v54 = vpop.f32.mrf.mxu1 }
  0xe8   :  { %v859_v55 = vadd.f32 %v858_v54, %v689_v53  ;;  %v1770_v54 = vor.u32 %v1914_v50, %v1769_v49 }
  0xea   :  { %v1958_v58 = vpack.c.bf16 %v859_v55, %v857_v38  ;;  %v1327_v59 = vadd.f32 %v1326_v46, %v859_v55  ;;  %v1398_v60 = vmul.f32 %v859_v55, %v859_v55  ;;  %v1650_v38 = vor.u32 %v1884_v32, %v1649_v31  ;;  %v1771_v55 = vld [vmem:[%s2912_s0 + $0x1d8] sm:$0xf0] }
  0xeb   :  { %v1774_v57 = vor.u32 %v1913_v51, %v1771_v55  ;;  %v1917_v55 = vld [vmem:[%s2912_s0 + $0x1f4] sm:$0xf] }
  0xec   :  { %2098 = vst [vmem:[%s2913_s2 + $0x20] sm:$0xff] %v1958_v58   ;;  %v1461_v1 = vadd.f32 %v1460_v52, %v1398_v60  ;;  %v769_v46 = vpop.f32.mrf.mxu2 }
  0xed   :  { %v938_v47 = vpop.f32.mrf.mxu3 }
  0xee   :  { %v692_v5 = vpop.f32.mrf.mxu0  ;;  %v2607_v48 = vadd.f32 %v938_v47, %v769_v46 }
  0xef   :  { %v861_v6 = vpop.f32.mrf.mxu1 }
  0xf0   :  { %v862_v9 = vadd.f32 %v861_v6, %v692_v5  ;;  %v2038_v56 = vpack.c.bf16 %v2607_v48, %v2605_v44  ;;  %v1886_v5 = vld [vmem:[%s2912_s0 + $0xf4] sm:$0xf0]  ;;  %v1885_v6 = vld [vmem:[%s2912_s0 + $0xf4] sm:$0xf] }
  0xf1   :  { %731 = vmatmul.bf16.gmra.mxu0 %v1642_v2  ;;  %811 = vmatmul.bf16.gmra.mxu2 %v1770_v54  ;;  %v1918_v54 = vld [vmem:[%s2912_s0 + $0x1f4] sm:$0xf0] }
  0xf2   :  { %v1328_v16 = vadd.f32 %v1327_v59, %v862_v9  ;;  %v1399_v17 = vmul.f32 %v862_v9, %v862_v9  ;;  %900 = vmatmul.bf16.gmra.mxu1 %v1646_v3  ;;  %2114 = vst [vmem:[%s2913_s2 + $0xa0] sm:$0xff] %v2038_v56   ;;  %980 = vmatmul.bf16.gmra.mxu3 %v1774_v57  ;;  %v1657_v3 = vld [vmem:[%s2912_s0 + $0xf0] sm:$0xf] }
  0xf3   :  { %v1658_v11 = vor.u32 %v1886_v5, %v1657_v3 }
  0xf4   :  { %v1462_v22 = vadd.f32 %v1461_v1, %v1399_v17  ;;  %v772_v62 = vpop.f32.mrf.mxu2 }
  0xf5   :  { %v941_v63 = vpop.f32.mrf.mxu3 }
  0xf6   :  { %v694_v23 = vpop.f32.mrf.mxu0 }
  0xf7   :  { %v863_v24 = vpop.f32.mrf.mxu1 }
  0xf8   :  { %v864_v25 = vadd.f32 %v863_v24, %v694_v23  ;;  %v1915_v23 = vld [vmem:[%s2912_s0 + $0x1e4] sm:$0xf] }
  0xfa   :  { %v1963_v28 = vpack.c.bf16 %v864_v25, %v862_v9  ;;  %v1329_v29 = vadd.f32 %v1328_v16, %v864_v25  ;;  %v1400_v30 = vmul.f32 %v864_v25, %v864_v25  ;;  %v1659_v9 = vld [vmem:[%s2912_s0 + $0xf8] sm:$0xf0]  ;;  %v2641_v16 = vadd.f32 %v941_v63, %v772_v62 }
  0xfb   :  { %v1662_v13 = vor.u32 %v1885_v6, %v1659_v9 }
  0xfc   :  { %2099 = vst [vmem:[%s2913_s2 + $0x28] sm:$0xff] %v1963_v28   ;;  %v1463_v35 = vadd.f32 %v1462_v22, %v1400_v30  ;;  %v774_v18 = vpop.f32.mrf.mxu2  ;;  %v1916_v22 = vld [vmem:[%s2912_s0 + $0x1e4] sm:$0xf0] }
  0xfd   :  { %v943_v19 = vpop.f32.mrf.mxu3  ;;  %v1778_v26 = vor.u32 %v1916_v22, %v1777_v21 }
  0xfe   :  { %v697_v41 = vpop.f32.mrf.mxu0  ;;  %v2643_v20 = vadd.f32 %v943_v19, %v774_v18 }
  0xff   :  { %v866_v43 = vpop.f32.mrf.mxu1 }
 0x100   :  { %v867_v45 = vadd.f32 %v866_v43, %v697_v41  ;;  %v2043_v28 = vpack.c.bf16 %v2643_v20, %v2641_v16 }
 0x101   :  { %736 = vmatmul.bf16.gmra.mxu0 %v1650_v38  ;;  %816 = vmatmul.bf16.gmra.mxu2 %v1778_v26 }
 0x102   :  { %v1330_v52 = vadd.f32 %v1329_v29, %v867_v45  ;;  %v1401_v53 = vmul.f32 %v867_v45, %v867_v45  ;;  %905 = vmatmul.bf16.gmra.mxu1 %v1654_v39  ;;  %v1782_v29 = vor.u32 %v1915_v23, %v1779_v27  ;;  %2115 = vst [vmem:[%s2913_s2 + $0xa8] sm:$0xff] %v2043_v28  }
 0x104   :  { %v1464_v58 = vadd.f32 %v1463_v35, %v1401_v53  ;;  %985 = vmatmul.bf16.gmra.mxu3 %v1782_v29  ;;  %v777_v34 = vpop.f32.mrf.mxu2  ;;  %v1785_v53 = vld [vmem:[%s2912_s0 + $0x1f0] sm:$0xf] }
 0x105   :  { %v946_v35 = vpop.f32.mrf.mxu3 }
 0x106   :  { %v699_v59 = vpop.f32.mrf.mxu0  ;;  %v2665_v47 = vadd.f32 %v946_v35, %v777_v34 }
 0x107   :  { %v868_v60 = vpop.f32.mrf.mxu1 }
 0x108   :  { %v869_v61 = vadd.f32 %v868_v60, %v699_v59  ;;  %v1787_v59 = vld [vmem:[%s2912_s0 + $0x1f8] sm:$0xf0] }
 0x10a   :  { %v1968_v0 = vpack.c.bf16 %v869_v61, %v867_v45  ;;  %v1331_v1 = vadd.f32 %v1330_v52, %v869_v61  ;;  %v1402_v2 = vmul.f32 %v869_v61, %v869_v61  ;;  %v1790_v61 = vor.u32 %v1917_v55, %v1787_v59 }
 0x10c   :  { %2100 = vst [vmem:[%s2913_s2 + $0x30] sm:$0xff] %v1968_v0   ;;  %v1465_v10 = vadd.f32 %v1464_v58, %v1402_v2  ;;  %v779_v50 = vpop.f32.mrf.mxu2  ;;  %v1786_v58 = vor.u32 %v1918_v54, %v1785_v53 }
 0x10d   :  { %v948_v51 = vpop.f32.mrf.mxu3 }
 0x10e   :  { %v702_v14 = vpop.f32.mrf.mxu0  ;;  %v2667_v52 = vadd.f32 %v948_v51, %v779_v50 }
 0x10f   :  { %v871_v15 = vpop.f32.mrf.mxu1 }
 0x110   :  { %v872_v17 = vadd.f32 %v871_v15, %v702_v14  ;;  %v2048_v60 = vpack.c.bf16 %v2667_v52, %v2665_v47 }
 0x111   :  { %741 = vmatmul.bf16.gmra.mxu0 %v1658_v11  ;;  %821 = vmatmul.bf16.gmra.mxu2 %v1786_v58 }
 0x112   :  { %v1332_v24 = vadd.f32 %v1331_v1, %v872_v17  ;;  %v1403_v25 = vmul.f32 %v872_v17, %v872_v17  ;;  %910 = vmatmul.bf16.gmra.mxu1 %v1662_v13  ;;  %2116 = vst [vmem:[%s2913_s2 + $0xb0] sm:$0xff] %v2048_v60  }
 0x114   :  { %v1466_v30 = vadd.f32 %v1465_v10, %v1403_v25  ;;  %990 = vmatmul.bf16.gmra.mxu3 %v1790_v61  ;;  %v782_v2 = vpop.f32.mrf.mxu2 }
 0x115   :  { %v951_v3 = vpop.f32.mrf.mxu3 }
 0x116   :  { %v704_v31 = vpop.f32.mrf.mxu0  ;;  %v2689_v14 = vadd.f32 %v951_v3, %v782_v2 }
 0x117   :  { %v873_v32 = vpop.f32.mrf.mxu1 }
 0x118   :  { %v874_v33 = vadd.f32 %v873_v32, %v704_v31 }
 0x11a   :  { %v1973_v38 = vpack.c.bf16 %v874_v33, %v872_v17  ;;  %v1333_v39 = vadd.f32 %v1332_v24, %v874_v33  ;;  %v1404_v41 = vmul.f32 %v874_v33, %v874_v33 }
 0x11c   :  { %2101 = vst [vmem:[%s2913_s2 + $0x38] sm:$0xff] %v1973_v38   ;;  %v1467_v43 = vadd.f32 %v1466_v30, %v1404_v41  ;;  %v784_v17 = vpop.f32.mrf.mxu2 }
 0x11d   :  { %v953_v18 = vpop.f32.mrf.mxu3 }
 0x11e   :  { %v707_v45 = vpop.f32.mrf.mxu0  ;;  %v2691_v19 = vadd.f32 %v953_v18, %v784_v17 }
 0x11f   :  { %v876_v46 = vpop.f32.mrf.mxu1 }
 0x120   :  { %v877_v49 = vadd.f32 %v876_v46, %v707_v45  ;;  %v2053_v23 = vpack.c.bf16 %v2691_v19, %v2689_v14 }
 0x122   :  { %v1334_v56 = vadd.f32 %v1333_v39, %v877_v49  ;;  %v1405_v57 = vmul.f32 %v877_v49, %v877_v49  ;;  %2117 = vst [vmem:[%s2913_s2 + $0xb8] sm:$0xff] %v2053_v23  }
 0x124   :  { %v1468_v62 = vadd.f32 %v1467_v43, %v1405_v57  ;;  %v787_v28 = vpop.f32.mrf.mxu2 }
 0x125   :  { %v956_v29 = vpop.f32.mrf.mxu3 }
 0x126   :  { %v709_v63 = vpop.f32.mrf.mxu0  ;;  %v2705_v38 = vadd.f32 %v956_v29, %v787_v28 }
 0x127   :  { %v878_v0 = vpop.f32.mrf.mxu1 }
 0x128   :  { %v879_v1 = vadd.f32 %v878_v0, %v709_v63 }
 0x12a   :  { %v1978_v5 = vpack.c.bf16 %v879_v1, %v877_v49  ;;  %v1335_v6 = vadd.f32 %v1334_v56, %v879_v1  ;;  %v1406_v9 = vmul.f32 %v879_v1, %v879_v1 }
 0x12c   :  { %2102 = vst [vmem:[%s2913_s2 + $0x40] sm:$0xff] %v1978_v5   ;;  %v1469_v10 = vadd.f32 %v1468_v62, %v1406_v9  ;;  %v789_v39 = vpop.f32.mrf.mxu2 }
 0x12d   :  { %v958_v41 = vpop.f32.mrf.mxu3 }
 0x12e   :  { %v712_v11 = vpop.f32.mrf.mxu0  ;;  %v2707_v43 = vadd.f32 %v958_v41, %v789_v39 }
 0x12f   :  { %v881_v13 = vpop.f32.mrf.mxu1 }
 0x130   :  { %v882_v15 = vadd.f32 %v881_v13, %v712_v11  ;;  %v2058_v45 = vpack.c.bf16 %v2707_v43, %v2705_v38 }
 0x132   :  { %v1336_v21 = vadd.f32 %v1335_v6, %v882_v15  ;;  %v1407_v22 = vmul.f32 %v882_v15, %v882_v15  ;;  %2118 = vst [vmem:[%s2913_s2 + $0xc0] sm:$0xff] %v2058_v45  }
 0x134   :  { %v1470_v24 = vadd.f32 %v1469_v10, %v1407_v22  ;;  %v792_v53 = vpop.f32.mrf.mxu2 }
 0x135   :  { %v961_v54 = vpop.f32.mrf.mxu3 }
 0x136   :  { %v714_v25 = vpop.f32.mrf.mxu0  ;;  %v2723_v58 = vadd.f32 %v961_v54, %v792_v53 }
 0x137   :  { %v883_v26 = vpop.f32.mrf.mxu1 }
 0x138   :  { %v884_v27 = vadd.f32 %v883_v26, %v714_v25 }
 0x13a   :  { %v1983_v30 = vpack.c.bf16 %v884_v27, %v882_v15  ;;  %v2698_v31 = vadd.f32 %v1336_v21, %v884_v27  ;;  %v1408_v32 = vmul.f32 %v884_v27, %v884_v27 }
 0x13c   :  { %2103 = vst [vmem:[%s2913_s2 + $0x48] sm:$0xff] %v1983_v30   ;;  %v2703_v33 = vadd.f32 %v1470_v24, %v1408_v32  ;;  %v794_v59 = vpop.f32.mrf.mxu2 }
 0x13d   :  { %v963_v60 = vpop.f32.mrf.mxu3 }
 0x13e   :  { %v717_v34 = vpop.f32.mrf.mxu0  ;;  %v2725_v61 = vadd.f32 %v963_v60, %v794_v59 }
 0x13f   :  { %v886_v35 = vpop.f32.mrf.mxu1 }
 0x140   :  { %v2714_v50 = vadd.f32 %v886_v35, %v717_v34  ;;  %v2063_v62 = vpack.c.bf16 %v2725_v61, %v2723_v58 }
 0x142   :  { %2119 = vst [vmem:[%s2913_s2 + $0xc8] sm:$0xff] %v2063_v62  }
 0x144   :  { %v797_v3 = vpop.f32.mrf.mxu2 }
 0x145   :  { %v966_v5 = vpop.f32.mrf.mxu3 }
 0x146   :  { %v719_v46 = vpop.f32.mrf.mxu0  ;;  %v2735_v11 = vadd.f32 %v966_v5, %v797_v3 }
 0x147   :  { %v888_v49 = vpop.f32.mrf.mxu1 }
 0x148   :  { %v2716_v51 = vadd.f32 %v888_v49, %v719_v46 }
 0x14a   :  { %v1988_v55 = vpack.c.bf16 %v2716_v51, %v2714_v50  ;;  %v1410_v3 = vmul.f32 %v2716_v51, %v2716_v51 }
 0x14c   :  { %2104 = vst [vmem:[%s2913_s2 + $0x50] sm:$0xff] %v1988_v55   ;;  %v799_v13 = vpop.f32.mrf.mxu2 }
 0x14d   :  { %v968_v15 = vpop.f32.mrf.mxu3 }
 0x14e   :  { %v722_v56 = vpop.f32.mrf.mxu0  ;;  %v2737_v17 = vadd.f32 %v968_v15, %v799_v13 }
 0x14f   :  { %v891_v57 = vpop.f32.mrf.mxu1 }
 0x150   :  { %v892_v1 = vadd.f32 %v891_v57, %v722_v56  ;;  %v2068_v18 = vpack.c.bf16 %v2737_v17, %v2735_v11 }
 0x152   :  { %2120 = vst [vmem:[%s2913_s2 + $0xd0] sm:$0xff] %v2068_v18   ;;  %v1411_v13 = vmul.f32 %v892_v1, %v892_v1 }
 0x154   :  { %v802_v25 = vpop.f32.mrf.mxu2 }
 0x155   :  { %v971_v26 = vpop.f32.mrf.mxu3 }
 0x156   :  { %v724_v63 = vpop.f32.mrf.mxu0  ;;  %v2747_v30 = vadd.f32 %v971_v26, %v802_v25 }
 0x157   :  { %v893_v0 = vpop.f32.mrf.mxu1 }
 0x158   :  { %v894_v2 = vadd.f32 %v893_v0, %v724_v63  ;;  %v1409_v63 = vmul.f32 %v2714_v50, %v2714_v50 }
 0x15a   :  { %v1993_v6 = vpack.c.bf16 %v894_v2, %v892_v1  ;;  %v1412_v25 = vmul.f32 %v894_v2, %v894_v2 }
 0x15c   :  { %2105 = vst [vmem:[%s2913_s2 + $0x58] sm:$0xff] %v1993_v6   ;;  %v804_v32 = vpop.f32.mrf.mxu2  ;;  %v1338_v6 = vadd.f32 %v2698_v31, %v2714_v50 }
 0x15d   :  { %v973_v34 = vpop.f32.mrf.mxu3 }
 0x15e   :  { %v727_v9 = vpop.f32.mrf.mxu0  ;;  %v2749_v35 = vadd.f32 %v973_v34, %v804_v32 }
 0x15f   :  { %v896_v10 = vpop.f32.mrf.mxu1 }
 0x160   :  { %v897_v23 = vadd.f32 %v896_v10, %v727_v9  ;;  %v2073_v39 = vpack.c.bf16 %v2749_v35, %v2747_v30  ;;  %v1472_v9 = vadd.f32 %v2703_v33, %v1409_v63  ;;  %v1339_v10 = vadd.f32 %v1338_v6, %v2716_v51 }
 0x162   :  { %2121 = vst [vmem:[%s2913_s2 + $0xd8] sm:$0xff] %v2073_v39   ;;  %v1473_v15 = vadd.f32 %v1472_v9, %v1410_v3  ;;  %v1413_v50 = vmul.f32 %v897_v23, %v897_v23 }
 0x164   :  { %v807_v53 = vpop.f32.mrf.mxu2  ;;  %v1474_v32 = vadd.f32 %v1473_v15, %v1411_v13 }
 0x165   :  { %v976_v54 = vpop.f32.mrf.mxu3 }
 0x166   :  { %v729_v21 = vpop.f32.mrf.mxu0  ;;  %v2759_v59 = vadd.f32 %v976_v54, %v807_v53  ;;  %v1475_v34 = vadd.f32 %v1474_v32, %v1412_v25 }
 0x167   :  { %v898_v22 = vpop.f32.mrf.mxu1 }
 0x168   :  { %v899_v24 = vadd.f32 %v898_v22, %v729_v21  ;;  %v1340_v22 = vadd.f32 %v1339_v10, %v892_v1  ;;  %v1476_v51 = vadd.f32 %v1475_v34, %v1413_v50 }
 0x16a   :  { %v1998_v27 = vpack.c.bf16 %v899_v24, %v897_v23  ;;  %v1341_v31 = vadd.f32 %v1340_v22, %v894_v2 }
 0x16c   :  { %2106 = vst [vmem:[%s2913_s2 + $0x60] sm:$0xff] %v1998_v27   ;;  %v809_v60 = vpop.f32.mrf.mxu2  ;;  %v1342_v39 = vadd.f32 %v1341_v31, %v897_v23 }
 0x16d   :  { %v978_v62 = vpop.f32.mrf.mxu3 }
 0x16e   :  { %v732_v28 = vpop.f32.mrf.mxu0  ;;  %v2763_v0 = vadd.f32 %v978_v62, %v809_v60 }
 0x16f   :  { %v901_v29 = vpop.f32.mrf.mxu1 }
 0x170   :  { %v902_v46 = vadd.f32 %v901_v29, %v732_v28  ;;  %v2078_v5 = vpack.c.bf16 %v2763_v0, %v2759_v59 }
 0x172   :  { %2122 = vst [vmem:[%s2913_s2 + $0xe0] sm:$0xff] %v2078_v5   ;;  %v1415_v53 = vmul.f32 %v902_v46, %v902_v46 }
 0x174   :  { %v812_v28 = vpop.f32.mrf.mxu2 }
 0x175   :  { %v981_v29 = vpop.f32.mrf.mxu3 }
 0x176   :  { %v734_v41 = vpop.f32.mrf.mxu0  ;;  %v2779_v60 = vadd.f32 %v981_v29, %v812_v28 }
 0x177   :  { %v903_v45 = vpop.f32.mrf.mxu1 }
 0x178   :  { %v904_v49 = vadd.f32 %v903_v45, %v734_v41  ;;  %v1414_v41 = vmul.f32 %v899_v24, %v899_v24  ;;  %v1343_v45 = vadd.f32 %v1342_v39, %v899_v24 }
 0x17a   :  { %v2003_v55 = vpack.c.bf16 %v904_v49, %v902_v46 }
 0x17c   :  { %2107 = vst [vmem:[%s2913_s2 + $0x68] sm:$0xff] %v2003_v55   ;;  %v1477_v55 = vadd.f32 %v1476_v51, %v1414_v41  ;;  %v814_v2 = vpop.f32.mrf.mxu2  ;;  %v1422_v41 = vmul.f32 %v2463_v40, %v2463_v40 }
 0x17d   :  { %v983_v62 = vpop.f32.mrf.mxu3 }
 0x17e   :  { %v737_v56 = vpop.f32.mrf.mxu0  ;;  %v2781_v63 = vadd.f32 %v983_v62, %v814_v2  ;;  %v1478_v23 = vadd.f32 %v1477_v55, %v1415_v53  ;;  %v1423_v53 = vmul.f32 %v2497_v4, %v2497_v4 }
 0x17f   :  { %v906_v57 = vpop.f32.mrf.mxu1 }
 0x180   :  { %v907_v26 = vadd.f32 %v906_v57, %v737_v56  ;;  %v1344_v56 = vadd.f32 %v1343_v45, %v902_v46  ;;  %v1416_v57 = vmul.f32 %v904_v49, %v904_v49  ;;  %v2083_v9 = vpack.c.bf16 %v2781_v63, %v2779_v60 }
 0x182   :  { %v1345_v3 = vadd.f32 %v1344_v56, %v904_v49  ;;  %v1417_v5 = vmul.f32 %v907_v26, %v907_v26  ;;  %v1479_v24 = vadd.f32 %v1478_v23, %v1416_v57  ;;  %2123 = vst [vmem:[%s2913_s2 + $0xe8] sm:$0xff] %v2083_v9  }
 0x184   :  { %v1346_v10 = vadd.f32 %v1345_v3, %v907_v26  ;;  %v1480_v46 = vadd.f32 %v1479_v24, %v1417_v5  ;;  %v817_v29 = vpop.f32.mrf.mxu2  ;;  %v1425_v3 = vmul.f32 %v2533_v37, %v2533_v37  ;;  %v1427_v24 = vmul.f32 %v2569_v7, %v2569_v7 }
 0x186   :  { %v739_v18 = vpop.f32.mrf.mxu0 }
 0x187   :  { %v908_v21 = vpop.f32.mrf.mxu1  ;;  %v986_v32 = vpop.f32.mrf.mxu3 }
 0x188   :  { %v909_v27 = vadd.f32 %v908_v21, %v739_v18  ;;  %v2800_v55 = vadd.f32 %v986_v32, %v817_v29  ;;  %v1431_v29 = vmul.f32 %v2641_v16, %v2641_v16 }
 0x18a   :  { %v2008_v33 = vpack.c.bf16 %v909_v27, %v907_v26  ;;  %v1418_v13 = vmul.f32 %v909_v27, %v909_v27  ;;  %v1347_v15 = vadd.f32 %v1346_v10, %v909_v27  ;;  %v1421_v26 = vmul.f32 %v2461_v36, %v2461_v36 }
 0x18c   :  { %2108 = vst [vmem:[%s2913_s2 + $0x70] sm:$0xff] %v2008_v33   ;;  %v1481_v25 = vadd.f32 %v1480_v46, %v1418_v13  ;;  %v819_v56 = vpop.f32.mrf.mxu2 }
 0x18e   :  { %v742_v1 = vpop.f32.mrf.mxu0 }
 0x18f   :  { %v911_v54 = vpop.f32.mrf.mxu1  ;;  %v988_v57 = vpop.f32.mrf.mxu3 }
 0x190   :  { %v912_v6 = vadd.f32 %v911_v54, %v742_v1  ;;  %v2802_v2 = vadd.f32 %v988_v57, %v819_v56  ;;  %v1436_v56 = vmul.f32 %v2691_v19, %v2691_v19 }
 0x192   :  { %v1419_v18 = vmul.f32 %v912_v6, %v912_v6  ;;  %v1348_v28 = vadd.f32 %v1347_v15, %v912_v6 }
 0x194   :  { %v1482_v31 = vadd.f32 %v1481_v25, %v1419_v18  ;;  %v822_v46 = vpop.f32.mrf.mxu2 }
 0x196   :  { %v744_v21 = vpop.f32.mrf.mxu0 }
 0x197   :  { %v913_v22 = vpop.f32.mrf.mxu1  ;;  %v991_v15 = vpop.f32.mrf.mxu3 }
 0x198   :  { %v914_v49 = vadd.f32 %v913_v22, %v744_v21  ;;  %v1429_v22 = vmul.f32 %v2605_v44, %v2605_v44 }
 0x19a   :  { %v2013_v50 = vpack.c.bf16 %v914_v49, %v912_v6  ;;  %v1349_v33 = vadd.f32 %v1348_v28, %v914_v49  ;;  %v1420_v34 = vmul.f32 %v914_v49, %v914_v49  ;;  %v1426_v6 = vmul.f32 %v2535_v42, %v2535_v42 }
 0x19b   :  { %v1430_v28 = vmul.f32 %v2607_v48, %v2607_v48 }
 0x19c   :  { %2109 = vst [vmem:[%s2913_s2 + $0x78] sm:$0xff] %v2013_v50   ;;  %v1350_v27 = vadd.f32 %v1349_v33, %v2461_v36  ;;  %v1483_v39 = vadd.f32 %v1482_v31, %v1420_v34  ;;  %v1424_v36 = vmul.f32 %v2499_v8, %v2499_v8  ;;  %v824_v50 = vpop.f32.mrf.mxu2 }
 0x19e   :  { %v1351_v51 = vadd.f32 %v1350_v27, %v2463_v40  ;;  %v1484_v45 = vadd.f32 %v1483_v39, %v1421_v26  ;;  %v2088_v40 = vpack.c.bf16 %v2802_v2, %v2800_v55  ;;  %v1433_v39 = vmul.f32 %v2665_v47, %v2665_v47 }
 0x19f   :  { %v993_v33 = vpop.f32.mrf.mxu3 }
 0x1a0   :  { %v1352_v1 = vadd.f32 %v1351_v51, %v2497_v4  ;;  %v1485_v54 = vadd.f32 %v1484_v45, %v1422_v41  ;;  %2124 = vst [vmem:[%s2913_s2 + $0xf0] sm:$0xff] %v2088_v40   ;;  %v2835_v34 = vadd.f32 %v993_v33, %v824_v50  ;;  %v1434_v51 = vmul.f32 %v2667_v52, %v2667_v52 }
 0x1a1   :  { %v1450_v33 = vmul.f32 %v2802_v2, %v2802_v2 }
 0x1a2   :  { %v1353_v62 = vadd.f32 %v1352_v1, %v2499_v8  ;;  %v1486_v23 = vadd.f32 %v1485_v54, %v1423_v53  ;;  %v1435_v53 = vmul.f32 %v2689_v14, %v2689_v14 }
 0x1a4   :  { %v1354_v4 = vadd.f32 %v1353_v62, %v2533_v37  ;;  %v1487_v5 = vadd.f32 %v1486_v23, %v1424_v36  ;;  %v1428_v37 = vmul.f32 %v2571_v12, %v2571_v12  ;;  %v1437_v36 = vmul.f32 %v2705_v38, %v2705_v38 }
 0x1a6   :  { %v1355_v9 = vadd.f32 %v1354_v4, %v2535_v42  ;;  %v1488_v8 = vadd.f32 %v1487_v5, %v1425_v3 }
 0x1a8   :  { %v1356_v10 = vadd.f32 %v1355_v9, %v2569_v7  ;;  %v1489_v13 = vadd.f32 %v1488_v8, %v1426_v6 }
 0x1aa   :  { %v1357_v18 = vadd.f32 %v1356_v10, %v2571_v12  ;;  %v1490_v21 = vadd.f32 %v1489_v13, %v1427_v24  ;;  %v2833_v12 = vadd.f32 %v991_v15, %v822_v46 }
 0x1ac   :  { %v1358_v42 = vadd.f32 %v1357_v18, %v2605_v44  ;;  %v1491_v25 = vadd.f32 %v1490_v21, %v1428_v37  ;;  %v1432_v44 = vmul.f32 %v2643_v20, %v2643_v20  ;;  %v1445_v21 = vmul.f32 %v2759_v59, %v2759_v59 }
 0x1ae   :  { %v1359_v7 = vadd.f32 %v1358_v42, %v2607_v48  ;;  %v1492_v49 = vadd.f32 %v1491_v25, %v1429_v22  ;;  %v2093_v48 = vpack.c.bf16 %v2835_v34, %v2833_v12  ;;  %v1446_v25 = vmul.f32 %v2763_v0, %v2763_v0 }
 0x1b0   :  { %v1360_v32 = vadd.f32 %v1359_v7, %v2641_v16  ;;  %v1493_v31 = vadd.f32 %v1492_v49, %v1430_v28  ;;  %2125 = vst [vmem:[%s2913_s2 + $0xf8] sm:$0xff] %v2093_v48   ;;  %v1447_v7 = vmul.f32 %v2779_v60, %v2779_v60  ;;  %v1452_v48 = vmul.f32 %v2835_v34, %v2835_v34 }
 0x1b2   :  { %v1361_v26 = vadd.f32 %v1360_v32, %v2643_v20  ;;  %v1494_v27 = vadd.f32 %v1493_v31, %v1431_v29  ;;  %v1448_v29 = vmul.f32 %v2781_v63, %v2781_v63  ;;  %v1449_v31 = vmul.f32 %v2800_v55, %v2800_v55 }
 0x1b4   :  { %v1495_v16 = vadd.f32 %v1494_v27, %v1432_v44  ;;  %v1362_v41 = vadd.f32 %v1361_v26, %v2665_v47  ;;  %v1451_v26 = vmul.f32 %v2833_v12, %v2833_v12 }
 0x1b6   :  { %v1363_v45 = vadd.f32 %v1362_v41, %v2667_v52  ;;  %v1496_v20 = vadd.f32 %v1495_v16, %v1433_v39  ;;  %v1438_v52 = vmul.f32 %v2707_v43, %v2707_v43 }
 0x1b8   :  { %v1364_v1 = vadd.f32 %v1363_v45, %v2689_v14  ;;  %v1497_v54 = vadd.f32 %v1496_v20, %v1434_v51  ;;  %v1439_v14 = vmul.f32 %v2723_v58, %v2723_v58 }
 0x1ba   :  { %v1365_v47 = vadd.f32 %v1364_v1, %v2691_v19  ;;  %v1498_v57 = vadd.f32 %v1497_v54, %v1435_v53  ;;  %v1440_v19 = vmul.f32 %v2725_v61, %v2725_v61 }
 0x1bc   :  { %v1366_v62 = vadd.f32 %v1365_v47, %v2705_v38  ;;  %v1499_v23 = vadd.f32 %v1498_v57, %v1436_v56  ;;  %v1441_v38 = vmul.f32 %v2735_v11, %v2735_v11 }
 0x1be   :  { %v1367_v40 = vadd.f32 %v1366_v62, %v2707_v43  ;;  %v1500_v3 = vadd.f32 %v1499_v23, %v1437_v36  ;;  %v1442_v43 = vmul.f32 %v2737_v17, %v2737_v17 }
 0x1c0   :  { %v1368_v4 = vadd.f32 %v1367_v40, %v2723_v58  ;;  %v1501_v5 = vadd.f32 %v1500_v3, %v1438_v52  ;;  %v1443_v58 = vmul.f32 %v2747_v30, %v2747_v30 }
 0x1c2   :  { %v1369_v6 = vadd.f32 %v1368_v4, %v2725_v61  ;;  %v1502_v9 = vadd.f32 %v1501_v5, %v1439_v14  ;;  %v1444_v61 = vmul.f32 %v2749_v35, %v2749_v35 }
 0x1c4   :  { %v1370_v8 = vadd.f32 %v1369_v6, %v2735_v11  ;;  %v1503_v24 = vadd.f32 %v1502_v9, %v1440_v19 }
 0x1c6   :  { %v1371_v10 = vadd.f32 %v1370_v8, %v2737_v17  ;;  %v1504_v13 = vadd.f32 %v1503_v24, %v1441_v38 }
 0x1c8   :  { %v1372_v46 = vadd.f32 %v1371_v10, %v2747_v30  ;;  %v1505_v15 = vadd.f32 %v1504_v13, %v1442_v43 }
 0x1ca   :  { %v1373_v37 = vadd.f32 %v1372_v46, %v2749_v35  ;;  %v1506_v18 = vadd.f32 %v1505_v15, %v1443_v58 }
 0x1cc   :  { %v1374_v11 = vadd.f32 %v1373_v37, %v2759_v59  ;;  %v1507_v22 = vadd.f32 %v1506_v18, %v1444_v61 }
 0x1ce   :  { %v1508_v17 = vadd.f32 %v1507_v22, %v1445_v21  ;;  %v1375_v42 = vadd.f32 %v1374_v11, %v2763_v0 }
 0x1d0   :  { %v1509_v30 = vadd.f32 %v1508_v17, %v1446_v25  ;;  %v1376_v28 = vadd.f32 %v1375_v42, %v2779_v60 }
 0x1d2   :  { %v1510_v35 = vadd.f32 %v1509_v30, %v1447_v7  ;;  %v1377_v49 = vadd.f32 %v1376_v28, %v2781_v63 }
 0x1d4   :  { %v1511_v59 = vadd.f32 %v1510_v35, %v1448_v29  ;;  %v1378_v32 = vadd.f32 %v1377_v49, %v2800_v55 }
 0x1d6   :  { %v1512_v50 = vadd.f32 %v1511_v59, %v1449_v31  ;;  %v1379_v0 = vadd.f32 %v1378_v32, %v2802_v2 }
 0x1d8   :  { %v1513_v44 = vadd.f32 %v1512_v50, %v1450_v33  ;;  %v1380_v60 = vadd.f32 %v1379_v0, %v2833_v12 }
 0x1da   :  { %v1514_v27 = vadd.f32 %v1513_v44, %v1451_v26  ;;  %v1381_v63 = vadd.f32 %v1380_v60, %v2835_v34 }
 0x1dc   :  { %v1382_v39 = vrot.slane %v1381_v63, 4  ;;  %v1515_v55 = vadd.f32 %v1514_v27, %v1452_v48 }
 0x1de   :  { %v1383_v16 = vadd.f32 %v1382_v39, %v1381_v63  ;;  %v1516_v41 = vrot.slane %v1515_v55, 4 }
 0x1e0   :  { %v1384_v51 = vrot.slane %v1383_v16, 2  ;;  %v1517_v45 = vadd.f32 %v1516_v41, %v1515_v55 }
 0x1e2   :  { %v1385_v20 = vadd.f32 %v1384_v51, %v1383_v16  ;;  %v1518_v2 = vrot.slane %v1517_v45, 2 }
 0x1e4   :  { %v1386_v53 = vrot.slane %v1385_v20, 1  ;;  %v1519_v1 = vadd.f32 %v1518_v2, %v1517_v45 }
 0x1e6   :  { %v1387_v54 = vadd.f32 %v1386_v53, %v1385_v20  ;;  %v1520_v56 = vrot.slane %v1519_v1, 1 }
 0x1e8   :  { %1388 = vst [vmem:[%s2914_s3] sm:$0x1] %v1387_v54  ;;  %v1521_v12 = vadd.f32 %v1520_v56, %v1519_v1 }
 0x1ea   :  { %1522 = vst [vmem:[%s2915_s4] sm:$0x1] %v1521_v12 }

// kernel: backbone_forward.76
= control target key start
LH: loop header
LB: loop body
LE: loop exit
PB: predicated region body
PF: predicated region fallthrough
CT: control target
= control target key end

     0   :  { %vm688_vm0 = vcmask 519168   ;;  %s1466_s0 = inlined_call_operand.vmem [shape: bf16[128,64], index: 0, kind: input, shape index: {}]   ;;  %s1467_s1 = inlined_call_operand.vmem [shape: bf16[128,64], index: 1, kind: input, shape index: {}]   ;;  %s1468_s2 = inlined_call_operand.vmem [shape: bf16[128,64], index: 2, kind: input, shape index: {}]   ;;  %s1469_s3 = inlined_call_operand.vmem [shape: bf16[128,64], index: 3, kind: input, shape index: {}]   ;;  %s1470_s4 = inlined_call_operand.vmem [shape: bf16[128,64], index: 4, kind: input, shape index: {}]   ;;  %s1471_s5 = inlined_call_operand.vmem [shape: bf16[128,64], index: 5, kind: input, shape index: {}]   ;;  %s1472_s6 = inlined_call_operand.vmem [shape: bf16[128,64], index: 6, kind: input, shape index: {}]   ;;  %s1473_s7 = inlined_call_operand.vmem [shape: bf16[128,64], index: 7, kind: input, shape index: {}]   ;;  %s1474_s8 = inlined_call_operand.vmem [shape: bf16[128,64], index: 8, kind: input, shape index: {}]   ;;  %s1475_s9 = inlined_call_operand.vmem [shape: bf16[128,64], index: 9, kind: output, shape index: {}]  }
   0x1   :  { %v710_v0 = vld [vmem:[%s1466_s0] sm:$0xff]   ;;  %v997_v17 = vld [vmem:[%s1466_s0 + $0x8] sm:$0xff]   ;;  %v998_v54 = vld [vmem:[%s1466_s0 + $0x10] sm:$0xff]  }
   0x2   :  { %v742_v1 = vld [vmem:[%s1467_s1] sm:$0xff]   ;;  %v711_v3 = vunpack.c.l.bf16 %v710_v0  ;;  %v712_v9 = vunpack.c.h.bf16 %v710_v0  ;;  %v1004_v18 = vld [vmem:[%s1467_s1 + $0x8] sm:$0xff]   ;;  %v715_v31 = vunpack.c.l.bf16 %v997_v17  ;;  %v716_v48 = vunpack.c.h.bf16 %v997_v17  ;;  %v1005_v59 = vld [vmem:[%s1467_s1 + $0x10] sm:$0xff]  }
   0x3   :  { %v774_v2 = vld [vmem:[%s1468_s2] sm:$0xff]   ;;  %v743_v4 = vunpack.c.l.bf16 %v742_v1  ;;  %v744_v13 = vunpack.c.h.bf16 %v742_v1  ;;  %v1011_v23 = vld [vmem:[%s1468_s2 + $0x8] sm:$0xff]   ;;  %v747_v32 = vunpack.c.l.bf16 %v1004_v18  ;;  %v748_v52 = vunpack.c.h.bf16 %v1004_v18  ;;  %v1012_v0 = vld [vmem:[%s1468_s2 + $0x10] sm:$0xff]  }
   0x4   :  { %v775_v5 = vunpack.c.l.bf16 %v774_v2  ;;  %v806_v6 = vld [vmem:[%s1469_s3] sm:$0xff]   ;;  %v776_v21 = vunpack.c.h.bf16 %v774_v2  ;;  %v1018_v28 = vld [vmem:[%s1469_s3 + $0x8] sm:$0xff]   ;;  %v779_v37 = vunpack.c.l.bf16 %v1011_v23  ;;  %v780_v53 = vunpack.c.h.bf16 %v1011_v23  ;;  %v1019_v1 = vld [vmem:[%s1469_s3 + $0x10] sm:$0xff]  }
   0x5   :  { %v838_v7 = vld [vmem:[%s1470_s4] sm:$0xff]   ;;  %v96_v14 = vmax.f32 %v711_v3, %v743_v4  ;;  %v807_v15 = vunpack.c.l.bf16 %v806_v6  ;;  %v97_v20 = vmax.f32 %v712_v9, %v744_v13  ;;  %v808_v22 = vunpack.c.h.bf16 %v806_v6  ;;  %v1025_v33 = vld [vmem:[%s1470_s4 + $0x8] sm:$0xff]  }
   0x6   :  { %v870_v8 = vld [vmem:[%s1471_s5] sm:$0xff]   ;;  %v839_v16 = vunpack.c.l.bf16 %v838_v7  ;;  %v840_v30 = vunpack.c.h.bf16 %v838_v7  ;;  %v98_v40 = vmax.f32 %v715_v31, %v747_v32  ;;  %v811_v41 = vunpack.c.l.bf16 %v1018_v28  ;;  %v1032_v42 = vld [vmem:[%s1471_s5 + $0x8] sm:$0xff]   ;;  %v1207_v31 = vld [vmem:[%s1472_s6 + $0x10] sm:$0xff]  }
   0x7   :  { %v902_v10 = vld [vmem:[%s1472_s6] sm:$0xff]   ;;  %v871_v19 = vunpack.c.l.bf16 %v870_v8  ;;  %v176_v24 = vmax.f32 %v96_v14, %v775_v5  ;;  %v177_v29 = vmax.f32 %v97_v20, %v776_v21  ;;  %v872_v35 = vunpack.c.h.bf16 %v870_v8  ;;  %v1165_v43 = vld [vmem:[%s1472_s6 + $0x8] sm:$0xff]  }
   0x8   :  { %v1134_v11 = vld [vmem:[%s1473_s7] sm:$0xff]   ;;  %v903_v25 = vunpack.c.l.bf16 %v902_v10  ;;  %v904_v36 = vunpack.c.h.bf16 %v902_v10  ;;  %v1170_v44 = vld [vmem:[%s1473_s7 + $0x8] sm:$0xff]   ;;  %v843_v47 = vunpack.c.l.bf16 %v1025_v33  ;;  %v178_v50 = vmax.f32 %v98_v40, %v779_v37  ;;  %v1026_v10 = vld [vmem:[%s1470_s4 + $0x10] sm:$0xff]  }
   0x9   :  { %v1139_v12 = vld [vmem:[%s1474_s8] sm:$0xff]   ;;  %v935_v26 = vunpack.c.l.bf16 %v1134_v11  ;;  %v256_v34 = vmax.f32 %v176_v24, %v807_v15  ;;  %v257_v38 = vmax.f32 %v177_v29, %v808_v22  ;;  %v936_v39 = vunpack.c.h.bf16 %v1134_v11  ;;  %v1176_v51 = vld [vmem:[%s1474_s8 + $0x8] sm:$0xff]   ;;  %v1212_v37 = vld [vmem:[%s1473_s7 + $0x10] sm:$0xff]  }
   0xa   :  { %v967_v27 = vunpack.c.l.bf16 %v1139_v12  ;;  %v968_v46 = vunpack.c.h.bf16 %v1139_v12  ;;  %v875_v56 = vunpack.c.l.bf16 %v1032_v42  ;;  %v907_v57 = vunpack.c.l.bf16 %v1165_v43 }
   0xb   :  { %v336_v45 = vmax.f32 %v256_v34, %v839_v16  ;;  %v337_v49 = vmax.f32 %v257_v38, %v840_v30  ;;  %v939_v58 = vunpack.c.l.bf16 %v1170_v44  ;;  %v258_v61 = vmax.f32 %v178_v50, %v811_v41  ;;  %v1054_v50 = vld [vmem:[%s1474_s8 + $0x10] sm:$0xff]  }
   0xc   :  { %v99_v62 = vmax.f32 %v716_v48, %v748_v52  ;;  %v812_v63 = vunpack.c.h.bf16 %v1018_v28  ;;  %v971_v3 = vunpack.c.l.bf16 %v1176_v51  ;;  %v844_v4 = vunpack.c.h.bf16 %v1025_v33  ;;  %v1013_v48 = vld [vmem:[%s1468_s2 + $0x18] sm:$0xff]  }
   0xd   :  { %v416_v55 = vmax.f32 %v336_v45, %v871_v19  ;;  %v417_v60 = vmax.f32 %v337_v49, %v872_v35  ;;  %v719_v5 = vunpack.c.l.bf16 %v998_v54  ;;  %v338_v7 = vmax.f32 %v258_v61, %v843_v47  ;;  %v1199_v19 = vld [vmem:[%s1471_s5 + $0x10] sm:$0xff]   ;;  %v1006_v47 = vld [vmem:[%s1467_s1 + $0x18] sm:$0xff]  }
   0xe   :  { %v179_v8 = vmax.f32 %v99_v62, %v780_v53  ;;  %v751_v9 = vunpack.c.l.bf16 %v1005_v59  ;;  %v876_v12 = vunpack.c.h.bf16 %v1032_v42  ;;  %v783_v13 = vunpack.c.l.bf16 %v1012_v0  ;;  %v999_v42 = vld [vmem:[%s1466_s0 + $0x18] sm:$0xff]  }
   0xf   :  { %v496_v2 = vmax.f32 %v416_v55, %v903_v25  ;;  %v497_v6 = vmax.f32 %v417_v60, %v904_v36  ;;  %v815_v14 = vunpack.c.l.bf16 %v1019_v1  ;;  %v418_v16 = vmax.f32 %v338_v7, %v875_v56  ;;  %v1027_v62 = vld [vmem:[%s1470_s4 + $0x18] sm:$0xff]  }
  0x10   :  { %v259_v17 = vmax.f32 %v179_v8, %v812_v63  ;;  %v100_v18 = vmax.f32 %v719_v5, %v751_v9  ;;  %v908_v21 = vunpack.c.h.bf16 %v1165_v43  ;;  %v940_v22 = vunpack.c.h.bf16 %v1170_v44  ;;  %v1253_v7 = vld [vmem:[%s1471_s5 + $0x18] sm:$0xff]  }
  0x11   :  { %v576_v11 = vmax.f32 %v496_v2, %v935_v26  ;;  %v577_v15 = vmax.f32 %v497_v6, %v936_v39  ;;  %v847_v23 = vunpack.c.l.bf16 %v1026_v10  ;;  %v498_v25 = vmax.f32 %v418_v16, %v907_v57  ;;  %v1020_v57 = vld [vmem:[%s1469_s3 + $0x18] sm:$0xff]  }
  0x12   :  { %v339_v26 = vmax.f32 %v259_v17, %v844_v4  ;;  %v180_v28 = vmax.f32 %v100_v18, %v783_v13  ;;  %v879_v30 = vunpack.c.l.bf16 %v1199_v19  ;;  %v720_v32 = vunpack.c.h.bf16 %v998_v54  ;;  %v1258_v8 = vld [vmem:[%s1472_s6 + $0x18] sm:$0xff]   ;;  %v1000_v18 = vld [vmem:[%s1466_s0 + $0x20] sm:$0xff]  }
  0x13   :  { %v656_v20 = vmax.f32 %v576_v11, %v967_v27  ;;  %v657_v24 = vmax.f32 %v577_v15, %v968_v46  ;;  %v752_v33 = vunpack.c.h.bf16 %v1005_v59  ;;  %v578_v34 = vmax.f32 %v498_v25, %v939_v58  ;;  %v1263_v15 = vld [vmem:[%s1473_s7 + $0x18] sm:$0xff]  }
  0x14   :  { %v419_v35 = vmax.f32 %v339_v26, %v876_v12  ;;  %v260_v36 = vmax.f32 %v180_v28, %v815_v14  ;;  %v972_v38 = vunpack.c.h.bf16 %v1176_v51  ;;  %v784_v40 = vunpack.c.h.bf16 %v1012_v0  ;;  %v1280_v26 = vld [vmem:[%s1474_s8 + $0x18] sm:$0xff]  }
  0x15   :  { %v672_v29 = vpack.c.bf16 %v656_v20, %v656_v20  ;;  %v673_v27 = vpack.c.bf16 %v657_v24, %v657_v24  ;;  %v101_v39 = vmax.f32 %v720_v32, %v752_v33  ;;  %v816_v41 = vunpack.c.h.bf16 %v1019_v1 }
  0x16   :  { %v658_v43 = vmax.f32 %v578_v34, %v971_v3  ;;  %v499_v44 = vmax.f32 %v419_v35, %v908_v21  ;;  %v340_v45 = vmax.f32 %v260_v36, %v847_v23  ;;  %v911_v46 = vunpack.c.l.bf16 %v1207_v31  ;;  %v1007_v23 = vld [vmem:[%s1467_s1 + $0x20] sm:$0xff]  }
  0x17   :  { %689 = vst.msk [vmem:[%s1475_s9] sm:$0xf] %vm688_vm0, %v672_v29  ;;  %v943_v49 = vunpack.c.l.bf16 %v1212_v37  ;;  %v181_v51 = vmax.f32 %v101_v39, %v784_v40  ;;  %v848_v52 = vunpack.c.h.bf16 %v1026_v10  ;;  %v723_v56 = vunpack.c.l.bf16 %v999_v42  ;;  %v1292_v39 = vld [vmem:[%s1470_s4 + $0x20] sm:$0xff]  }
  0x18   :  { %690 = vst.msk [vmem:[%s1475_s9 + $0x4] sm:$0xf] %vm688_vm0, %v673_v27  ;;  %v674_v53 = vpack.c.bf16 %v658_v43, %v658_v43  ;;  %v579_v54 = vmax.f32 %v499_v44, %v940_v22  ;;  %v420_v55 = vmax.f32 %v340_v45, %v879_v30  ;;  %v880_v59 = vunpack.c.h.bf16 %v1199_v19  ;;  %v1014_v30 = vld [vmem:[%s1468_s2 + $0x20] sm:$0xff]  }
  0x19   :  { %v261_v58 = vmax.f32 %v181_v51, %v816_v41  ;;  %v755_v60 = vunpack.c.l.bf16 %v1006_v47  ;;  %v787_v61 = vunpack.c.l.bf16 %v1013_v48  ;;  %v975_v1 = vunpack.c.l.bf16 %v1054_v50 }
  0x1a   :  { %691 = vst.msk [vmem:[%s1475_s9 + $0x8] sm:$0xf] %vm688_vm0, %v674_v53  ;;  %v659_v63 = vmax.f32 %v579_v54, %v972_v38  ;;  %v500_v0 = vmax.f32 %v420_v55, %v911_v46  ;;  %v912_v2 = vunpack.c.h.bf16 %v1207_v31  ;;  %v944_v4 = vunpack.c.h.bf16 %v1212_v37  ;;  %v1021_v31 = vld [vmem:[%s1469_s3 + $0x20] sm:$0xff]  }
  0x1b   :  { %v341_v3 = vmax.f32 %v261_v58, %v848_v52  ;;  %v102_v5 = vmax.f32 %v723_v56, %v755_v60  ;;  %v819_v6 = vunpack.c.l.bf16 %v1020_v57  ;;  %v851_v11 = vunpack.c.l.bf16 %v1027_v62  ;;  %v1311_v52 = vld [vmem:[%s1472_s6 + $0x20] sm:$0xff]  }
  0x1c   :  { %v675_v9 = vpack.c.bf16 %v659_v63, %v659_v63  ;;  %v580_v10 = vmax.f32 %v500_v0, %v943_v49  ;;  %v724_v12 = vunpack.c.h.bf16 %v999_v42  ;;  %v756_v16 = vunpack.c.h.bf16 %v1006_v47  ;;  %v1316_v58 = vld [vmem:[%s1473_s7 + $0x20] sm:$0xff]   ;;  %v1001_v0 = vld [vmem:[%s1466_s0 + $0x28] sm:$0xff]  }
  0x1d   :  { %v421_v13 = vmax.f32 %v341_v3, %v880_v59  ;;  %v182_v14 = vmax.f32 %v102_v5, %v787_v61  ;;  %v788_v17 = vunpack.c.h.bf16 %v1013_v48  ;;  %v976_v20 = vunpack.c.h.bf16 %v1054_v50  ;;  %v1303_v48 = vld [vmem:[%s1471_s5 + $0x20] sm:$0xff]   ;;  %v1008_v5 = vld [vmem:[%s1467_s1 + $0x28] sm:$0xff]  }
  0x1e   :  { %692 = vst.msk [vmem:[%s1475_s9 + $0xc] sm:$0xf] %vm688_vm0, %v675_v9  ;;  %v660_v19 = vmax.f32 %v580_v10, %v975_v1  ;;  %v883_v21 = vunpack.c.l.bf16 %v1253_v7  ;;  %v915_v22 = vunpack.c.l.bf16 %v1258_v8  ;;  %v103_v28 = vmax.f32 %v724_v12, %v756_v16  ;;  %v1321_v59 = vld [vmem:[%s1474_s8 + $0x20] sm:$0xff]  }
  0x1f   :  { %v501_v24 = vmax.f32 %v421_v13, %v912_v2  ;;  %v262_v25 = vmax.f32 %v182_v14, %v819_v6  ;;  %v820_v29 = vunpack.c.h.bf16 %v1020_v57  ;;  %v947_v33 = vunpack.c.l.bf16 %v1263_v15  ;;  %v1015_v6 = vld [vmem:[%s1468_s2 + $0x28] sm:$0xff]  }
  0x20   :  { %v676_v32 = vpack.c.bf16 %v660_v19, %v660_v19  ;;  %v852_v27 = vunpack.c.h.bf16 %v1027_v62  ;;  %v727_v34 = vunpack.c.l.bf16 %v1000_v18  ;;  %v183_v37 = vmax.f32 %v103_v28, %v788_v17 }
  0x21   :  { %v581_v35 = vmax.f32 %v501_v24, %v944_v4  ;;  %v342_v36 = vmax.f32 %v262_v25, %v851_v11  ;;  %v759_v38 = vunpack.c.l.bf16 %v1007_v23  ;;  %v979_v40 = vunpack.c.l.bf16 %v1280_v26 }
  0x22   :  { %693 = vst.msk [vmem:[%s1475_s9 + $0x10] sm:$0xf] %vm688_vm0, %v676_v32  ;;  %v884_v41 = vunpack.c.h.bf16 %v1253_v7  ;;  %v791_v42 = vunpack.c.l.bf16 %v1014_v30  ;;  %v823_v43 = vunpack.c.l.bf16 %v1021_v31  ;;  %v263_v46 = vmax.f32 %v183_v37, %v820_v29  ;;  %v1366_v37 = vld [vmem:[%s1473_s7 + $0x28] sm:$0xff]  }
  0x23   :  { %v661_v44 = vmax.f32 %v581_v35, %v976_v20  ;;  %v422_v45 = vmax.f32 %v342_v36, %v883_v21  ;;  %v104_v47 = vmax.f32 %v727_v34, %v759_v38  ;;  %v916_v49 = vunpack.c.h.bf16 %v1258_v8  ;;  %v1029_v20 = vld [vmem:[%s1470_s4 + $0x28] sm:$0xff]  }
  0x24   :  { %v948_v50 = vunpack.c.h.bf16 %v1263_v15  ;;  %v855_v51 = vunpack.c.l.bf16 %v1292_v39  ;;  %v728_v53 = vunpack.c.h.bf16 %v1000_v18  ;;  %v343_v56 = vmax.f32 %v263_v46, %v852_v27  ;;  %v1022_v15 = vld [vmem:[%s1469_s3 + $0x28] sm:$0xff]  }
  0x25   :  { %v677_v54 = vpack.c.bf16 %v661_v44, %v661_v44  ;;  %v502_v55 = vmax.f32 %v422_v45, %v915_v22  ;;  %v184_v57 = vmax.f32 %v104_v47, %v791_v42  ;;  %v980_v60 = vunpack.c.h.bf16 %v1280_v26  ;;  %v1361_v36 = vld [vmem:[%s1472_s6 + $0x28] sm:$0xff]  }
  0x26   :  { %v887_v61 = vunpack.c.l.bf16 %v1303_v48  ;;  %v760_v62 = vunpack.c.h.bf16 %v1007_v23  ;;  %v792_v63 = vunpack.c.h.bf16 %v1014_v30  ;;  %v423_v2 = vmax.f32 %v343_v56, %v884_v41  ;;  %v1036_v30 = vld [vmem:[%s1471_s5 + $0x28] sm:$0xff]  }
  0x27   :  { %694 = vst.msk [vmem:[%s1475_s9 + $0x14] sm:$0xf] %vm688_vm0, %v677_v54  ;;  %v582_v1 = vmax.f32 %v502_v55, %v947_v33  ;;  %v264_v3 = vmax.f32 %v184_v57, %v823_v43  ;;  %v919_v4 = vunpack.c.l.bf16 %v1311_v52  ;;  %v951_v7 = vunpack.c.l.bf16 %v1316_v58  ;;  %v1057_v57 = vld [vmem:[%s1474_s8 + $0x28] sm:$0xff]  }
  0x28   :  { %v983_v8 = vunpack.c.l.bf16 %v1321_v59  ;;  %v105_v9 = vmax.f32 %v728_v53, %v760_v62  ;;  %v824_v10 = vunpack.c.h.bf16 %v1021_v31  ;;  %v503_v12 = vmax.f32 %v423_v2, %v916_v49  ;;  %v1009_v49 = vld [vmem:[%s1467_s1 + $0x30] sm:$0xff]  }
  0x29   :  { %v662_v11 = vmax.f32 %v582_v1, %v979_v40  ;;  %v344_v13 = vmax.f32 %v264_v3, %v855_v51  ;;  %v731_v14 = vunpack.c.l.bf16 %v1001_v0  ;;  %v856_v17 = vunpack.c.h.bf16 %v1292_v39 }
  0x2a   :  { %v185_v16 = vmax.f32 %v105_v9, %v792_v63  ;;  %v763_v18 = vunpack.c.l.bf16 %v1008_v5  ;;  %v795_v19 = vunpack.c.l.bf16 %v1015_v6  ;;  %v583_v22 = vmax.f32 %v503_v12, %v948_v50  ;;  %v1016_v50 = vld [vmem:[%s1468_s2 + $0x30] sm:$0xff]  }
  0x2b   :  { %v678_v21 = vpack.c.bf16 %v662_v11, %v662_v11  ;;  %v424_v23 = vmax.f32 %v344_v13, %v887_v61  ;;  %v888_v24 = vunpack.c.h.bf16 %v1303_v48  ;;  %v920_v26 = vunpack.c.h.bf16 %v1311_v52  ;;  %v1002_v48 = vld [vmem:[%s1466_s0 + $0x30] sm:$0xff]  }
  0x2c   :  { %v265_v25 = vmax.f32 %v185_v16, %v824_v10  ;;  %v106_v28 = vmax.f32 %v731_v14, %v763_v18  ;;  %v827_v29 = vunpack.c.l.bf16 %v1022_v15  ;;  %v663_v31 = vmax.f32 %v583_v22, %v980_v60  ;;  %v1023_v61 = vld [vmem:[%s1469_s3 + $0x30] sm:$0xff]  }
  0x2d   :  { %695 = vst.msk [vmem:[%s1475_s9 + $0x18] sm:$0xf] %vm688_vm0, %v678_v21  ;;  %v504_v32 = vmax.f32 %v424_v23, %v919_v4  ;;  %v952_v33 = vunpack.c.h.bf16 %v1316_v58  ;;  %v859_v27 = vunpack.c.l.bf16 %v1029_v20  ;;  %v732_v38 = vunpack.c.h.bf16 %v1001_v0  ;;  %v1037_v14 = vld [vmem:[%s1471_s5 + $0x30] sm:$0xff]  }
  0x2e   :  { %v345_v34 = vmax.f32 %v265_v25, %v856_v17  ;;  %v186_v35 = vmax.f32 %v106_v28, %v795_v19  ;;  %v764_v39 = vunpack.c.h.bf16 %v1008_v5  ;;  %v679_v40 = vpack.c.bf16 %v663_v31, %v663_v31  ;;  %v1030_v5 = vld [vmem:[%s1470_s4 + $0x30] sm:$0xff]   ;;  %v1010_v31 = vld [vmem:[%s1467_s1 + $0x38] sm:$0xff]  }
  0x2f   :  { %v584_v41 = vmax.f32 %v504_v32, %v951_v7  ;;  %v891_v42 = vunpack.c.l.bf16 %v1036_v30  ;;  %v796_v43 = vunpack.c.h.bf16 %v1015_v6  ;;  %v828_v47 = vunpack.c.h.bf16 %v1022_v15  ;;  %v1044_v17 = vld [vmem:[%s1472_s6 + $0x30] sm:$0xff]  }
  0x30   :  { %v425_v44 = vmax.f32 %v345_v34, %v888_v24  ;;  %v266_v45 = vmax.f32 %v186_v35, %v827_v29  ;;  %v107_v46 = vmax.f32 %v732_v38, %v764_v39  ;;  %696 = vst.msk [vmem:[%s1475_s9 + $0x1c] sm:$0xf] %vm688_vm0, %v679_v40  ;;  %v984_v52 = vunpack.c.h.bf16 %v1321_v59  ;;  %v1051_v23 = vld [vmem:[%s1473_s7 + $0x30] sm:$0xff]   ;;  %v1017_v35 = vld [vmem:[%s1468_s2 + $0x38] sm:$0xff]  }
  0x31   :  { %v664_v51 = vmax.f32 %v584_v41, %v983_v8  ;;  %v923_v53 = vunpack.c.l.bf16 %v1361_v36  ;;  %v955_v54 = vunpack.c.l.bf16 %v1366_v37  ;;  %v860_v60 = vunpack.c.h.bf16 %v1029_v20  ;;  %v1058_v38 = vld [vmem:[%s1474_s8 + $0x30] sm:$0xff]   ;;  %v1024_v41 = vld [vmem:[%s1469_s3 + $0x38] sm:$0xff]  }
  0x32   :  { %v505_v55 = vmax.f32 %v425_v44, %v920_v26  ;;  %v346_v56 = vmax.f32 %v266_v45, %v859_v27  ;;  %v187_v58 = vmax.f32 %v107_v46, %v796_v43  ;;  %v735_v63 = vunpack.c.l.bf16 %v1002_v48 }
  0x33   :  { %v680_v62 = vpack.c.bf16 %v664_v51, %v664_v51  ;;  %v767_v0 = vunpack.c.l.bf16 %v1009_v49  ;;  %v799_v59 = vunpack.c.l.bf16 %v1016_v50  ;;  %v892_v4 = vunpack.c.h.bf16 %v1036_v30  ;;  %v1003_v30 = vld [vmem:[%s1466_s0 + $0x38] sm:$0xff]  }
  0x34   :  { %v585_v1 = vmax.f32 %v505_v55, %v952_v33  ;;  %v426_v2 = vmax.f32 %v346_v56, %v891_v42  ;;  %v267_v3 = vmax.f32 %v187_v58, %v828_v47  ;;  %v987_v6 = vunpack.c.l.bf16 %v1057_v57 }
  0x35   :  { %697 = vst.msk [vmem:[%s1475_s9 + $0x20] sm:$0xf] %vm688_vm0, %v680_v62  ;;  %v924_v7 = vunpack.c.h.bf16 %v1361_v36  ;;  %v108_v8 = vmax.f32 %v735_v63, %v767_v0  ;;  %v831_v9 = vunpack.c.l.bf16 %v1023_v61  ;;  %v956_v13 = vunpack.c.h.bf16 %v1366_v37 }
  0x36   :  { %v665_v10 = vmax.f32 %v585_v1, %v984_v52  ;;  %v506_v11 = vmax.f32 %v426_v2, %v923_v53  ;;  %v347_v12 = vmax.f32 %v267_v3, %v860_v60  ;;  %v863_v16 = vunpack.c.l.bf16 %v1030_v5  ;;  %v1038_v60 = vld [vmem:[%s1471_s5 + $0x38] sm:$0xff]  }
  0x37   :  { %v188_v15 = vmax.f32 %v108_v8, %v799_v59  ;;  %v736_v18 = vunpack.c.h.bf16 %v1002_v48  ;;  %v768_v19 = vunpack.c.h.bf16 %v1009_v49  ;;  %v800_v24 = vunpack.c.h.bf16 %v1016_v50  ;;  %v1031_v50 = vld [vmem:[%s1470_s4 + $0x38] sm:$0xff]  }
  0x38   :  { %v681_v20 = vpack.c.bf16 %v665_v10, %v665_v10  ;;  %v586_v21 = vmax.f32 %v506_v11, %v955_v54  ;;  %v427_v22 = vmax.f32 %v347_v12, %v892_v4  ;;  %v895_v26 = vunpack.c.l.bf16 %v1037_v14  ;;  %v1045_v2 = vld [vmem:[%s1472_s6 + $0x38] sm:$0xff]  }
  0x39   :  { %v268_v25 = vmax.f32 %v188_v15, %v831_v9  ;;  %v109_v28 = vmax.f32 %v736_v18, %v768_v19  ;;  %v832_v29 = vunpack.c.h.bf16 %v1023_v61  ;;  %v988_v27 = vunpack.c.h.bf16 %v1057_v57  ;;  %v1052_v10 = vld [vmem:[%s1473_s7 + $0x38] sm:$0xff]  }
  0x3a   :  { %698 = vst.msk [vmem:[%s1475_s9 + $0x24] sm:$0xf] %vm688_vm0, %v681_v20  ;;  %v666_v32 = vmax.f32 %v586_v21, %v987_v6  ;;  %v507_v33 = vmax.f32 %v427_v22, %v924_v7  ;;  %v927_v34 = vunpack.c.l.bf16 %v1044_v17  ;;  %v959_v37 = vunpack.c.l.bf16 %v1051_v23 }
  0x3b   :  { %v348_v36 = vmax.f32 %v268_v25, %v863_v16  ;;  %v189_v39 = vmax.f32 %v109_v28, %v800_v24  ;;  %v864_v40 = vunpack.c.h.bf16 %v1030_v5  ;;  %v739_v44 = vunpack.c.l.bf16 %v1003_v30 }
  0x3c   :  { %v682_v42 = vpack.c.bf16 %v666_v32, %v666_v32  ;;  %v587_v43 = vmax.f32 %v507_v33, %v956_v13  ;;  %v771_v45 = vunpack.c.l.bf16 %v1010_v31  ;;  %v896_v48 = vunpack.c.h.bf16 %v1037_v14 }
  0x3d   :  { %v428_v46 = vmax.f32 %v348_v36, %v895_v26  ;;  %v269_v47 = vmax.f32 %v189_v39, %v832_v29  ;;  %v803_v49 = vunpack.c.l.bf16 %v1017_v35  ;;  %v991_v52 = vunpack.c.l.bf16 %v1058_v38 }
  0x3e   :  { %699 = vst.msk [vmem:[%s1475_s9 + $0x28] sm:$0xf] %vm688_vm0, %v682_v42  ;;  %v667_v51 = vmax.f32 %v587_v43, %v988_v27  ;;  %v110_v53 = vmax.f32 %v739_v44, %v771_v45  ;;  %v835_v54 = vunpack.c.l.bf16 %v1024_v41  ;;  %v928_v57 = vunpack.c.h.bf16 %v1044_v17  ;;  %v1059_v17 = vld [vmem:[%s1474_s8 + $0x38] sm:$0xff]  }
  0x3f   :  { %v508_v55 = vmax.f32 %v428_v46, %v927_v34  ;;  %v349_v56 = vmax.f32 %v269_v47, %v864_v40  ;;  %v960_v58 = vunpack.c.h.bf16 %v1051_v23  ;;  %v867_v63 = vunpack.c.l.bf16 %v1031_v50 }
  0x40   :  { %v683_v61 = vpack.c.bf16 %v667_v51, %v667_v51  ;;  %v190_v62 = vmax.f32 %v110_v53, %v803_v49  ;;  %v740_v0 = vunpack.c.h.bf16 %v1003_v30  ;;  %v772_v3 = vunpack.c.h.bf16 %v1010_v31 }
  0x41   :  { %v588_v59 = vmax.f32 %v508_v55, %v959_v37  ;;  %v429_v1 = vmax.f32 %v349_v56, %v896_v48  ;;  %v804_v4 = vunpack.c.h.bf16 %v1017_v35  ;;  %v992_v5 = vunpack.c.h.bf16 %v1058_v38 }
  0x42   :  { %700 = vst.msk [vmem:[%s1475_s9 + $0x2c] sm:$0xf] %vm688_vm0, %v683_v61  ;;  %v270_v6 = vmax.f32 %v190_v62, %v835_v54  ;;  %v899_v7 = vunpack.c.l.bf16 %v1038_v60  ;;  %v111_v11 = vmax.f32 %v740_v0, %v772_v3  ;;  %v836_v12 = vunpack.c.h.bf16 %v1024_v41 }
  0x43   :  { %v668_v8 = vmax.f32 %v588_v59, %v991_v52  ;;  %v509_v9 = vmax.f32 %v429_v1, %v928_v57  ;;  %v931_v14 = vunpack.c.l.bf16 %v1045_v2  ;;  %v868_v19 = vunpack.c.h.bf16 %v1031_v50 }
  0x44   :  { %v350_v13 = vmax.f32 %v270_v6, %v867_v63  ;;  %v191_v18 = vmax.f32 %v111_v11, %v804_v4  ;;  %v963_v21 = vunpack.c.l.bf16 %v1052_v10  ;;  %v900_v24 = vunpack.c.h.bf16 %v1038_v60 }
  0x45   :  { %v684_v15 = vpack.c.bf16 %v668_v8, %v668_v8  ;;  %v589_v16 = vmax.f32 %v509_v9, %v960_v58  ;;  %v995_v26 = vunpack.c.l.bf16 %v1059_v17  ;;  %v932_v30 = vunpack.c.h.bf16 %v1045_v2 }
  0x46   :  { %v430_v20 = vmax.f32 %v350_v13, %v899_v7  ;;  %v271_v23 = vmax.f32 %v191_v18, %v836_v12  ;;  %v964_v33 = vunpack.c.h.bf16 %v1052_v10  ;;  %v996_v35 = vunpack.c.h.bf16 %v1059_v17 }
  0x47   :  { %701 = vst.msk [vmem:[%s1475_s9 + $0x30] sm:$0xf] %vm688_vm0, %v684_v15  ;;  %v669_v22 = vmax.f32 %v589_v16, %v992_v5 }
  0x48   :  { %v510_v25 = vmax.f32 %v430_v20, %v931_v14  ;;  %v351_v29 = vmax.f32 %v271_v23, %v868_v19 }
  0x49   :  { %v685_v28 = vpack.c.bf16 %v669_v22, %v669_v22 }
  0x4a   :  { %v590_v31 = vmax.f32 %v510_v25, %v963_v21  ;;  %v431_v32 = vmax.f32 %v351_v29, %v900_v24 }
  0x4b   :  { %702 = vst.msk [vmem:[%s1475_s9 + $0x34] sm:$0xf] %vm688_vm0, %v685_v28 }
  0x4c   :  { %v670_v27 = vmax.f32 %v590_v31, %v995_v26  ;;  %v511_v34 = vmax.f32 %v431_v32, %v932_v30 }
  0x4e   :  { %v686_v36 = vpack.c.bf16 %v670_v27, %v670_v27  ;;  %v591_v37 = vmax.f32 %v511_v34, %v964_v33 }
  0x50   :  { %703 = vst.msk [vmem:[%s1475_s9 + $0x38] sm:$0xf] %vm688_vm0, %v686_v36  ;;  %v671_v38 = vmax.f32 %v591_v37, %v996_v35 }
  0x52   :  { %v687_v39 = vpack.c.bf16 %v671_v38, %v671_v38 }
  0x54   :  { %704 = vst.msk [vmem:[%s1475_s9 + $0x3c] sm:$0xf] %vm688_vm0, %v687_v39 }

// kernel: backbone_forward.77
= control target key start
LH: loop header
LB: loop body
LE: loop exit
PB: predicated region body
PF: predicated region fallthrough
CT: control target
= control target key end

     0   :  { %s1195_s15 = smov 0   ;;  %s1197_s16 = smov 0   ;;  %s1330_s0 = inlined_call_operand.vmem [shape: bf16[128,640], index: 0, kind: input, shape index: {}]   ;;  %s1331_s1 = inlined_call_operand.vmem [shape: bf16[640,128], index: 1, kind: input, shape index: {}]   ;;  %s1332_s2 = inlined_call_operand.vmem [shape: bf16[128,128], index: 2, kind: output, shape index: {0}]   ;;  %s1333_s3 = inlined_call_operand.vmem [shape: f32[1,1,128], index: 3, kind: output, shape index: {1}]   ;;  %s1334_s4 = inlined_call_operand.vmem [shape: f32[1,1,128], index: 4, kind: output, shape index: {2}]  }
   0x1   :  { %s1199_s17 = smov 0   ;;  %s1201_s18 = smov 0  }
   0x2   :  { %s1203_s19 = smov 0  }
   0x3 LB: > { %s27_s20 = sadd.s32 1, %s1163_s18  ;;  %p50_p1 = scmp.ne.s32.totalorder %s1155_s16, %s1151_s15  ;;  %s1167_s19 = sphi %s1203_s19, %s15_s19   ;;  %s1163_s18 = sphi %s1201_s18, %s1338_s18   ;;  %s1159_s17 = sphi %s1199_s17, %s1337_s17   ;;  %s1155_s16 = sphi %s1197_s16, %s1336_s16   ;;  %s1151_s15 = sphi %s1195_s15, %s1335_s15  }
   0x4   : > { %p28_p0 = scmp.ge.s32.totalorder %s27_s20, 5  ;;  %p51_p2 = scmp.eq.s32.totalorder %s1167_s19, 0 }
   0x5   : > { %s43_s22 = sadd.s32 1, %s1155_s16  ;;  %p922_p5 = scmp.ge.s32.totalorder %s1167_s19, 5 }
   0x6   : > { %s1340_s20 = smov (%p28_p0, %s27_s20), 0  ;;  %p52_p3 = por %p51_p2, %p50_p1 }
   0x7   : > { %s39_s21 = ssub.s32 %s1163_s18, %s1340_s20  ;;  %188 = sbr.rel (%p922_p5) target bundleno = 32 (0x20), region = 16 }
   0x8   : > { %p41_p4 = scmp.eq.s32.totalorder %s39_s21, 0 }
   0xa   : > { %s1230_s23 = scalar_select %p41_p4, %s1155_s16, %s43_s22  }
   0xc   : > { %191 = sbr.rel (!%p52_p3) target bundleno = 32 (0x20), region = 20  ;;  %s193_s24 = sand.u32 (%p52_p3), 1, %s1155_s16  }
   0xd   : > { %s924_s25 = sshll.u32 (%p52_p3), %s1163_s18, 2  ;;  %s923_s26 = sshll.u32 (%p52_p3), %s193_s24, 6 }
   0xe   : > { %s1238_s29 = scalar_lea.vmem (%p52_p3), %s1330_s0, %s924_s25  ;;  %s195_s30 = scalar_lea.vmem (%p52_p3), [#allocation3], %s923_s26 }
   0xf   : > { %v217_v0 = vld [vmem:[%s1238_s29] sm:$0xf] (%p52_p3)  ;;  %v219_v1 = vld [vmem:[%s1238_s29 + $0x14] sm:$0xf] (%p52_p3)  ;;  %v221_v2 = vld [vmem:[%s1238_s29 + $0x28] sm:$0xf] (%p52_p3) }
  0x10   : > { %218 = vst [vmem:[%s195_s30] sm:$0xf] (%p52_p3), %v217_v0  ;;  %v223_v3 = vld [vmem:[%s1238_s29 + $0x3c] sm:$0xf] (%p52_p3)  ;;  %v225_v4 = vld [vmem:[%s1238_s29 + $0x50] sm:$0xf] (%p52_p3) }
  0x11   : > { %220 = vst [vmem:[%s195_s30 + $0x4] sm:$0xf] %v219_v1  ;;  %v227_v5 = vld [vmem:[%s1238_s29 + $0x64] sm:$0xf]  ;;  %v229_v6 = vld [vmem:[%s1238_s29 + $0x78] sm:$0xf] }
  0x12   : > { %222 = vst [vmem:[%s195_s30 + $0x8] sm:$0xf] %v221_v2  ;;  %v231_v7 = vld [vmem:[%s1238_s29 + $0x8c] sm:$0xf]  ;;  %v233_v8 = vld [vmem:[%s1238_s29 + $0xa0] sm:$0xf] }
  0x13   : > { %224 = vst [vmem:[%s195_s30 + $0xc] sm:$0xf] %v223_v3  ;;  %v235_v9 = vld [vmem:[%s1238_s29 + $0xb4] sm:$0xf]  ;;  %v237_v10 = vld [vmem:[%s1238_s29 + $0xc8] sm:$0xf] }
  0x14   : > { %226 = vst [vmem:[%s195_s30 + $0x10] sm:$0xf] %v225_v4  ;;  %v239_v11 = vld [vmem:[%s1238_s29 + $0xdc] sm:$0xf]  ;;  %v241_v12 = vld [vmem:[%s1238_s29 + $0xf0] sm:$0xf] }
  0x15   : > { %228 = vst [vmem:[%s195_s30 + $0x14] sm:$0xf] %v227_v5  ;;  %v243_v13 = vld [vmem:[%s1238_s29 + $0x104] sm:$0xf]  ;;  %v245_v14 = vld [vmem:[%s1238_s29 + $0x118] sm:$0xf] }
  0x16   : > { %230 = vst [vmem:[%s195_s30 + $0x18] sm:$0xf] %v229_v6  ;;  %v247_v15 = vld [vmem:[%s1238_s29 + $0x12c] sm:$0xf] }
  0x17   : > { %232 = vst [vmem:[%s195_s30 + $0x1c] sm:$0xf] %v231_v7 }
  0x18   : > { %234 = vst [vmem:[%s195_s30 + $0x20] sm:$0xf] %v233_v8 }
  0x19   : > { %236 = vst [vmem:[%s195_s30 + $0x24] sm:$0xf] %v235_v9 }
  0x1a   : > { %238 = vst [vmem:[%s195_s30 + $0x28] sm:$0xf] %v237_v10 }
  0x1b   : > { %240 = vst [vmem:[%s195_s30 + $0x2c] sm:$0xf] %v239_v11 }
  0x1c   : > { %242 = vst [vmem:[%s195_s30 + $0x30] sm:$0xf] %v241_v12 }
  0x1d   : > { %244 = vst [vmem:[%s195_s30 + $0x34] sm:$0xf] %v243_v13 }
  0x1e   : > { %246 = vst [vmem:[%s195_s30 + $0x38] sm:$0xf] %v245_v14 }
  0x1f   : > { %248 = vst [vmem:[%s195_s30 + $0x3c] sm:$0xf] %v247_v15 }
  0x20 PF: > { %p925_p6 = scmp.ge.s32.totalorder %s1167_s19, 1  ;;  %p315_p7 = scmp.lt.s32.totalorder %s1167_s19, 6 }
  0x22   : > { %p316_p8 = pnand %p925_p6, %p315_p7 }
  0x23   : > { %s322_s5 = sand.u32 (!%p316_p8), 1, %s1151_s15   ;;  %s927_s6 = sshll.u32 (!%p316_p8), %s1159_s17, 4 }
  0x24   : > { %319 = sbr.rel (%p316_p8) target bundleno = 302 (0x12e), region = 65  ;;  %s926_s7 = sshll.u32 (!%p316_p8), %s322_s5, 6 }
  0x25   : > { %p372_p9 = scmp.lt.s32.totalorder (!%p316_p8), %s927_s6, 79  ;;  %s1265_s12 = scalar_lea.vmem (!%p316_p8), [#allocation3], %s926_s7 }
  0x26   : > { %p929_p10 = scmp.ne.s32.totalorder (!%p316_p8), %s1159_s17, 0 }
  0x29   : > { %s1342_s6 = smov (!%p372_p9, %s927_s6), 79  ;;  %404 = sbr.rel (%p929_p10) target bundleno = 63 (0x3f), region = 73 }
  0x2a   : > { %s928_s8 = sshll.u32 %s1342_s6, 2 }
  0x2b   : > { %s1263_s11 = scalar_lea.vmem %s1331_s1, %s928_s8 }
  0x2e   : > { %v1169_v16 = vmov 0.0  }
  0x2f   : > { %405 = vst [vmem:[#allocation2 + $0x30] sm:$0xff] %v1169_v16 }
  0x30   : > { %406 = vst [vmem:[#allocation2] sm:$0xff] %v1169_v16 }
  0x31   : > { %407 = vst [vmem:[#allocation2 + $0x58] sm:$0xff] %v1169_v16 }
  0x32   : > { %408 = vst [vmem:[#allocation2 + $0x18] sm:$0xff] %v1169_v16 }
  0x33   : > { %409 = vst [vmem:[#allocation2 + $0x50] sm:$0xff] %v1169_v16 }
  0x34   : > { %410 = vst [vmem:[#allocation2 + $0x68] sm:$0xff] %v1169_v16 }
  0x35   : > { %411 = vst [vmem:[#allocation2 + $0x8] sm:$0xff] %v1169_v16 }
  0x36   : > { %412 = vst [vmem:[#allocation2 + $0x48] sm:$0xff] %v1169_v16 }
  0x37   : > { %413 = vst [vmem:[#allocation2 + $0x40] sm:$0xff] %v1169_v16 }
  0x38   : > { %414 = vst [vmem:[#allocation2 + $0x20] sm:$0xff] %v1169_v16 }
  0x39   : > { %415 = vst [vmem:[#allocation2 + $0x10] sm:$0xff] %v1169_v16 }
  0x3a   : > { %416 = vst [vmem:[#allocation2 + $0x38] sm:$0xff] %v1169_v16 }
  0x3b   : > { %417 = vst [vmem:[#allocation2 + $0x60] sm:$0xff] %v1169_v16 }
  0x3c   : > { %418 = vst [vmem:[#allocation2 + $0x70] sm:$0xff] %v1169_v16 }
  0x3d   : > { %419 = vst [vmem:[#allocation2 + $0x78] sm:$0xff] %v1169_v16 }
  0x3e   : > { %420 = vst [vmem:[#allocation2 + $0x28] sm:$0xff] %v1169_v16 }
  0x3f PF: > { %v1016_v17 = vld [vmem:[%s1263_s11 + $0x38] sm:$0xff]  ;;  %v1015_v18 = vld [vmem:[%s1263_s11 + $0x30] sm:$0xff]  ;;  %v1014_v19 = vld [vmem:[%s1263_s11 + $0x28] sm:$0xff]  ;;  %p994_p11 = scmp.ne.s32.totalorder %s1159_s17, 4 }
  0x40   : > { %565 = vmatpush.bf16.msra.mxu0 %v1016_v17  ;;  %1064 = vmatpush.bf16.msra.mxu1 %v1016_v17  ;;  %v1013_v20 = vld [vmem:[%s1263_s11 + $0x20] sm:$0xff]  ;;  %v1012_v21 = vld [vmem:[%s1263_s11 + $0x18] sm:$0xff]  ;;  %v1011_v22 = vld [vmem:[%s1263_s11 + $0x10] sm:$0xff] }
  0x41   : > { %1065 = vmatpush.bf16.msra.mxu2 %v1016_v17  ;;  %1066 = vmatpush.bf16.msra.mxu3 %v1016_v17  ;;  %v1010_v23 = vld [vmem:[%s1263_s11 + $0x8] sm:$0xff]  ;;  %v1009_v24 = vld [vmem:[%s1263_s11] sm:$0xff]  ;;  %v1003_v26 = vld [vmem:[%s1265_s12 + $0x10] sm:$0xff] }
  0x42   : > { %v1001_v25 = vld [vmem:[%s1265_s12] sm:$0xff]  ;;  %v1007_v28 = vld [vmem:[%s1265_s12 + $0x30] sm:$0xff]  ;;  %v1002_v29 = vld [vmem:[%s1265_s12 + $0x8] sm:$0xff] }
  0x43   : > { %v1005_v27 = vld [vmem:[%s1265_s12 + $0x20] sm:$0xff]  ;;  %v1004_v30 = vld [vmem:[%s1265_s12 + $0x18] sm:$0xff]  ;;  %v1006_v31 = vld [vmem:[%s1265_s12 + $0x28] sm:$0xff] }
  0x44   : > { %566 = vmatpush.bf16.msra.mxu0 %v1015_v18  ;;  %1067 = vmatpush.bf16.msra.mxu1 %v1015_v18  ;;  %v1008_v32 = vld [vmem:[%s1265_s12 + $0x38] sm:$0xff]  ;;  %v421_v33 = vld [vmem:[#allocation2 + $0x30] sm:$0xff]  ;;  %v429_v39 = vld [vmem:[#allocation2 + $0x40] sm:$0xff] }
  0x45   : > { %1068 = vmatpush.bf16.msra.mxu2 %v1015_v18  ;;  %1069 = vmatpush.bf16.msra.mxu3 %v1015_v18  ;;  %v425_v34 = vld [vmem:[#allocation2 + $0x50] sm:$0xff]  ;;  %v433_v40 = vld [vmem:[#allocation2 + $0x60] sm:$0xff]  ;;  %v426_v42 = vld [vmem:[#allocation2 + $0x68] sm:$0xff] }
  0x46   : > { %v422_v41 = vld [vmem:[#allocation2] sm:$0xff]  ;;  %v434_v52 = vld [vmem:[#allocation2 + $0x70] sm:$0xff]  ;;  %v423_v53 = vld [vmem:[#allocation2 + $0x58] sm:$0xff] }
  0x47   : > { %v430_v51 = vld [vmem:[#allocation2 + $0x20] sm:$0xff]  ;;  %v427_v54 = vld [vmem:[#allocation2 + $0x8] sm:$0xff]  ;;  %v431_v63 = vld [vmem:[#allocation2 + $0x10] sm:$0xff] }
  0x48   : > { %567 = vmatpush.bf16.msra.mxu0 %v1014_v19  ;;  %1070 = vmatpush.bf16.msra.mxu1 %v1014_v19  ;;  %v435_v0 = vld [vmem:[#allocation2 + $0x78] sm:$0xff]  ;;  %v428_v2 = vld [vmem:[#allocation2 + $0x48] sm:$0xff] }
  0x49   : > { %1071 = vmatpush.bf16.msra.mxu2 %v1014_v19  ;;  %1072 = vmatpush.bf16.msra.mxu3 %v1014_v19  ;;  %v424_v1 = vld [vmem:[#allocation2 + $0x18] sm:$0xff]  ;;  %v436_v12 = vld [vmem:[#allocation2 + $0x28] sm:$0xff] }
  0x4a   : > { %v432_v11 = vld [vmem:[#allocation2 + $0x38] sm:$0xff] }
  0x4c   : > { %568 = vmatpush.bf16.msra.mxu0 %v1013_v20  ;;  %1073 = vmatpush.bf16.msra.mxu1 %v1013_v20 }
  0x4d   : > { %1074 = vmatpush.bf16.msra.mxu2 %v1013_v20  ;;  %1075 = vmatpush.bf16.msra.mxu3 %v1013_v20 }
  0x50   : > { %569 = vmatpush.bf16.msra.mxu0 %v1012_v21  ;;  %1076 = vmatpush.bf16.msra.mxu1 %v1012_v21 }
  0x51   : > { %1077 = vmatpush.bf16.msra.mxu2 %v1012_v21  ;;  %1078 = vmatpush.bf16.msra.mxu3 %v1012_v21 }
  0x54   : > { %570 = vmatpush.bf16.msra.mxu0 %v1011_v22  ;;  %1079 = vmatpush.bf16.msra.mxu1 %v1011_v22 }
  0x55   : > { %1080 = vmatpush.bf16.msra.mxu2 %v1011_v22  ;;  %1081 = vmatpush.bf16.msra.mxu3 %v1011_v22 }
  0x58   : > { %571 = vmatpush.bf16.msra.mxu0 %v1010_v23  ;;  %1082 = vmatpush.bf16.msra.mxu1 %v1010_v23 }
  0x59   : > { %1083 = vmatpush.bf16.msra.mxu2 %v1010_v23  ;;  %1084 = vmatpush.bf16.msra.mxu3 %v1010_v23 }
  0x5c   : > { %572 = vmatpush.bf16.msra.mxu0 %v1009_v24  ;;  %1085 = vmatpush.bf16.msra.mxu1 %v1009_v24 }
  0x5d   : > { %1086 = vmatpush.bf16.msra.mxu2 %v1009_v24  ;;  %1087 = vmatpush.bf16.msra.mxu3 %v1009_v24 }
  0x5f   : > { %573 = vmatmul.bf16.vlgmr.msra.gmra.mxu0 %v1001_v25  ;;  %583 = vmatmul.bf16.vlgmr.msra.gmra.mxu1 %v1003_v26 }
  0x60   : > { %593 = vmatmul.bf16.vlgmr.msra.gmra.mxu2 %v1005_v27  ;;  %603 = vmatmul.bf16.vlgmr.msra.gmra.mxu3 %v1007_v28 }
  0x6f   : > { %578 = vmatmul.bf16.gmra.mxu0 %v1002_v29  ;;  %588 = vmatmul.bf16.gmra.mxu1 %v1004_v30 }
  0x70   : > { %598 = vmatmul.bf16.gmra.mxu2 %v1006_v31  ;;  %608 = vmatmul.bf16.gmra.mxu3 %v1008_v32 }
  0xdc   : > { %v574_v35 = vpop.f32.mrf.mxu0  ;;  %v584_v36 = vpop.f32.mrf.mxu1 }
  0xdd   : > { %v614_v37 = vadd.f32 %v574_v35, %v421_v33  ;;  %v618_v38 = vadd.f32 %v584_v36, %v425_v34 }
  0xdf   : > { %630 = vst [vmem:[#allocation2 + $0x30] sm:$0xff] %v614_v37 }
  0xe0   : > { %634 = vst [vmem:[#allocation2 + $0x50] sm:$0xff] %v618_v38 }
  0xe3   : > { %v594_v43 = vpop.f32.mrf.mxu2  ;;  %v604_v44 = vpop.f32.mrf.mxu3 }
  0xe4   : > { %v622_v45 = vadd.f32 %v594_v43, %v429_v39  ;;  %v626_v46 = vadd.f32 %v604_v44, %v433_v40  ;;  %v576_v47 = vpop.f32.mrf.mxu0  ;;  %v586_v48 = vpop.f32.mrf.mxu1 }
  0xe5   : > { %v615_v49 = vadd.f32 %v576_v47, %v422_v41  ;;  %v619_v50 = vadd.f32 %v586_v48, %v426_v42 }
  0xe6   : > { %638 = vst [vmem:[#allocation2 + $0x40] sm:$0xff] %v622_v45 }
  0xe7   : > { %642 = vst [vmem:[#allocation2 + $0x60] sm:$0xff] %v626_v46 }
  0xe8   : > { %631 = vst [vmem:[#allocation2] sm:$0xff] %v615_v49 }
  0xe9   : > { %635 = vst [vmem:[#allocation2 + $0x68] sm:$0xff] %v619_v50 }
  0xeb   : > { %v596_v55 = vpop.f32.mrf.mxu2  ;;  %v606_v56 = vpop.f32.mrf.mxu3 }
  0xec   : > { %v623_v57 = vadd.f32 %v596_v55, %v430_v51  ;;  %v627_v58 = vadd.f32 %v606_v56, %v434_v52  ;;  %v579_v59 = vpop.f32.mrf.mxu0  ;;  %v589_v60 = vpop.f32.mrf.mxu1 }
  0xed   : > { %v616_v61 = vadd.f32 %v579_v59, %v423_v53  ;;  %v620_v62 = vadd.f32 %v589_v60, %v427_v54 }
  0xee   : > { %639 = vst [vmem:[#allocation2 + $0x20] sm:$0xff] %v623_v57 }
  0xef   : > { %643 = vst [vmem:[#allocation2 + $0x70] sm:$0xff] %v627_v58 }
  0xf0   : > { %632 = vst [vmem:[#allocation2 + $0x58] sm:$0xff] %v616_v61 }
  0xf1   : > { %636 = vst [vmem:[#allocation2 + $0x8] sm:$0xff] %v620_v62 }
  0xf3   : > { %v599_v3 = vpop.f32.mrf.mxu2  ;;  %v609_v4 = vpop.f32.mrf.mxu3 }
  0xf4   : > { %v624_v5 = vadd.f32 %v599_v3, %v431_v63  ;;  %v628_v6 = vadd.f32 %v609_v4, %v435_v0  ;;  %v581_v7 = vpop.f32.mrf.mxu0  ;;  %v591_v8 = vpop.f32.mrf.mxu1 }
  0xf5   : > { %v617_v9 = vadd.f32 %v581_v7, %v424_v1  ;;  %v621_v10 = vadd.f32 %v591_v8, %v428_v2 }
  0xf6   : > { %640 = vst [vmem:[#allocation2 + $0x10] sm:$0xff] %v624_v5 }
  0xf7   : > { %644 = vst [vmem:[#allocation2 + $0x78] sm:$0xff] %v628_v6 }
  0xf8   : > { %633 = vst [vmem:[#allocation2 + $0x18] sm:$0xff] %v617_v9 }
  0xf9   : > { %637 = vst [vmem:[#allocation2 + $0x48] sm:$0xff] %v621_v10 }
  0xfb   : > { %v601_v13 = vpop.f32.mrf.mxu2  ;;  %v611_v14 = vpop.f32.mrf.mxu3  ;;  %649 = sbr.rel (%p994_p11) target bundleno = 302 (0x12e), region = 77 }
  0xfc   : > { %v625_v15 = vadd.f32 %v601_v13, %v432_v11  ;;  %v629_v16 = vadd.f32 %v611_v14, %v436_v12 }
  0xfe   : > { %641 = vst [vmem:[#allocation2 + $0x38] sm:$0xff] %v625_v15 }
  0xff   : > { %645 = vst [vmem:[#allocation2 + $0x28] sm:$0xff] %v629_v16 }
 0x100   : > { %v650_v17 = vld [vmem:[#allocation2 + $0x30] sm:$0xff]  ;;  %v651_v18 = vld [vmem:[#allocation2] sm:$0xff]  ;;  %v652_v19 = vld [vmem:[#allocation2 + $0x58] sm:$0xff] }
 0x101   : > { %v1020_v20 = vpack.c.bf16 %v651_v18, %v650_v17  ;;  %v698_v21 = vadd.f32 %v651_v18, %v650_v17  ;;  %v720_v22 = vmul.f32 %v650_v17, %v650_v17  ;;  %v721_v23 = vmul.f32 %v651_v18, %v651_v18  ;;  %v653_v24 = vld [vmem:[#allocation2 + $0x18] sm:$0xff]  ;;  %v654_v25 = vld [vmem:[#allocation2 + $0x50] sm:$0xff]  ;;  %v655_v26 = vld [vmem:[#allocation2 + $0x68] sm:$0xff] }
 0x102   : > { %v1025_v27 = vpack.c.bf16 %v653_v24, %v652_v19  ;;  %v722_v28 = vmul.f32 %v652_v19, %v652_v19  ;;  %v1030_v29 = vpack.c.bf16 %v655_v26, %v654_v25  ;;  %v656_v30 = vld [vmem:[#allocation2 + $0x8] sm:$0xff]  ;;  %v723_v33 = vmul.f32 %v653_v24, %v653_v24  ;;  %v658_v35 = vld [vmem:[#allocation2 + $0x40] sm:$0xff]  ;;  %v660_v39 = vld [vmem:[#allocation2 + $0x10] sm:$0xff] }
 0x103   : > { %1021 = vst [vmem:[%s1332_s2] sm:$0xff] %v1020_v20   ;;  %v736_v31 = vadd.f32 %v721_v23, %v720_v22  ;;  %v699_v32 = vadd.f32 %v698_v21, %v652_v19  ;;  %v657_v34 = vld [vmem:[#allocation2 + $0x48] sm:$0xff]  ;;  %v659_v36 = vld [vmem:[#allocation2 + $0x20] sm:$0xff]  ;;  %v724_v42 = vmul.f32 %v654_v25, %v654_v25  ;;  %v663_v45 = vld [vmem:[#allocation2 + $0x70] sm:$0xff]  ;;  %v725_v50 = vmul.f32 %v655_v26, %v655_v26 }
 0x104   : > { %1057 = vst [vmem:[%s1332_s2 + $0x8] sm:$0xff] %v1025_v27   ;;  %v1035_v37 = vpack.c.bf16 %v657_v34, %v656_v30  ;;  %v1040_v38 = vpack.c.bf16 %v659_v36, %v658_v35  ;;  %v662_v44 = vld [vmem:[#allocation2 + $0x60] sm:$0xff]  ;;  %v664_v51 = vld [vmem:[#allocation2 + $0x78] sm:$0xff]  ;;  %v726_v56 = vmul.f32 %v656_v30, %v656_v30  ;;  %v727_v59 = vmul.f32 %v657_v34, %v657_v34 }
 0x105   : > { %v700_v40 = vadd.f32 %v699_v32, %v653_v24  ;;  %v737_v41 = vadd.f32 %v736_v31, %v722_v28  ;;  %1058 = vst [vmem:[%s1332_s2 + $0x10] sm:$0xff] %v1030_v29   ;;  %v661_v43 = vld [vmem:[#allocation2 + $0x38] sm:$0xff]  ;;  %v1050_v47 = vpack.c.bf16 %v663_v45, %v662_v44  ;;  %v728_v62 = vmul.f32 %v658_v35, %v658_v35 }
 0x106   : > { %1059 = vst [vmem:[%s1332_s2 + $0x18] sm:$0xff] %v1035_v37   ;;  %v1045_v46 = vpack.c.bf16 %v661_v43, %v660_v39  ;;  %v665_v52 = vld [vmem:[#allocation2 + $0x28] sm:$0xff]  ;;  %v729_v1 = vmul.f32 %v659_v36, %v659_v36  ;;  %v730_v4 = vmul.f32 %v660_v39, %v660_v39  ;;  %v731_v7 = vmul.f32 %v661_v43, %v661_v43 }
 0x107   : > { %v738_v48 = vadd.f32 %v737_v41, %v723_v33  ;;  %v701_v49 = vadd.f32 %v700_v40, %v654_v25  ;;  %1060 = vst [vmem:[%s1332_s2 + $0x20] sm:$0xff] %v1040_v38   ;;  %v1055_v53 = vpack.c.bf16 %v665_v52, %v664_v51  ;;  %v732_v10 = vmul.f32 %v662_v44, %v662_v44 }
 0x108   : > { %1061 = vst [vmem:[%s1332_s2 + $0x28] sm:$0xff] %v1045_v46   ;;  %v733_v13 = vmul.f32 %v663_v45, %v663_v45  ;;  %v734_v16 = vmul.f32 %v664_v51, %v664_v51  ;;  %v735_v19 = vmul.f32 %v665_v52, %v665_v52 }
 0x109   : > { %v702_v54 = vadd.f32 %v701_v49, %v655_v26  ;;  %v739_v55 = vadd.f32 %v738_v48, %v724_v42  ;;  %1062 = vst [vmem:[%s1332_s2 + $0x30] sm:$0xff] %v1050_v47  }
 0x10a   : > { %1063 = vst [vmem:[%s1332_s2 + $0x38] sm:$0xff] %v1055_v53  }
 0x10b   : > { %v740_v57 = vadd.f32 %v739_v55, %v725_v50  ;;  %v703_v58 = vadd.f32 %v702_v54, %v656_v30 }
 0x10d   : > { %v704_v60 = vadd.f32 %v703_v58, %v657_v34  ;;  %v741_v61 = vadd.f32 %v740_v57, %v726_v56 }
 0x10f   : > { %v742_v63 = vadd.f32 %v741_v61, %v727_v59  ;;  %v705_v0 = vadd.f32 %v704_v60, %v658_v35 }
 0x111   : > { %v706_v2 = vadd.f32 %v705_v0, %v659_v36  ;;  %v743_v3 = vadd.f32 %v742_v63, %v728_v62 }
 0x113   : > { %v744_v5 = vadd.f32 %v743_v3, %v729_v1  ;;  %v707_v6 = vadd.f32 %v706_v2, %v660_v39 }
 0x115   : > { %v708_v8 = vadd.f32 %v707_v6, %v661_v43  ;;  %v745_v9 = vadd.f32 %v744_v5, %v730_v4 }
 0x117   : > { %v746_v11 = vadd.f32 %v745_v9, %v731_v7  ;;  %v709_v12 = vadd.f32 %v708_v8, %v662_v44 }
 0x119   : > { %v710_v14 = vadd.f32 %v709_v12, %v663_v45  ;;  %v747_v15 = vadd.f32 %v746_v11, %v732_v10 }
 0x11b   : > { %v748_v17 = vadd.f32 %v747_v15, %v733_v13  ;;  %v711_v18 = vadd.f32 %v710_v14, %v664_v51 }
 0x11d   : > { %v712_v20 = vadd.f32 %v711_v18, %v665_v52  ;;  %v749_v21 = vadd.f32 %v748_v17, %v734_v16 }
 0x11f   : > { %v713_v22 = vrot.slane %v712_v20, 4  ;;  %v750_v23 = vadd.f32 %v749_v21, %v735_v19 }
 0x121   : > { %v714_v24 = vadd.f32 %v713_v22, %v712_v20  ;;  %v751_v25 = vrot.slane %v750_v23, 4 }
 0x123   : > { %v715_v26 = vrot.slane %v714_v24, 2  ;;  %v752_v27 = vadd.f32 %v751_v25, %v750_v23 }
 0x125   : > { %v716_v28 = vadd.f32 %v715_v26, %v714_v24  ;;  %v753_v29 = vrot.slane %v752_v27, 2 }
 0x127   : > { %v717_v30 = vrot.slane %v716_v28, 1  ;;  %v754_v31 = vadd.f32 %v753_v29, %v752_v27 }
 0x129   : > { %v718_v32 = vadd.f32 %v717_v30, %v716_v28  ;;  %v755_v33 = vrot.slane %v754_v31, 1 }
 0x12b   : > { %719 = vst [vmem:[%s1333_s3] sm:$0x1] %v718_v32  ;;  %v756_v34 = vadd.f32 %v755_v33, %v754_v31 }
 0x12d   : > { %757 = vst [vmem:[%s1334_s4] sm:$0x1] %v756_v34 }
 0x12e PF: > { %s15_s19 = sadd.s32 1, %s1167_s19   ;;  %s1335_s15 = smov %s1155_s16 }
 0x12f   : > { %p12_p12 = scmp.ge.s32.totalorder %s15_s19, 7   ;;  %s1336_s16 = smov %s1230_s23 }
 0x130   : > { %s1337_s17 = smov %s1163_s18  ;;  %s1338_s18 = smov %s1340_s20 }
 0x131   :  { %14 = sbr.rel (!%p12_p12) target bundleno = 3 (0x3), region = 139 }

// kernel: backbone_forward.78
= control target key start
LH: loop header
LB: loop body
LE: loop exit
PB: predicated region body
PF: predicated region fallthrough
CT: control target
= control target key end

     0   :  { %s336_s0 = inlined_call_operand.vmem [shape: bf16[128,128], index: 0, kind: input, shape index: {}]   ;;  %s337_s1 = inlined_call_operand.vmem [shape: f32[1,128], index: 1, kind: input, shape index: {}]   ;;  %s338_s2 = inlined_call_operand.vmem [shape: f32[1,128], index: 2, kind: input, shape index: {}]   ;;  %s339_s3 = inlined_call_operand.vmem [shape: bf16[128,128], index: 3, kind: output, shape index: {}]  }
   0x1   :  { %v139_v0 = vld [vmem:[%s336_s0] sm:$0xff]   ;;  %v210_v5 = vld [vmem:[%s336_s0 + $0x8] sm:$0xff]   ;;  %v211_v8 = vld [vmem:[%s336_s0 + $0x10] sm:$0xff]  }
   0x2   :  { %v252_v1 = vld [vmem:[%s337_s1] ss:$0 sm:$0xff]  ;;  %v140_v2 = vunpack.c.l.bf16 %v139_v0  ;;  %v141_v3 = vunpack.c.h.bf16 %v139_v0  ;;  %v144_v6 = vunpack.c.l.bf16 %v210_v5  ;;  %v145_v7 = vunpack.c.h.bf16 %v210_v5  ;;  %v212_v9 = vld [vmem:[%s336_s0 + $0x18] sm:$0xff]   ;;  %v214_v35 = vld [vmem:[%s336_s0 + $0x28] sm:$0xff]  }
   0x3   :  { %v257_v4 = vld [vmem:[%s338_s2] ss:$0 sm:$0xff]  ;;  %v148_v12 = vunpack.c.l.bf16 %v211_v8  ;;  %v149_v13 = vunpack.c.h.bf16 %v211_v8  ;;  %v152_v16 = vunpack.c.l.bf16 %v212_v9  ;;  %v153_v17 = vunpack.c.h.bf16 %v212_v9  ;;  %v215_v40 = vld [vmem:[%s336_s0 + $0x30] sm:$0xff]   ;;  %v216_v45 = vld [vmem:[%s336_s0 + $0x38] sm:$0xff]  }
   0x4   :  { %v50_v10 = vmul.f32 %v252_v1, %v140_v2  ;;  %v51_v11 = vmul.f32 %v252_v1, %v141_v3  ;;  %v52_v14 = vmul.f32 %v252_v1, %v144_v6  ;;  %v53_v15 = vmul.f32 %v252_v1, %v145_v7  ;;  %v213_v26 = vld [vmem:[%s336_s0 + $0x20] sm:$0xff]  }
   0x5   :  { %v54_v20 = vmul.f32 %v252_v1, %v148_v12  ;;  %v55_v21 = vmul.f32 %v252_v1, %v149_v13  ;;  %v56_v24 = vmul.f32 %v252_v1, %v152_v16  ;;  %v57_v25 = vmul.f32 %v252_v1, %v153_v17 }
   0x6   :  { %v70_v18 = vadd.f32 %v257_v4, %v50_v10  ;;  %v71_v19 = vadd.f32 %v257_v4, %v51_v11  ;;  %v72_v22 = vadd.f32 %v257_v4, %v52_v14  ;;  %v73_v23 = vadd.f32 %v257_v4, %v53_v15 }
   0x7   :  { %v74_v29 = vadd.f32 %v257_v4, %v54_v20  ;;  %v75_v30 = vadd.f32 %v257_v4, %v55_v21  ;;  %v76_v33 = vadd.f32 %v257_v4, %v56_v24  ;;  %v77_v34 = vadd.f32 %v257_v4, %v57_v25 }
   0x8   :  { %v86_v27 = vmax.f32 %v70_v18, 0.0  ;;  %v87_v28 = vmax.f32 %v71_v19, 0.0  ;;  %v88_v31 = vmax.f32 %v72_v22, 0.0  ;;  %v89_v32 = vmax.f32 %v73_v23, 0.0 }
   0x9   :  { %v90_v37 = vmax.f32 %v74_v29, 0.0  ;;  %v91_v38 = vmax.f32 %v75_v30, 0.0  ;;  %v156_v39 = vunpack.c.l.bf16 %v213_v26  ;;  %v92_v42 = vmax.f32 %v76_v33, 0.0 }
   0xa   :  { %v173_v36 = vpack.c.bf16 %v87_v28, %v86_v27  ;;  %v178_v41 = vpack.c.bf16 %v89_v32, %v88_v31  ;;  %v93_v43 = vmax.f32 %v77_v34, 0.0  ;;  %v157_v44 = vunpack.c.h.bf16 %v213_v26 }
   0xb   :  { %v183_v46 = vpack.c.bf16 %v91_v38, %v90_v37  ;;  %v58_v47 = vmul.f32 %v252_v1, %v156_v39  ;;  %v160_v48 = vunpack.c.l.bf16 %v214_v35  ;;  %v161_v49 = vunpack.c.h.bf16 %v214_v35 }
   0xc   :  { %174 = vst [vmem:[%s339_s3] sm:$0xff] %v173_v36   ;;  %v188_v50 = vpack.c.bf16 %v93_v43, %v92_v42  ;;  %v59_v51 = vmul.f32 %v252_v1, %v157_v44  ;;  %v164_v52 = vunpack.c.l.bf16 %v215_v40  ;;  %v165_v53 = vunpack.c.h.bf16 %v215_v40 }
   0xd   :  { %217 = vst [vmem:[%s339_s3 + $0x8] sm:$0xff] %v178_v41   ;;  %v78_v54 = vadd.f32 %v257_v4, %v58_v47  ;;  %v60_v55 = vmul.f32 %v252_v1, %v160_v48  ;;  %v61_v56 = vmul.f32 %v252_v1, %v161_v49  ;;  %v168_v57 = vunpack.c.l.bf16 %v216_v45 }
   0xe   :  { %218 = vst [vmem:[%s339_s3 + $0x10] sm:$0xff] %v183_v46   ;;  %v79_v58 = vadd.f32 %v257_v4, %v59_v51  ;;  %v62_v59 = vmul.f32 %v252_v1, %v164_v52  ;;  %v63_v60 = vmul.f32 %v252_v1, %v165_v53  ;;  %v169_v61 = vunpack.c.h.bf16 %v216_v45 }
   0xf   :  { %219 = vst [vmem:[%s339_s3 + $0x18] sm:$0xff] %v188_v50   ;;  %v94_v62 = vmax.f32 %v78_v54, 0.0  ;;  %v80_v63 = vadd.f32 %v257_v4, %v60_v55  ;;  %v81_v0 = vadd.f32 %v257_v4, %v61_v56  ;;  %v64_v2 = vmul.f32 %v252_v1, %v168_v57 }
  0x10   :  { %v95_v3 = vmax.f32 %v79_v58, 0.0  ;;  %v82_v5 = vadd.f32 %v257_v4, %v62_v59  ;;  %v83_v6 = vadd.f32 %v257_v4, %v63_v60  ;;  %v65_v7 = vmul.f32 %v252_v1, %v169_v61 }
  0x11   :  { %v96_v8 = vmax.f32 %v80_v63, 0.0  ;;  %v97_v9 = vmax.f32 %v81_v0, 0.0  ;;  %v84_v10 = vadd.f32 %v257_v4, %v64_v2 }
  0x12   :  { %v193_v11 = vpack.c.bf16 %v95_v3, %v94_v62  ;;  %v98_v12 = vmax.f32 %v82_v5, 0.0  ;;  %v99_v13 = vmax.f32 %v83_v6, 0.0  ;;  %v85_v14 = vadd.f32 %v257_v4, %v65_v7 }
  0x13   :  { %v198_v15 = vpack.c.bf16 %v97_v9, %v96_v8  ;;  %v100_v16 = vmax.f32 %v84_v10, 0.0 }
  0x14   :  { %220 = vst [vmem:[%s339_s3 + $0x20] sm:$0xff] %v193_v11   ;;  %v203_v17 = vpack.c.bf16 %v99_v13, %v98_v12  ;;  %v101_v18 = vmax.f32 %v85_v14, 0.0 }
  0x15   :  { %221 = vst [vmem:[%s339_s3 + $0x28] sm:$0xff] %v198_v15  }
  0x16   :  { %222 = vst [vmem:[%s339_s3 + $0x30] sm:$0xff] %v203_v17   ;;  %v208_v1 = vpack.c.bf16 %v101_v18, %v100_v16 }
  0x18   :  { %223 = vst [vmem:[%s339_s3 + $0x38] sm:$0xff] %v208_v1  }

// kernel: backbone_forward.80
= control target key start
LH: loop header
LB: loop body
LE: loop exit
PB: predicated region body
PF: predicated region fallthrough
CT: control target
= control target key end

     0   :  { %s455_s0 = inlined_call_operand.vmem [shape: bf16[128,128], index: 0, kind: input, shape index: {}]   ;;  %s456_s1 = inlined_call_operand.vmem [shape: f32[1,128], index: 1, kind: input, shape index: {}]   ;;  %s457_s2 = inlined_call_operand.vmem [shape: f32[1,128], index: 2, kind: input, shape index: {}]   ;;  %s458_s3 = inlined_call_operand.vmem [shape: bf16[128,128], index: 3, kind: input, shape index: {}]   ;;  %s459_s4 = inlined_call_operand.vmem [shape: bf16[128,128], index: 4, kind: output, shape index: {}]  }
   0x1   :  { %v190_v0 = vld [vmem:[%s455_s0] sm:$0xff]   ;;  %v293_v8 = vld [vmem:[%s455_s0 + $0x8] sm:$0xff]   ;;  %v294_v10 = vld [vmem:[%s455_s0 + $0x10] sm:$0xff]  }
   0x2   :  { %v347_v1 = vld [vmem:[%s456_s1] ss:$0 sm:$0xff]  ;;  %v191_v2 = vunpack.c.l.bf16 %v190_v0  ;;  %v192_v3 = vunpack.c.h.bf16 %v190_v0  ;;  %v300_v9 = vld [vmem:[%s458_s3 + $0x8] sm:$0xff]   ;;  %v195_v13 = vunpack.c.l.bf16 %v293_v8  ;;  %v196_v14 = vunpack.c.h.bf16 %v293_v8  ;;  %v301_v15 = vld [vmem:[%s458_s3 + $0x10] sm:$0xff]  }
   0x3   :  { %v352_v4 = vld [vmem:[%s457_s2] ss:$0 sm:$0xff]  ;;  %v227_v16 = vunpack.c.l.bf16 %v300_v9  ;;  %v228_v17 = vunpack.c.h.bf16 %v300_v9  ;;  %v199_v18 = vunpack.c.l.bf16 %v294_v10  ;;  %v200_v19 = vunpack.c.h.bf16 %v294_v10  ;;  %v295_v24 = vld [vmem:[%s455_s0 + $0x18] sm:$0xff]   ;;  %v297_v56 = vld [vmem:[%s455_s0 + $0x28] sm:$0xff]  }
   0x4   :  { %v222_v5 = vld [vmem:[%s458_s3] sm:$0xff]   ;;  %v53_v11 = vmul.f32 %v347_v1, %v191_v2  ;;  %v54_v12 = vmul.f32 %v347_v1, %v192_v3  ;;  %v55_v22 = vmul.f32 %v347_v1, %v195_v13  ;;  %v56_v23 = vmul.f32 %v347_v1, %v196_v14  ;;  %v302_v37 = vld [vmem:[%s458_s3 + $0x18] sm:$0xff]   ;;  %v304_v61 = vld [vmem:[%s458_s3 + $0x28] sm:$0xff]  }
   0x5   :  { %v223_v6 = vunpack.c.l.bf16 %v222_v5  ;;  %v224_v7 = vunpack.c.h.bf16 %v222_v5  ;;  %v57_v25 = vmul.f32 %v347_v1, %v199_v18  ;;  %v58_v26 = vmul.f32 %v347_v1, %v200_v19  ;;  %v296_v46 = vld [vmem:[%s455_s0 + $0x20] sm:$0xff]   ;;  %v298_v8 = vld [vmem:[%s455_s0 + $0x30] sm:$0xff]  }
   0x6   :  { %v73_v20 = vadd.f32 %v352_v4, %v53_v11  ;;  %v74_v21 = vadd.f32 %v352_v4, %v54_v12  ;;  %v231_v27 = vunpack.c.l.bf16 %v301_v15  ;;  %v232_v28 = vunpack.c.h.bf16 %v301_v15  ;;  %v303_v51 = vld [vmem:[%s458_s3 + $0x20] sm:$0xff]   ;;  %v305_v9 = vld [vmem:[%s458_s3 + $0x30] sm:$0xff]  }
   0x7   :  { %v75_v31 = vadd.f32 %v352_v4, %v55_v22  ;;  %v76_v32 = vadd.f32 %v352_v4, %v56_v23  ;;  %v77_v33 = vadd.f32 %v352_v4, %v57_v25  ;;  %v78_v34 = vadd.f32 %v352_v4, %v58_v26  ;;  %v299_v22 = vld [vmem:[%s455_s0 + $0x38] sm:$0xff]  }
   0x8   :  { %v121_v29 = vadd.f32 %v223_v6, %v73_v20  ;;  %v122_v30 = vadd.f32 %v224_v7, %v74_v21  ;;  %v203_v35 = vunpack.c.l.bf16 %v295_v24  ;;  %v204_v36 = vunpack.c.h.bf16 %v295_v24 }
   0x9   :  { %v123_v40 = vadd.f32 %v227_v16, %v75_v31  ;;  %v124_v41 = vadd.f32 %v228_v17, %v76_v32  ;;  %v125_v42 = vadd.f32 %v231_v27, %v77_v33  ;;  %v126_v43 = vadd.f32 %v232_v28, %v78_v34  ;;  %v306_v31 = vld [vmem:[%s458_s3 + $0x38] sm:$0xff]  }
   0xa   :  { %v137_v38 = vmax.f32 %v121_v29, 0.0  ;;  %v138_v39 = vmax.f32 %v122_v30, 0.0  ;;  %v59_v44 = vmul.f32 %v347_v1, %v203_v35  ;;  %v60_v45 = vmul.f32 %v347_v1, %v204_v36 }
   0xb   :  { %v139_v48 = vmax.f32 %v123_v40, 0.0  ;;  %v140_v49 = vmax.f32 %v124_v41, 0.0  ;;  %v235_v50 = vunpack.c.l.bf16 %v302_v37  ;;  %v141_v52 = vmax.f32 %v125_v42, 0.0 }
   0xc   :  { %v256_v47 = vpack.c.bf16 %v138_v39, %v137_v38  ;;  %v142_v53 = vmax.f32 %v126_v43, 0.0  ;;  %v79_v54 = vadd.f32 %v352_v4, %v59_v44  ;;  %v80_v55 = vadd.f32 %v352_v4, %v60_v45 }
   0xd   :  { %v261_v57 = vpack.c.bf16 %v140_v49, %v139_v48  ;;  %v236_v58 = vunpack.c.h.bf16 %v302_v37  ;;  %v207_v59 = vunpack.c.l.bf16 %v296_v46  ;;  %v208_v60 = vunpack.c.h.bf16 %v296_v46 }
   0xe   :  { %257 = vst [vmem:[%s459_s4] sm:$0xff] %v256_v47   ;;  %v266_v62 = vpack.c.bf16 %v142_v53, %v141_v52  ;;  %v127_v63 = vadd.f32 %v235_v50, %v79_v54  ;;  %v239_v0 = vunpack.c.l.bf16 %v303_v51  ;;  %v240_v2 = vunpack.c.h.bf16 %v303_v51 }
   0xf   :  { %307 = vst [vmem:[%s459_s4 + $0x8] sm:$0xff] %v261_v57   ;;  %v128_v3 = vadd.f32 %v236_v58, %v80_v55  ;;  %v61_v5 = vmul.f32 %v347_v1, %v207_v59  ;;  %v62_v6 = vmul.f32 %v347_v1, %v208_v60  ;;  %v211_v7 = vunpack.c.l.bf16 %v297_v56 }
  0x10   :  { %308 = vst [vmem:[%s459_s4 + $0x10] sm:$0xff] %v266_v62   ;;  %v143_v10 = vmax.f32 %v127_v63, 0.0  ;;  %v212_v11 = vunpack.c.h.bf16 %v297_v56  ;;  %v243_v12 = vunpack.c.l.bf16 %v304_v61  ;;  %v244_v13 = vunpack.c.h.bf16 %v304_v61 }
  0x11   :  { %v144_v14 = vmax.f32 %v128_v3, 0.0  ;;  %v81_v15 = vadd.f32 %v352_v4, %v61_v5  ;;  %v82_v16 = vadd.f32 %v352_v4, %v62_v6  ;;  %v63_v17 = vmul.f32 %v347_v1, %v211_v7 }
  0x12   :  { %v64_v18 = vmul.f32 %v347_v1, %v212_v11  ;;  %v215_v19 = vunpack.c.l.bf16 %v298_v8  ;;  %v216_v20 = vunpack.c.h.bf16 %v298_v8  ;;  %v247_v21 = vunpack.c.l.bf16 %v305_v9 }
  0x13   :  { %v271_v23 = vpack.c.bf16 %v144_v14, %v143_v10  ;;  %v129_v24 = vadd.f32 %v239_v0, %v81_v15  ;;  %v130_v25 = vadd.f32 %v240_v2, %v82_v16  ;;  %v83_v26 = vadd.f32 %v352_v4, %v63_v17 }
  0x14   :  { %v84_v27 = vadd.f32 %v352_v4, %v64_v18  ;;  %v65_v28 = vmul.f32 %v347_v1, %v215_v19  ;;  %v66_v29 = vmul.f32 %v347_v1, %v216_v20  ;;  %v248_v30 = vunpack.c.h.bf16 %v305_v9 }
  0x15   :  { %309 = vst [vmem:[%s459_s4 + $0x18] sm:$0xff] %v271_v23   ;;  %v145_v32 = vmax.f32 %v129_v24, 0.0  ;;  %v146_v33 = vmax.f32 %v130_v25, 0.0  ;;  %v131_v34 = vadd.f32 %v243_v12, %v83_v26  ;;  %v219_v35 = vunpack.c.l.bf16 %v299_v22 }
  0x16   :  { %v132_v36 = vadd.f32 %v244_v13, %v84_v27  ;;  %v85_v37 = vadd.f32 %v352_v4, %v65_v28  ;;  %v86_v38 = vadd.f32 %v352_v4, %v66_v29  ;;  %v220_v39 = vunpack.c.h.bf16 %v299_v22 }
  0x17   :  { %v276_v40 = vpack.c.bf16 %v146_v33, %v145_v32  ;;  %v147_v41 = vmax.f32 %v131_v34, 0.0  ;;  %v67_v42 = vmul.f32 %v347_v1, %v219_v35  ;;  %v251_v43 = vunpack.c.l.bf16 %v306_v31 }
  0x18   :  { %v148_v44 = vmax.f32 %v132_v36, 0.0  ;;  %v133_v45 = vadd.f32 %v247_v21, %v85_v37  ;;  %v134_v46 = vadd.f32 %v248_v30, %v86_v38  ;;  %v68_v47 = vmul.f32 %v347_v1, %v220_v39 }
  0x19   :  { %310 = vst [vmem:[%s459_s4 + $0x20] sm:$0xff] %v276_v40   ;;  %v87_v48 = vadd.f32 %v352_v4, %v67_v42  ;;  %v252_v49 = vunpack.c.h.bf16 %v306_v31 }
  0x1a   :  { %v281_v50 = vpack.c.bf16 %v148_v44, %v147_v41  ;;  %v149_v51 = vmax.f32 %v133_v45, 0.0  ;;  %v150_v52 = vmax.f32 %v134_v46, 0.0  ;;  %v88_v53 = vadd.f32 %v352_v4, %v68_v47 }
  0x1b   :  { %v135_v54 = vadd.f32 %v251_v43, %v87_v48 }
  0x1c   :  { %311 = vst [vmem:[%s459_s4 + $0x28] sm:$0xff] %v281_v50   ;;  %v286_v55 = vpack.c.bf16 %v150_v52, %v149_v51  ;;  %v136_v56 = vadd.f32 %v252_v49, %v88_v53 }
  0x1d   :  { %v151_v1 = vmax.f32 %v135_v54, 0.0 }
  0x1e   :  { %312 = vst [vmem:[%s459_s4 + $0x30] sm:$0xff] %v286_v55   ;;  %v152_v57 = vmax.f32 %v136_v56, 0.0 }
  0x20   :  { %v291_v58 = vpack.c.bf16 %v152_v57, %v151_v1 }
  0x22   :  { %313 = vst [vmem:[%s459_s4 + $0x38] sm:$0xff] %v291_v58  }

// kernel: backbone_forward.89
= control target key start
LH: loop header
LB: loop body
LE: loop exit
PB: predicated region body
PF: predicated region fallthrough
CT: control target
= control target key end

     0   :  { %s320_s1 = inlined_call_operand.vmem [shape: bf16[128,128], index: 1, kind: input, shape index: {}]   ;;  %s321_s0 = inlined_call_operand.vmem [shape: bf16[32,128], index: 0, kind: input, shape index: {}]   ;;  %s322_s2 = inlined_call_operand.vmem [shape: bf16[32,128], index: 2, kind: output, shape index: {0}]   ;;  %s323_s3 = inlined_call_operand.vmem [shape: f32[1,1,128], index: 3, kind: output, shape index: {1}]   ;;  %s324_s4 = inlined_call_operand.vmem [shape: f32[1,1,128], index: 4, kind: output, shape index: {2}]  }
   0x1   :  { %v233_v0 = vld [vmem:[%s320_s1 + $0x38] sm:$0xff]  ;;  %v232_v1 = vld [vmem:[%s320_s1 + $0x30] sm:$0xff]  ;;  %v231_v2 = vld [vmem:[%s320_s1 + $0x28] sm:$0xff] }
   0x2   :  { %106 = vmatpush.bf16.msra.mxu0 %v233_v0  ;;  %245 = vmatpush.bf16.msra.mxu1 %v233_v0  ;;  %v230_v3 = vld [vmem:[%s320_s1 + $0x20] sm:$0xff]  ;;  %v229_v4 = vld [vmem:[%s320_s1 + $0x18] sm:$0xff]  ;;  %v228_v5 = vld [vmem:[%s320_s1 + $0x10] sm:$0xff] }
   0x3   :  { %v227_v6 = vld [vmem:[%s320_s1 + $0x8] sm:$0xff]  ;;  %v226_v7 = vld [vmem:[%s320_s1] sm:$0xff] }
   0x4   :  { %v224_v8 = vld [vmem:[%s321_s0] sm:$0xff]  ;;  %v225_v9 = vld [vmem:[%s321_s0 + $0x8] sm:$0xff] }
   0x6   :  { %107 = vmatpush.bf16.msra.mxu0 %v232_v1  ;;  %246 = vmatpush.bf16.msra.mxu1 %v232_v1 }
   0xa   :  { %108 = vmatpush.bf16.msra.mxu0 %v231_v2  ;;  %247 = vmatpush.bf16.msra.mxu1 %v231_v2 }
   0xe   :  { %109 = vmatpush.bf16.msra.mxu0 %v230_v3  ;;  %248 = vmatpush.bf16.msra.mxu1 %v230_v3 }
  0x12   :  { %110 = vmatpush.bf16.msra.mxu0 %v229_v4  ;;  %249 = vmatpush.bf16.msra.mxu1 %v229_v4 }
  0x16   :  { %111 = vmatpush.bf16.msra.mxu0 %v228_v5  ;;  %250 = vmatpush.bf16.msra.mxu1 %v228_v5 }
  0x1a   :  { %112 = vmatpush.bf16.msra.mxu0 %v227_v6  ;;  %251 = vmatpush.bf16.msra.mxu1 %v227_v6 }
  0x1e   :  { %113 = vmatpush.bf16.msra.mxu0 %v226_v7  ;;  %252 = vmatpush.bf16.msra.mxu1 %v226_v7 }
  0x21   :  { %114 = vmatmul.bf16.vlgmr.msra.gmra.mxu0 %v224_v8  ;;  %119 = vmatmul.bf16.vlgmr.msra.gmra.mxu1 %v225_v9 }
  0x9e   :  { %v115_v10 = vpop.f32.mrf.mxu0  ;;  %v120_v11 = vpop.f32.mrf.mxu1 }
  0x9f   :  { %v158_v12 = vmul.f32 %v115_v10, %v115_v10  ;;  %v160_v19 = vmul.f32 %v120_v11, %v120_v11 }
  0xa6   :  { %v117_v13 = vpop.f32.mrf.mxu0  ;;  %v122_v14 = vpop.f32.mrf.mxu1 }
  0xa7   :  { %v237_v15 = vpack.c.bf16 %v117_v13, %v115_v10  ;;  %v148_v16 = vadd.f32 %v117_v13, %v115_v10  ;;  %v159_v17 = vmul.f32 %v117_v13, %v117_v13  ;;  %v242_v18 = vpack.c.bf16 %v122_v14, %v120_v11 }
  0xa8   :  { %v161_v23 = vmul.f32 %v122_v14, %v122_v14 }
  0xa9   :  { %238 = vst [vmem:[%s322_s2] sm:$0xff] %v237_v15   ;;  %v162_v20 = vadd.f32 %v159_v17, %v158_v12  ;;  %v149_v21 = vadd.f32 %v148_v16, %v120_v11 }
  0xaa   :  { %244 = vst [vmem:[%s322_s2 + $0x8] sm:$0xff] %v242_v18  }
  0xab   :  { %v150_v22 = vadd.f32 %v149_v21, %v122_v14  ;;  %v163_v24 = vadd.f32 %v162_v20, %v160_v19 }
  0xad   :  { %v151_v25 = vrot.slane %v150_v22, 4  ;;  %v164_v26 = vadd.f32 %v163_v24, %v161_v23 }
  0xaf   :  { %v152_v27 = vadd.f32 %v151_v25, %v150_v22  ;;  %v165_v28 = vrot.slane %v164_v26, 4 }
  0xb1   :  { %v153_v29 = vrot.slane %v152_v27, 2  ;;  %v166_v30 = vadd.f32 %v165_v28, %v164_v26 }
  0xb3   :  { %v154_v31 = vadd.f32 %v153_v29, %v152_v27  ;;  %v167_v32 = vrot.slane %v166_v30, 2 }
  0xb5   :  { %v155_v33 = vrot.slane %v154_v31, 1  ;;  %v168_v34 = vadd.f32 %v167_v32, %v166_v30 }
  0xb7   :  { %v156_v35 = vadd.f32 %v155_v33, %v154_v31  ;;  %v169_v36 = vrot.slane %v168_v34, 1 }
  0xb9   :  { %157 = vst [vmem:[%s323_s3] sm:$0x1] %v156_v35  ;;  %v170_v37 = vadd.f32 %v169_v36, %v168_v34 }
  0xbb   :  { %171 = vst [vmem:[%s324_s4] sm:$0x1] %v170_v37 }

// kernel: backbone_forward.90
= control target key start
LH: loop header
LB: loop body
LE: loop exit
PB: predicated region body
PF: predicated region fallthrough
CT: control target
= control target key end

     0   :  { %s110_s0 = inlined_call_operand.vmem [shape: bf16[32,128], index: 0, kind: input, shape index: {}]   ;;  %s111_s1 = inlined_call_operand.vmem [shape: f32[1,128], index: 1, kind: input, shape index: {}]   ;;  %s112_s2 = inlined_call_operand.vmem [shape: f32[1,128], index: 2, kind: input, shape index: {}]   ;;  %s113_s3 = inlined_call_operand.vmem [shape: bf16[32,128], index: 3, kind: output, shape index: {}]  }
   0x1   :  { %v51_v0 = vld [vmem:[%s110_s0] sm:$0xff]   ;;  %v68_v5 = vld [vmem:[%s110_s0 + $0x8] sm:$0xff]  }
   0x2   :  { %v70_v1 = vld [vmem:[%s111_s1] ss:$0 sm:$0xff]  ;;  %v52_v2 = vunpack.c.l.bf16 %v51_v0  ;;  %v53_v3 = vunpack.c.h.bf16 %v51_v0  ;;  %v56_v6 = vunpack.c.l.bf16 %v68_v5  ;;  %v57_v7 = vunpack.c.h.bf16 %v68_v5 }
   0x3   :  { %v71_v4 = vld [vmem:[%s112_s2] ss:$0 sm:$0xff] }
   0x4   :  { %v26_v8 = vmul.f32 %v70_v1, %v52_v2  ;;  %v27_v9 = vmul.f32 %v70_v1, %v53_v3  ;;  %v28_v10 = vmul.f32 %v70_v1, %v56_v6  ;;  %v29_v11 = vmul.f32 %v70_v1, %v57_v7 }
   0x6   :  { %v34_v12 = vadd.f32 %v71_v4, %v26_v8  ;;  %v35_v13 = vadd.f32 %v71_v4, %v27_v9  ;;  %v36_v14 = vadd.f32 %v71_v4, %v28_v10  ;;  %v37_v15 = vadd.f32 %v71_v4, %v29_v11 }
   0x8   :  { %v61_v16 = vpack.c.bf16 %v35_v13, %v34_v12  ;;  %v66_v17 = vpack.c.bf16 %v37_v15, %v36_v14 }
   0xa   :  { %62 = vst [vmem:[%s113_s3] sm:$0xff] %v61_v16  }
   0xb   :  { %69 = vst [vmem:[%s113_s3 + $0x8] sm:$0xff] %v66_v17  }

// kernel: backbone_forward.92
= control target key start
LH: loop header
LB: loop body
LE: loop exit
PB: predicated region body
PF: predicated region fallthrough
CT: control target
= control target key end

     0   :  { %s114_s0 = inlined_call_operand.vmem [shape: bf16[32,128], index: 0, kind: input, shape index: {}]   ;;  %s115_s1 = inlined_call_operand.vmem [shape: f32[1,128], index: 1, kind: input, shape index: {}]   ;;  %s116_s2 = inlined_call_operand.vmem [shape: f32[1,128], index: 2, kind: input, shape index: {}]   ;;  %s117_s3 = inlined_call_operand.vmem [shape: bf16[32,128], index: 3, kind: output, shape index: {}]  }
   0x1   :  { %v55_v0 = vld [vmem:[%s114_s0] sm:$0xff]   ;;  %v72_v5 = vld [vmem:[%s114_s0 + $0x8] sm:$0xff]  }
   0x2   :  { %v74_v1 = vld [vmem:[%s115_s1] ss:$0 sm:$0xff]  ;;  %v56_v2 = vunpack.c.l.bf16 %v55_v0  ;;  %v57_v3 = vunpack.c.h.bf16 %v55_v0  ;;  %v60_v6 = vunpack.c.l.bf16 %v72_v5  ;;  %v61_v7 = vunpack.c.h.bf16 %v72_v5 }
   0x3   :  { %v75_v4 = vld [vmem:[%s116_s2] ss:$0 sm:$0xff] }
   0x4   :  { %v26_v8 = vmul.f32 %v74_v1, %v56_v2  ;;  %v27_v9 = vmul.f32 %v74_v1, %v57_v3  ;;  %v28_v10 = vmul.f32 %v74_v1, %v60_v6  ;;  %v29_v11 = vmul.f32 %v74_v1, %v61_v7 }
   0x6   :  { %v34_v12 = vadd.f32 %v75_v4, %v26_v8  ;;  %v35_v13 = vadd.f32 %v75_v4, %v27_v9  ;;  %v36_v14 = vadd.f32 %v75_v4, %v28_v10  ;;  %v37_v15 = vadd.f32 %v75_v4, %v29_v11 }
   0x8   :  { %v38_v16 = vmax.f32 %v34_v12, 0.0  ;;  %v39_v17 = vmax.f32 %v35_v13, 0.0  ;;  %v40_v18 = vmax.f32 %v36_v14, 0.0  ;;  %v41_v19 = vmax.f32 %v37_v15, 0.0 }
   0xa   :  { %v65_v20 = vpack.c.bf16 %v39_v17, %v38_v16  ;;  %v70_v21 = vpack.c.bf16 %v41_v19, %v40_v18 }
   0xc   :  { %66 = vst [vmem:[%s117_s3] sm:$0xff] %v65_v20  }
   0xd   :  { %73 = vst [vmem:[%s117_s3 + $0x8] sm:$0xff] %v70_v21  }

// kernel: backbone_forward.91
= control target key start
LH: loop header
LB: loop body
LE: loop exit
PB: predicated region body
PF: predicated region fallthrough
CT: control target
= control target key end

     0   :  { %s867_s15 = smov 0   ;;  %s869_s16 = smov 0   ;;  %s963_s0 = inlined_call_operand.vmem [shape: bf16[32,640], index: 0, kind: input, shape index: {}]   ;;  %s964_s1 = inlined_call_operand.vmem [shape: bf16[640,128], index: 1, kind: input, shape index: {}]   ;;  %s965_s2 = inlined_call_operand.vmem [shape: bf16[32,128], index: 2, kind: output, shape index: {0}]   ;;  %s966_s3 = inlined_call_operand.vmem [shape: f32[1,1,128], index: 3, kind: output, shape index: {1}]   ;;  %s967_s4 = inlined_call_operand.vmem [shape: f32[1,1,128], index: 4, kind: output, shape index: {2}]  }
   0x1   :  { %s871_s17 = smov 0   ;;  %s873_s18 = smov 0  }
   0x2   :  { %s875_s19 = smov 0  }
   0x3 LB: > { %s27_s20 = sadd.s32 1, %s835_s18  ;;  %p50_p1 = scmp.ne.s32.totalorder %s827_s16, %s823_s15  ;;  %s839_s19 = sphi %s875_s19, %s15_s19   ;;  %s835_s18 = sphi %s873_s18, %s971_s18   ;;  %s831_s17 = sphi %s871_s17, %s970_s17   ;;  %s827_s16 = sphi %s869_s16, %s969_s16   ;;  %s823_s15 = sphi %s867_s15, %s968_s15  }
   0x4   : > { %p28_p0 = scmp.ge.s32.totalorder %s27_s20, 5  ;;  %p51_p2 = scmp.eq.s32.totalorder %s839_s19, 0 }
   0x5   : > { %s43_s22 = sadd.s32 1, %s827_s16  ;;  %p676_p5 = scmp.ge.s32.totalorder %s839_s19, 5 }
   0x6   : > { %s973_s20 = smov (%p28_p0, %s27_s20), 0  ;;  %p52_p3 = por %p51_p2, %p50_p1 }
   0x7   : > { %s39_s21 = ssub.s32 %s835_s18, %s973_s20  ;;  %188 = sbr.rel (%p676_p5) target bundleno = 20 (0x14), region = 16 }
   0x8   : > { %p41_p4 = scmp.eq.s32.totalorder %s39_s21, 0 }
   0xa   : > { %s902_s23 = scalar_select %p41_p4, %s827_s16, %s43_s22  }
   0xc   : > { %191 = sbr.rel (!%p52_p3) target bundleno = 20 (0x14), region = 20  ;;  %s193_s24 = sand.u32 (%p52_p3), 1, %s827_s16  }
   0xd   : > { %s678_s25 = sshll.u32 (%p52_p3), %s835_s18, 2  ;;  %s677_s26 = sshll.u32 (%p52_p3), %s193_s24, 4 }
   0xe   : > { %s200_s29 = scalar_lea.vmem (%p52_p3), %s963_s0, %s678_s25  ;;  %s195_s30 = scalar_lea.vmem (%p52_p3), [#allocation3], %s677_s26 }
   0xf   : > { %v217_v0 = vld [vmem:[%s200_s29] sm:$0xf] (%p52_p3)  ;;  %v219_v1 = vld [vmem:[%s200_s29 + $0x14] sm:$0xf] (%p52_p3)  ;;  %v221_v2 = vld [vmem:[%s200_s29 + $0x28] sm:$0xf] (%p52_p3) }
  0x10   : > { %218 = vst [vmem:[%s195_s30] sm:$0xf] (%p52_p3), %v217_v0  ;;  %v223_v3 = vld [vmem:[%s200_s29 + $0x3c] sm:$0xf] (%p52_p3) }
  0x11   : > { %220 = vst [vmem:[%s195_s30 + $0x4] sm:$0xf] %v219_v1 }
  0x12   : > { %222 = vst [vmem:[%s195_s30 + $0x8] sm:$0xf] %v221_v2 }
  0x13   : > { %224 = vst [vmem:[%s195_s30 + $0xc] sm:$0xf] %v223_v3 }
  0x14 PF: > { %p679_p6 = scmp.ge.s32.totalorder %s839_s19, 1  ;;  %p267_p7 = scmp.lt.s32.totalorder %s839_s19, 6 }
  0x16   : > { %p268_p8 = pnand %p679_p6, %p267_p7 }
  0x17   : > { %s274_s5 = sand.u32 (!%p268_p8), 1, %s823_s15   ;;  %s681_s6 = sshll.u32 (!%p268_p8), %s831_s17, 4 }
  0x18   : > { %271 = sbr.rel (%p268_p8) target bundleno = 236 (0xec), region = 65  ;;  %s914_s7 = sshll.u32 (!%p268_p8), %s274_s5, 4 }
  0x19   : > { %p324_p9 = scmp.lt.s32.totalorder (!%p268_p8), %s681_s6, 79  ;;  %s276_s12 = scalar_lea.vmem (!%p268_p8), [#allocation3], %s914_s7 }
  0x1a   : > { %p683_p10 = scmp.ne.s32.totalorder (!%p268_p8), %s831_s17, 0 }
  0x1d   : > { %s975_s6 = smov (!%p324_p9, %s681_s6), 79  ;;  %356 = sbr.rel (%p683_p10) target bundleno = 39 (0x27), region = 73 }
  0x1e   : > { %s682_s8 = sshll.u32 %s975_s6, 2 }
  0x1f   : > { %s919_s11 = scalar_lea.vmem %s964_s1, %s682_s8 }
  0x22   : > { %v841_v4 = vmov 0.0  }
  0x23   : > { %357 = vst [vmem:[#allocation2 + $0x10] sm:$0xff] %v841_v4 }
  0x24   : > { %358 = vst [vmem:[#allocation2] sm:$0xff] %v841_v4 }
  0x25   : > { %359 = vst [vmem:[#allocation2 + $0x18] sm:$0xff] %v841_v4 }
  0x26   : > { %360 = vst [vmem:[#allocation2 + $0x8] sm:$0xff] %v841_v4 }
  0x27 PF: > { %v740_v5 = vld [vmem:[%s919_s11 + $0x38] sm:$0xff]  ;;  %v739_v6 = vld [vmem:[%s919_s11 + $0x30] sm:$0xff]  ;;  %v738_v7 = vld [vmem:[%s919_s11 + $0x28] sm:$0xff]  ;;  %p724_p11 = scmp.ne.s32.totalorder %s831_s17, 4 }
  0x28   : > { %445 = vmatpush.bf16.msra.mxu0 %v740_v5  ;;  %752 = vmatpush.bf16.msra.mxu1 %v740_v5  ;;  %v737_v8 = vld [vmem:[%s919_s11 + $0x20] sm:$0xff]  ;;  %v736_v9 = vld [vmem:[%s919_s11 + $0x18] sm:$0xff]  ;;  %v735_v10 = vld [vmem:[%s919_s11 + $0x10] sm:$0xff] }
  0x29   : > { %v734_v11 = vld [vmem:[%s919_s11 + $0x8] sm:$0xff]  ;;  %v733_v12 = vld [vmem:[%s919_s11] sm:$0xff] }
  0x2a   : > { %v731_v13 = vld [vmem:[%s276_s12] sm:$0xff]  ;;  %v732_v14 = vld [vmem:[%s276_s12 + $0x8] sm:$0xff] }
  0x2b   : > { %v361_v15 = vld [vmem:[#allocation2 + $0x10] sm:$0xff]  ;;  %v362_v21 = vld [vmem:[#allocation2] sm:$0xff] }
  0x2c   : > { %446 = vmatpush.bf16.msra.mxu0 %v739_v6  ;;  %753 = vmatpush.bf16.msra.mxu1 %v739_v6  ;;  %v363_v16 = vld [vmem:[#allocation2 + $0x18] sm:$0xff] }
  0x2d   : > { %v364_v22 = vld [vmem:[#allocation2 + $0x8] sm:$0xff] }
  0x30   : > { %447 = vmatpush.bf16.msra.mxu0 %v738_v7  ;;  %754 = vmatpush.bf16.msra.mxu1 %v738_v7 }
  0x34   : > { %448 = vmatpush.bf16.msra.mxu0 %v737_v8  ;;  %755 = vmatpush.bf16.msra.mxu1 %v737_v8 }
  0x38   : > { %449 = vmatpush.bf16.msra.mxu0 %v736_v9  ;;  %756 = vmatpush.bf16.msra.mxu1 %v736_v9 }
  0x3c   : > { %450 = vmatpush.bf16.msra.mxu0 %v735_v10  ;;  %757 = vmatpush.bf16.msra.mxu1 %v735_v10 }
  0x40   : > { %451 = vmatpush.bf16.msra.mxu0 %v734_v11  ;;  %758 = vmatpush.bf16.msra.mxu1 %v734_v11 }
  0x44   : > { %452 = vmatpush.bf16.msra.mxu0 %v733_v12  ;;  %759 = vmatpush.bf16.msra.mxu1 %v733_v12 }
  0x47   : > { %453 = vmatmul.bf16.vlgmr.msra.gmra.mxu0 %v731_v13  ;;  %458 = vmatmul.bf16.vlgmr.msra.gmra.mxu1 %v732_v14 }
  0xc4   : > { %v454_v17 = vpop.f32.mrf.mxu0  ;;  %v459_v18 = vpop.f32.mrf.mxu1 }
  0xc5   : > { %v464_v19 = vadd.f32 %v454_v17, %v361_v15  ;;  %v466_v20 = vadd.f32 %v459_v18, %v363_v16 }
  0xc7   : > { %468 = vst [vmem:[#allocation2 + $0x10] sm:$0xff] %v464_v19 }
  0xc8   : > { %470 = vst [vmem:[#allocation2 + $0x18] sm:$0xff] %v466_v20 }
  0xcc   : > { %v456_v23 = vpop.f32.mrf.mxu0  ;;  %v461_v24 = vpop.f32.mrf.mxu1  ;;  %475 = sbr.rel (%p724_p11) target bundleno = 236 (0xec), region = 77 }
  0xcd   : > { %v465_v25 = vadd.f32 %v456_v23, %v362_v21  ;;  %v467_v26 = vadd.f32 %v461_v24, %v364_v22 }
  0xcf   : > { %469 = vst [vmem:[#allocation2] sm:$0xff] %v465_v25 }
  0xd0   : > { %471 = vst [vmem:[#allocation2 + $0x8] sm:$0xff] %v467_v26 }
  0xd1   : > { %v476_v27 = vld [vmem:[#allocation2 + $0x10] sm:$0xff]  ;;  %v478_v29 = vld [vmem:[#allocation2 + $0x18] sm:$0xff] }
  0xd2   : > { %v498_v32 = vmul.f32 %v476_v27, %v476_v27  ;;  %v500_v36 = vmul.f32 %v478_v29, %v478_v29 }
  0xd6   : > { %v477_v28 = vld [vmem:[#allocation2] sm:$0xff] }
  0xd7   : > { %v744_v30 = vpack.c.bf16 %v477_v28, %v476_v27  ;;  %v488_v31 = vadd.f32 %v477_v28, %v476_v27  ;;  %v499_v33 = vmul.f32 %v477_v28, %v477_v28  ;;  %v479_v34 = vld [vmem:[#allocation2 + $0x8] sm:$0xff] }
  0xd8   : > { %v749_v35 = vpack.c.bf16 %v479_v34, %v478_v29  ;;  %v501_v39 = vmul.f32 %v479_v34, %v479_v34 }
  0xd9   : > { %745 = vst [vmem:[%s965_s2] sm:$0xff] %v744_v30   ;;  %v502_v37 = vadd.f32 %v499_v33, %v498_v32  ;;  %v489_v38 = vadd.f32 %v488_v31, %v478_v29 }
  0xda   : > { %751 = vst [vmem:[%s965_s2 + $0x8] sm:$0xff] %v749_v35  }
  0xdb   : > { %v490_v40 = vadd.f32 %v489_v38, %v479_v34  ;;  %v503_v41 = vadd.f32 %v502_v37, %v500_v36 }
  0xdd   : > { %v491_v42 = vrot.slane %v490_v40, 4  ;;  %v504_v43 = vadd.f32 %v503_v41, %v501_v39 }
  0xdf   : > { %v492_v44 = vadd.f32 %v491_v42, %v490_v40  ;;  %v505_v45 = vrot.slane %v504_v43, 4 }
  0xe1   : > { %v493_v46 = vrot.slane %v492_v44, 2  ;;  %v506_v47 = vadd.f32 %v505_v45, %v504_v43 }
  0xe3   : > { %v494_v48 = vadd.f32 %v493_v46, %v492_v44  ;;  %v507_v49 = vrot.slane %v506_v47, 2 }
  0xe5   : > { %v495_v50 = vrot.slane %v494_v48, 1  ;;  %v508_v51 = vadd.f32 %v507_v49, %v506_v47 }
  0xe7   : > { %v496_v52 = vadd.f32 %v495_v50, %v494_v48  ;;  %v509_v53 = vrot.slane %v508_v51, 1 }
  0xe9   : > { %497 = vst [vmem:[%s966_s3] sm:$0x1] %v496_v52  ;;  %v510_v54 = vadd.f32 %v509_v53, %v508_v51 }
  0xeb   : > { %511 = vst [vmem:[%s967_s4] sm:$0x1] %v510_v54 }
  0xec PF: > { %s15_s19 = sadd.s32 1, %s839_s19   ;;  %s968_s15 = smov %s827_s16 }
  0xed   : > { %p12_p12 = scmp.ge.s32.totalorder %s15_s19, 7   ;;  %s969_s16 = smov %s902_s23 }
  0xee   : > { %s970_s17 = smov %s835_s18  ;;  %s971_s18 = smov %s973_s20 }
  0xef   :  { %14 = sbr.rel (!%p12_p12) target bundleno = 3 (0x3), region = 139 }

// kernel: backbone_forward.93
= control target key start
LH: loop header
LB: loop body
LE: loop exit
PB: predicated region body
PF: predicated region fallthrough
CT: control target
= control target key end

     0   :  { %s867_s15 = smov 0   ;;  %s869_s16 = smov 0   ;;  %s963_s0 = inlined_call_operand.vmem [shape: bf16[32,1152], index: 0, kind: input, shape index: {}]   ;;  %s964_s1 = inlined_call_operand.vmem [shape: bf16[1152,128], index: 1, kind: input, shape index: {}]   ;;  %s965_s2 = inlined_call_operand.vmem [shape: bf16[32,128], index: 2, kind: output, shape index: {0}]   ;;  %s966_s3 = inlined_call_operand.vmem [shape: f32[1,1,128], index: 3, kind: output, shape index: {1}]   ;;  %s967_s4 = inlined_call_operand.vmem [shape: f32[1,1,128], index: 4, kind: output, shape index: {2}]  }
   0x1   :  { %s871_s17 = smov 0   ;;  %s873_s18 = smov 0  }
   0x2   :  { %s875_s19 = smov 0  }
   0x3 LB: > { %s27_s20 = sadd.s32 1, %s835_s18  ;;  %p50_p1 = scmp.ne.s32.totalorder %s827_s16, %s823_s15  ;;  %s839_s19 = sphi %s875_s19, %s15_s19   ;;  %s835_s18 = sphi %s873_s18, %s971_s18   ;;  %s831_s17 = sphi %s871_s17, %s970_s17   ;;  %s827_s16 = sphi %s869_s16, %s969_s16   ;;  %s823_s15 = sphi %s867_s15, %s968_s15  }
   0x4   : > { %p28_p0 = scmp.ge.s32.totalorder %s27_s20, 9  ;;  %p51_p2 = scmp.eq.s32.totalorder %s839_s19, 0 }
   0x5   : > { %s43_s22 = sadd.s32 1, %s827_s16  ;;  %p676_p5 = scmp.ge.s32.totalorder %s839_s19, 9 }
   0x6   : > { %s973_s20 = smov (%p28_p0, %s27_s20), 0  ;;  %p52_p3 = por %p51_p2, %p50_p1 }
   0x7   : > { %s39_s21 = ssub.s32 %s835_s18, %s973_s20  ;;  %188 = sbr.rel (%p676_p5) target bundleno = 20 (0x14), region = 16 }
   0x8   : > { %p41_p4 = scmp.eq.s32.totalorder %s39_s21, 0 }
   0xa   : > { %s902_s23 = scalar_select %p41_p4, %s827_s16, %s43_s22  }
   0xc   : > { %191 = sbr.rel (!%p52_p3) target bundleno = 20 (0x14), region = 20  ;;  %s193_s24 = sand.u32 (%p52_p3), 1, %s827_s16  }
   0xd   : > { %s678_s25 = sshll.u32 (%p52_p3), %s835_s18, 2  ;;  %s677_s26 = sshll.u32 (%p52_p3), %s193_s24, 4 }
   0xe   : > { %s200_s29 = scalar_lea.vmem (%p52_p3), %s963_s0, %s678_s25  ;;  %s195_s30 = scalar_lea.vmem (%p52_p3), [#allocation3], %s677_s26 }
   0xf   : > { %v217_v0 = vld [vmem:[%s200_s29] sm:$0xf] (%p52_p3)  ;;  %v219_v1 = vld [vmem:[%s200_s29 + $0x24] sm:$0xf] (%p52_p3)  ;;  %v221_v2 = vld [vmem:[%s200_s29 + $0x48] sm:$0xf] (%p52_p3) }
  0x10   : > { %218 = vst [vmem:[%s195_s30] sm:$0xf] (%p52_p3), %v217_v0  ;;  %v223_v3 = vld [vmem:[%s200_s29 + $0x6c] sm:$0xf] (%p52_p3) }
  0x11   : > { %220 = vst [vmem:[%s195_s30 + $0x4] sm:$0xf] %v219_v1 }
  0x12   : > { %222 = vst [vmem:[%s195_s30 + $0x8] sm:$0xf] %v221_v2 }
  0x13   : > { %224 = vst [vmem:[%s195_s30 + $0xc] sm:$0xf] %v223_v3 }
  0x14 PF: > { %p679_p6 = scmp.ge.s32.totalorder %s839_s19, 1  ;;  %p267_p7 = scmp.lt.s32.totalorder %s839_s19, 10 }
  0x16   : > { %p268_p8 = pnand %p679_p6, %p267_p7 }
  0x17   : > { %s274_s5 = sand.u32 (!%p268_p8), 1, %s823_s15   ;;  %s681_s6 = sshll.u32 (!%p268_p8), %s831_s17, 4 }
  0x18   : > { %271 = sbr.rel (%p268_p8) target bundleno = 236 (0xec), region = 65  ;;  %s914_s7 = sshll.u32 (!%p268_p8), %s274_s5, 4 }
  0x19   : > { %p324_p9 = scmp.lt.s32.totalorder (!%p268_p8), %s681_s6, 143  ;;  %s276_s12 = scalar_lea.vmem (!%p268_p8), [#allocation3], %s914_s7 }
  0x1a   : > { %p683_p10 = scmp.ne.s32.totalorder (!%p268_p8), %s831_s17, 0 }
  0x1d   : > { %s975_s6 = smov (!%p324_p9, %s681_s6), 143  ;;  %356 = sbr.rel (%p683_p10) target bundleno = 39 (0x27), region = 73 }
  0x1e   : > { %s682_s8 = sshll.u32 %s975_s6, 2 }
  0x1f   : > { %s919_s11 = scalar_lea.vmem %s964_s1, %s682_s8 }
  0x22   : > { %v841_v4 = vmov 0.0  }
  0x23   : > { %357 = vst [vmem:[#allocation2 + $0x10] sm:$0xff] %v841_v4 }
  0x24   : > { %358 = vst [vmem:[#allocation2] sm:$0xff] %v841_v4 }
  0x25   : > { %359 = vst [vmem:[#allocation2 + $0x18] sm:$0xff] %v841_v4 }
  0x26   : > { %360 = vst [vmem:[#allocation2 + $0x8] sm:$0xff] %v841_v4 }
  0x27 PF: > { %v740_v5 = vld [vmem:[%s919_s11 + $0x38] sm:$0xff]  ;;  %v739_v6 = vld [vmem:[%s919_s11 + $0x30] sm:$0xff]  ;;  %v738_v7 = vld [vmem:[%s919_s11 + $0x28] sm:$0xff]  ;;  %p724_p11 = scmp.ne.s32.totalorder %s831_s17, 8 }
  0x28   : > { %445 = vmatpush.bf16.msra.mxu0 %v740_v5  ;;  %752 = vmatpush.bf16.msra.mxu1 %v740_v5  ;;  %v737_v8 = vld [vmem:[%s919_s11 + $0x20] sm:$0xff]  ;;  %v736_v9 = vld [vmem:[%s919_s11 + $0x18] sm:$0xff]  ;;  %v735_v10 = vld [vmem:[%s919_s11 + $0x10] sm:$0xff] }
  0x29   : > { %v734_v11 = vld [vmem:[%s919_s11 + $0x8] sm:$0xff]  ;;  %v733_v12 = vld [vmem:[%s919_s11] sm:$0xff] }
  0x2a   : > { %v731_v13 = vld [vmem:[%s276_s12] sm:$0xff]  ;;  %v732_v14 = vld [vmem:[%s276_s12 + $0x8] sm:$0xff] }
  0x2b   : > { %v361_v15 = vld [vmem:[#allocation2 + $0x10] sm:$0xff]  ;;  %v362_v21 = vld [vmem:[#allocation2] sm:$0xff] }
  0x2c   : > { %446 = vmatpush.bf16.msra.mxu0 %v739_v6  ;;  %753 = vmatpush.bf16.msra.mxu1 %v739_v6  ;;  %v363_v16 = vld [vmem:[#allocation2 + $0x18] sm:$0xff] }
  0x2d   : > { %v364_v22 = vld [vmem:[#allocation2 + $0x8] sm:$0xff] }
  0x30   : > { %447 = vmatpush.bf16.msra.mxu0 %v738_v7  ;;  %754 = vmatpush.bf16.msra.mxu1 %v738_v7 }
  0x34   : > { %448 = vmatpush.bf16.msra.mxu0 %v737_v8  ;;  %755 = vmatpush.bf16.msra.mxu1 %v737_v8 }
  0x38   : > { %449 = vmatpush.bf16.msra.mxu0 %v736_v9  ;;  %756 = vmatpush.bf16.msra.mxu1 %v736_v9 }
  0x3c   : > { %450 = vmatpush.bf16.msra.mxu0 %v735_v10  ;;  %757 = vmatpush.bf16.msra.mxu1 %v735_v10 }
  0x40   : > { %451 = vmatpush.bf16.msra.mxu0 %v734_v11  ;;  %758 = vmatpush.bf16.msra.mxu1 %v734_v11 }
  0x44   : > { %452 = vmatpush.bf16.msra.mxu0 %v733_v12  ;;  %759 = vmatpush.bf16.msra.mxu1 %v733_v12 }
  0x47   : > { %453 = vmatmul.bf16.vlgmr.msra.gmra.mxu0 %v731_v13  ;;  %458 = vmatmul.bf16.vlgmr.msra.gmra.mxu1 %v732_v14 }
  0xc4   : > { %v454_v17 = vpop.f32.mrf.mxu0  ;;  %v459_v18 = vpop.f32.mrf.mxu1 }
  0xc5   : > { %v464_v19 = vadd.f32 %v454_v17, %v361_v15  ;;  %v466_v20 = vadd.f32 %v459_v18, %v363_v16 }
  0xc7   : > { %468 = vst [vmem:[#allocation2 + $0x10] sm:$0xff] %v464_v19 }
  0xc8   : > { %470 = vst [vmem:[#allocation2 + $0x18] sm:$0xff] %v466_v20 }
  0xcc   : > { %v456_v23 = vpop.f32.mrf.mxu0  ;;  %v461_v24 = vpop.f32.mrf.mxu1  ;;  %475 = sbr.rel (%p724_p11) target bundleno = 236 (0xec), region = 77 }
  0xcd   : > { %v465_v25 = vadd.f32 %v456_v23, %v362_v21  ;;  %v467_v26 = vadd.f32 %v461_v24, %v364_v22 }
  0xcf   : > { %469 = vst [vmem:[#allocation2] sm:$0xff] %v465_v25 }
  0xd0   : > { %471 = vst [vmem:[#allocation2 + $0x8] sm:$0xff] %v467_v26 }
  0xd1   : > { %v476_v27 = vld [vmem:[#allocation2 + $0x10] sm:$0xff]  ;;  %v478_v29 = vld [vmem:[#allocation2 + $0x18] sm:$0xff] }
  0xd2   : > { %v498_v32 = vmul.f32 %v476_v27, %v476_v27  ;;  %v500_v36 = vmul.f32 %v478_v29, %v478_v29 }
  0xd6   : > { %v477_v28 = vld [vmem:[#allocation2] sm:$0xff] }
  0xd7   : > { %v744_v30 = vpack.c.bf16 %v477_v28, %v476_v27  ;;  %v488_v31 = vadd.f32 %v477_v28, %v476_v27  ;;  %v499_v33 = vmul.f32 %v477_v28, %v477_v28  ;;  %v479_v34 = vld [vmem:[#allocation2 + $0x8] sm:$0xff] }
  0xd8   : > { %v749_v35 = vpack.c.bf16 %v479_v34, %v478_v29  ;;  %v501_v39 = vmul.f32 %v479_v34, %v479_v34 }
  0xd9   : > { %745 = vst [vmem:[%s965_s2] sm:$0xff] %v744_v30   ;;  %v502_v37 = vadd.f32 %v499_v33, %v498_v32  ;;  %v489_v38 = vadd.f32 %v488_v31, %v478_v29 }
  0xda   : > { %751 = vst [vmem:[%s965_s2 + $0x8] sm:$0xff] %v749_v35  }
  0xdb   : > { %v490_v40 = vadd.f32 %v489_v38, %v479_v34  ;;  %v503_v41 = vadd.f32 %v502_v37, %v500_v36 }
  0xdd   : > { %v491_v42 = vrot.slane %v490_v40, 4  ;;  %v504_v43 = vadd.f32 %v503_v41, %v501_v39 }
  0xdf   : > { %v492_v44 = vadd.f32 %v491_v42, %v490_v40  ;;  %v505_v45 = vrot.slane %v504_v43, 4 }
  0xe1   : > { %v493_v46 = vrot.slane %v492_v44, 2  ;;  %v506_v47 = vadd.f32 %v505_v45, %v504_v43 }
  0xe3   : > { %v494_v48 = vadd.f32 %v493_v46, %v492_v44  ;;  %v507_v49 = vrot.slane %v506_v47, 2 }
  0xe5   : > { %v495_v50 = vrot.slane %v494_v48, 1  ;;  %v508_v51 = vadd.f32 %v507_v49, %v506_v47 }
  0xe7   : > { %v496_v52 = vadd.f32 %v495_v50, %v494_v48  ;;  %v509_v53 = vrot.slane %v508_v51, 1 }
  0xe9   : > { %497 = vst [vmem:[%s966_s3] sm:$0x1] %v496_v52  ;;  %v510_v54 = vadd.f32 %v509_v53, %v508_v51 }
  0xeb   : > { %511 = vst [vmem:[%s967_s4] sm:$0x1] %v510_v54 }
  0xec PF: > { %s15_s19 = sadd.s32 1, %s839_s19   ;;  %s968_s15 = smov %s827_s16 }
  0xed   : > { %p12_p12 = scmp.ge.s32.totalorder %s15_s19, 11   ;;  %s969_s16 = smov %s902_s23 }
  0xee   : > { %s970_s17 = smov %s835_s18  ;;  %s971_s18 = smov %s973_s20 }
  0xef   :  { %14 = sbr.rel (!%p12_p12) target bundleno = 3 (0x3), region = 139 }

// kernel: backbone_forward.94
= control target key start
LH: loop header
LB: loop body
LE: loop exit
PB: predicated region body
PF: predicated region fallthrough
CT: control target
= control target key end

     0   :  { %s149_s0 = inlined_call_operand.vmem [shape: bf16[32,128], index: 0, kind: input, shape index: {}]   ;;  %s150_s1 = inlined_call_operand.vmem [shape: f32[1,128], index: 1, kind: input, shape index: {}]   ;;  %s151_s2 = inlined_call_operand.vmem [shape: f32[1,128], index: 2, kind: input, shape index: {}]   ;;  %s152_s3 = inlined_call_operand.vmem [shape: bf16[32,128], index: 3, kind: input, shape index: {}]   ;;  %s153_s4 = inlined_call_operand.vmem [shape: bf16[32,128], index: 4, kind: output, shape index: {}]  }
   0x1   :  { %v70_v0 = vld [vmem:[%s149_s0] sm:$0xff]   ;;  %v95_v8 = vld [vmem:[%s149_s0 + $0x8] sm:$0xff]  }
   0x2   :  { %v98_v1 = vld [vmem:[%s150_s1] ss:$0 sm:$0xff]  ;;  %v71_v2 = vunpack.c.l.bf16 %v70_v0  ;;  %v72_v3 = vunpack.c.h.bf16 %v70_v0  ;;  %v96_v9 = vld [vmem:[%s152_s3 + $0x8] sm:$0xff]   ;;  %v75_v12 = vunpack.c.l.bf16 %v95_v8  ;;  %v76_v13 = vunpack.c.h.bf16 %v95_v8 }
   0x3   :  { %v99_v4 = vld [vmem:[%s151_s2] ss:$0 sm:$0xff]  ;;  %v83_v14 = vunpack.c.l.bf16 %v96_v9  ;;  %v84_v15 = vunpack.c.h.bf16 %v96_v9 }
   0x4   :  { %v78_v5 = vld [vmem:[%s152_s3] sm:$0xff]   ;;  %v29_v10 = vmul.f32 %v98_v1, %v71_v2  ;;  %v30_v11 = vmul.f32 %v98_v1, %v72_v3  ;;  %v31_v18 = vmul.f32 %v98_v1, %v75_v12  ;;  %v32_v19 = vmul.f32 %v98_v1, %v76_v13 }
   0x5   :  { %v79_v6 = vunpack.c.l.bf16 %v78_v5  ;;  %v80_v7 = vunpack.c.h.bf16 %v78_v5 }
   0x6   :  { %v37_v16 = vadd.f32 %v99_v4, %v29_v10  ;;  %v38_v17 = vadd.f32 %v99_v4, %v30_v11  ;;  %v39_v22 = vadd.f32 %v99_v4, %v31_v18  ;;  %v40_v23 = vadd.f32 %v99_v4, %v32_v19 }
   0x8   :  { %v49_v20 = vadd.f32 %v79_v6, %v37_v16  ;;  %v50_v21 = vadd.f32 %v80_v7, %v38_v17  ;;  %v51_v26 = vadd.f32 %v83_v14, %v39_v22  ;;  %v52_v27 = vadd.f32 %v84_v15, %v40_v23 }
   0xa   :  { %v53_v24 = vmax.f32 %v49_v20, 0.0  ;;  %v54_v25 = vmax.f32 %v50_v21, 0.0  ;;  %v55_v29 = vmax.f32 %v51_v26, 0.0  ;;  %v56_v30 = vmax.f32 %v52_v27, 0.0 }
   0xc   :  { %v88_v28 = vpack.c.bf16 %v54_v25, %v53_v24  ;;  %v93_v31 = vpack.c.bf16 %v56_v30, %v55_v29 }
   0xe   :  { %89 = vst [vmem:[%s153_s4] sm:$0xff] %v88_v28  }
   0xf   :  { %97 = vst [vmem:[%s153_s4 + $0x8] sm:$0xff] %v93_v31  }

// kernel: backbone_forward.108
= control target key start
LH: loop header
LB: loop body
LE: loop exit
PB: predicated region body
PF: predicated region fallthrough
CT: control target
= control target key end

     0   :  { %s71_s0 = inlined_call_operand.vmem [shape: bf16[8,256], index: 0, kind: input, shape index: {}]   ;;  %s72_s1 = inlined_call_operand.vmem [shape: f32[1,256], index: 1, kind: input, shape index: {}]   ;;  %s73_s2 = inlined_call_operand.vmem [shape: f32[1,256], index: 2, kind: input, shape index: {}]   ;;  %s74_s3 = inlined_call_operand.vmem [shape: bf16[8,256], index: 3, kind: output, shape index: {}]  }
   0x1   :  { %v14_v0 = vld [vmem:[%s71_s0] sm:$0xff] }
   0x2   :  { %v17_v1 = vld [vmem:[%s72_s1] sm:$0x3]  ;;  %v15_v3 = vunpack.c.l.bf16 %v14_v0  ;;  %v16_v4 = vunpack.c.h.bf16 %v14_v0 }
   0x3   :  { %v25_v2 = vld [vmem:[%s73_s2] sm:$0x3]  ;;  %v19_v5 = vperm.slane %v17_v1, 0  ;;  %v20_v6 = vperm.slane %v17_v1, 1 }
   0x4   :  { %v27_v7 = vperm.slane %v25_v2, 0  ;;  %v28_v8 = vperm.slane %v25_v2, 1 }
   0x5   :  { %v23_v9 = vmul.f32 %v19_v5, %v15_v3  ;;  %v24_v10 = vmul.f32 %v20_v6, %v16_v4 }
   0x7   :  { %v31_v11 = vadd.f32 %v27_v7, %v23_v9  ;;  %v32_v12 = vadd.f32 %v28_v8, %v24_v10 }
   0x9   :  { %v33_v13 = vpack.c.bf16 %v32_v12, %v31_v11 }
   0xb   :  { %34 = vst [vmem:[%s74_s3] sm:$0xff] %v33_v13 }

// kernel: backbone_forward.107
= control target key start
LH: loop header
LB: loop body
LE: loop exit
PB: predicated region body
PF: predicated region fallthrough
CT: control target
= control target key end

     0   :  { %vm171_vm0 = vcmask 1040384   ;;  %s424_s1 = inlined_call_operand.vmem [shape: bf16[128,256], index: 1, kind: input, shape index: {}]   ;;  %s425_s0 = inlined_call_operand.vmem [shape: bf16[8,128], index: 0, kind: input, shape index: {}]   ;;  %s426_s2 = inlined_call_operand.vmem [shape: bf16[8,256], index: 2, kind: output, shape index: {0}]   ;;  %s427_s3 = inlined_call_operand.vmem [shape: f32[1,1,256], index: 3, kind: output, shape index: {1}]   ;;  %s428_s4 = inlined_call_operand.vmem [shape: f32[1,1,256], index: 4, kind: output, shape index: {2}]  }
   0x1   :  { %v269_v0 = vld [vmem:[%s424_s1 + $0x70] sm:$0xf]  ;;  %v290_v1 = vld [vmem:[%s424_s1 + $0x74] sm:$0xf0]  ;;  %v289_v2 = vld [vmem:[%s424_s1 + $0x74] sm:$0xf] }
   0x2   :  { %v270_v3 = vor.u32 %v290_v1, %v269_v0  ;;  %v271_v4 = vld [vmem:[%s424_s1 + $0x78] sm:$0xf0]  ;;  %v261_v5 = vld [vmem:[%s424_s1 + $0x60] sm:$0xf]  ;;  %v288_v6 = vld [vmem:[%s424_s1 + $0x64] sm:$0xf0] }
   0x3   :  { %v274_v7 = vor.u32 %v289_v2, %v271_v4  ;;  %v287_v8 = vld [vmem:[%s424_s1 + $0x64] sm:$0xf]  ;;  %v263_v9 = vld [vmem:[%s424_s1 + $0x68] sm:$0xf0]  ;;  %v262_v10 = vor.u32 %v288_v6, %v261_v5  ;;  %v253_v12 = vld [vmem:[%s424_s1 + $0x50] sm:$0xf] }
   0x4   :  { %119 = vmatpush.bf16.msra.mxu0 %v270_v3  ;;  %v266_v11 = vor.u32 %v287_v8, %v263_v9  ;;  %v286_v13 = vld [vmem:[%s424_s1 + $0x54] sm:$0xf0]  ;;  %v285_v14 = vld [vmem:[%s424_s1 + $0x54] sm:$0xf]  ;;  %v255_v15 = vld [vmem:[%s424_s1 + $0x58] sm:$0xf0]  ;;  %v174_v9 = vlaneseq }
   0x5   :  { %132 = vmatpush.bf16.msra.mxu1 %v274_v7  ;;  %v254_v16 = vor.u32 %v286_v13, %v253_v12  ;;  %v258_v17 = vor.u32 %v285_v14, %v255_v15  ;;  %v245_v18 = vld [vmem:[%s424_s1 + $0x40] sm:$0xf]  ;;  %v284_v19 = vld [vmem:[%s424_s1 + $0x44] sm:$0xf0]  ;;  %v283_v20 = vld [vmem:[%s424_s1 + $0x44] sm:$0xf] }
   0x6   :  { %v247_v21 = vld [vmem:[%s424_s1 + $0x48] sm:$0xf0]  ;;  %v246_v22 = vor.u32 %v284_v19, %v245_v18  ;;  %v237_v24 = vld [vmem:[%s424_s1 + $0x30] sm:$0xf]  ;;  %v282_v25 = vld [vmem:[%s424_s1 + $0x34] sm:$0xf0] }
   0x7   :  { %v250_v23 = vor.u32 %v283_v20, %v247_v21  ;;  %v281_v26 = vld [vmem:[%s424_s1 + $0x34] sm:$0xf]  ;;  %v239_v27 = vld [vmem:[%s424_s1 + $0x38] sm:$0xf0]  ;;  %v238_v28 = vor.u32 %v282_v25, %v237_v24  ;;  %v229_v30 = vld [vmem:[%s424_s1 + $0x20] sm:$0xf] }
   0x8   :  { %120 = vmatpush.bf16.msra.mxu0 %v262_v10  ;;  %v242_v29 = vor.u32 %v281_v26, %v239_v27  ;;  %v280_v31 = vld [vmem:[%s424_s1 + $0x24] sm:$0xf0]  ;;  %v279_v32 = vld [vmem:[%s424_s1 + $0x24] sm:$0xf]  ;;  %v231_v33 = vld [vmem:[%s424_s1 + $0x28] sm:$0xf0] }
   0x9   :  { %133 = vmatpush.bf16.msra.mxu1 %v266_v11  ;;  %v230_v34 = vor.u32 %v280_v31, %v229_v30  ;;  %v234_v35 = vor.u32 %v279_v32, %v231_v33  ;;  %v221_v36 = vld [vmem:[%s424_s1 + $0x10] sm:$0xf]  ;;  %v278_v37 = vld [vmem:[%s424_s1 + $0x14] sm:$0xf0]  ;;  %v277_v38 = vld [vmem:[%s424_s1 + $0x14] sm:$0xf] }
   0xa   :  { %v223_v39 = vld [vmem:[%s424_s1 + $0x18] sm:$0xf0]  ;;  %v222_v40 = vor.u32 %v278_v37, %v221_v36  ;;  %v213_v42 = vld [vmem:[%s424_s1] sm:$0xf]  ;;  %v276_v43 = vld [vmem:[%s424_s1 + $0x4] sm:$0xf0] }
   0xb   :  { %v226_v41 = vor.u32 %v277_v38, %v223_v39  ;;  %v275_v44 = vld [vmem:[%s424_s1 + $0x4] sm:$0xf]  ;;  %v215_v45 = vld [vmem:[%s424_s1 + $0x8] sm:$0xf0]  ;;  %v214_v46 = vor.u32 %v276_v43, %v213_v42  ;;  %v22_v48 = vld [vmem:[%s425_s0] sm:$0xf] }
   0xc   :  { %121 = vmatpush.bf16.msra.mxu0 %v254_v16  ;;  %v218_v47 = vor.u32 %v275_v44, %v215_v45  ;;  %vm176_vm1 = vcmp.lt.s32.totalorder %v174_v9, 256 }
   0xd   :  { %134 = vmatpush.bf16.msra.mxu1 %v258_v17 }
  0x10   :  { %122 = vmatpush.bf16.msra.mxu0 %v246_v22 }
  0x11   :  { %135 = vmatpush.bf16.msra.mxu1 %v250_v23 }
  0x14   :  { %123 = vmatpush.bf16.msra.mxu0 %v238_v28 }
  0x15   :  { %136 = vmatpush.bf16.msra.mxu1 %v242_v29 }
  0x18   :  { %124 = vmatpush.bf16.msra.mxu0 %v230_v34 }
  0x19   :  { %137 = vmatpush.bf16.msra.mxu1 %v234_v35 }
  0x1c   :  { %125 = vmatpush.bf16.msra.mxu0 %v222_v40 }
  0x1d   :  { %138 = vmatpush.bf16.msra.mxu1 %v226_v41 }
  0x20   :  { %126 = vmatpush.bf16.msra.mxu0 %v214_v46 }
  0x21   :  { %139 = vmatpush.bf16.msra.mxu1 %v218_v47 }
  0x23   :  { %127 = vmatmul.bf16.vlgmr.msra.gmra.mxu0 %v22_v48 }
  0x24   :  { %140 = vmatmul.bf16.vlgmr.msra.gmra.mxu1 %v22_v48 }
  0xa0   :  { %v128_v49 = vpop.f32.mrf.mxu0 }
  0xa1   :  { %v156_v50 = vrot.slane %v128_v49, 4  ;;  %v179_v51 = vmul.f32 %v128_v49, %v128_v49  ;;  %v141_v52 = vpop.f32.mrf.mxu1 }
  0xa2   :  { %v154_v53 = vpack.c.bf16 %v141_v52, %v128_v49  ;;  %v162_v54 = vrot.slane %v141_v52, 4  ;;  %v180_v55 = vmul.f32 %v141_v52, %v141_v52 }
  0xa3   :  { %v157_v56 = vadd.f32 %v156_v50, %v128_v49  ;;  %v181_v57 = vrot.slane %v179_v51, 4 }
  0xa4   :  { %155 = vst [vmem:[%s426_s2] sm:$0xff] %v154_v53  ;;  %v163_v58 = vadd.f32 %v162_v54, %v141_v52  ;;  %v187_v59 = vrot.slane %v180_v55, 4 }
  0xa5   :  { %v158_v60 = vrot.slane %v157_v56, 2  ;;  %v182_v61 = vadd.f32 %v181_v57, %v179_v51 }
  0xa6   :  { %v164_v62 = vrot.slane %v163_v58, 2  ;;  %v188_v63 = vadd.f32 %v187_v59, %v180_v55 }
  0xa7   :  { %v159_v0 = vadd.f32 %v158_v60, %v157_v56  ;;  %v183_v1 = vrot.slane %v182_v61, 2 }
  0xa8   :  { %v165_v2 = vadd.f32 %v164_v62, %v163_v58  ;;  %v189_v3 = vrot.slane %v188_v63, 2  ;;  %v130_v4 = vpop.f32.mrf.mxu0 }
  0xa9   :  { %v184_v5 = vadd.f32 %v183_v1, %v182_v61  ;;  %v143_v6 = vpop.f32.mrf.mxu1  ;;  %v160_v7 = vrot.slane %v159_v0, 1 }
  0xaa   :  { %v166_v8 = vrot.slane %v165_v2, 1  ;;  %v190_v10 = vadd.f32 %v189_v3, %v188_v63 }
  0xab   :  { %v185_v11 = vrot.slane %v184_v5, 1  ;;  %v161_v14 = vadd.f32 %v160_v7, %v159_v0 }
  0xac   :  { %v167_v12 = vadd.f32 %v166_v8, %v165_v2  ;;  %v191_v13 = vrot.slane %v190_v10, 1 }
  0xad   :  { %v186_v17 = vadd.f32 %v185_v11, %v184_v5 }
  0xae   :  { %v170_v15 = vrot.slane %v167_v12, 7  ;;  %v192_v16 = vadd.f32 %v191_v13, %v190_v10 }
  0xb0   :  { %v172_v18 = vsel %vm171_vm0, %v161_v14, %v170_v15  ;;  %v195_v19 = vrot.slane %v192_v16, 7 }
  0xb1   :  { %178 = vst.msk [vmem:[%s427_s3] sm:$0x3] %vm176_vm1, %v172_v18 }
  0xb2   :  { %v196_v20 = vsel %vm171_vm0, %v186_v17, %v195_v19 }
  0xb3   :  { %198 = vst.msk [vmem:[%s428_s4] sm:$0x3] %vm176_vm1, %v196_v20 }

// kernel: backbone_forward.110
= control target key start
LH: loop header
LB: loop body
LE: loop exit
PB: predicated region body
PF: predicated region fallthrough
CT: control target
= control target key end

     0   :  { %s73_s0 = inlined_call_operand.vmem [shape: bf16[8,256], index: 0, kind: input, shape index: {}]   ;;  %s74_s1 = inlined_call_operand.vmem [shape: f32[1,256], index: 1, kind: input, shape index: {}]   ;;  %s75_s2 = inlined_call_operand.vmem [shape: f32[1,256], index: 2, kind: input, shape index: {}]   ;;  %s76_s3 = inlined_call_operand.vmem [shape: bf16[8,256], index: 3, kind: output, shape index: {}]  }
   0x1   :  { %v14_v0 = vld [vmem:[%s73_s0] sm:$0xff] }
   0x2   :  { %v17_v1 = vld [vmem:[%s74_s1] sm:$0x3]  ;;  %v15_v3 = vunpack.c.l.bf16 %v14_v0  ;;  %v16_v4 = vunpack.c.h.bf16 %v14_v0 }
   0x3   :  { %v25_v2 = vld [vmem:[%s75_s2] sm:$0x3]  ;;  %v19_v5 = vperm.slane %v17_v1, 0  ;;  %v20_v6 = vperm.slane %v17_v1, 1 }
   0x4   :  { %v27_v7 = vperm.slane %v25_v2, 0  ;;  %v28_v8 = vperm.slane %v25_v2, 1 }
   0x5   :  { %v23_v9 = vmul.f32 %v19_v5, %v15_v3  ;;  %v24_v10 = vmul.f32 %v20_v6, %v16_v4 }
   0x7   :  { %v31_v11 = vadd.f32 %v27_v7, %v23_v9  ;;  %v32_v12 = vadd.f32 %v28_v8, %v24_v10 }
   0x9   :  { %v33_v13 = vmax.f32 %v31_v11, 0.0  ;;  %v34_v14 = vmax.f32 %v32_v12, 0.0 }
   0xb   :  { %v35_v15 = vpack.c.bf16 %v34_v14, %v33_v13 }
   0xd   :  { %36 = vst [vmem:[%s76_s3] sm:$0xff] %v35_v15 }

// kernel: backbone_forward.109
= control target key start
LH: loop header
LB: loop body
LE: loop exit
PB: predicated region body
PF: predicated region fallthrough
CT: control target
= control target key end

     0   :  { %s870_s15 = smov 0   ;;  %s872_s16 = smov 0   ;;  %s956_s0 = inlined_call_operand.vmem [shape: bf16[8,1152], index: 0, kind: input, shape index: {}]   ;;  %s957_s1 = inlined_call_operand.vmem [shape: bf16[1152,256], index: 1, kind: input, shape index: {}]   ;;  %s958_s2 = inlined_call_operand.vmem [shape: bf16[8,256], index: 2, kind: output, shape index: {0}]   ;;  %s959_s3 = inlined_call_operand.vmem [shape: f32[1,1,256], index: 3, kind: output, shape index: {1}]   ;;  %s960_s4 = inlined_call_operand.vmem [shape: f32[1,1,256], index: 4, kind: output, shape index: {2}]  }
   0x1   :  { %s874_s17 = smov 0  }
   0x2 LB: > { %s27_s18 = sadd.s32 1, %s838_s16  ;;  %p699_p0 = scmp.ge.s32.totalorder %s842_s17, 1  ;;  %s842_s17 = sphi %s874_s17, %s15_s17   ;;  %s838_s16 = sphi %s872_s16, %s962_s16   ;;  %s834_s15 = sphi %s870_s15, %s961_s15  }
   0x3   : > { %p28_p1 = scmp.ge.s32.totalorder %s27_s18, 9  ;;  %p216_p2 = scmp.lt.s32.totalorder %s842_s17, 10 }
   0x5   : > { %s964_s18 = smov (%p28_p1, %s27_s18), 0  ;;  %p217_p3 = pnand %p699_p0, %p216_p2 }
   0x6   : > { %p277_p4 = scmp.lt.s32.totalorder (!%p217_p3), %s834_s15, 8  ;;  %s701_s19 = sshll.u32 (!%p217_p3), %s834_s15, 4 }
   0x7   : > { %220 = sbr.rel (%p217_p3) target bundleno = 210 (0xd2), region = 28  ;;  %p285_p5 = scmp.lt.s32.totalorder (!%p217_p3), %s701_s19, 143 }
   0x8   : > { %p704_p6 = scmp.ne.s32.totalorder (!%p217_p3), %s834_s15, 0 }
   0xc   : > { %s278_s20 = scalar_select %p277_p4, %s834_s15, 8 }
   0xd   : > { %s966_s19 = smov (!%p285_p5, %s701_s19), 143  ;;  %326 = sbr.rel (%p704_p6) target bundleno = 21 (0x15), region = 32 }
   0xe   : > { %s700_s21 = sshll.u32 %s278_s20, 2  ;;  %s778_s25 = sshll.u32 %s966_s19, 3 }
   0xf   : > { %s896_s24 = scalar_lea.vmem %s956_s0, %s700_s21  ;;  %s901_s28 = scalar_lea.vmem %s957_s1, %s778_s25 }
  0x12   : > { %v844_v0 = vmov 0.0  }
  0x13   : > { %327 = vst [vmem:[#allocation2] sm:$0xff] %v844_v0 }
  0x14   : > { %328 = vst [vmem:[#allocation2 + $0x8] sm:$0xff] %v844_v0 }
  0x15 PF: > { %v763_v1 = vld [vmem:[%s901_s28 + $0x70] sm:$0xf]  ;;  %v794_v2 = vld [vmem:[%s901_s28 + $0x74] sm:$0xf0]  ;;  %v793_v3 = vld [vmem:[%s901_s28 + $0x74] sm:$0xf] }
  0x16   : > { %v764_v4 = vor.u32 %v794_v2, %v763_v1  ;;  %v765_v5 = vld [vmem:[%s901_s28 + $0x78] sm:$0xf0]  ;;  %v755_v6 = vld [vmem:[%s901_s28 + $0x60] sm:$0xf]  ;;  %v792_v7 = vld [vmem:[%s901_s28 + $0x64] sm:$0xf0] }
  0x17   : > { %v768_v8 = vor.u32 %v793_v3, %v765_v5  ;;  %v791_v9 = vld [vmem:[%s901_s28 + $0x64] sm:$0xf]  ;;  %v757_v10 = vld [vmem:[%s901_s28 + $0x68] sm:$0xf0]  ;;  %v756_v11 = vor.u32 %v792_v7, %v755_v6  ;;  %v747_v13 = vld [vmem:[%s901_s28 + $0x50] sm:$0xf] }
  0x18   : > { %428 = vmatpush.bf16.msra.mxu0 %v764_v4  ;;  %v760_v12 = vor.u32 %v791_v9, %v757_v10  ;;  %v790_v14 = vld [vmem:[%s901_s28 + $0x54] sm:$0xf0]  ;;  %v789_v15 = vld [vmem:[%s901_s28 + $0x54] sm:$0xf]  ;;  %v749_v16 = vld [vmem:[%s901_s28 + $0x58] sm:$0xf0] }
  0x19   : > { %441 = vmatpush.bf16.msra.mxu1 %v768_v8  ;;  %v748_v17 = vor.u32 %v790_v14, %v747_v13  ;;  %v752_v18 = vor.u32 %v789_v15, %v749_v16  ;;  %v739_v19 = vld [vmem:[%s901_s28 + $0x40] sm:$0xf]  ;;  %v788_v20 = vld [vmem:[%s901_s28 + $0x44] sm:$0xf0]  ;;  %v787_v21 = vld [vmem:[%s901_s28 + $0x44] sm:$0xf] }
  0x1a   : > { %v741_v22 = vld [vmem:[%s901_s28 + $0x48] sm:$0xf0]  ;;  %v740_v23 = vor.u32 %v788_v20, %v739_v19  ;;  %v731_v25 = vld [vmem:[%s901_s28 + $0x30] sm:$0xf]  ;;  %v786_v26 = vld [vmem:[%s901_s28 + $0x34] sm:$0xf0] }
  0x1b   : > { %v744_v24 = vor.u32 %v787_v21, %v741_v22  ;;  %v785_v27 = vld [vmem:[%s901_s28 + $0x34] sm:$0xf]  ;;  %v733_v28 = vld [vmem:[%s901_s28 + $0x38] sm:$0xf0]  ;;  %v732_v29 = vor.u32 %v786_v26, %v731_v25  ;;  %v723_v31 = vld [vmem:[%s901_s28 + $0x20] sm:$0xf] }
  0x1c   : > { %429 = vmatpush.bf16.msra.mxu0 %v756_v11  ;;  %v736_v30 = vor.u32 %v785_v27, %v733_v28  ;;  %v784_v32 = vld [vmem:[%s901_s28 + $0x24] sm:$0xf0]  ;;  %v783_v33 = vld [vmem:[%s901_s28 + $0x24] sm:$0xf]  ;;  %v725_v34 = vld [vmem:[%s901_s28 + $0x28] sm:$0xf0] }
  0x1d   : > { %442 = vmatpush.bf16.msra.mxu1 %v760_v12  ;;  %v724_v35 = vor.u32 %v784_v32, %v723_v31  ;;  %v728_v36 = vor.u32 %v783_v33, %v725_v34  ;;  %v715_v37 = vld [vmem:[%s901_s28 + $0x10] sm:$0xf]  ;;  %v782_v38 = vld [vmem:[%s901_s28 + $0x14] sm:$0xf0]  ;;  %v781_v39 = vld [vmem:[%s901_s28 + $0x14] sm:$0xf] }
  0x1e   : > { %v717_v40 = vld [vmem:[%s901_s28 + $0x18] sm:$0xf0]  ;;  %v716_v41 = vor.u32 %v782_v38, %v715_v37  ;;  %v707_v43 = vld [vmem:[%s901_s28] sm:$0xf]  ;;  %v780_v44 = vld [vmem:[%s901_s28 + $0x4] sm:$0xf0] }
  0x1f   : > { %v720_v42 = vor.u32 %v781_v39, %v717_v40  ;;  %v779_v45 = vld [vmem:[%s901_s28 + $0x4] sm:$0xf]  ;;  %v709_v46 = vld [vmem:[%s901_s28 + $0x8] sm:$0xf0]  ;;  %v708_v47 = vor.u32 %v780_v44, %v707_v43  ;;  %v331_v49 = vld [vmem:[%s896_s24] sm:$0xf] }
  0x20   : > { %430 = vmatpush.bf16.msra.mxu0 %v748_v17  ;;  %v712_v48 = vor.u32 %v779_v45, %v709_v46  ;;  %v329_v50 = vld [vmem:[#allocation2] sm:$0xff]  ;;  %v330_v51 = vld [vmem:[#allocation2 + $0x8] sm:$0xff]  ;;  %p769_p7 = scmp.ne.s32.totalorder %s834_s15, 8 }
  0x21   : > { %443 = vmatpush.bf16.msra.mxu1 %v752_v18 }
  0x24   : > { %431 = vmatpush.bf16.msra.mxu0 %v740_v23 }
  0x25   : > { %444 = vmatpush.bf16.msra.mxu1 %v744_v24 }
  0x28   : > { %432 = vmatpush.bf16.msra.mxu0 %v732_v29 }
  0x29   : > { %445 = vmatpush.bf16.msra.mxu1 %v736_v30 }
  0x2c   : > { %433 = vmatpush.bf16.msra.mxu0 %v724_v35 }
  0x2d   : > { %446 = vmatpush.bf16.msra.mxu1 %v728_v36 }
  0x30   : > { %434 = vmatpush.bf16.msra.mxu0 %v716_v41 }
  0x31   : > { %447 = vmatpush.bf16.msra.mxu1 %v720_v42 }
  0x34   : > { %435 = vmatpush.bf16.msra.mxu0 %v708_v47 }
  0x35   : > { %448 = vmatpush.bf16.msra.mxu1 %v712_v48 }
  0x37   : > { %436 = vmatmul.bf16.vlgmr.msra.gmra.mxu0 %v331_v49 }
  0x38   : > { %449 = vmatmul.bf16.vlgmr.msra.gmra.mxu1 %v331_v49 }
  0xb4   : > { %v437_v52 = vpop.f32.mrf.mxu0 }
  0xb5   : > { %v454_v53 = vadd.f32 %v437_v52, %v329_v50  ;;  %v450_v54 = vpop.f32.mrf.mxu1 }
  0xb6   : > { %v455_v55 = vadd.f32 %v450_v54, %v330_v51 }
  0xb7   : > { %456 = vst [vmem:[#allocation2] sm:$0xff] %v454_v53 }
  0xb8   : > { %457 = vst [vmem:[#allocation2 + $0x8] sm:$0xff] %v455_v55 }
  0xb9   : > { %461 = sbr.rel (%p769_p7) target bundleno = 210 (0xd2), region = 36 }
  0xbc   : > { %v439_v56 = vpop.f32.mrf.mxu0 }
  0xbd   : > { %v452_v57 = vpop.f32.mrf.mxu1 }
  0xbe   : > { %v462_v58 = vld [vmem:[#allocation2] sm:$0xff]  ;;  %v484_v15 = vlaneseq  ;;  %vm481_vm0 = vcmask 1040384  }
  0xbf   : > { %v463_v59 = vld [vmem:[#allocation2 + $0x8] sm:$0xff]  ;;  %v466_v61 = vrot.slane %v462_v58, 4  ;;  %v489_v63 = vmul.f32 %v462_v58, %v462_v58 }
  0xc0   : > { %v464_v60 = vpack.c.bf16 %v463_v59, %v462_v58  ;;  %v472_v62 = vrot.slane %v463_v59, 4  ;;  %v490_v0 = vmul.f32 %v463_v59, %v463_v59  ;;  %vm486_vm1 = vcmp.lt.s32.totalorder %v484_v15, 256 }
  0xc1   : > { %v467_v1 = vadd.f32 %v466_v61, %v462_v58  ;;  %v491_v3 = vrot.slane %v489_v63, 4 }
  0xc2   : > { %465 = vst [vmem:[%s958_s2] sm:$0xff] %v464_v60  ;;  %v473_v2 = vadd.f32 %v472_v62, %v463_v59  ;;  %v497_v4 = vrot.slane %v490_v0, 4 }
  0xc3   : > { %v468_v5 = vrot.slane %v467_v1, 2  ;;  %v492_v7 = vadd.f32 %v491_v3, %v489_v63 }
  0xc4   : > { %v474_v6 = vrot.slane %v473_v2, 2  ;;  %v498_v8 = vadd.f32 %v497_v4, %v490_v0 }
  0xc5   : > { %v469_v9 = vadd.f32 %v468_v5, %v467_v1  ;;  %v493_v11 = vrot.slane %v492_v7, 2 }
  0xc6   : > { %v475_v10 = vadd.f32 %v474_v6, %v473_v2  ;;  %v499_v12 = vrot.slane %v498_v8, 2 }
  0xc7   : > { %v470_v13 = vrot.slane %v469_v9, 1  ;;  %v494_v16 = vadd.f32 %v493_v11, %v492_v7 }
  0xc8   : > { %v476_v14 = vrot.slane %v475_v10, 1  ;;  %v500_v17 = vadd.f32 %v499_v12, %v498_v8 }
  0xc9   : > { %v471_v18 = vadd.f32 %v470_v13, %v469_v9  ;;  %v495_v20 = vrot.slane %v494_v16, 1 }
  0xca   : > { %v477_v19 = vadd.f32 %v476_v14, %v475_v10  ;;  %v501_v21 = vrot.slane %v500_v17, 1 }
  0xcb   : > { %v496_v23 = vadd.f32 %v495_v20, %v494_v16 }
  0xcc   : > { %v480_v22 = vrot.slane %v477_v19, 7  ;;  %v502_v24 = vadd.f32 %v501_v21, %v500_v17 }
  0xce   : > { %v482_v25 = vsel %vm481_vm0, %v471_v18, %v480_v22  ;;  %v505_v26 = vrot.slane %v502_v24, 7 }
  0xcf   : > { %488 = vst.msk [vmem:[%s959_s3] sm:$0x3] %vm486_vm1, %v482_v25 }
  0xd0   : > { %v506_v27 = vsel %vm481_vm0, %v496_v23, %v505_v26 }
  0xd1   : > { %508 = vst.msk [vmem:[%s960_s4] sm:$0x3] %vm486_vm1, %v506_v27 }
  0xd2 PF: > { %s15_s17 = sadd.s32 1, %s842_s17   ;;  %s961_s15 = smov %s838_s16 }
  0xd3   : > { %p12_p8 = scmp.ge.s32.totalorder %s15_s17, 11   ;;  %s962_s16 = smov %s964_s18 }
  0xd5   :  { %14 = sbr.rel (!%p12_p8) target bundleno = 2 (0x2), region = 93 }

// kernel: backbone_forward.112
= control target key start
LH: loop header
LB: loop body
LE: loop exit
PB: predicated region body
PF: predicated region fallthrough
CT: control target
= control target key end

     0   :  { %s89_s0 = inlined_call_operand.vmem [shape: bf16[8,256], index: 0, kind: input, shape index: {}]   ;;  %s90_s1 = inlined_call_operand.vmem [shape: f32[1,256], index: 1, kind: input, shape index: {}]   ;;  %s91_s2 = inlined_call_operand.vmem [shape: f32[1,256], index: 2, kind: input, shape index: {}]   ;;  %s92_s3 = inlined_call_operand.vmem [shape: bf16[8,256], index: 3, kind: input, shape index: {}]   ;;  %s93_s4 = inlined_call_operand.vmem [shape: bf16[8,256], index: 4, kind: output, shape index: {}]  }
   0x1   :  { %v17_v0 = vld [vmem:[%s89_s0] sm:$0xff] }
   0x2   :  { %v20_v1 = vld [vmem:[%s90_s1] sm:$0x3]  ;;  %v18_v3 = vunpack.c.l.bf16 %v17_v0  ;;  %v19_v4 = vunpack.c.h.bf16 %v17_v0 }
   0x3   :  { %v28_v2 = vld [vmem:[%s91_s2] sm:$0x3]  ;;  %v22_v5 = vperm.slane %v20_v1, 0  ;;  %v23_v6 = vperm.slane %v20_v1, 1 }
   0x4   :  { %v36_v7 = vld [vmem:[%s92_s3] sm:$0xff]  ;;  %v30_v8 = vperm.slane %v28_v2, 0  ;;  %v31_v9 = vperm.slane %v28_v2, 1 }
   0x5   :  { %v26_v10 = vmul.f32 %v22_v5, %v18_v3  ;;  %v27_v11 = vmul.f32 %v23_v6, %v19_v4  ;;  %v37_v12 = vunpack.c.l.bf16 %v36_v7  ;;  %v38_v13 = vunpack.c.h.bf16 %v36_v7 }
   0x7   :  { %v34_v14 = vadd.f32 %v30_v8, %v26_v10  ;;  %v35_v15 = vadd.f32 %v31_v9, %v27_v11 }
   0x9   :  { %v39_v16 = vadd.f32 %v37_v12, %v34_v14  ;;  %v40_v17 = vadd.f32 %v38_v13, %v35_v15 }
   0xb   :  { %v41_v18 = vmax.f32 %v39_v16, 0.0  ;;  %v42_v19 = vmax.f32 %v40_v17, 0.0 }
   0xd   :  { %v43_v20 = vpack.c.bf16 %v42_v19, %v41_v18 }
   0xf   :  { %44 = vst [vmem:[%s93_s4] sm:$0xff] %v43_v20 }

// kernel: backbone_forward.111
= control target key start
LH: loop header
LB: loop body
LE: loop exit
PB: predicated region body
PF: predicated region fallthrough
CT: control target
= control target key end

     0   :  { %s1085_s15 = smov 0   ;;  %s1087_s16 = smov 0   ;;  %s1202_s0 = inlined_call_operand.vmem [shape: bf16[8,2304], index: 0, kind: input, shape index: {}]   ;;  %s1203_s1 = inlined_call_operand.vmem [shape: bf16[2304,256], index: 1, kind: input, shape index: {}]   ;;  %s1204_s2 = inlined_call_operand.vmem [shape: bf16[8,256], index: 2, kind: output, shape index: {0}]   ;;  %s1205_s3 = inlined_call_operand.vmem [shape: f32[1,1,256], index: 3, kind: output, shape index: {1}]   ;;  %s1206_s4 = inlined_call_operand.vmem [shape: f32[1,1,256], index: 4, kind: output, shape index: {2}]  }
   0x1   :  { %s1089_s17 = smov 0  }
   0x2 LB: > { %s27_s18 = sadd.s32 1, %s1053_s16  ;;  %p833_p0 = scmp.ge.s32.totalorder %s1057_s17, 1  ;;  %s1057_s17 = sphi %s1089_s17, %s15_s17   ;;  %s1053_s16 = sphi %s1087_s16, %s1208_s16   ;;  %s1049_s15 = sphi %s1085_s15, %s1207_s15  }
   0x3   : > { %p28_p1 = scmp.ge.s32.totalorder %s27_s18, 9  ;;  %p218_p2 = scmp.lt.s32.totalorder %s1057_s17, 10 }
   0x5   : > { %s1210_s18 = smov (%p28_p1, %s27_s18), 0  ;;  %p219_p3 = pnand %p833_p0, %p218_p2 }
   0x6   : > { %s834_s19 = sshll.u32 (!%p219_p3), %s1049_s15, 1  ;;  %s836_s20 = sshll.u32 (!%p219_p3), %s1049_s15, 5 }
   0x7   : > { %222 = sbr.rel (%p219_p3) target bundleno = 221 (0xdd), region = 28  ;;  %p281_p4 = scmp.lt.s32.totalorder (!%p219_p3), %s834_s19, 17 }
   0x8   : > { %p290_p5 = scmp.lt.s32.totalorder (!%p219_p3), %s836_s20, 287  ;;  %p839_p6 = scmp.ne.s32.totalorder (!%p219_p3), %s1049_s15, 0 }
   0xc   : > { %s1212_s19 = smov (!%p281_p4, %s834_s19), 17  ;;  %s1214_s20 = smov (!%p290_p5, %s836_s20), 287 }
   0xd   : > { %s835_s21 = sshll.u32 %s1212_s19, 2  ;;  %s977_s25 = sshll.u32 %s1214_s20, 3 }
   0xe   : > { %s1110_s24 = scalar_lea.vmem %s1202_s0, %s835_s21  ;;  %s1115_s28 = scalar_lea.vmem %s1203_s1, %s977_s25 }
   0xf   : > { %331 = sbr.rel (%p839_p6) target bundleno = 23 (0x17), region = 32 }
  0x14   : > { %v1059_v0 = vmov 0.0  }
  0x15   : > { %332 = vst [vmem:[#allocation2] sm:$0xff] %v1059_v0 }
  0x16   : > { %333 = vst [vmem:[#allocation2 + $0x8] sm:$0xff] %v1059_v0 }
  0x17 PF: > { %v898_v1 = vld [vmem:[%s1115_s28 + $0x70] sm:$0xf]  ;;  %v993_v2 = vld [vmem:[%s1115_s28 + $0x74] sm:$0xf0]  ;;  %v992_v6 = vld [vmem:[%s1115_s28 + $0x74] sm:$0xf] }
  0x18   : > { %v962_v3 = vld [vmem:[%s1115_s28 + $0xf0] sm:$0xf]  ;;  %v899_v4 = vor.u32 %v993_v2, %v898_v1  ;;  %v1009_v5 = vld [vmem:[%s1115_s28 + $0xf4] sm:$0xf0]  ;;  %v900_v7 = vld [vmem:[%s1115_s28 + $0x78] sm:$0xf0] }
  0x19   : > { %v963_v8 = vor.u32 %v1009_v5, %v962_v3  ;;  %v903_v9 = vor.u32 %v992_v6, %v900_v7  ;;  %v1008_v10 = vld [vmem:[%s1115_s28 + $0xf4] sm:$0xf]  ;;  %v964_v11 = vld [vmem:[%s1115_s28 + $0xf8] sm:$0xf0]  ;;  %v890_v12 = vld [vmem:[%s1115_s28 + $0x60] sm:$0xf] }
  0x1a   : > { %536 = vmatpush.bf16.msra.mxu0 %v899_v4  ;;  %v967_v13 = vor.u32 %v1008_v10, %v964_v11  ;;  %v991_v14 = vld [vmem:[%s1115_s28 + $0x64] sm:$0xf0]  ;;  %v954_v15 = vld [vmem:[%s1115_s28 + $0xe0] sm:$0xf]  ;;  %v990_v19 = vld [vmem:[%s1115_s28 + $0x64] sm:$0xf] }
  0x1b   : > { %v1007_v16 = vld [vmem:[%s1115_s28 + $0xe4] sm:$0xf0]  ;;  %549 = vmatpush.bf16.msra.mxu1 %v963_v8  ;;  %562 = vmatpush.bf16.msra.mxu2 %v903_v9  ;;  %v891_v17 = vor.u32 %v991_v14, %v890_v12  ;;  %v892_v20 = vld [vmem:[%s1115_s28 + $0x68] sm:$0xf0]  ;;  %v1006_v21 = vld [vmem:[%s1115_s28 + $0xe4] sm:$0xf] }
  0x1c   : > { %v955_v18 = vor.u32 %v1007_v16, %v954_v15  ;;  %575 = vmatpush.bf16.msra.mxu3 %v967_v13  ;;  %v895_v22 = vor.u32 %v990_v19, %v892_v20  ;;  %v956_v23 = vld [vmem:[%s1115_s28 + $0xe8] sm:$0xf0]  ;;  %v882_v24 = vld [vmem:[%s1115_s28 + $0x50] sm:$0xf]  ;;  %v989_v25 = vld [vmem:[%s1115_s28 + $0x54] sm:$0xf0] }
  0x1d   : > { %v959_v26 = vor.u32 %v1006_v21, %v956_v23  ;;  %v946_v27 = vld [vmem:[%s1115_s28 + $0xd0] sm:$0xf]  ;;  %v1005_v28 = vld [vmem:[%s1115_s28 + $0xd4] sm:$0xf0]  ;;  %v988_v29 = vld [vmem:[%s1115_s28 + $0x54] sm:$0xf]  ;;  %v883_v30 = vor.u32 %v989_v25, %v882_v24 }
  0x1e   : > { %537 = vmatpush.bf16.msra.mxu0 %v891_v17  ;;  %v884_v31 = vld [vmem:[%s1115_s28 + $0x58] sm:$0xf0]  ;;  %v1004_v32 = vld [vmem:[%s1115_s28 + $0xd4] sm:$0xf]  ;;  %v947_v34 = vor.u32 %v1005_v28, %v946_v27  ;;  %v874_v36 = vld [vmem:[%s1115_s28 + $0x40] sm:$0xf] }
  0x1f   : > { %v948_v33 = vld [vmem:[%s1115_s28 + $0xd8] sm:$0xf0]  ;;  %550 = vmatpush.bf16.msra.mxu1 %v955_v18  ;;  %563 = vmatpush.bf16.msra.mxu2 %v895_v22  ;;  %v887_v35 = vor.u32 %v988_v29, %v884_v31  ;;  %v987_v37 = vld [vmem:[%s1115_s28 + $0x44] sm:$0xf0]  ;;  %v938_v38 = vld [vmem:[%s1115_s28 + $0xc0] sm:$0xf] }
  0x20   : > { %576 = vmatpush.bf16.msra.mxu3 %v959_v26  ;;  %v951_v39 = vor.u32 %v1004_v32, %v948_v33  ;;  %v1003_v40 = vld [vmem:[%s1115_s28 + $0xc4] sm:$0xf0]  ;;  %v986_v41 = vld [vmem:[%s1115_s28 + $0x44] sm:$0xf]  ;;  %v876_v42 = vld [vmem:[%s1115_s28 + $0x48] sm:$0xf0]  ;;  %v875_v45 = vor.u32 %v987_v37, %v874_v36 }
  0x21   : > { %v1002_v43 = vld [vmem:[%s1115_s28 + $0xc4] sm:$0xf]  ;;  %v940_v44 = vld [vmem:[%s1115_s28 + $0xc8] sm:$0xf0]  ;;  %v939_v46 = vor.u32 %v1003_v40, %v938_v38  ;;  %v879_v47 = vor.u32 %v986_v41, %v876_v42  ;;  %v866_v48 = vld [vmem:[%s1115_s28 + $0x30] sm:$0xf] }
  0x22   : > { %538 = vmatpush.bf16.msra.mxu0 %v883_v30  ;;  %v985_v49 = vld [vmem:[%s1115_s28 + $0x34] sm:$0xf0]  ;;  %v930_v50 = vld [vmem:[%s1115_s28 + $0xb0] sm:$0xf]  ;;  %v943_v51 = vor.u32 %v1002_v43, %v940_v44  ;;  %v984_v53 = vld [vmem:[%s1115_s28 + $0x34] sm:$0xf] }
  0x23   : > { %551 = vmatpush.bf16.msra.mxu1 %v947_v34  ;;  %564 = vmatpush.bf16.msra.mxu2 %v887_v35  ;;  %v1001_v52 = vld [vmem:[%s1115_s28 + $0xb4] sm:$0xf0]  ;;  %v868_v54 = vld [vmem:[%s1115_s28 + $0x38] sm:$0xf0]  ;;  %v1000_v55 = vld [vmem:[%s1115_s28 + $0xb4] sm:$0xf]  ;;  %v867_v57 = vor.u32 %v985_v49, %v866_v48 }
  0x24   : > { %577 = vmatpush.bf16.msra.mxu3 %v951_v39  ;;  %v932_v56 = vld [vmem:[%s1115_s28 + $0xb8] sm:$0xf0]  ;;  %v931_v58 = vor.u32 %v1001_v52, %v930_v50  ;;  %v871_v59 = vor.u32 %v984_v53, %v868_v54  ;;  %v858_v60 = vld [vmem:[%s1115_s28 + $0x20] sm:$0xf]  ;;  %v983_v61 = vld [vmem:[%s1115_s28 + $0x24] sm:$0xf0] }
  0x25   : > { %v922_v62 = vld [vmem:[%s1115_s28 + $0xa0] sm:$0xf]  ;;  %v935_v63 = vor.u32 %v1000_v55, %v932_v56  ;;  %v999_v0 = vld [vmem:[%s1115_s28 + $0xa4] sm:$0xf0]  ;;  %v982_v1 = vld [vmem:[%s1115_s28 + $0x24] sm:$0xf]  ;;  %v859_v5 = vor.u32 %v983_v61, %v858_v60 }
  0x26   : > { %539 = vmatpush.bf16.msra.mxu0 %v875_v45  ;;  %v860_v2 = vld [vmem:[%s1115_s28 + $0x28] sm:$0xf0]  ;;  %v998_v3 = vld [vmem:[%s1115_s28 + $0xa4] sm:$0xf]  ;;  %v923_v6 = vor.u32 %v999_v0, %v922_v62  ;;  %v850_v8 = vld [vmem:[%s1115_s28 + $0x10] sm:$0xf] }
  0x27   : > { %552 = vmatpush.bf16.msra.mxu1 %v939_v46  ;;  %565 = vmatpush.bf16.msra.mxu2 %v879_v47  ;;  %v924_v4 = vld [vmem:[%s1115_s28 + $0xa8] sm:$0xf0]  ;;  %v863_v7 = vor.u32 %v982_v1, %v860_v2  ;;  %v981_v9 = vld [vmem:[%s1115_s28 + $0x14] sm:$0xf0]  ;;  %v914_v10 = vld [vmem:[%s1115_s28 + $0x90] sm:$0xf] }
  0x28   : > { %578 = vmatpush.bf16.msra.mxu3 %v943_v51  ;;  %v927_v11 = vor.u32 %v998_v3, %v924_v4  ;;  %v997_v12 = vld [vmem:[%s1115_s28 + $0x94] sm:$0xf0]  ;;  %v980_v13 = vld [vmem:[%s1115_s28 + $0x14] sm:$0xf]  ;;  %v852_v14 = vld [vmem:[%s1115_s28 + $0x18] sm:$0xf0]  ;;  %v851_v17 = vor.u32 %v981_v9, %v850_v8 }
  0x29   : > { %v996_v15 = vld [vmem:[%s1115_s28 + $0x94] sm:$0xf]  ;;  %v916_v16 = vld [vmem:[%s1115_s28 + $0x98] sm:$0xf0]  ;;  %v336_v18 = vld [vmem:[%s1110_s24] sm:$0xff]  ;;  %v915_v19 = vor.u32 %v997_v12, %v914_v10  ;;  %v855_v20 = vor.u32 %v980_v13, %v852_v14  ;;  %p968_p7 = scmp.ne.s32.totalorder %s1049_s15, 8 }
  0x2a   : > { %540 = vmatpush.bf16.msra.mxu0 %v867_v57  ;;  %v842_v21 = vld [vmem:[%s1115_s28] sm:$0xf]  ;;  %v979_v22 = vld [vmem:[%s1115_s28 + $0x4] sm:$0xf0]  ;;  %v919_v24 = vor.u32 %v996_v15, %v916_v16  ;;  %v978_v26 = vld [vmem:[%s1115_s28 + $0x4] sm:$0xf]  ;;  %v370_v30 = vunpack.c.l.b16 %v336_v18  ;;  %v371_v32 = vunpack.c.h.b16 %v336_v18 }
  0x2b   : > { %553 = vmatpush.bf16.msra.mxu1 %v931_v58  ;;  %566 = vmatpush.bf16.msra.mxu2 %v871_v59  ;;  %v906_v23 = vld [vmem:[%s1115_s28 + $0x80] sm:$0xf]  ;;  %v995_v25 = vld [vmem:[%s1115_s28 + $0x84] sm:$0xf0]  ;;  %v844_v27 = vld [vmem:[%s1115_s28 + $0x8] sm:$0xf0]  ;;  %v843_v31 = vor.u32 %v979_v22, %v842_v21 }
  0x2c   : > { %579 = vmatpush.bf16.msra.mxu3 %v935_v63  ;;  %v994_v28 = vld [vmem:[%s1115_s28 + $0x84] sm:$0xf]  ;;  %v908_v29 = vld [vmem:[%s1115_s28 + $0x88] sm:$0xf0]  ;;  %v907_v33 = vor.u32 %v995_v25, %v906_v23  ;;  %v847_v34 = vor.u32 %v978_v26, %v844_v27  ;;  %v372_v36 = vpack.c.b16 %v370_v30, %v370_v30  ;;  %v373_v37 = vpack.c.b16 %v371_v32, %v371_v32 }
  0x2d   : > { %v911_v35 = vor.u32 %v994_v28, %v908_v29  ;;  %v334_v39 = vld [vmem:[#allocation2] sm:$0xff]  ;;  %v335_v44 = vld [vmem:[#allocation2 + $0x8] sm:$0xff] }
  0x2e   : > { %541 = vmatpush.bf16.msra.mxu0 %v859_v5 }
  0x2f   : > { %554 = vmatpush.bf16.msra.mxu1 %v923_v6  ;;  %567 = vmatpush.bf16.msra.mxu2 %v863_v7 }
  0x30   : > { %580 = vmatpush.bf16.msra.mxu3 %v927_v11 }
  0x32   : > { %542 = vmatpush.bf16.msra.mxu0 %v851_v17 }
  0x33   : > { %555 = vmatpush.bf16.msra.mxu1 %v915_v19  ;;  %568 = vmatpush.bf16.msra.mxu2 %v855_v20 }
  0x34   : > { %581 = vmatpush.bf16.msra.mxu3 %v919_v24 }
  0x36   : > { %543 = vmatpush.bf16.msra.mxu0 %v843_v31 }
  0x37   : > { %556 = vmatpush.bf16.msra.mxu1 %v907_v33  ;;  %569 = vmatpush.bf16.msra.mxu2 %v847_v34 }
  0x38   : > { %582 = vmatpush.bf16.msra.mxu3 %v911_v35 }
  0x39   : > { %544 = vmatmul.bf16.vlgmr.msra.gmra.mxu0 %v372_v36 }
  0x3a   : > { %557 = vmatmul.bf16.vlgmr.msra.gmra.mxu1 %v373_v37  ;;  %570 = vmatmul.bf16.vlgmr.msra.gmra.mxu2 %v372_v36 }
  0x3b   : > { %583 = vmatmul.bf16.vlgmr.msra.gmra.mxu3 %v373_v37 }
  0xb6   : > { %v545_v38 = vpop.f32.mrf.mxu0 }
  0xb7   : > { %v558_v40 = vpop.f32.mrf.mxu1 }
  0xb8   : > { %v559_v41 = vadd.f32 %v558_v40, %v545_v38 }
  0xba   : > { %v588_v42 = vadd.f32 %v559_v41, %v334_v39 }
  0xbc   : > { %590 = vst [vmem:[#allocation2] sm:$0xff] %v588_v42 }
  0xbd   : > { %v571_v43 = vpop.f32.mrf.mxu2 }
  0xbe   : > { %v584_v45 = vpop.f32.mrf.mxu3  ;;  %v547_v46 = vpop.f32.mrf.mxu0 }
  0xbf   : > { %v585_v47 = vadd.f32 %v584_v45, %v571_v43  ;;  %v560_v48 = vpop.f32.mrf.mxu1 }
  0xc1   : > { %v589_v49 = vadd.f32 %v585_v47, %v335_v44 }
  0xc2   : > { %595 = sbr.rel (%p968_p7) target bundleno = 221 (0xdd), region = 36 }
  0xc3   : > { %591 = vst [vmem:[#allocation2 + $0x8] sm:$0xff] %v589_v49 }
  0xc5   : > { %v573_v50 = vpop.f32.mrf.mxu2 }
  0xc6   : > { %v586_v51 = vpop.f32.mrf.mxu3 }
  0xc7   : > { %v596_v52 = vld [vmem:[#allocation2] sm:$0xff]  ;;  %v618_v9 = vlaneseq  ;;  %vm615_vm0 = vcmask 1040384  }
  0xc8   : > { %v600_v55 = vrot.slane %v596_v52, 4  ;;  %v623_v57 = vmul.f32 %v596_v52, %v596_v52 }
  0xc9   : > { %vm620_vm1 = vcmp.lt.s32.totalorder %v618_v9, 256 }
  0xca   : > { %v597_v53 = vld [vmem:[#allocation2 + $0x8] sm:$0xff]  ;;  %v601_v59 = vadd.f32 %v600_v55, %v596_v52  ;;  %v625_v61 = vrot.slane %v623_v57, 4 }
  0xcb   : > { %v598_v54 = vpack.c.bf16 %v597_v53, %v596_v52  ;;  %v606_v56 = vrot.slane %v597_v53, 4  ;;  %v624_v58 = vmul.f32 %v597_v53, %v597_v53 }
  0xcc   : > { %v602_v63 = vrot.slane %v601_v59, 2  ;;  %v626_v1 = vadd.f32 %v625_v61, %v623_v57 }
  0xcd   : > { %599 = vst [vmem:[%s1204_s2] sm:$0xff] %v598_v54  ;;  %v607_v60 = vadd.f32 %v606_v56, %v597_v53  ;;  %v631_v62 = vrot.slane %v624_v58, 4 }
  0xce   : > { %v603_v3 = vadd.f32 %v602_v63, %v601_v59  ;;  %v627_v5 = vrot.slane %v626_v1, 2 }
  0xcf   : > { %v608_v0 = vrot.slane %v607_v60, 2  ;;  %v632_v2 = vadd.f32 %v631_v62, %v624_v58 }
  0xd0   : > { %v604_v7 = vrot.slane %v603_v3, 1  ;;  %v628_v10 = vadd.f32 %v627_v5, %v626_v1 }
  0xd1   : > { %v609_v4 = vadd.f32 %v608_v0, %v607_v60  ;;  %v633_v6 = vrot.slane %v632_v2, 2 }
  0xd2   : > { %v605_v12 = vadd.f32 %v604_v7, %v603_v3  ;;  %v629_v14 = vrot.slane %v628_v10, 1 }
  0xd3   : > { %v610_v8 = vrot.slane %v609_v4, 1  ;;  %v634_v11 = vadd.f32 %v633_v6, %v632_v2 }
  0xd4   : > { %v630_v17 = vadd.f32 %v629_v14, %v628_v10 }
  0xd5   : > { %v611_v13 = vadd.f32 %v610_v8, %v609_v4  ;;  %v635_v15 = vrot.slane %v634_v11, 1 }
  0xd7   : > { %v614_v16 = vrot.slane %v611_v13, 7  ;;  %v636_v18 = vadd.f32 %v635_v15, %v634_v11 }
  0xd9   : > { %v616_v19 = vsel %vm615_vm0, %v605_v12, %v614_v16  ;;  %v639_v20 = vrot.slane %v636_v18, 7 }
  0xda   : > { %622 = vst.msk [vmem:[%s1205_s3] sm:$0x3] %vm620_vm1, %v616_v19 }
  0xdb   : > { %v640_v21 = vsel %vm615_vm0, %v630_v17, %v639_v20 }
  0xdc   : > { %642 = vst.msk [vmem:[%s1206_s4] sm:$0x3] %vm620_vm1, %v640_v21 }
  0xdd PF: > { %s15_s17 = sadd.s32 1, %s1057_s17   ;;  %s1207_s15 = smov %s1053_s16 }
  0xde   : > { %p12_p8 = scmp.ge.s32.totalorder %s15_s17, 11   ;;  %s1208_s16 = smov %s1210_s18 }
  0xe0   :  { %14 = sbr.rel (!%p12_p8) target bundleno = 2 (0x2), region = 93 }

// kernel: backbone_forward.134
= control target key start
LH: loop header
LB: loop body
LE: loop exit
PB: predicated region body
PF: predicated region fallthrough
CT: control target
= control target key end

     0   :  { %vm25_vm0 = vcmask 1041408   ;;  %vm27_vm1 = vcmask 1045508   ;;  %vm29_vm2 = vcmask 1043456   ;;  %vm64_vm3 = vcmask 1040384   ;;  %s116_s0 = inlined_call_operand.vmem [shape: bf16[2,512], index: 0, kind: input, shape index: {}]   ;;  %s117_s1 = inlined_call_operand.vmem [shape: f32[1,512], index: 1, kind: input, shape index: {}]   ;;  %s118_s2 = inlined_call_operand.vmem [shape: f32[1,512], index: 2, kind: input, shape index: {}]   ;;  %s119_s3 = inlined_call_operand.vmem [shape: bf16[2,512], index: 3, kind: output, shape index: {}]  }
   0x1   :  { %v16_v0 = vld [vmem:[%s117_s1] sm:$0xf]  ;;  %vm68_vm4 = vcmask 1042434  }
   0x2   :  { %v33_v1 = vld [vmem:[%s118_s2] sm:$0xf]  ;;  %v18_v3 = vperm.slane %v16_v0, 0  ;;  %v19_v4 = vperm.slane %v16_v0, 1  ;;  %v20_v5 = vperm.slane %v16_v0, 2  ;;  %v21_v6 = vperm.slane %v16_v0, 3 }
   0x3   :  { %v14_v2 = vld [vmem:[%s116_s0] sm:$0xf]  ;;  %v35_v7 = vperm.slane %v33_v1, 0  ;;  %v36_v8 = vperm.slane %v33_v1, 1  ;;  %v37_v9 = vperm.slane %v33_v1, 2  ;;  %v38_v12 = vperm.slane %v33_v1, 3 }
   0x4   :  { %v22_v10 = vrot.slane %v19_v4, 6  ;;  %v23_v11 = vrot.slane %v20_v5, 4  ;;  %v15_v13 = vunpack.c.l.bf16 %v14_v2  ;;  %v24_v14 = vrot.slane %v21_v6, 2 }
   0x5   :  { %v39_v15 = vrot.slane %v36_v8, 6  ;;  %v40_v16 = vrot.slane %v37_v9, 4  ;;  %v41_v18 = vrot.slane %v38_v12, 2 }
   0x6   :  { %v26_v17 = vsel %vm25_vm0, %v18_v3, %v22_v10  ;;  %v28_v19 = vsel %vm27_vm1, %v23_v11, %v24_v14 }
   0x7   :  { %v42_v20 = vsel %vm25_vm0, %v35_v7, %v39_v15  ;;  %v30_v21 = vsel %vm29_vm2, %v26_v17, %v28_v19  ;;  %v43_v22 = vsel %vm27_vm1, %v40_v16, %v41_v18 }
   0x8   :  { %v32_v23 = vmul.f32 %v30_v21, %v15_v13  ;;  %v44_v24 = vsel %vm29_vm2, %v42_v20, %v43_v22 }
   0xa   :  { %v46_v25 = vadd.f32 %v44_v24, %v32_v23 }
   0xc   :  { %48 = vst [vmem:[#allocation1] ss:$4 sm:$0xff] %v46_v25 }
  0x13   :  { %v49_v26 = vld.sshfl [vmem:[#allocation1] sm:$0xff pattern:$0x73625140]  ;;  %v50_v27 = vld.sshfl [vmem:[#allocation1 + $0x8] sm:$0xff pattern:$0x73625140] }
  0x14   :  { %v51_v28 = vld.sshfl [vmem:[#allocation1 + $0x10] sm:$0xff pattern:$0x73625140]  ;;  %v52_v29 = vld.sshfl [vmem:[#allocation1 + $0x18] sm:$0xff pattern:$0x73625140]  ;;  %v57_v30 = vpack.c.bf16 %v50_v27, %v49_v26 }
  0x15   :  { %v58_v31 = vpack.c.bf16 %v52_v29, %v51_v28 }
  0x16   :  { %v61_v32 = vrot.slane %v57_v30, 3 }
  0x17   :  { %v62_v33 = vrot.slane %v58_v31, 6  ;;  %v63_v34 = vrot.slane %v58_v31, 1 }
  0x18   :  { %v67_v35 = vsel %vm64_vm3, %v57_v30, %v61_v32 }
  0x19   :  { %v71_v36 = vsel %vm68_vm4, %v62_v33, %v63_v34 }
  0x1a   :  { %v72_v37 = vsel %vm25_vm0, %v67_v35, %v71_v36 }
  0x1b   :  { %74 = vst [vmem:[%s119_s3] sm:$0xf] %v72_v37 }

// kernel: backbone_forward.133
= control target key start
LH: loop header
LB: loop body
LE: loop exit
PB: predicated region body
PF: predicated region fallthrough
CT: control target
= control target key end

     0   :  { %s1285_s15 = smov 0   ;;  %s1287_s16 = smov 0   ;;  %s1514_s0 = inlined_call_operand.vmem [shape: bf16[2,256], index: 0, kind: input, shape index: {}]   ;;  %s1515_s1 = inlined_call_operand.vmem [shape: bf16[256,512], index: 1, kind: input, shape index: {}]   ;;  %s1516_s2 = inlined_call_operand.vmem [shape: bf16[2,512], index: 2, kind: output, shape index: {0}]   ;;  %s1517_s3 = inlined_call_operand.vmem [shape: f32[1,1,512], index: 3, kind: output, shape index: {1}]   ;;  %s1518_s4 = inlined_call_operand.vmem [shape: f32[1,1,512], index: 4, kind: output, shape index: {2}]  }
   0x1   :  { %s1289_s17 = smov 0   ;;  %s1291_s18 = smov 0  }
   0x2   :  { %s1293_s19 = smov 0  }
   0x3 LB: > { %s30_s20 = sadd.s32 1, %s1253_s18  ;;  %p78_p1 = scmp.ne.s32.totalorder %s1245_s16, %s1241_s15  ;;  %s1257_s19 = sphi %s1293_s19, %s15_s19   ;;  %s1253_s18 = sphi %s1291_s18, %s1524_s18   ;;  %s1249_s17 = sphi %s1289_s17, %s1523_s17   ;;  %s1245_s16 = sphi %s1287_s16, %s1522_s16   ;;  %s1241_s15 = sphi %s1285_s15, %s1521_s15  }
   0x4   : > { %p32_p0 = scmp.ge.s32.totalorder %s30_s20, 2  ;;  %p79_p2 = scmp.eq.s32.totalorder %s1257_s19, 0 }
   0x5   : > { %s71_s22 = sadd.s32 1, %s1245_s16  ;;  %p1006_p5 = scmp.ge.s32.totalorder %s1257_s19, 2 }
   0x6   : > { %s1526_s20 = smov (%p32_p0, %s30_s20), 0  ;;  %p80_p3 = por %p79_p2, %p78_p1 }
   0x7   : > { %s67_s21 = ssub.s32 %s1253_s18, %s1526_s20  ;;  %200 = sbr.rel (%p1006_p5) target bundleno = 48 (0x30), region = 20 }
   0x8   : > { %p69_p4 = scmp.eq.s32.totalorder %s67_s21, 0 }
   0xa   : > { %s1320_s23 = scalar_select %p69_p4, %s1245_s16, %s71_s22  }
   0xc   : > { %203 = sbr.rel (!%p80_p3) target bundleno = 48 (0x30), region = 24  ;;  %s205_s24 = sand.u32 (%p80_p3), 1, %s1245_s16  }
   0xd   : > { %s1145_s25 = sshll.u32 (%p80_p3), %s1253_s18, 3  ;;  %s1007_s26 = sshll.u32 (%p80_p3), %s205_s24, 8 }
   0xe   : > { %s1328_s29 = scalar_lea.vmem (%p80_p3), %s1515_s1, %s1145_s25  ;;  %s1333_s30 = scalar_lea.vmem (%p80_p3), [#allocation3], %s1007_s26 }
   0xf   : > { %v304_v0 = vld [vmem:[%s1328_s29] sm:$0xff] (%p80_p3)  ;;  %v306_v1 = vld [vmem:[%s1328_s29 + $0x10] sm:$0xff] (%p80_p3) }
  0x10   : > { %v308_v2 = vld [vmem:[%s1328_s29 + $0x20] sm:$0xff] (%p80_p3)  ;;  %305 = vst [vmem:[%s1333_s30] sm:$0xff] (%p80_p3), %v304_v0  ;;  %v310_v3 = vld [vmem:[%s1328_s29 + $0x30] sm:$0xff] (%p80_p3) }
  0x11   : > { %307 = vst [vmem:[%s1333_s30 + $0x8] sm:$0xff] %v306_v1  ;;  %v312_v4 = vld [vmem:[%s1328_s29 + $0x40] sm:$0xff]  ;;  %v314_v5 = vld [vmem:[%s1328_s29 + $0x50] sm:$0xff] }
  0x12   : > { %309 = vst [vmem:[%s1333_s30 + $0x10] sm:$0xff] %v308_v2  ;;  %v316_v6 = vld [vmem:[%s1328_s29 + $0x60] sm:$0xff]  ;;  %v318_v7 = vld [vmem:[%s1328_s29 + $0x70] sm:$0xff] }
  0x13   : > { %311 = vst [vmem:[%s1333_s30 + $0x18] sm:$0xff] %v310_v3  ;;  %v320_v8 = vld [vmem:[%s1328_s29 + $0x80] sm:$0xff]  ;;  %v322_v9 = vld [vmem:[%s1328_s29 + $0x90] sm:$0xff] }
  0x14   : > { %313 = vst [vmem:[%s1333_s30 + $0x20] sm:$0xff] %v312_v4  ;;  %v324_v10 = vld [vmem:[%s1328_s29 + $0xa0] sm:$0xff]  ;;  %v326_v11 = vld [vmem:[%s1328_s29 + $0xb0] sm:$0xff] }
  0x15   : > { %315 = vst [vmem:[%s1333_s30 + $0x28] sm:$0xff] %v314_v5  ;;  %v328_v12 = vld [vmem:[%s1328_s29 + $0xc0] sm:$0xff]  ;;  %v330_v13 = vld [vmem:[%s1328_s29 + $0xd0] sm:$0xff] }
  0x16   : > { %317 = vst [vmem:[%s1333_s30 + $0x30] sm:$0xff] %v316_v6  ;;  %v332_v14 = vld [vmem:[%s1328_s29 + $0xe0] sm:$0xff]  ;;  %v334_v15 = vld [vmem:[%s1328_s29 + $0xf0] sm:$0xff] }
  0x17   : > { %319 = vst [vmem:[%s1333_s30 + $0x38] sm:$0xff] %v318_v7  ;;  %v336_v16 = vld [vmem:[%s1328_s29 + $0x100] sm:$0xff]  ;;  %v338_v17 = vld [vmem:[%s1328_s29 + $0x110] sm:$0xff] }
  0x18   : > { %321 = vst [vmem:[%s1333_s30 + $0x40] sm:$0xff] %v320_v8  ;;  %v340_v18 = vld [vmem:[%s1328_s29 + $0x120] sm:$0xff]  ;;  %v342_v19 = vld [vmem:[%s1328_s29 + $0x130] sm:$0xff] }
  0x19   : > { %323 = vst [vmem:[%s1333_s30 + $0x48] sm:$0xff] %v322_v9  ;;  %v344_v20 = vld [vmem:[%s1328_s29 + $0x140] sm:$0xff]  ;;  %v346_v21 = vld [vmem:[%s1328_s29 + $0x150] sm:$0xff] }
  0x1a   : > { %325 = vst [vmem:[%s1333_s30 + $0x50] sm:$0xff] %v324_v10  ;;  %v348_v22 = vld [vmem:[%s1328_s29 + $0x160] sm:$0xff]  ;;  %v350_v23 = vld [vmem:[%s1328_s29 + $0x170] sm:$0xff] }
  0x1b   : > { %327 = vst [vmem:[%s1333_s30 + $0x58] sm:$0xff] %v326_v11  ;;  %v352_v24 = vld [vmem:[%s1328_s29 + $0x180] sm:$0xff]  ;;  %v354_v25 = vld [vmem:[%s1328_s29 + $0x190] sm:$0xff] }
  0x1c   : > { %329 = vst [vmem:[%s1333_s30 + $0x60] sm:$0xff] %v328_v12  ;;  %v356_v26 = vld [vmem:[%s1328_s29 + $0x1a0] sm:$0xff]  ;;  %v358_v27 = vld [vmem:[%s1328_s29 + $0x1b0] sm:$0xff] }
  0x1d   : > { %331 = vst [vmem:[%s1333_s30 + $0x68] sm:$0xff] %v330_v13  ;;  %v360_v28 = vld [vmem:[%s1328_s29 + $0x1c0] sm:$0xff]  ;;  %v362_v29 = vld [vmem:[%s1328_s29 + $0x1d0] sm:$0xff] }
  0x1e   : > { %333 = vst [vmem:[%s1333_s30 + $0x70] sm:$0xff] %v332_v14  ;;  %v364_v30 = vld [vmem:[%s1328_s29 + $0x1e0] sm:$0xff]  ;;  %v366_v31 = vld [vmem:[%s1328_s29 + $0x1f0] sm:$0xff] }
  0x1f   : > { %335 = vst [vmem:[%s1333_s30 + $0x78] sm:$0xff] %v334_v15 }
  0x20   : > { %337 = vst [vmem:[%s1333_s30 + $0x80] sm:$0xff] %v336_v16 }
  0x21   : > { %339 = vst [vmem:[%s1333_s30 + $0x88] sm:$0xff] %v338_v17 }
  0x22   : > { %341 = vst [vmem:[%s1333_s30 + $0x90] sm:$0xff] %v340_v18 }
  0x23   : > { %343 = vst [vmem:[%s1333_s30 + $0x98] sm:$0xff] %v342_v19 }
  0x24   : > { %345 = vst [vmem:[%s1333_s30 + $0xa0] sm:$0xff] %v344_v20 }
  0x25   : > { %347 = vst [vmem:[%s1333_s30 + $0xa8] sm:$0xff] %v346_v21 }
  0x26   : > { %349 = vst [vmem:[%s1333_s30 + $0xb0] sm:$0xff] %v348_v22 }
  0x27   : > { %351 = vst [vmem:[%s1333_s30 + $0xb8] sm:$0xff] %v350_v23 }
  0x28   : > { %353 = vst [vmem:[%s1333_s30 + $0xc0] sm:$0xff] %v352_v24 }
  0x29   : > { %355 = vst [vmem:[%s1333_s30 + $0xc8] sm:$0xff] %v354_v25 }
  0x2a   : > { %357 = vst [vmem:[%s1333_s30 + $0xd0] sm:$0xff] %v356_v26 }
  0x2b   : > { %359 = vst [vmem:[%s1333_s30 + $0xd8] sm:$0xff] %v358_v27 }
  0x2c   : > { %361 = vst [vmem:[%s1333_s30 + $0xe0] sm:$0xff] %v360_v28 }
  0x2d   : > { %363 = vst [vmem:[%s1333_s30 + $0xe8] sm:$0xff] %v362_v29 }
  0x2e   : > { %365 = vst [vmem:[%s1333_s30 + $0xf0] sm:$0xff] %v364_v30 }
  0x2f   : > { %367 = vst [vmem:[%s1333_s30 + $0xf8] sm:$0xff] %v366_v31 }
  0x30 PF: > { %p1010_p6 = scmp.ge.s32.totalorder %s1257_s19, 1  ;;  %p372_p7 = scmp.lt.s32.totalorder %s1257_s19, 3 }
  0x32   : > { %p373_p8 = pnand %p1010_p6, %p372_p7 }
  0x33   : > { %s379_s5 = sand.u32 (!%p373_p8), 1, %s1241_s15   ;;  %s1012_s10 = sshll.u32 (!%p373_p8), %s1249_s17, 1 }
  0x34   : > { %376 = sbr.rel (%p373_p8) target bundleno = 282 (0x11a), region = 62  ;;  %s1011_s8 = sshll.u32 (!%p373_p8), %s379_s5, 8 }
  0x35   : > { %s1402_s9 = scalar_lea.vmem (!%p373_p8), [#allocation3], %s1011_s8  ;;  %p445_p9 = scmp.lt.s32.totalorder (!%p373_p8), %s1012_s10, 3 }
  0x39   : > { %v475_v32 = vld [vmem:[%s1514_s0] sm:$0x3]  ;;  %v1073_v33 = vld [vmem:[%s1402_s9 + $0x70] sm:$0xf]  ;;  %v1161_v34 = vld [vmem:[%s1402_s9 + $0x74] sm:$0xf0] }
  0x3a   : > { %509 = vst [vmem:[#allocation1] ss:$9 sm:$0xff] %v475_v32  ;;  %v1137_v35 = vld [vmem:[%s1402_s9 + $0xf0] sm:$0xf]  ;;  %v1074_v36 = vor.u32 %v1161_v34, %v1073_v33  ;;  %v1177_v37 = vld [vmem:[%s1402_s9 + $0xf4] sm:$0xf0] }
  0x3b   : > { %v1160_v38 = vld [vmem:[%s1402_s9 + $0x74] sm:$0xf]  ;;  %v1075_v39 = vld [vmem:[%s1402_s9 + $0x78] sm:$0xf0]  ;;  %v1138_v40 = vor.u32 %v1177_v37, %v1137_v35  ;;  %v1065_v44 = vld [vmem:[%s1402_s9 + $0x60] sm:$0xf] }
  0x3c   : > { %v1078_v41 = vor.u32 %v1160_v38, %v1075_v39  ;;  %v1176_v42 = vld [vmem:[%s1402_s9 + $0xf4] sm:$0xf]  ;;  %v1139_v43 = vld [vmem:[%s1402_s9 + $0xf8] sm:$0xf0]  ;;  %674 = vmatpush.bf16.msra.mxu0 %v1074_v36  ;;  %v1159_v46 = vld [vmem:[%s1402_s9 + $0x64] sm:$0xf0] }
  0x3d   : > { %v1142_v45 = vor.u32 %v1176_v42, %v1139_v43  ;;  %v1129_v47 = vld [vmem:[%s1402_s9 + $0xe0] sm:$0xf]  ;;  %v1175_v48 = vld [vmem:[%s1402_s9 + $0xe4] sm:$0xf0]  ;;  %687 = vmatpush.bf16.msra.mxu1 %v1138_v40  ;;  %v1066_v49 = vor.u32 %v1159_v46, %v1065_v44  ;;  %v1158_v51 = vld [vmem:[%s1402_s9 + $0x64] sm:$0xf] }
  0x3e   : > { %700 = vmatpush.bf16.msra.mxu2 %v1078_v41  ;;  %v1130_v50 = vor.u32 %v1175_v48, %v1129_v47  ;;  %v1067_v52 = vld [vmem:[%s1402_s9 + $0x68] sm:$0xf0]  ;;  %v1174_v53 = vld [vmem:[%s1402_s9 + $0xe4] sm:$0xf]  ;;  %v1057_v56 = vld [vmem:[%s1402_s9 + $0x50] sm:$0xf] }
  0x3f   : > { %713 = vmatpush.bf16.msra.mxu3 %v1142_v45  ;;  %v1070_v54 = vor.u32 %v1158_v51, %v1067_v52  ;;  %v1131_v55 = vld [vmem:[%s1402_s9 + $0xe8] sm:$0xf0]  ;;  %v1157_v57 = vld [vmem:[%s1402_s9 + $0x54] sm:$0xf0]  ;;  %v1121_v59 = vld [vmem:[%s1402_s9 + $0xd0] sm:$0xf] }
  0x40   : > { %v1134_v58 = vor.u32 %v1174_v53, %v1131_v55  ;;  %v1173_v60 = vld [vmem:[%s1402_s9 + $0xd4] sm:$0xf0]  ;;  %v1156_v61 = vld [vmem:[%s1402_s9 + $0x54] sm:$0xf]  ;;  %675 = vmatpush.bf16.msra.mxu0 %v1066_v49  ;;  %v1058_v62 = vor.u32 %v1157_v57, %v1057_v56  ;;  %v1059_v63 = vld [vmem:[%s1402_s9 + $0x58] sm:$0xf0] }
  0x41   : > { %v1172_v0 = vld [vmem:[%s1402_s9 + $0xd4] sm:$0xf]  ;;  %v1123_v1 = vld [vmem:[%s1402_s9 + $0xd8] sm:$0xf0]  ;;  %688 = vmatpush.bf16.msra.mxu1 %v1130_v50  ;;  %v1122_v2 = vor.u32 %v1173_v60, %v1121_v59  ;;  %v1062_v3 = vor.u32 %v1156_v61, %v1059_v63  ;;  %v1049_v4 = vld [vmem:[%s1402_s9 + $0x40] sm:$0xf] }
  0x42   : > { %701 = vmatpush.bf16.msra.mxu2 %v1070_v54  ;;  %v1155_v5 = vld [vmem:[%s1402_s9 + $0x44] sm:$0xf0]  ;;  %v1113_v6 = vld [vmem:[%s1402_s9 + $0xc0] sm:$0xf]  ;;  %v1126_v7 = vor.u32 %v1172_v0, %v1123_v1  ;;  %v1154_v9 = vld [vmem:[%s1402_s9 + $0x44] sm:$0xf] }
  0x43   : > { %714 = vmatpush.bf16.msra.mxu3 %v1134_v58  ;;  %v1171_v8 = vld [vmem:[%s1402_s9 + $0xc4] sm:$0xf0]  ;;  %v1051_v10 = vld [vmem:[%s1402_s9 + $0x48] sm:$0xf0]  ;;  %v1170_v11 = vld [vmem:[%s1402_s9 + $0xc4] sm:$0xf]  ;;  %v1050_v13 = vor.u32 %v1155_v5, %v1049_v4 }
  0x44   : > { %v1115_v12 = vld [vmem:[%s1402_s9 + $0xc8] sm:$0xf0]  ;;  %676 = vmatpush.bf16.msra.mxu0 %v1058_v62  ;;  %v1114_v14 = vor.u32 %v1171_v8, %v1113_v6  ;;  %v1054_v15 = vor.u32 %v1154_v9, %v1051_v10  ;;  %v1041_v16 = vld [vmem:[%s1402_s9 + $0x30] sm:$0xf]  ;;  %v1153_v17 = vld [vmem:[%s1402_s9 + $0x34] sm:$0xf0] }
  0x45   : > { %689 = vmatpush.bf16.msra.mxu1 %v1122_v2  ;;  %v1105_v18 = vld [vmem:[%s1402_s9 + $0xb0] sm:$0xf]  ;;  %v1118_v19 = vor.u32 %v1170_v11, %v1115_v12  ;;  %v1169_v20 = vld [vmem:[%s1402_s9 + $0xb4] sm:$0xf0]  ;;  %v1152_v21 = vld [vmem:[%s1402_s9 + $0x34] sm:$0xf]  ;;  %v1042_v25 = vor.u32 %v1153_v17, %v1041_v16 }
  0x46   : > { %702 = vmatpush.bf16.msra.mxu2 %v1062_v3  ;;  %v1043_v22 = vld [vmem:[%s1402_s9 + $0x38] sm:$0xf0]  ;;  %v1168_v23 = vld [vmem:[%s1402_s9 + $0xb4] sm:$0xf]  ;;  %v1106_v26 = vor.u32 %v1169_v20, %v1105_v18  ;;  %v1033_v28 = vld [vmem:[%s1402_s9 + $0x20] sm:$0xf] }
  0x47   : > { %715 = vmatpush.bf16.msra.mxu3 %v1126_v7  ;;  %v1107_v24 = vld [vmem:[%s1402_s9 + $0xb8] sm:$0xf0]  ;;  %v1046_v27 = vor.u32 %v1152_v21, %v1043_v22  ;;  %v1151_v29 = vld [vmem:[%s1402_s9 + $0x24] sm:$0xf0]  ;;  %v1097_v30 = vld [vmem:[%s1402_s9 + $0xa0] sm:$0xf] }
  0x48   : > { %677 = vmatpush.bf16.msra.mxu0 %v1050_v13  ;;  %v1110_v31 = vor.u32 %v1168_v23, %v1107_v24  ;;  %v1167_v32 = vld [vmem:[%s1402_s9 + $0xa4] sm:$0xf0]  ;;  %v1150_v33 = vld [vmem:[%s1402_s9 + $0x24] sm:$0xf]  ;;  %v1035_v34 = vld [vmem:[%s1402_s9 + $0x28] sm:$0xf0]  ;;  %v1034_v37 = vor.u32 %v1151_v29, %v1033_v28 }
  0x49   : > { %690 = vmatpush.bf16.msra.mxu1 %v1114_v14  ;;  %v1166_v35 = vld [vmem:[%s1402_s9 + $0xa4] sm:$0xf]  ;;  %v1099_v36 = vld [vmem:[%s1402_s9 + $0xa8] sm:$0xf0]  ;;  %v1098_v38 = vor.u32 %v1167_v32, %v1097_v30  ;;  %v1038_v39 = vor.u32 %v1150_v33, %v1035_v34  ;;  %v1025_v40 = vld [vmem:[%s1402_s9 + $0x10] sm:$0xf] }
  0x4a   : > { %703 = vmatpush.bf16.msra.mxu2 %v1054_v15  ;;  %v1149_v41 = vld [vmem:[%s1402_s9 + $0x14] sm:$0xf0]  ;;  %v1089_v42 = vld [vmem:[%s1402_s9 + $0x90] sm:$0xf]  ;;  %v1102_v43 = vor.u32 %v1166_v35, %v1099_v36  ;;  %v1148_v45 = vld [vmem:[%s1402_s9 + $0x14] sm:$0xf] }
  0x4b   : > { %716 = vmatpush.bf16.msra.mxu3 %v1118_v19  ;;  %v1165_v44 = vld [vmem:[%s1402_s9 + $0x94] sm:$0xf0]  ;;  %v1027_v46 = vld [vmem:[%s1402_s9 + $0x18] sm:$0xf0]  ;;  %v1164_v47 = vld [vmem:[%s1402_s9 + $0x94] sm:$0xf]  ;;  %v1026_v49 = vor.u32 %v1149_v41, %v1025_v40 }
  0x4c   : > { %678 = vmatpush.bf16.msra.mxu0 %v1042_v25  ;;  %v1091_v48 = vld [vmem:[%s1402_s9 + $0x98] sm:$0xf0]  ;;  %v1090_v50 = vor.u32 %v1165_v44, %v1089_v42  ;;  %v1030_v51 = vor.u32 %v1148_v45, %v1027_v46  ;;  %v1017_v52 = vld [vmem:[%s1402_s9] sm:$0xf]  ;;  %v1147_v53 = vld [vmem:[%s1402_s9 + $0x4] sm:$0xf0] }
  0x4d   : > { %691 = vmatpush.bf16.msra.mxu1 %v1106_v26  ;;  %v1081_v54 = vld [vmem:[%s1402_s9 + $0x80] sm:$0xf]  ;;  %v1094_v55 = vor.u32 %v1164_v47, %v1091_v48  ;;  %v1163_v56 = vld [vmem:[%s1402_s9 + $0x84] sm:$0xf0]  ;;  %v1146_v57 = vld [vmem:[%s1402_s9 + $0x4] sm:$0xf]  ;;  %v1018_v61 = vor.u32 %v1147_v53, %v1017_v52 }
  0x4e   : > { %704 = vmatpush.bf16.msra.mxu2 %v1046_v27  ;;  %v1019_v58 = vld [vmem:[%s1402_s9 + $0x8] sm:$0xf0]  ;;  %v1162_v59 = vld [vmem:[%s1402_s9 + $0x84] sm:$0xf]  ;;  %v1082_v62 = vor.u32 %v1163_v56, %v1081_v54  ;;  %v510_v1 = vld [vmem:[#allocation1] sm:$0xff]  ;;  %v1259_v3 = vmov 0.0  }
  0x4f   : > { %717 = vmatpush.bf16.msra.mxu3 %v1110_v31  ;;  %v1083_v60 = vld [vmem:[%s1402_s9 + $0x88] sm:$0xf0]  ;;  %v1022_v63 = vor.u32 %v1146_v57, %v1019_v58  ;;  %v511_v2 = vld [vmem:[#allocation1 + $0x9] sm:$0xff]  ;;  %473 = vst [vmem:[#allocation2] sm:$0xf] %v1259_v3  ;;  %vm729_vm0 = vcmask 1041408  }
  0x50   : > { %679 = vmatpush.bf16.msra.mxu0 %v1034_v37  ;;  %v1086_v0 = vor.u32 %v1162_v59, %v1083_v60  ;;  %s1528_s10 = smov (!%p445_p9, %s1012_s10), 3  ;;  %vm747_vm1 = vcmask 1040384  }
  0x51   : > { %692 = vmatpush.bf16.msra.mxu1 %v1098_v38  ;;  %s449_s13 = scalar_lea.vmem %s1516_s2, %s1528_s10  ;;  %s458_s17 = scalar_lea.vmem %s1517_s3, %s1528_s10 }
  0x52   : > { %705 = vmatpush.bf16.msra.mxu2 %v1038_v39  ;;  %v777_v39 = vlaneseq  ;;  %s467_s24 = scalar_lea.vmem %s1518_s4, %s1528_s10 }
  0x53   : > { %718 = vmatpush.bf16.msra.mxu3 %v1102_v43 }
  0x54   : > { %680 = vmatpush.bf16.msra.mxu0 %v1026_v49  ;;  %vm1481_vm2 = vcmp.lt.s32.totalorder %v777_v39, 256 }
  0x55   : > { %693 = vmatpush.bf16.msra.mxu1 %v1090_v50 }
  0x56   : > { %706 = vmatpush.bf16.msra.mxu2 %v1030_v51  ;;  %v474_v12 = vld [vmem:[#allocation2] sm:$0xf] }
  0x57   : > { %719 = vmatpush.bf16.msra.mxu3 %v1094_v55 }
  0x58   : > { %681 = vmatpush.bf16.msra.mxu0 %v1018_v61 }
  0x59   : > { %694 = vmatpush.bf16.msra.mxu1 %v1082_v62 }
  0x5a   : > { %707 = vmatpush.bf16.msra.mxu2 %v1022_v63 }
  0x5b   : > { %720 = vmatpush.bf16.msra.mxu3 %v1086_v0  ;;  %682 = vmatmul.bf16.vlgmr.msra.gmra.mxu0 %v510_v1 }
  0x5c   : > { %695 = vmatmul.bf16.vlgmr.msra.gmra.mxu1 %v511_v2 }
  0x5d   : > { %708 = vmatmul.bf16.vlgmr.msra.gmra.mxu2 %v510_v1 }
  0x5e   : > { %721 = vmatmul.bf16.vlgmr.msra.gmra.mxu3 %v511_v2 }
  0xd8   : > { %v683_v4 = vpop.f32.mrf.mxu0 }
  0xd9   : > { %v696_v5 = vpop.f32.mrf.mxu1 }
  0xda   : > { %v697_v9 = vadd.f32 %v696_v5, %v683_v4 }
  0xe0   : > { %v709_v6 = vpop.f32.mrf.mxu2  ;;  %v685_v8 = vpop.f32.mrf.mxu0 }
  0xe1   : > { %v722_v7 = vpop.f32.mrf.mxu3  ;;  %v698_v11 = vpop.f32.mrf.mxu1 }
  0xe2   : > { %v723_v10 = vadd.f32 %v722_v7, %v709_v6 }
  0xe4   : > { %v728_v13 = vrot.slane %v723_v10, 6 }
  0xe6   : > { %v730_v14 = vsel %vm729_vm0, %v697_v9, %v728_v13 }
  0xe7   : > { %v732_v15 = vadd.f32 %v730_v14, %v474_v12 }
  0xe8   : > { %v711_v16 = vpop.f32.mrf.mxu2 }
  0xe9   : > { %733 = vst [vmem:[#allocation2] sm:$0xf] %v732_v15  ;;  %v724_v17 = vpop.f32.mrf.mxu3 }
  0xf0   : > { %v737_v18 = vld [vmem:[#allocation2] sm:$0xf] }
  0xf1   : > { %739 = vst [vmem:[#allocation1] ss:$4 sm:$0xff] %v737_v18  ;;  %v782_v24 = vmul.f32 %v737_v18, %v737_v18 }
  0xf8   : > { %v740_v19 = vld.sshfl [vmem:[#allocation1] sm:$0xff pattern:$0x73625140]  ;;  %v741_v20 = vld.sshfl [vmem:[#allocation1 + $0x8] sm:$0xff pattern:$0x73625140] }
  0xf9   : > { %v744_v21 = vpack.c.bf16 %v741_v20, %v740_v19  ;;  %753 = vst [vmem:[#allocation1] ss:$4 sm:$0xff] %v737_v18 }
  0xfb   : > { %v746_v22 = vrot.slane %v744_v21, 3 }
  0xfd   : > { %v750_v23 = vsel %vm747_vm1, %v744_v21, %v746_v22 }
  0xfe   : > { %752 = vst [vmem:[%s449_s13] sm:$0x3] %v750_v23 }
 0x100   : > { %v754_v25 = vld.sshfl [vmem:[#allocation1] sm:$0xff pattern:$0x73625140]  ;;  %v755_v26 = vld.sshfl [vmem:[#allocation1 + $0x8] sm:$0xff pattern:$0x73625140] }
 0x101   : > { %v758_v27 = vsel %vm729_vm0, %v754_v25, 0.0  ;;  %v765_v28 = vsel %vm729_vm0, %v755_v26, 0.0  ;;  %784 = vst [vmem:[#allocation1] ss:$4 sm:$0xff] %v782_v24 }
 0x102   : > { %v759_v29 = vrot.slane %v758_v27, 4  ;;  %v766_v30 = vrot.slane %v765_v28, 4 }
 0x104   : > { %v760_v31 = vadd.f32 %v759_v29, %v758_v27  ;;  %v767_v32 = vadd.f32 %v766_v30, %v765_v28 }
 0x106   : > { %v761_v33 = vrot.slane %v760_v31, 2  ;;  %v768_v34 = vrot.slane %v767_v32, 2 }
 0x108   : > { %v762_v35 = vadd.f32 %v761_v33, %v760_v31  ;;  %v769_v36 = vadd.f32 %v768_v34, %v767_v32  ;;  %v785_v37 = vld.sshfl [vmem:[#allocation1] sm:$0xff pattern:$0x73625140]  ;;  %v786_v38 = vld.sshfl [vmem:[#allocation1 + $0x8] sm:$0xff pattern:$0x73625140] }
 0x109   : > { %v789_v40 = vsel %vm729_vm0, %v785_v37, 0.0  ;;  %v796_v41 = vsel %vm729_vm0, %v786_v38, 0.0 }
 0x10a   : > { %v763_v42 = vrot.slane %v762_v35, 1  ;;  %v770_v43 = vrot.slane %v769_v36, 1  ;;  %v790_v44 = vrot.slane %v789_v40, 4  ;;  %v797_v45 = vrot.slane %v796_v41, 4 }
 0x10c   : > { %v771_v46 = vadd.f32 %v770_v43, %v769_v36  ;;  %v791_v47 = vadd.f32 %v790_v44, %v789_v40  ;;  %v798_v48 = vadd.f32 %v797_v45, %v796_v41  ;;  %v764_v50 = vadd.f32 %v763_v42, %v762_v35 }
 0x10e   : > { %v774_v51 = vrot.slane %v771_v46, 7  ;;  %v792_v52 = vrot.slane %v791_v47, 2  ;;  %v799_v53 = vrot.slane %v798_v48, 2 }
 0x110   : > { %v775_v54 = vsel %vm747_vm1, %v764_v50, %v774_v51  ;;  %v793_v55 = vadd.f32 %v792_v52, %v791_v47  ;;  %v800_v56 = vadd.f32 %v799_v53, %v798_v48 }
 0x111   : > { %781 = vst.msk [vmem:[%s458_s17] sm:$0x3] %vm1481_vm2, %v775_v54 }
 0x112   : > { %v794_v57 = vrot.slane %v793_v55, 1  ;;  %v801_v58 = vrot.slane %v800_v56, 1 }
 0x114   : > { %v802_v59 = vadd.f32 %v801_v58, %v800_v56  ;;  %v795_v60 = vadd.f32 %v794_v57, %v793_v55 }
 0x116   : > { %v805_v61 = vrot.slane %v802_v59, 7 }
 0x118   : > { %v806_v62 = vsel %vm747_vm1, %v795_v60, %v805_v61 }
 0x119   : > { %808 = vst.msk [vmem:[%s467_s24] sm:$0x3] %vm1481_vm2, %v806_v62 }
 0x11a PF: > { %s15_s19 = sadd.s32 1, %s1257_s19   ;;  %s1521_s15 = smov %s1245_s16 }
 0x11b   : > { %p12_p10 = scmp.ge.s32.totalorder %s15_s19, 4   ;;  %s1522_s16 = smov %s1320_s23 }
 0x11c   : > { %s1523_s17 = smov %s1253_s18  ;;  %s1524_s18 = smov %s1526_s20 }
 0x11d   :  { %14 = sbr.rel (!%p12_p10) target bundleno = 3 (0x3), region = 136 }

// kernel: backbone_forward.136
= control target key start
LH: loop header
LB: loop body
LE: loop exit
PB: predicated region body
PF: predicated region fallthrough
CT: control target
= control target key end

     0   :  { %vm25_vm0 = vcmask 1041408   ;;  %vm27_vm1 = vcmask 1045508   ;;  %vm29_vm2 = vcmask 1043456   ;;  %vm65_vm3 = vcmask 1040384   ;;  %s117_s0 = inlined_call_operand.vmem [shape: bf16[2,512], index: 0, kind: input, shape index: {}]   ;;  %s118_s1 = inlined_call_operand.vmem [shape: f32[1,512], index: 1, kind: input, shape index: {}]   ;;  %s119_s2 = inlined_call_operand.vmem [shape: f32[1,512], index: 2, kind: input, shape index: {}]   ;;  %s120_s3 = inlined_call_operand.vmem [shape: bf16[2,512], index: 3, kind: output, shape index: {}]  }
   0x1   :  { %v16_v0 = vld [vmem:[%s118_s1] sm:$0xf]  ;;  %vm69_vm4 = vcmask 1042434  }
   0x2   :  { %v33_v1 = vld [vmem:[%s119_s2] sm:$0xf]  ;;  %v18_v3 = vperm.slane %v16_v0, 0  ;;  %v19_v4 = vperm.slane %v16_v0, 1  ;;  %v20_v5 = vperm.slane %v16_v0, 2  ;;  %v21_v6 = vperm.slane %v16_v0, 3 }
   0x3   :  { %v14_v2 = vld [vmem:[%s117_s0] sm:$0xf]  ;;  %v35_v7 = vperm.slane %v33_v1, 0  ;;  %v36_v8 = vperm.slane %v33_v1, 1  ;;  %v37_v9 = vperm.slane %v33_v1, 2  ;;  %v38_v12 = vperm.slane %v33_v1, 3 }
   0x4   :  { %v22_v10 = vrot.slane %v19_v4, 6  ;;  %v23_v11 = vrot.slane %v20_v5, 4  ;;  %v15_v13 = vunpack.c.l.bf16 %v14_v2  ;;  %v24_v14 = vrot.slane %v21_v6, 2 }
   0x5   :  { %v39_v15 = vrot.slane %v36_v8, 6  ;;  %v40_v16 = vrot.slane %v37_v9, 4  ;;  %v41_v18 = vrot.slane %v38_v12, 2 }
   0x6   :  { %v26_v17 = vsel %vm25_vm0, %v18_v3, %v22_v10  ;;  %v28_v19 = vsel %vm27_vm1, %v23_v11, %v24_v14 }
   0x7   :  { %v42_v20 = vsel %vm25_vm0, %v35_v7, %v39_v15  ;;  %v30_v21 = vsel %vm29_vm2, %v26_v17, %v28_v19  ;;  %v43_v22 = vsel %vm27_vm1, %v40_v16, %v41_v18 }
   0x8   :  { %v32_v23 = vmul.f32 %v30_v21, %v15_v13  ;;  %v44_v24 = vsel %vm29_vm2, %v42_v20, %v43_v22 }
   0xa   :  { %v46_v25 = vadd.f32 %v44_v24, %v32_v23 }
   0xc   :  { %v47_v26 = vmax.f32 %v46_v25, 0.0 }
   0xe   :  { %49 = vst [vmem:[#allocation1] ss:$4 sm:$0xff] %v47_v26 }
  0x15   :  { %v50_v27 = vld.sshfl [vmem:[#allocation1] sm:$0xff pattern:$0x73625140]  ;;  %v51_v28 = vld.sshfl [vmem:[#allocation1 + $0x8] sm:$0xff pattern:$0x73625140] }
  0x16   :  { %v52_v29 = vld.sshfl [vmem:[#allocation1 + $0x10] sm:$0xff pattern:$0x73625140]  ;;  %v53_v30 = vld.sshfl [vmem:[#allocation1 + $0x18] sm:$0xff pattern:$0x73625140]  ;;  %v58_v31 = vpack.c.bf16 %v51_v28, %v50_v27 }
  0x17   :  { %v59_v32 = vpack.c.bf16 %v53_v30, %v52_v29 }
  0x18   :  { %v62_v33 = vrot.slane %v58_v31, 3 }
  0x19   :  { %v63_v34 = vrot.slane %v59_v32, 6  ;;  %v64_v35 = vrot.slane %v59_v32, 1 }
  0x1a   :  { %v68_v36 = vsel %vm65_vm3, %v58_v31, %v62_v33 }
  0x1b   :  { %v72_v37 = vsel %vm69_vm4, %v63_v34, %v64_v35 }
  0x1c   :  { %v73_v38 = vsel %vm25_vm0, %v68_v36, %v72_v37 }
  0x1d   :  { %75 = vst [vmem:[%s120_s3] sm:$0xf] %v73_v38 }

// kernel: backbone_forward.135
= control target key start
LH: loop header
LB: loop body
LE: loop exit
PB: predicated region body
PF: predicated region fallthrough
CT: control target
= control target key end

     0   :  { %s1322_s15 = smov 0   ;;  %s1324_s16 = smov 0   ;;  %s1592_s0 = inlined_call_operand.vmem [shape: bf16[2,2304], index: 0, kind: input, shape index: {}]   ;;  %s1593_s1 = inlined_call_operand.vmem [shape: bf16[2304,512], index: 1, kind: input, shape index: {}]   ;;  %s1594_s2 = inlined_call_operand.vmem [shape: bf16[2,512], index: 2, kind: output, shape index: {0}]   ;;  %s1595_s3 = inlined_call_operand.vmem [shape: f32[1,1,512], index: 3, kind: output, shape index: {1}]   ;;  %s1596_s4 = inlined_call_operand.vmem [shape: f32[1,1,512], index: 4, kind: output, shape index: {2}]  }
   0x1   :  { %s1326_s17 = smov 0   ;;  %s1328_s18 = smov 0  }
   0x2   :  { %s1330_s19 = smov 0   ;;  %s1332_s20 = smov 0  }
   0x3   :  { %s1334_s21 = smov 0  }
   0x4 LB: > { %s27_s22 = sadd.s32 1, %s1286_s19  ;;  %s30_s23 = sadd.s32 1, %s1290_s20  ;;  %s1294_s21 = sphi %s1334_s21, %s15_s21   ;;  %s1290_s20 = sphi %s1332_s20, %s1602_s20   ;;  %s1286_s19 = sphi %s1330_s19, %s1601_s19   ;;  %s1282_s18 = sphi %s1328_s18, %s1600_s18   ;;  %s1278_s17 = sphi %s1326_s17, %s1599_s17   ;;  %s1274_s16 = sphi %s1324_s16, %s1598_s16   ;;  %s1270_s15 = sphi %s1322_s15, %s1597_s15  }
   0x5   : > { %p28_p0 = scmp.ge.s32.totalorder %s27_s22, 9  ;;  %p78_p1 = scmp.ne.s32.totalorder %s1274_s16, %s1270_s15 }
   0x6   : > { %p79_p2 = scmp.eq.s32.totalorder %s1294_s21, 0  ;;  %s71_s27 = sadd.s32 1, %s1274_s16 }
   0x7   : > { %s1604_s22 = smov (%p28_p0, %s27_s22), 0  ;;  %s1606_s23 = smov (!%p28_p0, %s30_s23), %s1290_s20 }
   0x8   : > { %p80_p3 = por %p79_p2, %p78_p1  ;;  %p32_p4 = scmp.ge.s32.totalorder %s1606_s23, 2 }
   0x9   : > { %s66_s24 = ssub.s32 %s1286_s19, %s1604_s22  ;;  %p1006_p6 = scmp.ge.s32.totalorder %s1294_s21, 18 }
   0xa   : > { %s1608_s23 = smov (%p32_p4, %s1606_s23), 0 }
   0xb   : > { %s67_s25 = ssub.s32 %s1290_s20, %s1608_s23  ;;  %188 = sbr.rel (%p1006_p6) target bundleno = 55 (0x37), region = 16 }
   0xc   : > { %s68_s26 = sor.u32 %s67_s25, %s66_s24 }
   0xd   : > { %p69_p5 = scmp.eq.s32.totalorder %s68_s26, 0 }
   0xf   : > { %s1373_s28 = scalar_select %p69_p5, %s1274_s16, %s71_s27  }
  0x10   : > { %203 = sbr.rel (!%p80_p3) target bundleno = 55 (0x37), region = 24  ;;  %s205_s29 = sand.u32 (%p80_p3), 1, %s1274_s16  }
  0x11   : > { %s1009_s30 = sshll.u32 (%p80_p3), %s1290_s20, 1  ;;  %s1007_s5 = sshll.u32 (%p80_p3), %s205_s29, 8 }
  0x12   : > { %s1150_s6 = sshll.u32 (%p80_p3), %s1286_s19, 7  ;;  %s1387_s12 = scalar_lea.vmem (%p80_p3), [#allocation3], %s1007_s5 }
  0x13   : > { %s211_s7 = sadd.s32 (%p80_p3), %s1150_s6, %s1009_s30 }
  0x14   : > { %s1011_s8 = sshll.u32 (%p80_p3), %s211_s7, 2 }
  0x15   : > { %s1382_s11 = scalar_lea.vmem %s1593_s1, %s1011_s8 }
  0x16   : > { %v304_v0 = vld [vmem:[%s1382_s11] sm:$0xff]  ;;  %v306_v1 = vld [vmem:[%s1382_s11 + $0x10] sm:$0xff] }
  0x17   : > { %v308_v2 = vld [vmem:[%s1382_s11 + $0x20] sm:$0xff]  ;;  %305 = vst [vmem:[%s1387_s12] sm:$0xff] %v304_v0  ;;  %v310_v3 = vld [vmem:[%s1382_s11 + $0x30] sm:$0xff] }
  0x18   : > { %307 = vst [vmem:[%s1387_s12 + $0x8] sm:$0xff] %v306_v1  ;;  %v312_v4 = vld [vmem:[%s1382_s11 + $0x40] sm:$0xff]  ;;  %v314_v5 = vld [vmem:[%s1382_s11 + $0x50] sm:$0xff] }
  0x19   : > { %309 = vst [vmem:[%s1387_s12 + $0x10] sm:$0xff] %v308_v2  ;;  %v316_v6 = vld [vmem:[%s1382_s11 + $0x60] sm:$0xff]  ;;  %v318_v7 = vld [vmem:[%s1382_s11 + $0x70] sm:$0xff] }
  0x1a   : > { %311 = vst [vmem:[%s1387_s12 + $0x18] sm:$0xff] %v310_v3  ;;  %v320_v8 = vld [vmem:[%s1382_s11 + $0x80] sm:$0xff]  ;;  %v322_v9 = vld [vmem:[%s1382_s11 + $0x90] sm:$0xff] }
  0x1b   : > { %313 = vst [vmem:[%s1387_s12 + $0x20] sm:$0xff] %v312_v4  ;;  %v324_v10 = vld [vmem:[%s1382_s11 + $0xa0] sm:$0xff]  ;;  %v326_v11 = vld [vmem:[%s1382_s11 + $0xb0] sm:$0xff] }
  0x1c   : > { %315 = vst [vmem:[%s1387_s12 + $0x28] sm:$0xff] %v314_v5  ;;  %v328_v12 = vld [vmem:[%s1382_s11 + $0xc0] sm:$0xff]  ;;  %v330_v13 = vld [vmem:[%s1382_s11 + $0xd0] sm:$0xff] }
  0x1d   : > { %317 = vst [vmem:[%s1387_s12 + $0x30] sm:$0xff] %v316_v6  ;;  %v332_v14 = vld [vmem:[%s1382_s11 + $0xe0] sm:$0xff]  ;;  %v334_v15 = vld [vmem:[%s1382_s11 + $0xf0] sm:$0xff] }
  0x1e   : > { %319 = vst [vmem:[%s1387_s12 + $0x38] sm:$0xff] %v318_v7  ;;  %v336_v16 = vld [vmem:[%s1382_s11 + $0x100] sm:$0xff]  ;;  %v338_v17 = vld [vmem:[%s1382_s11 + $0x110] sm:$0xff] }
  0x1f   : > { %321 = vst [vmem:[%s1387_s12 + $0x40] sm:$0xff] %v320_v8  ;;  %v340_v18 = vld [vmem:[%s1382_s11 + $0x120] sm:$0xff]  ;;  %v342_v19 = vld [vmem:[%s1382_s11 + $0x130] sm:$0xff] }
  0x20   : > { %323 = vst [vmem:[%s1387_s12 + $0x48] sm:$0xff] %v322_v9  ;;  %v344_v20 = vld [vmem:[%s1382_s11 + $0x140] sm:$0xff]  ;;  %v346_v21 = vld [vmem:[%s1382_s11 + $0x150] sm:$0xff] }
  0x21   : > { %325 = vst [vmem:[%s1387_s12 + $0x50] sm:$0xff] %v324_v10  ;;  %v348_v22 = vld [vmem:[%s1382_s11 + $0x160] sm:$0xff]  ;;  %v350_v23 = vld [vmem:[%s1382_s11 + $0x170] sm:$0xff] }
  0x22   : > { %327 = vst [vmem:[%s1387_s12 + $0x58] sm:$0xff] %v326_v11  ;;  %v352_v24 = vld [vmem:[%s1382_s11 + $0x180] sm:$0xff]  ;;  %v354_v25 = vld [vmem:[%s1382_s11 + $0x190] sm:$0xff] }
  0x23   : > { %329 = vst [vmem:[%s1387_s12 + $0x60] sm:$0xff] %v328_v12  ;;  %v356_v26 = vld [vmem:[%s1382_s11 + $0x1a0] sm:$0xff]  ;;  %v358_v27 = vld [vmem:[%s1382_s11 + $0x1b0] sm:$0xff] }
  0x24   : > { %331 = vst [vmem:[%s1387_s12 + $0x68] sm:$0xff] %v330_v13  ;;  %v360_v28 = vld [vmem:[%s1382_s11 + $0x1c0] sm:$0xff]  ;;  %v362_v29 = vld [vmem:[%s1382_s11 + $0x1d0] sm:$0xff] }
  0x25   : > { %333 = vst [vmem:[%s1387_s12 + $0x70] sm:$0xff] %v332_v14  ;;  %v364_v30 = vld [vmem:[%s1382_s11 + $0x1e0] sm:$0xff]  ;;  %v366_v31 = vld [vmem:[%s1382_s11 + $0x1f0] sm:$0xff] }
  0x26   : > { %335 = vst [vmem:[%s1387_s12 + $0x78] sm:$0xff] %v334_v15 }
  0x27   : > { %337 = vst [vmem:[%s1387_s12 + $0x80] sm:$0xff] %v336_v16 }
  0x28   : > { %339 = vst [vmem:[%s1387_s12 + $0x88] sm:$0xff] %v338_v17 }
  0x29   : > { %341 = vst [vmem:[%s1387_s12 + $0x90] sm:$0xff] %v340_v18 }
  0x2a   : > { %343 = vst [vmem:[%s1387_s12 + $0x98] sm:$0xff] %v342_v19 }
  0x2b   : > { %345 = vst [vmem:[%s1387_s12 + $0xa0] sm:$0xff] %v344_v20 }
  0x2c   : > { %347 = vst [vmem:[%s1387_s12 + $0xa8] sm:$0xff] %v346_v21 }
  0x2d   : > { %349 = vst [vmem:[%s1387_s12 + $0xb0] sm:$0xff] %v348_v22 }
  0x2e   : > { %351 = vst [vmem:[%s1387_s12 + $0xb8] sm:$0xff] %v350_v23 }
  0x2f   : > { %353 = vst [vmem:[%s1387_s12 + $0xc0] sm:$0xff] %v352_v24 }
  0x30   : > { %355 = vst [vmem:[%s1387_s12 + $0xc8] sm:$0xff] %v354_v25 }
  0x31   : > { %357 = vst [vmem:[%s1387_s12 + $0xd0] sm:$0xff] %v356_v26 }
  0x32   : > { %359 = vst [vmem:[%s1387_s12 + $0xd8] sm:$0xff] %v358_v27 }
  0x33   : > { %361 = vst [vmem:[%s1387_s12 + $0xe0] sm:$0xff] %v360_v28 }
  0x34   : > { %363 = vst [vmem:[%s1387_s12 + $0xe8] sm:$0xff] %v362_v29 }
  0x35   : > { %365 = vst [vmem:[%s1387_s12 + $0xf0] sm:$0xff] %v364_v30 }
  0x36   : > { %367 = vst [vmem:[%s1387_s12 + $0xf8] sm:$0xff] %v366_v31 }
  0x37 PF: > { %p1012_p7 = scmp.ge.s32.totalorder %s1294_s21, 1  ;;  %p372_p8 = scmp.lt.s32.totalorder %s1294_s21, 19 }
  0x39   : > { %p373_p9 = pnand %p1012_p7, %p372_p8 }
  0x3a   : > { %s379_s13 = sand.u32 (!%p373_p9), 1, %s1270_s15   ;;  %s1014_s14 = sshll.u32 (!%p373_p9), %s1278_s17, 1 }
  0x3b   : > { %376 = sbr.rel (%p373_p9) target bundleno = 298 (0x12a), region = 62  ;;  %s1013_s24 = sshll.u32 (!%p373_p9), %s379_s13, 8 }
  0x3c   : > { %p434_p10 = scmp.lt.s32.totalorder (!%p373_p9), %s1014_s14, 17  ;;  %s1015_s25 = sshll.u32 (!%p373_p9), %s1282_s18, 1 }
  0x3d   : > { %p445_p11 = scmp.lt.s32.totalorder (!%p373_p9), %s1015_s25, 3  ;;  %s1475_s11 = scalar_lea.vmem (!%p373_p9), [#allocation3], %s1013_s24 }
  0x3e   : > { %p1018_p12 = scmp.ne.s32.totalorder (!%p373_p9), %s1278_s17, 0 }
  0x40   : > { %s1610_s14 = smov (!%p434_p10, %s1014_s14), 17  ;;  %s1612_s25 = smov (!%p445_p11, %s1015_s25), 3 }
  0x41   : > { %s438_s29 = scalar_lea.vmem %s1592_s0, %s1610_s14  ;;  %s449_s15 = scalar_lea.vmem %s1594_s2, %s1612_s25 }
  0x42   : > { %s458_s18 = scalar_lea.vmem %s1595_s3, %s1612_s25  ;;  %s467_s10 = scalar_lea.vmem %s1596_s4, %s1612_s25 }
  0x43   : > { %472 = sbr.rel (%p1018_p12) target bundleno = 74 (0x4a), region = 70 }
  0x48   : > { %v1296_v32 = vmov 0.0  }
  0x49   : > { %473 = vst [vmem:[#allocation2] sm:$0xf] %v1296_v32 }
  0x4a PF: > { %v1077_v33 = vld [vmem:[%s1475_s11 + $0x70] sm:$0xf]  ;;  %v1166_v34 = vld [vmem:[%s1475_s11 + $0x74] sm:$0xf0]  ;;  %v1165_v38 = vld [vmem:[%s1475_s11 + $0x74] sm:$0xf] }
  0x4b   : > { %v1141_v35 = vld [vmem:[%s1475_s11 + $0xf0] sm:$0xf]  ;;  %v1078_v36 = vor.u32 %v1166_v34, %v1077_v33  ;;  %v1182_v37 = vld [vmem:[%s1475_s11 + $0xf4] sm:$0xf0]  ;;  %v1079_v39 = vld [vmem:[%s1475_s11 + $0x78] sm:$0xf0] }
  0x4c   : > { %v1142_v40 = vor.u32 %v1182_v37, %v1141_v35  ;;  %v1082_v41 = vor.u32 %v1165_v38, %v1079_v39  ;;  %v1181_v42 = vld [vmem:[%s1475_s11 + $0xf4] sm:$0xf]  ;;  %v1143_v43 = vld [vmem:[%s1475_s11 + $0xf8] sm:$0xf0]  ;;  %v1069_v44 = vld [vmem:[%s1475_s11 + $0x60] sm:$0xf] }
  0x4d   : > { %674 = vmatpush.bf16.msra.mxu0 %v1078_v36  ;;  %v1146_v45 = vor.u32 %v1181_v42, %v1143_v43  ;;  %v1164_v46 = vld [vmem:[%s1475_s11 + $0x64] sm:$0xf0]  ;;  %v1133_v47 = vld [vmem:[%s1475_s11 + $0xe0] sm:$0xf]  ;;  %v1163_v51 = vld [vmem:[%s1475_s11 + $0x64] sm:$0xf] }
  0x4e   : > { %v1180_v48 = vld [vmem:[%s1475_s11 + $0xe4] sm:$0xf0]  ;;  %687 = vmatpush.bf16.msra.mxu1 %v1142_v40  ;;  %700 = vmatpush.bf16.msra.mxu2 %v1082_v41  ;;  %v1070_v49 = vor.u32 %v1164_v46, %v1069_v44  ;;  %v1071_v52 = vld [vmem:[%s1475_s11 + $0x68] sm:$0xf0]  ;;  %v1179_v53 = vld [vmem:[%s1475_s11 + $0xe4] sm:$0xf] }
  0x4f   : > { %v1134_v50 = vor.u32 %v1180_v48, %v1133_v47  ;;  %713 = vmatpush.bf16.msra.mxu3 %v1146_v45  ;;  %v1074_v54 = vor.u32 %v1163_v51, %v1071_v52  ;;  %v1135_v55 = vld [vmem:[%s1475_s11 + $0xe8] sm:$0xf0]  ;;  %v1061_v56 = vld [vmem:[%s1475_s11 + $0x50] sm:$0xf]  ;;  %v1162_v57 = vld [vmem:[%s1475_s11 + $0x54] sm:$0xf0] }
  0x50   : > { %v1138_v58 = vor.u32 %v1179_v53, %v1135_v55  ;;  %v1125_v59 = vld [vmem:[%s1475_s11 + $0xd0] sm:$0xf]  ;;  %v1178_v60 = vld [vmem:[%s1475_s11 + $0xd4] sm:$0xf0]  ;;  %v1161_v61 = vld [vmem:[%s1475_s11 + $0x54] sm:$0xf]  ;;  %v1062_v62 = vor.u32 %v1162_v57, %v1061_v56 }
  0x51   : > { %675 = vmatpush.bf16.msra.mxu0 %v1070_v49  ;;  %v1063_v63 = vld [vmem:[%s1475_s11 + $0x58] sm:$0xf0]  ;;  %v1177_v0 = vld [vmem:[%s1475_s11 + $0xd4] sm:$0xf]  ;;  %v1126_v2 = vor.u32 %v1178_v60, %v1125_v59  ;;  %v1053_v4 = vld [vmem:[%s1475_s11 + $0x40] sm:$0xf] }
  0x52   : > { %v1127_v1 = vld [vmem:[%s1475_s11 + $0xd8] sm:$0xf0]  ;;  %688 = vmatpush.bf16.msra.mxu1 %v1134_v50  ;;  %701 = vmatpush.bf16.msra.mxu2 %v1074_v54  ;;  %v1066_v3 = vor.u32 %v1161_v61, %v1063_v63  ;;  %v1160_v5 = vld [vmem:[%s1475_s11 + $0x44] sm:$0xf0]  ;;  %v1117_v6 = vld [vmem:[%s1475_s11 + $0xc0] sm:$0xf] }
  0x53   : > { %714 = vmatpush.bf16.msra.mxu3 %v1138_v58  ;;  %v1130_v7 = vor.u32 %v1177_v0, %v1127_v1  ;;  %v1176_v8 = vld [vmem:[%s1475_s11 + $0xc4] sm:$0xf0]  ;;  %v1159_v9 = vld [vmem:[%s1475_s11 + $0x44] sm:$0xf]  ;;  %v1055_v10 = vld [vmem:[%s1475_s11 + $0x48] sm:$0xf0]  ;;  %v1054_v13 = vor.u32 %v1160_v5, %v1053_v4 }
  0x54   : > { %v1175_v11 = vld [vmem:[%s1475_s11 + $0xc4] sm:$0xf]  ;;  %v1119_v12 = vld [vmem:[%s1475_s11 + $0xc8] sm:$0xf0]  ;;  %v1118_v14 = vor.u32 %v1176_v8, %v1117_v6  ;;  %v1058_v15 = vor.u32 %v1159_v9, %v1055_v10  ;;  %v1045_v16 = vld [vmem:[%s1475_s11 + $0x30] sm:$0xf] }
  0x55   : > { %676 = vmatpush.bf16.msra.mxu0 %v1062_v62  ;;  %v1158_v17 = vld [vmem:[%s1475_s11 + $0x34] sm:$0xf0]  ;;  %v1109_v18 = vld [vmem:[%s1475_s11 + $0xb0] sm:$0xf]  ;;  %v1122_v19 = vor.u32 %v1175_v11, %v1119_v12  ;;  %v1157_v21 = vld [vmem:[%s1475_s11 + $0x34] sm:$0xf] }
  0x56   : > { %689 = vmatpush.bf16.msra.mxu1 %v1126_v2  ;;  %702 = vmatpush.bf16.msra.mxu2 %v1066_v3  ;;  %v1174_v20 = vld [vmem:[%s1475_s11 + $0xb4] sm:$0xf0]  ;;  %v1047_v22 = vld [vmem:[%s1475_s11 + $0x38] sm:$0xf0]  ;;  %v1173_v23 = vld [vmem:[%s1475_s11 + $0xb4] sm:$0xf]  ;;  %v1046_v25 = vor.u32 %v1158_v17, %v1045_v16 }
  0x57   : > { %715 = vmatpush.bf16.msra.mxu3 %v1130_v7  ;;  %v1111_v24 = vld [vmem:[%s1475_s11 + $0xb8] sm:$0xf0]  ;;  %v1110_v26 = vor.u32 %v1174_v20, %v1109_v18  ;;  %v1050_v27 = vor.u32 %v1157_v21, %v1047_v22  ;;  %v1037_v28 = vld [vmem:[%s1475_s11 + $0x20] sm:$0xf]  ;;  %v1156_v29 = vld [vmem:[%s1475_s11 + $0x24] sm:$0xf0] }
  0x58   : > { %v1101_v30 = vld [vmem:[%s1475_s11 + $0xa0] sm:$0xf]  ;;  %v1114_v31 = vor.u32 %v1173_v23, %v1111_v24  ;;  %v1172_v32 = vld [vmem:[%s1475_s11 + $0xa4] sm:$0xf0]  ;;  %v1155_v33 = vld [vmem:[%s1475_s11 + $0x24] sm:$0xf]  ;;  %v1038_v37 = vor.u32 %v1156_v29, %v1037_v28 }
  0x59   : > { %677 = vmatpush.bf16.msra.mxu0 %v1054_v13  ;;  %v1039_v34 = vld [vmem:[%s1475_s11 + $0x28] sm:$0xf0]  ;;  %v1171_v35 = vld [vmem:[%s1475_s11 + $0xa4] sm:$0xf]  ;;  %v1029_v38 = vld [vmem:[%s1475_s11 + $0x10] sm:$0xf]  ;;  %v1102_v39 = vor.u32 %v1172_v32, %v1101_v30 }
  0x5a   : > { %690 = vmatpush.bf16.msra.mxu1 %v1118_v14  ;;  %703 = vmatpush.bf16.msra.mxu2 %v1058_v15  ;;  %v1103_v36 = vld [vmem:[%s1475_s11 + $0xa8] sm:$0xf0]  ;;  %v1042_v40 = vor.u32 %v1155_v33, %v1039_v34  ;;  %v1154_v41 = vld [vmem:[%s1475_s11 + $0x14] sm:$0xf0]  ;;  %v1093_v42 = vld [vmem:[%s1475_s11 + $0x90] sm:$0xf] }
  0x5b   : > { %716 = vmatpush.bf16.msra.mxu3 %v1122_v19  ;;  %v1170_v43 = vld [vmem:[%s1475_s11 + $0x94] sm:$0xf0]  ;;  %v1106_v44 = vor.u32 %v1171_v35, %v1103_v36  ;;  %v1153_v45 = vld [vmem:[%s1475_s11 + $0x14] sm:$0xf]  ;;  %v1031_v46 = vld [vmem:[%s1475_s11 + $0x18] sm:$0xf0]  ;;  %v1030_v50 = vor.u32 %v1154_v41, %v1029_v38 }
  0x5c   : > { %v475_v47 = vld [vmem:[%s438_s29] sm:$0x3]  ;;  %v1095_v49 = vld [vmem:[%s1475_s11 + $0x98] sm:$0xf0]  ;;  %v1094_v51 = vor.u32 %v1170_v43, %v1093_v42  ;;  %v1034_v52 = vor.u32 %v1153_v45, %v1031_v46  ;;  %v1021_v53 = vld [vmem:[%s1475_s11] sm:$0xf] }
  0x5d   : > { %678 = vmatpush.bf16.msra.mxu0 %v1046_v25  ;;  %v1169_v48 = vld [vmem:[%s1475_s11 + $0x94] sm:$0xf]  ;;  %509 = vst [vmem:[#allocation1] ss:$9 sm:$0xff] %v475_v47  ;;  %v1152_v54 = vld [vmem:[%s1475_s11 + $0x4] sm:$0xf0] }
  0x5e   : > { %691 = vmatpush.bf16.msra.mxu1 %v1110_v26  ;;  %704 = vmatpush.bf16.msra.mxu2 %v1050_v27  ;;  %v1085_v55 = vld [vmem:[%s1475_s11 + $0x80] sm:$0xf]  ;;  %v1098_v56 = vor.u32 %v1169_v48, %v1095_v49  ;;  %v1168_v57 = vld [vmem:[%s1475_s11 + $0x84] sm:$0xf0]  ;;  %v1151_v58 = vld [vmem:[%s1475_s11 + $0x4] sm:$0xf]  ;;  %v1022_v62 = vor.u32 %v1152_v54, %v1021_v53 }
  0x5f   : > { %717 = vmatpush.bf16.msra.mxu3 %v1114_v31  ;;  %v1023_v59 = vld [vmem:[%s1475_s11 + $0x8] sm:$0xf0]  ;;  %v1167_v60 = vld [vmem:[%s1475_s11 + $0x84] sm:$0xf]  ;;  %v1086_v63 = vor.u32 %v1168_v57, %v1085_v55  ;;  %vm729_vm0 = vcmask 1041408   ;;  %p1147_p13 = scmp.ne.s32.totalorder %s1278_s17, 8 }
  0x60   : > { %v1087_v61 = vld [vmem:[%s1475_s11 + $0x88] sm:$0xf0]  ;;  %v1026_v0 = vor.u32 %v1151_v58, %v1023_v59  ;;  %v474_v12 = vld [vmem:[#allocation2] sm:$0xf] }
  0x61   : > { %679 = vmatpush.bf16.msra.mxu0 %v1038_v37  ;;  %v1090_v1 = vor.u32 %v1167_v60, %v1087_v61 }
  0x62   : > { %692 = vmatpush.bf16.msra.mxu1 %v1102_v39  ;;  %705 = vmatpush.bf16.msra.mxu2 %v1042_v40 }
  0x63   : > { %718 = vmatpush.bf16.msra.mxu3 %v1106_v44 }
  0x64   : > { %v510_v2 = vld [vmem:[#allocation1] sm:$0xff]  ;;  %v511_v3 = vld [vmem:[#allocation1 + $0x9] sm:$0xff] }
  0x65   : > { %680 = vmatpush.bf16.msra.mxu0 %v1030_v50 }
  0x66   : > { %693 = vmatpush.bf16.msra.mxu1 %v1094_v51  ;;  %706 = vmatpush.bf16.msra.mxu2 %v1034_v52 }
  0x67   : > { %719 = vmatpush.bf16.msra.mxu3 %v1098_v56 }
  0x69   : > { %681 = vmatpush.bf16.msra.mxu0 %v1022_v62 }
  0x6a   : > { %694 = vmatpush.bf16.msra.mxu1 %v1086_v63  ;;  %707 = vmatpush.bf16.msra.mxu2 %v1026_v0 }
  0x6b   : > { %720 = vmatpush.bf16.msra.mxu3 %v1090_v1 }
  0x6c   : > { %682 = vmatmul.bf16.vlgmr.msra.gmra.mxu0 %v510_v2 }
  0x6d   : > { %695 = vmatmul.bf16.vlgmr.msra.gmra.mxu1 %v511_v3  ;;  %708 = vmatmul.bf16.vlgmr.msra.gmra.mxu2 %v510_v2 }
  0x6e   : > { %721 = vmatmul.bf16.vlgmr.msra.gmra.mxu3 %v511_v3 }
  0xe9   : > { %v683_v4 = vpop.f32.mrf.mxu0 }
  0xea   : > { %v696_v5 = vpop.f32.mrf.mxu1 }
  0xeb   : > { %v697_v11 = vadd.f32 %v696_v5, %v683_v4 }
  0xf0   : > { %v709_v6 = vpop.f32.mrf.mxu2 }
  0xf1   : > { %v722_v7 = vpop.f32.mrf.mxu3  ;;  %v685_v8 = vpop.f32.mrf.mxu0 }
  0xf2   : > { %v723_v9 = vadd.f32 %v722_v7, %v709_v6  ;;  %v698_v10 = vpop.f32.mrf.mxu1 }
  0xf4   : > { %v728_v13 = vrot.slane %v723_v9, 6 }
  0xf5   : > { %737 = sbr.rel (%p1147_p13) target bundleno = 298 (0x12a), region = 74 }
  0xf6   : > { %v730_v14 = vsel %vm729_vm0, %v697_v11, %v728_v13 }
  0xf7   : > { %v732_v15 = vadd.f32 %v730_v14, %v474_v12 }
  0xf8   : > { %v711_v16 = vpop.f32.mrf.mxu2 }
  0xf9   : > { %733 = vst [vmem:[#allocation2] sm:$0xf] %v732_v15  ;;  %v724_v17 = vpop.f32.mrf.mxu3 }
  0xfa   : > { %vm748_vm1 = vcmask 1040384   ;;  %v778_v39 = vlaneseq }
  0xfc   : > { %vm780_vm2 = vcmp.lt.s32.totalorder %v778_v39, 256 }
 0x100   : > { %v738_v18 = vld [vmem:[#allocation2] sm:$0xf] }
 0x101   : > { %740 = vst [vmem:[#allocation1] ss:$4 sm:$0xff] %v738_v18  ;;  %v783_v23 = vmul.f32 %v738_v18, %v738_v18 }
 0x108   : > { %v741_v19 = vld.sshfl [vmem:[#allocation1] sm:$0xff pattern:$0x73625140]  ;;  %v742_v20 = vld.sshfl [vmem:[#allocation1 + $0x8] sm:$0xff pattern:$0x73625140] }
 0x109   : > { %754 = vst [vmem:[#allocation1] ss:$4 sm:$0xff] %v738_v18  ;;  %v745_v21 = vpack.c.bf16 %v742_v20, %v741_v19 }
 0x10b   : > { %v747_v22 = vrot.slane %v745_v21, 3 }
 0x10d   : > { %v751_v24 = vsel %vm748_vm1, %v745_v21, %v747_v22 }
 0x10e   : > { %753 = vst [vmem:[%s449_s15] sm:$0x3] %v751_v24 }
 0x110   : > { %v755_v25 = vld.sshfl [vmem:[#allocation1] sm:$0xff pattern:$0x73625140]  ;;  %v756_v26 = vld.sshfl [vmem:[#allocation1 + $0x8] sm:$0xff pattern:$0x73625140] }
 0x111   : > { %v759_v27 = vsel %vm729_vm0, %v755_v25, 0.0  ;;  %v766_v28 = vsel %vm729_vm0, %v756_v26, 0.0  ;;  %785 = vst [vmem:[#allocation1] ss:$4 sm:$0xff] %v783_v23 }
 0x112   : > { %v760_v29 = vrot.slane %v759_v27, 4  ;;  %v767_v30 = vrot.slane %v766_v28, 4 }
 0x114   : > { %v761_v31 = vadd.f32 %v760_v29, %v759_v27  ;;  %v768_v32 = vadd.f32 %v767_v30, %v766_v28 }
 0x116   : > { %v762_v33 = vrot.slane %v761_v31, 2  ;;  %v769_v34 = vrot.slane %v768_v32, 2 }
 0x118   : > { %v763_v35 = vadd.f32 %v762_v33, %v761_v31  ;;  %v770_v36 = vadd.f32 %v769_v34, %v768_v32  ;;  %v786_v37 = vld.sshfl [vmem:[#allocation1] sm:$0xff pattern:$0x73625140]  ;;  %v787_v38 = vld.sshfl [vmem:[#allocation1 + $0x8] sm:$0xff pattern:$0x73625140] }
 0x119   : > { %v790_v40 = vsel %vm729_vm0, %v786_v37, 0.0  ;;  %v797_v41 = vsel %vm729_vm0, %v787_v38, 0.0 }
 0x11a   : > { %v764_v42 = vrot.slane %v763_v35, 1  ;;  %v771_v43 = vrot.slane %v770_v36, 1  ;;  %v791_v44 = vrot.slane %v790_v40, 4  ;;  %v798_v45 = vrot.slane %v797_v41, 4 }
 0x11c   : > { %v772_v46 = vadd.f32 %v771_v43, %v770_v36  ;;  %v792_v47 = vadd.f32 %v791_v44, %v790_v40  ;;  %v799_v48 = vadd.f32 %v798_v45, %v797_v41  ;;  %v765_v49 = vadd.f32 %v764_v42, %v763_v35 }
 0x11e   : > { %v775_v50 = vrot.slane %v772_v46, 7  ;;  %v793_v51 = vrot.slane %v792_v47, 2  ;;  %v800_v52 = vrot.slane %v799_v48, 2 }
 0x120   : > { %v776_v53 = vsel %vm748_vm1, %v765_v49, %v775_v50  ;;  %v794_v54 = vadd.f32 %v793_v51, %v792_v47  ;;  %v801_v55 = vadd.f32 %v800_v52, %v799_v48 }
 0x121   : > { %782 = vst.msk [vmem:[%s458_s18] sm:$0x3] %vm780_vm2, %v776_v53 }
 0x122   : > { %v795_v56 = vrot.slane %v794_v54, 1  ;;  %v802_v57 = vrot.slane %v801_v55, 1 }
 0x124   : > { %v803_v58 = vadd.f32 %v802_v57, %v801_v55  ;;  %v796_v59 = vadd.f32 %v795_v56, %v794_v54 }
 0x126   : > { %v806_v60 = vrot.slane %v803_v58, 7 }
 0x128   : > { %v807_v61 = vsel %vm748_vm1, %v796_v59, %v806_v60 }
 0x129   : > { %809 = vst.msk [vmem:[%s467_s10] sm:$0x3] %vm780_vm2, %v807_v61 }
 0x12a PF: > { %s15_s21 = sadd.s32 1, %s1294_s21   ;;  %s1597_s15 = smov %s1274_s16 }
 0x12b   : > { %p12_p0 = scmp.ge.s32.totalorder %s15_s21, 20   ;;  %s1598_s16 = smov %s1373_s28 }
 0x12c   : > { %s1599_s17 = smov %s1286_s19  ;;  %s1600_s18 = smov %s1290_s20 }
 0x12d   : > { %s1601_s19 = smov %s1604_s22  ;;  %s1602_s20 = smov %s1608_s23 }
 0x12e   :  { %14 = sbr.rel (!%p12_p0) target bundleno = 4 (0x4), region = 136 }

// kernel: backbone_forward.137
= control target key start
LH: loop header
LB: loop body
LE: loop exit
PB: predicated region body
PF: predicated region fallthrough
CT: control target
= control target key end

     0   :  { %s1858_s15 = smov 0   ;;  %s1860_s16 = smov 0   ;;  %s2272_s0 = inlined_call_operand.vmem [shape: bf16[2,4608], index: 0, kind: input, shape index: {}]   ;;  %s2273_s1 = inlined_call_operand.vmem [shape: bf16[4608,512], index: 1, kind: input, shape index: {}]   ;;  %s2274_s2 = inlined_call_operand.vmem [shape: bf16[2,512], index: 2, kind: output, shape index: {0}]   ;;  %s2275_s3 = inlined_call_operand.vmem [shape: f32[1,1,512], index: 3, kind: output, shape index: {1}]   ;;  %s2276_s4 = inlined_call_operand.vmem [shape: f32[1,1,512], index: 4, kind: output, shape index: {2}]  }
   0x1   :  { %s1862_s17 = smov 0   ;;  %s1864_s18 = smov 0  }
   0x2   :  { %s1866_s19 = smov 0   ;;  %s1868_s20 = smov 0  }
   0x3   :  { %s1870_s21 = smov 0  }
   0x4 LB: > { %s27_s22 = sadd.s32 1, %s1822_s19  ;;  %s30_s23 = sadd.s32 1, %s1826_s20  ;;  %s1830_s21 = sphi %s1870_s21, %s15_s21   ;;  %s1826_s20 = sphi %s1868_s20, %s2282_s20   ;;  %s1822_s19 = sphi %s1866_s19, %s2281_s19   ;;  %s1818_s18 = sphi %s1864_s18, %s2280_s18   ;;  %s1814_s17 = sphi %s1862_s17, %s2279_s17   ;;  %s1810_s16 = sphi %s1860_s16, %s2278_s16   ;;  %s1806_s15 = sphi %s1858_s15, %s2277_s15  }
   0x5   : > { %p28_p0 = scmp.ge.s32.totalorder %s27_s22, 9  ;;  %p78_p1 = scmp.ne.s32.totalorder %s1810_s16, %s1806_s15 }
   0x6   : > { %p79_p2 = scmp.eq.s32.totalorder %s1830_s21, 0  ;;  %s71_s27 = sadd.s32 1, %s1810_s16 }
   0x7   : > { %s2284_s22 = smov (%p28_p0, %s27_s22), 0  ;;  %s2286_s23 = smov (!%p28_p0, %s30_s23), %s1826_s20 }
   0x8   : > { %p80_p3 = por %p79_p2, %p78_p1  ;;  %p32_p4 = scmp.ge.s32.totalorder %s2286_s23, 2 }
   0x9   : > { %s66_s24 = ssub.s32 %s1822_s19, %s2284_s22  ;;  %p1382_p6 = scmp.ge.s32.totalorder %s1830_s21, 18 }
   0xa   : > { %s2288_s23 = smov (%p32_p4, %s2286_s23), 0 }
   0xb   : > { %s67_s25 = ssub.s32 %s1826_s20, %s2288_s23  ;;  %188 = sbr.rel (%p1382_p6) target bundleno = 87 (0x57), region = 16 }
   0xc   : > { %s68_s26 = sor.u32 %s67_s25, %s66_s24 }
   0xd   : > { %p69_p5 = scmp.eq.s32.totalorder %s68_s26, 0 }
   0xf   : > { %s1909_s28 = scalar_select %p69_p5, %s1810_s16, %s71_s27  }
  0x10   : > { %203 = sbr.rel (!%p80_p3) target bundleno = 87 (0x57), region = 24  ;;  %s205_s29 = sand.u32 (%p80_p3), 1, %s1810_s16  }
  0x11   : > { %s1385_s30 = sshll.u32 (%p80_p3), %s1826_s20, 1  ;;  %s1383_s5 = sshll.u32 (%p80_p3), %s205_s29, 9 }
  0x12   : > { %s1654_s6 = sshll.u32 (%p80_p3), %s1822_s19, 8  ;;  %s1923_s12 = scalar_lea.vmem (%p80_p3), [#allocation3], %s1383_s5 }
  0x13   : > { %s211_s7 = sadd.s32 (%p80_p3), %s1654_s6, %s1385_s30 }
  0x14   : > { %s1387_s8 = sshll.u32 (%p80_p3), %s211_s7, 2 }
  0x15   : > { %s1918_s11 = scalar_lea.vmem %s2273_s1, %s1387_s8 }
  0x16   : > { %v368_v0 = vld [vmem:[%s1918_s11] sm:$0xff]  ;;  %v370_v1 = vld [vmem:[%s1918_s11 + $0x10] sm:$0xff] }
  0x17   : > { %v372_v2 = vld [vmem:[%s1918_s11 + $0x20] sm:$0xff]  ;;  %369 = vst [vmem:[%s1923_s12] sm:$0xff] %v368_v0  ;;  %v374_v3 = vld [vmem:[%s1918_s11 + $0x30] sm:$0xff] }
  0x18   : > { %371 = vst [vmem:[%s1923_s12 + $0x8] sm:$0xff] %v370_v1  ;;  %v376_v4 = vld [vmem:[%s1918_s11 + $0x40] sm:$0xff]  ;;  %v378_v5 = vld [vmem:[%s1918_s11 + $0x50] sm:$0xff] }
  0x19   : > { %373 = vst [vmem:[%s1923_s12 + $0x10] sm:$0xff] %v372_v2  ;;  %v380_v6 = vld [vmem:[%s1918_s11 + $0x60] sm:$0xff]  ;;  %v382_v7 = vld [vmem:[%s1918_s11 + $0x70] sm:$0xff] }
  0x1a   : > { %375 = vst [vmem:[%s1923_s12 + $0x18] sm:$0xff] %v374_v3  ;;  %v384_v8 = vld [vmem:[%s1918_s11 + $0x80] sm:$0xff]  ;;  %v386_v9 = vld [vmem:[%s1918_s11 + $0x90] sm:$0xff] }
  0x1b   : > { %377 = vst [vmem:[%s1923_s12 + $0x20] sm:$0xff] %v376_v4  ;;  %v388_v10 = vld [vmem:[%s1918_s11 + $0xa0] sm:$0xff]  ;;  %v390_v11 = vld [vmem:[%s1918_s11 + $0xb0] sm:$0xff] }
  0x1c   : > { %379 = vst [vmem:[%s1923_s12 + $0x28] sm:$0xff] %v378_v5  ;;  %v392_v12 = vld [vmem:[%s1918_s11 + $0xc0] sm:$0xff]  ;;  %v394_v13 = vld [vmem:[%s1918_s11 + $0xd0] sm:$0xff] }
  0x1d   : > { %381 = vst [vmem:[%s1923_s12 + $0x30] sm:$0xff] %v380_v6  ;;  %v396_v14 = vld [vmem:[%s1918_s11 + $0xe0] sm:$0xff]  ;;  %v398_v15 = vld [vmem:[%s1918_s11 + $0xf0] sm:$0xff] }
  0x1e   : > { %383 = vst [vmem:[%s1923_s12 + $0x38] sm:$0xff] %v382_v7  ;;  %v400_v16 = vld [vmem:[%s1918_s11 + $0x100] sm:$0xff]  ;;  %v402_v17 = vld [vmem:[%s1918_s11 + $0x110] sm:$0xff] }
  0x1f   : > { %385 = vst [vmem:[%s1923_s12 + $0x40] sm:$0xff] %v384_v8  ;;  %v404_v18 = vld [vmem:[%s1918_s11 + $0x120] sm:$0xff]  ;;  %v406_v19 = vld [vmem:[%s1918_s11 + $0x130] sm:$0xff] }
  0x20   : > { %387 = vst [vmem:[%s1923_s12 + $0x48] sm:$0xff] %v386_v9  ;;  %v408_v20 = vld [vmem:[%s1918_s11 + $0x140] sm:$0xff]  ;;  %v410_v21 = vld [vmem:[%s1918_s11 + $0x150] sm:$0xff] }
  0x21   : > { %389 = vst [vmem:[%s1923_s12 + $0x50] sm:$0xff] %v388_v10  ;;  %v412_v22 = vld [vmem:[%s1918_s11 + $0x160] sm:$0xff]  ;;  %v414_v23 = vld [vmem:[%s1918_s11 + $0x170] sm:$0xff] }
  0x22   : > { %391 = vst [vmem:[%s1923_s12 + $0x58] sm:$0xff] %v390_v11  ;;  %v416_v24 = vld [vmem:[%s1918_s11 + $0x180] sm:$0xff]  ;;  %v418_v25 = vld [vmem:[%s1918_s11 + $0x190] sm:$0xff] }
  0x23   : > { %393 = vst [vmem:[%s1923_s12 + $0x60] sm:$0xff] %v392_v12  ;;  %v420_v26 = vld [vmem:[%s1918_s11 + $0x1a0] sm:$0xff]  ;;  %v422_v27 = vld [vmem:[%s1918_s11 + $0x1b0] sm:$0xff] }
  0x24   : > { %395 = vst [vmem:[%s1923_s12 + $0x68] sm:$0xff] %v394_v13  ;;  %v424_v28 = vld [vmem:[%s1918_s11 + $0x1c0] sm:$0xff]  ;;  %v426_v29 = vld [vmem:[%s1918_s11 + $0x1d0] sm:$0xff] }
  0x25   : > { %397 = vst [vmem:[%s1923_s12 + $0x70] sm:$0xff] %v396_v14  ;;  %v428_v30 = vld [vmem:[%s1918_s11 + $0x1e0] sm:$0xff]  ;;  %v430_v31 = vld [vmem:[%s1918_s11 + $0x1f0] sm:$0xff] }
  0x26   : > { %399 = vst [vmem:[%s1923_s12 + $0x78] sm:$0xff] %v398_v15  ;;  %v432_v32 = vld [vmem:[%s1918_s11 + $0x200] sm:$0xff]  ;;  %v434_v33 = vld [vmem:[%s1918_s11 + $0x210] sm:$0xff] }
  0x27   : > { %401 = vst [vmem:[%s1923_s12 + $0x80] sm:$0xff] %v400_v16  ;;  %v436_v34 = vld [vmem:[%s1918_s11 + $0x220] sm:$0xff]  ;;  %v438_v35 = vld [vmem:[%s1918_s11 + $0x230] sm:$0xff] }
  0x28   : > { %403 = vst [vmem:[%s1923_s12 + $0x88] sm:$0xff] %v402_v17  ;;  %v440_v36 = vld [vmem:[%s1918_s11 + $0x240] sm:$0xff]  ;;  %v442_v37 = vld [vmem:[%s1918_s11 + $0x250] sm:$0xff] }
  0x29   : > { %405 = vst [vmem:[%s1923_s12 + $0x90] sm:$0xff] %v404_v18  ;;  %v444_v38 = vld [vmem:[%s1918_s11 + $0x260] sm:$0xff]  ;;  %v446_v39 = vld [vmem:[%s1918_s11 + $0x270] sm:$0xff] }
  0x2a   : > { %407 = vst [vmem:[%s1923_s12 + $0x98] sm:$0xff] %v406_v19  ;;  %v448_v40 = vld [vmem:[%s1918_s11 + $0x280] sm:$0xff]  ;;  %v450_v41 = vld [vmem:[%s1918_s11 + $0x290] sm:$0xff] }
  0x2b   : > { %409 = vst [vmem:[%s1923_s12 + $0xa0] sm:$0xff] %v408_v20  ;;  %v452_v42 = vld [vmem:[%s1918_s11 + $0x2a0] sm:$0xff]  ;;  %v454_v43 = vld [vmem:[%s1918_s11 + $0x2b0] sm:$0xff] }
  0x2c   : > { %411 = vst [vmem:[%s1923_s12 + $0xa8] sm:$0xff] %v410_v21  ;;  %v456_v44 = vld [vmem:[%s1918_s11 + $0x2c0] sm:$0xff]  ;;  %v458_v45 = vld [vmem:[%s1918_s11 + $0x2d0] sm:$0xff] }
  0x2d   : > { %413 = vst [vmem:[%s1923_s12 + $0xb0] sm:$0xff] %v412_v22  ;;  %v460_v46 = vld [vmem:[%s1918_s11 + $0x2e0] sm:$0xff]  ;;  %v462_v47 = vld [vmem:[%s1918_s11 + $0x2f0] sm:$0xff] }
  0x2e   : > { %415 = vst [vmem:[%s1923_s12 + $0xb8] sm:$0xff] %v414_v23  ;;  %v464_v48 = vld [vmem:[%s1918_s11 + $0x300] sm:$0xff]  ;;  %v466_v49 = vld [vmem:[%s1918_s11 + $0x310] sm:$0xff] }
  0x2f   : > { %417 = vst [vmem:[%s1923_s12 + $0xc0] sm:$0xff] %v416_v24  ;;  %v468_v50 = vld [vmem:[%s1918_s11 + $0x320] sm:$0xff]  ;;  %v470_v51 = vld [vmem:[%s1918_s11 + $0x330] sm:$0xff] }
  0x30   : > { %419 = vst [vmem:[%s1923_s12 + $0xc8] sm:$0xff] %v418_v25  ;;  %v472_v52 = vld [vmem:[%s1918_s11 + $0x340] sm:$0xff]  ;;  %v474_v53 = vld [vmem:[%s1918_s11 + $0x350] sm:$0xff] }
  0x31   : > { %421 = vst [vmem:[%s1923_s12 + $0xd0] sm:$0xff] %v420_v26  ;;  %v476_v54 = vld [vmem:[%s1918_s11 + $0x360] sm:$0xff]  ;;  %v478_v55 = vld [vmem:[%s1918_s11 + $0x370] sm:$0xff] }
  0x32   : > { %423 = vst [vmem:[%s1923_s12 + $0xd8] sm:$0xff] %v422_v27  ;;  %v480_v56 = vld [vmem:[%s1918_s11 + $0x380] sm:$0xff]  ;;  %v482_v57 = vld [vmem:[%s1918_s11 + $0x390] sm:$0xff] }
  0x33   : > { %425 = vst [vmem:[%s1923_s12 + $0xe0] sm:$0xff] %v424_v28  ;;  %v484_v58 = vld [vmem:[%s1918_s11 + $0x3a0] sm:$0xff]  ;;  %v486_v59 = vld [vmem:[%s1918_s11 + $0x3b0] sm:$0xff] }
  0x34   : > { %427 = vst [vmem:[%s1923_s12 + $0xe8] sm:$0xff] %v426_v29  ;;  %v488_v60 = vld [vmem:[%s1918_s11 + $0x3c0] sm:$0xff]  ;;  %v490_v61 = vld [vmem:[%s1918_s11 + $0x3d0] sm:$0xff] }
  0x35   : > { %429 = vst [vmem:[%s1923_s12 + $0xf0] sm:$0xff] %v428_v30  ;;  %v492_v62 = vld [vmem:[%s1918_s11 + $0x3e0] sm:$0xff]  ;;  %v494_v63 = vld [vmem:[%s1918_s11 + $0x3f0] sm:$0xff] }
  0x36   : > { %431 = vst [vmem:[%s1923_s12 + $0xf8] sm:$0xff] %v430_v31 }
  0x37   : > { %433 = vst [vmem:[%s1923_s12 + $0x100] sm:$0xff] %v432_v32 }
  0x38   : > { %435 = vst [vmem:[%s1923_s12 + $0x108] sm:$0xff] %v434_v33 }
  0x39   : > { %437 = vst [vmem:[%s1923_s12 + $0x110] sm:$0xff] %v436_v34 }
  0x3a   : > { %439 = vst [vmem:[%s1923_s12 + $0x118] sm:$0xff] %v438_v35 }
  0x3b   : > { %441 = vst [vmem:[%s1923_s12 + $0x120] sm:$0xff] %v440_v36 }
  0x3c   : > { %443 = vst [vmem:[%s1923_s12 + $0x128] sm:$0xff] %v442_v37 }
  0x3d   : > { %445 = vst [vmem:[%s1923_s12 + $0x130] sm:$0xff] %v444_v38 }
  0x3e   : > { %447 = vst [vmem:[%s1923_s12 + $0x138] sm:$0xff] %v446_v39 }
  0x3f   : > { %449 = vst [vmem:[%s1923_s12 + $0x140] sm:$0xff] %v448_v40 }
  0x40   : > { %451 = vst [vmem:[%s1923_s12 + $0x148] sm:$0xff] %v450_v41 }
  0x41   : > { %453 = vst [vmem:[%s1923_s12 + $0x150] sm:$0xff] %v452_v42 }
  0x42   : > { %455 = vst [vmem:[%s1923_s12 + $0x158] sm:$0xff] %v454_v43 }
  0x43   : > { %457 = vst [vmem:[%s1923_s12 + $0x160] sm:$0xff] %v456_v44 }
  0x44   : > { %459 = vst [vmem:[%s1923_s12 + $0x168] sm:$0xff] %v458_v45 }
  0x45   : > { %461 = vst [vmem:[%s1923_s12 + $0x170] sm:$0xff] %v460_v46 }
  0x46   : > { %463 = vst [vmem:[%s1923_s12 + $0x178] sm:$0xff] %v462_v47 }
  0x47   : > { %465 = vst [vmem:[%s1923_s12 + $0x180] sm:$0xff] %v464_v48 }
  0x48   : > { %467 = vst [vmem:[%s1923_s12 + $0x188] sm:$0xff] %v466_v49 }
  0x49   : > { %469 = vst [vmem:[%s1923_s12 + $0x190] sm:$0xff] %v468_v50 }
  0x4a   : > { %471 = vst [vmem:[%s1923_s12 + $0x198] sm:$0xff] %v470_v51 }
  0x4b   : > { %473 = vst [vmem:[%s1923_s12 + $0x1a0] sm:$0xff] %v472_v52 }
  0x4c   : > { %475 = vst [vmem:[%s1923_s12 + $0x1a8] sm:$0xff] %v474_v53 }
  0x4d   : > { %477 = vst [vmem:[%s1923_s12 + $0x1b0] sm:$0xff] %v476_v54 }
  0x4e   : > { %479 = vst [vmem:[%s1923_s12 + $0x1b8] sm:$0xff] %v478_v55 }
  0x4f   : > { %481 = vst [vmem:[%s1923_s12 + $0x1c0] sm:$0xff] %v480_v56 }
  0x50   : > { %483 = vst [vmem:[%s1923_s12 + $0x1c8] sm:$0xff] %v482_v57 }
  0x51   : > { %485 = vst [vmem:[%s1923_s12 + $0x1d0] sm:$0xff] %v484_v58 }
  0x52   : > { %487 = vst [vmem:[%s1923_s12 + $0x1d8] sm:$0xff] %v486_v59 }
  0x53   : > { %489 = vst [vmem:[%s1923_s12 + $0x1e0] sm:$0xff] %v488_v60 }
  0x54   : > { %491 = vst [vmem:[%s1923_s12 + $0x1e8] sm:$0xff] %v490_v61 }
  0x55   : > { %493 = vst [vmem:[%s1923_s12 + $0x1f0] sm:$0xff] %v492_v62 }
  0x56   : > { %495 = vst [vmem:[%s1923_s12 + $0x1f8] sm:$0xff] %v494_v63 }
  0x57 PF: > { %p1388_p7 = scmp.ge.s32.totalorder %s1830_s21, 1  ;;  %p500_p8 = scmp.lt.s32.totalorder %s1830_s21, 19 }
  0x59   : > { %p501_p9 = pnand %p1388_p7, %p500_p8 }
  0x5a   : > { %s507_s13 = sand.u32 (!%p501_p9), 1, %s1806_s15   ;;  %s1390_s14 = sshll.u32 (!%p501_p9), %s1814_s17, 2 }
  0x5b   : > { %504 = sbr.rel (%p501_p9) target bundleno = 364 (0x16c), region = 62  ;;  %s1389_s24 = sshll.u32 (!%p501_p9), %s507_s13, 9 }
  0x5c   : > { %p562_p10 = scmp.lt.s32.totalorder (!%p501_p9), %s1390_s14, 35  ;;  %s1391_s25 = sshll.u32 (!%p501_p9), %s1818_s18, 1 }
  0x5d   : > { %p573_p11 = scmp.lt.s32.totalorder (!%p501_p9), %s1391_s25, 3  ;;  %s2075_s11 = scalar_lea.vmem (!%p501_p9), [#allocation3], %s1389_s24 }
  0x5e   : > { %p1394_p12 = scmp.ne.s32.totalorder (!%p501_p9), %s1814_s17, 0 }
  0x60   : > { %s2290_s14 = smov (!%p562_p10, %s1390_s14), 35  ;;  %s2292_s25 = smov (!%p573_p11, %s1391_s25), 3 }
  0x61   : > { %s566_s29 = scalar_lea.vmem %s2272_s0, %s2290_s14  ;;  %s577_s15 = scalar_lea.vmem %s2274_s2, %s2292_s25 }
  0x62   : > { %s586_s18 = scalar_lea.vmem %s2275_s3, %s2292_s25  ;;  %s595_s10 = scalar_lea.vmem %s2276_s4, %s2292_s25 }
  0x63   : > { %600 = sbr.rel (%p1394_p12) target bundleno = 106 (0x6a), region = 70 }
  0x68   : > { %v1832_v0 = vmov 0.0  }
  0x69   : > { %601 = vst [vmem:[#allocation2] sm:$0xf] %v1832_v0 }
  0x6a PF: > { %v1453_v1 = vld [vmem:[%s2075_s11 + $0x70] sm:$0xf]  ;;  %v1670_v2 = vld [vmem:[%s2075_s11 + $0x74] sm:$0xf0]  ;;  %v1445_v12 = vld [vmem:[%s2075_s11 + $0x60] sm:$0xf] }
  0x6b   : > { %v1517_v3 = vld [vmem:[%s2075_s11 + $0xf0] sm:$0xf]  ;;  %v1454_v4 = vor.u32 %v1670_v2, %v1453_v1  ;;  %v1686_v5 = vld [vmem:[%s2075_s11 + $0xf4] sm:$0xf0]  ;;  %v1668_v14 = vld [vmem:[%s2075_s11 + $0x64] sm:$0xf0] }
  0x6c   : > { %v1581_v6 = vld [vmem:[%s2075_s11 + $0x170] sm:$0xf]  ;;  %v1702_v7 = vld [vmem:[%s2075_s11 + $0x174] sm:$0xf0]  ;;  %v1518_v8 = vor.u32 %v1686_v5, %v1517_v3  ;;  %v1509_v15 = vld [vmem:[%s2075_s11 + $0xe0] sm:$0xf]  ;;  %v1446_v17 = vor.u32 %v1668_v14, %v1445_v12 }
  0x6d   : > { %v1582_v9 = vor.u32 %v1702_v7, %v1581_v6  ;;  %v1645_v10 = vld [vmem:[%s2075_s11 + $0x1f0] sm:$0xf]  ;;  %v1718_v11 = vld [vmem:[%s2075_s11 + $0x1f4] sm:$0xf0]  ;;  %998 = vmatpush.bf16.msra.mxu0 %v1454_v4  ;;  %v1684_v16 = vld [vmem:[%s2075_s11 + $0xe4] sm:$0xf0] }
  0x6e   : > { %v1646_v13 = vor.u32 %v1718_v11, %v1645_v10  ;;  %1011 = vmatpush.bf16.msra.mxu1 %v1518_v8  ;;  %v1510_v18 = vor.u32 %v1684_v16, %v1509_v15  ;;  %v1573_v19 = vld [vmem:[%s2075_s11 + $0x160] sm:$0xf]  ;;  %v1700_v20 = vld [vmem:[%s2075_s11 + $0x164] sm:$0xf0]  ;;  %v1437_v24 = vld [vmem:[%s2075_s11 + $0x50] sm:$0xf] }
  0x6f   : > { %1024 = vmatpush.bf16.msra.mxu2 %v1582_v9  ;;  %v1637_v21 = vld [vmem:[%s2075_s11 + $0x1e0] sm:$0xf]  ;;  %v1574_v22 = vor.u32 %v1700_v20, %v1573_v19  ;;  %v1716_v23 = vld [vmem:[%s2075_s11 + $0x1e4] sm:$0xf0]  ;;  %v1666_v25 = vld [vmem:[%s2075_s11 + $0x54] sm:$0xf0] }
  0x70   : > { %1037 = vmatpush.bf16.msra.mxu3 %v1646_v13  ;;  %v1638_v26 = vor.u32 %v1716_v23, %v1637_v21  ;;  %v1501_v27 = vld [vmem:[%s2075_s11 + $0xd0] sm:$0xf]  ;;  %v1682_v28 = vld [vmem:[%s2075_s11 + $0xd4] sm:$0xf0]  ;;  %v1438_v30 = vor.u32 %v1666_v25, %v1437_v24  ;;  %v1429_v36 = vld [vmem:[%s2075_s11 + $0x40] sm:$0xf] }
  0x71   : > { %v1565_v29 = vld [vmem:[%s2075_s11 + $0x150] sm:$0xf]  ;;  %999 = vmatpush.bf16.msra.mxu0 %v1446_v17  ;;  %v1698_v31 = vld [vmem:[%s2075_s11 + $0x154] sm:$0xf0]  ;;  %v1502_v34 = vor.u32 %v1682_v28, %v1501_v27  ;;  %v1664_v37 = vld [vmem:[%s2075_s11 + $0x44] sm:$0xf0] }
  0x72   : > { %v1629_v32 = vld [vmem:[%s2075_s11 + $0x1d0] sm:$0xf]  ;;  %v1714_v33 = vld [vmem:[%s2075_s11 + $0x1d4] sm:$0xf0]  ;;  %1012 = vmatpush.bf16.msra.mxu1 %v1510_v18  ;;  %v1566_v35 = vor.u32 %v1698_v31, %v1565_v29  ;;  %v1493_v38 = vld [vmem:[%s2075_s11 + $0xc0] sm:$0xf]  ;;  %v1430_v45 = vor.u32 %v1664_v37, %v1429_v36 }
  0x73   : > { %1025 = vmatpush.bf16.msra.mxu2 %v1574_v22  ;;  %v1630_v39 = vor.u32 %v1714_v33, %v1629_v32  ;;  %v1680_v40 = vld [vmem:[%s2075_s11 + $0xc4] sm:$0xf0]  ;;  %v1557_v41 = vld [vmem:[%s2075_s11 + $0x140] sm:$0xf]  ;;  %v1421_v48 = vld [vmem:[%s2075_s11 + $0x30] sm:$0xf] }
  0x74   : > { %1038 = vmatpush.bf16.msra.mxu3 %v1638_v26  ;;  %v1696_v42 = vld [vmem:[%s2075_s11 + $0x144] sm:$0xf0]  ;;  %v1621_v43 = vld [vmem:[%s2075_s11 + $0x1c0] sm:$0xf]  ;;  %v1494_v46 = vor.u32 %v1680_v40, %v1493_v38  ;;  %v1662_v49 = vld [vmem:[%s2075_s11 + $0x34] sm:$0xf0] }
  0x75   : > { %v1712_v44 = vld [vmem:[%s2075_s11 + $0x1c4] sm:$0xf0]  ;;  %1000 = vmatpush.bf16.msra.mxu0 %v1438_v30  ;;  %v1558_v47 = vor.u32 %v1696_v42, %v1557_v41  ;;  %v1485_v50 = vld [vmem:[%s2075_s11 + $0xb0] sm:$0xf]  ;;  %v1678_v52 = vld [vmem:[%s2075_s11 + $0xb4] sm:$0xf0]  ;;  %v1422_v57 = vor.u32 %v1662_v49, %v1421_v48 }
  0x76   : > { %1013 = vmatpush.bf16.msra.mxu1 %v1502_v34  ;;  %v1622_v51 = vor.u32 %v1712_v44, %v1621_v43  ;;  %v1549_v53 = vld [vmem:[%s2075_s11 + $0x130] sm:$0xf]  ;;  %v1694_v54 = vld [vmem:[%s2075_s11 + $0x134] sm:$0xf0]  ;;  %v1486_v58 = vor.u32 %v1678_v52, %v1485_v50  ;;  %v1413_v60 = vld [vmem:[%s2075_s11 + $0x20] sm:$0xf] }
  0x77   : > { %1026 = vmatpush.bf16.msra.mxu2 %v1566_v35  ;;  %v1613_v55 = vld [vmem:[%s2075_s11 + $0x1b0] sm:$0xf]  ;;  %v1710_v56 = vld [vmem:[%s2075_s11 + $0x1b4] sm:$0xf0]  ;;  %v1550_v59 = vor.u32 %v1694_v54, %v1549_v53  ;;  %v1660_v61 = vld [vmem:[%s2075_s11 + $0x24] sm:$0xf0] }
  0x78   : > { %1039 = vmatpush.bf16.msra.mxu3 %v1630_v39  ;;  %v1477_v62 = vld [vmem:[%s2075_s11 + $0xa0] sm:$0xf]  ;;  %v1614_v63 = vor.u32 %v1710_v56, %v1613_v55  ;;  %v1676_v0 = vld [vmem:[%s2075_s11 + $0xa4] sm:$0xf0]  ;;  %v1414_v5 = vor.u32 %v1660_v61, %v1413_v60  ;;  %v1405_v8 = vld [vmem:[%s2075_s11 + $0x10] sm:$0xf] }
  0x79   : > { %1001 = vmatpush.bf16.msra.mxu0 %v1430_v45  ;;  %v1541_v1 = vld [vmem:[%s2075_s11 + $0x120] sm:$0xf]  ;;  %v1692_v2 = vld [vmem:[%s2075_s11 + $0x124] sm:$0xf0]  ;;  %v1478_v6 = vor.u32 %v1676_v0, %v1477_v62  ;;  %v1658_v9 = vld [vmem:[%s2075_s11 + $0x14] sm:$0xf0] }
  0x7a   : > { %1014 = vmatpush.bf16.msra.mxu1 %v1494_v46  ;;  %v1605_v3 = vld [vmem:[%s2075_s11 + $0x1a0] sm:$0xf]  ;;  %v1708_v4 = vld [vmem:[%s2075_s11 + $0x1a4] sm:$0xf0]  ;;  %v1542_v7 = vor.u32 %v1692_v2, %v1541_v1  ;;  %v1469_v10 = vld [vmem:[%s2075_s11 + $0x90] sm:$0xf]  ;;  %v1406_v18 = vor.u32 %v1658_v9, %v1405_v8 }
  0x7b   : > { %1027 = vmatpush.bf16.msra.mxu2 %v1558_v47  ;;  %v1606_v11 = vor.u32 %v1708_v4, %v1605_v3  ;;  %v1674_v12 = vld [vmem:[%s2075_s11 + $0x94] sm:$0xf0]  ;;  %v1533_v13 = vld [vmem:[%s2075_s11 + $0x110] sm:$0xf]  ;;  %v1397_v17 = vld [vmem:[%s2075_s11] sm:$0xf] }
  0x7c   : > { %1040 = vmatpush.bf16.msra.mxu3 %v1622_v51  ;;  %v1690_v14 = vld [vmem:[%s2075_s11 + $0x114] sm:$0xf0]  ;;  %v1597_v15 = vld [vmem:[%s2075_s11 + $0x190] sm:$0xf]  ;;  %v1656_v19 = vld [vmem:[%s2075_s11 + $0x4] sm:$0xf0]  ;;  %v1470_v22 = vor.u32 %v1674_v12, %v1469_v10 }
  0x7d   : > { %1002 = vmatpush.bf16.msra.mxu0 %v1422_v57  ;;  %v1706_v16 = vld [vmem:[%s2075_s11 + $0x194] sm:$0xf0]  ;;  %v1461_v20 = vld [vmem:[%s2075_s11 + $0x80] sm:$0xf]  ;;  %v1672_v21 = vld [vmem:[%s2075_s11 + $0x84] sm:$0xf0]  ;;  %v1534_v23 = vor.u32 %v1690_v14, %v1533_v13  ;;  %v1398_v34 = vor.u32 %v1656_v19, %v1397_v17 }
  0x7e   : > { %1015 = vmatpush.bf16.msra.mxu1 %v1486_v58  ;;  %v1525_v24 = vld [vmem:[%s2075_s11 + $0x100] sm:$0xf]  ;;  %v1688_v25 = vld [vmem:[%s2075_s11 + $0x104] sm:$0xf0]  ;;  %v1598_v27 = vor.u32 %v1706_v16, %v1597_v15  ;;  %v1669_v29 = vld [vmem:[%s2075_s11 + $0x74] sm:$0xf]  ;;  %v1462_v37 = vor.u32 %v1672_v21, %v1461_v20 }
  0x7f   : > { %1028 = vmatpush.bf16.msra.mxu2 %v1550_v59  ;;  %v1589_v26 = vld [vmem:[%s2075_s11 + $0x180] sm:$0xf]  ;;  %v1704_v28 = vld [vmem:[%s2075_s11 + $0x184] sm:$0xf0]  ;;  %v1455_v30 = vld [vmem:[%s2075_s11 + $0x78] sm:$0xf0]  ;;  %v1526_v38 = vor.u32 %v1688_v25, %v1525_v24 }
  0x80   : > { %1041 = vmatpush.bf16.msra.mxu3 %v1614_v63  ;;  %v1685_v31 = vld [vmem:[%s2075_s11 + $0xf4] sm:$0xf]  ;;  %v1519_v32 = vld [vmem:[%s2075_s11 + $0xf8] sm:$0xf0]  ;;  %v1590_v41 = vor.u32 %v1704_v28, %v1589_v26  ;;  %v1458_v42 = vor.u32 %v1669_v29, %v1455_v30  ;;  %v1667_v45 = vld [vmem:[%s2075_s11 + $0x64] sm:$0xf] }
  0x81   : > { %1003 = vmatpush.bf16.msra.mxu0 %v1414_v5  ;;  %v603_v33 = vld [vmem:[%s566_s29] sm:$0xf]  ;;  %v1583_v36 = vld [vmem:[%s2075_s11 + $0x178] sm:$0xf0]  ;;  %v1522_v43 = vor.u32 %v1685_v31, %v1519_v32  ;;  %v1447_v46 = vld [vmem:[%s2075_s11 + $0x68] sm:$0xf0] }
  0x82   : > { %1016 = vmatpush.bf16.msra.mxu1 %v1478_v6  ;;  %v1701_v35 = vld [vmem:[%s2075_s11 + $0x174] sm:$0xf]  ;;  %669 = vst [vmem:[#allocation1] ss:$9 sm:$0xff] %v603_v33  ;;  %v1647_v40 = vld [vmem:[%s2075_s11 + $0x1f8] sm:$0xf0]  ;;  %v1450_v55 = vor.u32 %v1667_v45, %v1447_v46 }
  0x83   : > { %1029 = vmatpush.bf16.msra.mxu2 %v1542_v7  ;;  %v1717_v39 = vld [vmem:[%s2075_s11 + $0x1f4] sm:$0xf]  ;;  %v1586_v44 = vor.u32 %v1701_v35, %v1583_v36  ;;  %v1683_v47 = vld [vmem:[%s2075_s11 + $0xe4] sm:$0xf]  ;;  %v1511_v49 = vld [vmem:[%s2075_s11 + $0xe8] sm:$0xf0] }
  0x84   : > { %1042 = vmatpush.bf16.msra.mxu3 %v1606_v11  ;;  %v1650_v48 = vor.u32 %v1717_v39, %v1647_v40  ;;  %v1699_v50 = vld [vmem:[%s2075_s11 + $0x164] sm:$0xf]  ;;  %v1575_v51 = vld [vmem:[%s2075_s11 + $0x168] sm:$0xf0]  ;;  %v1665_v54 = vld [vmem:[%s2075_s11 + $0x54] sm:$0xf]  ;;  %v1514_v59 = vor.u32 %v1683_v47, %v1511_v49 }
  0x85   : > { %1004 = vmatpush.bf16.msra.mxu0 %v1406_v18  ;;  %v1715_v52 = vld [vmem:[%s2075_s11 + $0x1e4] sm:$0xf]  ;;  %v1639_v53 = vld [vmem:[%s2075_s11 + $0x1e8] sm:$0xf0]  ;;  %v1439_v56 = vld [vmem:[%s2075_s11 + $0x58] sm:$0xf0]  ;;  %v1578_v60 = vor.u32 %v1699_v50, %v1575_v51 }
  0x86   : > { %1017 = vmatpush.bf16.msra.mxu1 %v1470_v22  ;;  %v1681_v57 = vld [vmem:[%s2075_s11 + $0xd4] sm:$0xf]  ;;  %v1503_v58 = vld [vmem:[%s2075_s11 + $0xd8] sm:$0xf0]  ;;  %v1642_v0 = vor.u32 %v1715_v52, %v1639_v53  ;;  %v1442_v6 = vor.u32 %v1665_v54, %v1439_v56  ;;  %v1663_v9 = vld [vmem:[%s2075_s11 + $0x44] sm:$0xf] }
  0x87   : > { %1030 = vmatpush.bf16.msra.mxu2 %v1534_v23  ;;  %v1697_v1 = vld [vmem:[%s2075_s11 + $0x154] sm:$0xf]  ;;  %v1567_v2 = vld [vmem:[%s2075_s11 + $0x158] sm:$0xf0]  ;;  %v1506_v7 = vor.u32 %v1681_v57, %v1503_v58  ;;  %v1431_v10 = vld [vmem:[%s2075_s11 + $0x48] sm:$0xf0] }
  0x88   : > { %1043 = vmatpush.bf16.msra.mxu3 %v1598_v27  ;;  %v1713_v4 = vld [vmem:[%s2075_s11 + $0x1d4] sm:$0xf]  ;;  %v1631_v5 = vld [vmem:[%s2075_s11 + $0x1d8] sm:$0xf0]  ;;  %v1570_v8 = vor.u32 %v1697_v1, %v1567_v2  ;;  %v1679_v11 = vld [vmem:[%s2075_s11 + $0xc4] sm:$0xf]  ;;  %v1434_v18 = vor.u32 %v1663_v9, %v1431_v10 }
  0x89   : > { %1005 = vmatpush.bf16.msra.mxu0 %v1398_v34  ;;  %v2167_v61 = vld [vmem:[#allocation1 + $0x12] sm:$0xff]  ;;  %v2169_v62 = vld [vmem:[#allocation1 + $0x1b] sm:$0xff]  ;;  %v2176_v3 = vld [vmem:[#allocation1 + $0x9] sm:$0xff]  ;;  %v1634_v12 = vor.u32 %v1713_v4, %v1631_v5  ;;  %vm1105_vm0 = vcmask 1041408   ;;  %p1651_p13 = scmp.ne.s32.totalorder %s1814_s17, 8 }
  0x8a   : > { %1018 = vmatpush.bf16.msra.mxu1 %v1462_v37  ;;  %v2171_v63 = vld [vmem:[#allocation1] sm:$0xff]  ;;  %v1495_v13 = vld [vmem:[%s2075_s11 + $0xc8] sm:$0xf0]  ;;  %v1695_v14 = vld [vmem:[%s2075_s11 + $0x144] sm:$0xf] }
  0x8b   : > { %1031 = vmatpush.bf16.msra.mxu2 %v1526_v38  ;;  %v1559_v15 = vld [vmem:[%s2075_s11 + $0x148] sm:$0xf0]  ;;  %v1711_v16 = vld [vmem:[%s2075_s11 + $0x1c4] sm:$0xf]  ;;  %v1498_v19 = vor.u32 %v1679_v11, %v1495_v13  ;;  %v1661_v21 = vld [vmem:[%s2075_s11 + $0x34] sm:$0xf] }
  0x8c   : > { %1044 = vmatpush.bf16.msra.mxu3 %v1590_v41  ;;  %1006 = vmatmul.bf16.vlgmr.msra.gmra.mxu0 %v2171_v63  ;;  %v1623_v17 = vld [vmem:[%s2075_s11 + $0x1c8] sm:$0xf0]  ;;  %v1562_v20 = vor.u32 %v1695_v14, %v1559_v15  ;;  %v1423_v22 = vld [vmem:[%s2075_s11 + $0x38] sm:$0xf0]  ;;  %v1677_v23 = vld [vmem:[%s2075_s11 + $0xb4] sm:$0xf] }
  0x8d   : > { %1050 = vmatpush.bf16.msrb.mxu0 %v1458_v42  ;;  %1019 = vmatmul.bf16.vlgmr.msra.gmra.mxu1 %v2176_v3  ;;  %v1626_v24 = vor.u32 %v1711_v16, %v1623_v17  ;;  %v1487_v25 = vld [vmem:[%s2075_s11 + $0xb8] sm:$0xf0]  ;;  %v1693_v26 = vld [vmem:[%s2075_s11 + $0x134] sm:$0xf]  ;;  %v1426_v30 = vor.u32 %v1661_v21, %v1423_v22  ;;  %v1659_v33 = vld [vmem:[%s2075_s11 + $0x24] sm:$0xf] }
  0x8e   : > { %1063 = vmatpush.bf16.msrb.mxu1 %v1522_v43  ;;  %1032 = vmatmul.bf16.vlgmr.msra.gmra.mxu2 %v2167_v61  ;;  %v1551_v27 = vld [vmem:[%s2075_s11 + $0x138] sm:$0xf0]  ;;  %v1709_v28 = vld [vmem:[%s2075_s11 + $0x1b4] sm:$0xf]  ;;  %v1490_v31 = vor.u32 %v1677_v23, %v1487_v25  ;;  %v1415_v34 = vld [vmem:[%s2075_s11 + $0x28] sm:$0xf0] }
  0x8f   : > { %1076 = vmatpush.bf16.msrb.mxu2 %v1586_v44  ;;  %1045 = vmatmul.bf16.vlgmr.msra.gmra.mxu3 %v2169_v62  ;;  %v1615_v29 = vld [vmem:[%s2075_s11 + $0x1b8] sm:$0xf0]  ;;  %v1554_v32 = vor.u32 %v1693_v26, %v1551_v27  ;;  %v1675_v35 = vld [vmem:[%s2075_s11 + $0xa4] sm:$0xf]  ;;  %v1479_v37 = vld [vmem:[%s2075_s11 + $0xa8] sm:$0xf0]  ;;  %v1418_v42 = vor.u32 %v1659_v33, %v1415_v34 }
  0x90   : > { %1089 = vmatpush.bf16.msrb.mxu3 %v1650_v48  ;;  %v1618_v36 = vor.u32 %v1709_v28, %v1615_v29  ;;  %v1691_v38 = vld [vmem:[%s2075_s11 + $0x124] sm:$0xf]  ;;  %v1543_v39 = vld [vmem:[%s2075_s11 + $0x128] sm:$0xf0]  ;;  %v1482_v43 = vor.u32 %v1675_v35, %v1479_v37  ;;  %v1657_v45 = vld [vmem:[%s2075_s11 + $0x14] sm:$0xf] }
  0x91   : > { %1051 = vmatpush.bf16.msrb.mxu0 %v1450_v55  ;;  %v1707_v40 = vld [vmem:[%s2075_s11 + $0x1a4] sm:$0xf]  ;;  %v1607_v41 = vld [vmem:[%s2075_s11 + $0x1a8] sm:$0xf0]  ;;  %v1546_v44 = vor.u32 %v1691_v38, %v1543_v39  ;;  %v1407_v46 = vld [vmem:[%s2075_s11 + $0x18] sm:$0xf0] }
  0x92   : > { %1064 = vmatpush.bf16.msrb.mxu1 %v1514_v59  ;;  %v1673_v47 = vld [vmem:[%s2075_s11 + $0x94] sm:$0xf]  ;;  %v1610_v48 = vor.u32 %v1707_v40, %v1607_v41  ;;  %v1471_v49 = vld [vmem:[%s2075_s11 + $0x98] sm:$0xf0]  ;;  %v1410_v54 = vor.u32 %v1657_v45, %v1407_v46  ;;  %v1655_v57 = vld [vmem:[%s2075_s11 + $0x4] sm:$0xf] }
  0x93   : > { %1077 = vmatpush.bf16.msrb.mxu2 %v1578_v60  ;;  %v1689_v50 = vld [vmem:[%s2075_s11 + $0x114] sm:$0xf]  ;;  %v1535_v51 = vld [vmem:[%s2075_s11 + $0x118] sm:$0xf0]  ;;  %v1474_v55 = vor.u32 %v1673_v47, %v1471_v49  ;;  %v1399_v58 = vld [vmem:[%s2075_s11 + $0x8] sm:$0xf0] }
  0x94   : > { %1090 = vmatpush.bf16.msrb.mxu3 %v1642_v0  ;;  %v1705_v52 = vld [vmem:[%s2075_s11 + $0x194] sm:$0xf]  ;;  %v1599_v53 = vld [vmem:[%s2075_s11 + $0x198] sm:$0xf0]  ;;  %v1538_v56 = vor.u32 %v1689_v50, %v1535_v51  ;;  %v1671_v59 = vld [vmem:[%s2075_s11 + $0x84] sm:$0xf] }
  0x95   : > { %1052 = vmatpush.bf16.msrb.mxu0 %v1442_v6  ;;  %v1602_v60 = vor.u32 %v1705_v52, %v1599_v53  ;;  %v1463_v0 = vld [vmem:[%s2075_s11 + $0x88] sm:$0xf0]  ;;  %v1687_v1 = vld [vmem:[%s2075_s11 + $0x104] sm:$0xf]  ;;  %v1402_v6 = vor.u32 %v1655_v57, %v1399_v58  ;;  %v602_v26 = vld [vmem:[#allocation2] sm:$0xf] }
  0x96   : > { %1065 = vmatpush.bf16.msrb.mxu1 %v1506_v7  ;;  %v1527_v2 = vld [vmem:[%s2075_s11 + $0x108] sm:$0xf0]  ;;  %v1703_v4 = vld [vmem:[%s2075_s11 + $0x184] sm:$0xf]  ;;  %v1466_v7 = vor.u32 %v1671_v59, %v1463_v0 }
  0x97   : > { %1078 = vmatpush.bf16.msrb.mxu2 %v1570_v8  ;;  %v1591_v5 = vld [vmem:[%s2075_s11 + $0x188] sm:$0xf0]  ;;  %v1530_v8 = vor.u32 %v1687_v1, %v1527_v2 }
  0x98   : > { %1091 = vmatpush.bf16.msrb.mxu3 %v1634_v12  ;;  %v1594_v9 = vor.u32 %v1703_v4, %v1591_v5 }
  0x99   : > { %1053 = vmatpush.bf16.msrb.mxu0 %v1434_v18 }
  0x9a   : > { %1066 = vmatpush.bf16.msrb.mxu1 %v1498_v19 }
  0x9b   : > { %1079 = vmatpush.bf16.msrb.mxu2 %v1562_v20 }
  0x9c   : > { %1092 = vmatpush.bf16.msrb.mxu3 %v1626_v24 }
  0x9d   : > { %1054 = vmatpush.bf16.msrb.mxu0 %v1426_v30 }
  0x9e   : > { %1067 = vmatpush.bf16.msrb.mxu1 %v1490_v31 }
  0x9f   : > { %1080 = vmatpush.bf16.msrb.mxu2 %v1554_v32 }
  0xa0   : > { %1093 = vmatpush.bf16.msrb.mxu3 %v1618_v36 }
  0xa1   : > { %1055 = vmatpush.bf16.msrb.mxu0 %v1418_v42 }
  0xa2   : > { %1068 = vmatpush.bf16.msrb.mxu1 %v1482_v43 }
  0xa3   : > { %1081 = vmatpush.bf16.msrb.mxu2 %v1546_v44 }
  0xa4   : > { %1094 = vmatpush.bf16.msrb.mxu3 %v1610_v48 }
  0xa5   : > { %1056 = vmatpush.bf16.msrb.mxu0 %v1410_v54 }
  0xa6   : > { %1069 = vmatpush.bf16.msrb.mxu1 %v1474_v55 }
  0xa7   : > { %1082 = vmatpush.bf16.msrb.mxu2 %v1538_v56 }
  0xa8   : > { %1095 = vmatpush.bf16.msrb.mxu3 %v1602_v60 }
  0xa9   : > { %1057 = vmatpush.bf16.msrb.mxu0 %v1402_v6 }
  0xaa   : > { %1070 = vmatpush.bf16.msrb.mxu1 %v1466_v7 }
  0xab   : > { %1083 = vmatpush.bf16.msrb.mxu2 %v1530_v8 }
  0xac   : > { %1096 = vmatpush.bf16.msrb.mxu3 %v1594_v9  ;;  %1058 = vmatmul.bf16.vlgmr.msrb.gmra.mxu0 %v2171_v63 }
  0xad   : > { %1071 = vmatmul.bf16.vlgmr.msrb.gmra.mxu1 %v2176_v3 }
  0xae   : > { %1084 = vmatmul.bf16.vlgmr.msrb.gmra.mxu2 %v2167_v61 }
  0xaf   : > { %1097 = vmatmul.bf16.vlgmr.msrb.gmra.mxu3 %v2169_v62 }
 0x109   : > { %v1007_v10 = vpop.f32.mrf.mxu0 }
 0x10a   : > { %v1020_v11 = vpop.f32.mrf.mxu1 }
 0x10b   : > { %v1021_v20 = vadd.f32 %v1020_v11, %v1007_v10 }
 0x111   : > { %v1033_v12 = vpop.f32.mrf.mxu2  ;;  %v1009_v14 = vpop.f32.mrf.mxu0 }
 0x112   : > { %v1046_v13 = vpop.f32.mrf.mxu3  ;;  %v1022_v15 = vpop.f32.mrf.mxu1  ;;  %v1034_v63 = vadd.f32 %v1033_v12, %v1021_v20 }
 0x114   : > { %v1047_v62 = vadd.f32 %v1046_v13, %v1034_v63 }
 0x119   : > { %v1035_v16 = vpop.f32.mrf.mxu2 }
 0x11a   : > { %v1048_v17 = vpop.f32.mrf.mxu3 }
 0x129   : > { %v1059_v18 = vpop.f32.mrf.mxu0 }
 0x12a   : > { %v1072_v19 = vpop.f32.mrf.mxu1 }
 0x12b   : > { %v1073_v21 = vadd.f32 %v1072_v19, %v1059_v18 }
 0x131   : > { %v1085_v22 = vpop.f32.mrf.mxu2  ;;  %v1061_v24 = vpop.f32.mrf.mxu0 }
 0x132   : > { %v1086_v23 = vadd.f32 %v1085_v22, %v1073_v21  ;;  %v1098_v3 = vpop.f32.mrf.mxu3  ;;  %v1074_v61 = vpop.f32.mrf.mxu1 }
 0x134   : > { %v1099_v25 = vadd.f32 %v1098_v3, %v1086_v23 }
 0x136   : > { %v1104_v27 = vrot.slane %v1099_v25, 6 }
 0x137   : > { %1113 = sbr.rel (%p1651_p13) target bundleno = 364 (0x16c), region = 74 }
 0x138   : > { %v1106_v28 = vsel %vm1105_vm0, %v1047_v62, %v1104_v27 }
 0x139   : > { %v1108_v29 = vadd.f32 %v1106_v28, %v602_v26  ;;  %v1087_v30 = vpop.f32.mrf.mxu2 }
 0x13a   : > { %v1100_v31 = vpop.f32.mrf.mxu3 }
 0x13b   : > { %1109 = vst [vmem:[#allocation2] sm:$0xf] %v1108_v29 }
 0x13c   : > { %vm1124_vm1 = vcmask 1040384   ;;  %v1154_v53 = vlaneseq }
 0x13e   : > { %vm1156_vm2 = vcmp.lt.s32.totalorder %v1154_v53, 256 }
 0x142   : > { %v1114_v32 = vld [vmem:[#allocation2] sm:$0xf] }
 0x143   : > { %1116 = vst [vmem:[#allocation1] ss:$4 sm:$0xff] %v1114_v32  ;;  %v1159_v37 = vmul.f32 %v1114_v32, %v1114_v32 }
 0x14a   : > { %v1117_v33 = vld.sshfl [vmem:[#allocation1] sm:$0xff pattern:$0x73625140]  ;;  %v1118_v34 = vld.sshfl [vmem:[#allocation1 + $0x8] sm:$0xff pattern:$0x73625140] }
 0x14b   : > { %1130 = vst [vmem:[#allocation1] ss:$4 sm:$0xff] %v1114_v32  ;;  %v1121_v35 = vpack.c.bf16 %v1118_v34, %v1117_v33 }
 0x14d   : > { %v1123_v36 = vrot.slane %v1121_v35, 3 }
 0x14f   : > { %v1127_v38 = vsel %vm1124_vm1, %v1121_v35, %v1123_v36 }
 0x150   : > { %1129 = vst [vmem:[%s577_s15] sm:$0x3] %v1127_v38 }
 0x152   : > { %v1131_v39 = vld.sshfl [vmem:[#allocation1] sm:$0xff pattern:$0x73625140]  ;;  %v1132_v40 = vld.sshfl [vmem:[#allocation1 + $0x8] sm:$0xff pattern:$0x73625140] }
 0x153   : > { %v1135_v41 = vsel %vm1105_vm0, %v1131_v39, 0.0  ;;  %v1142_v42 = vsel %vm1105_vm0, %v1132_v40, 0.0  ;;  %1161 = vst [vmem:[#allocation1] ss:$4 sm:$0xff] %v1159_v37 }
 0x154   : > { %v1136_v43 = vrot.slane %v1135_v41, 4  ;;  %v1143_v44 = vrot.slane %v1142_v42, 4 }
 0x156   : > { %v1137_v45 = vadd.f32 %v1136_v43, %v1135_v41  ;;  %v1144_v46 = vadd.f32 %v1143_v44, %v1142_v42 }
 0x158   : > { %v1138_v47 = vrot.slane %v1137_v45, 2  ;;  %v1145_v48 = vrot.slane %v1144_v46, 2 }
 0x15a   : > { %v1139_v49 = vadd.f32 %v1138_v47, %v1137_v45  ;;  %v1146_v50 = vadd.f32 %v1145_v48, %v1144_v46  ;;  %v1162_v51 = vld.sshfl [vmem:[#allocation1] sm:$0xff pattern:$0x73625140]  ;;  %v1163_v52 = vld.sshfl [vmem:[#allocation1 + $0x8] sm:$0xff pattern:$0x73625140] }
 0x15b   : > { %v1166_v54 = vsel %vm1105_vm0, %v1162_v51, 0.0  ;;  %v1173_v55 = vsel %vm1105_vm0, %v1163_v52, 0.0 }
 0x15c   : > { %v1140_v56 = vrot.slane %v1139_v49, 1  ;;  %v1147_v57 = vrot.slane %v1146_v50, 1  ;;  %v1167_v58 = vrot.slane %v1166_v54, 4  ;;  %v1174_v59 = vrot.slane %v1173_v55, 4 }
 0x15e   : > { %v1148_v60 = vadd.f32 %v1147_v57, %v1146_v50  ;;  %v1168_v0 = vadd.f32 %v1167_v58, %v1166_v54  ;;  %v1175_v1 = vadd.f32 %v1174_v59, %v1173_v55  ;;  %v1141_v2 = vadd.f32 %v1140_v56, %v1139_v49 }
 0x160   : > { %v1151_v4 = vrot.slane %v1148_v60, 7  ;;  %v1169_v5 = vrot.slane %v1168_v0, 2  ;;  %v1176_v6 = vrot.slane %v1175_v1, 2 }
 0x162   : > { %v1152_v7 = vsel %vm1124_vm1, %v1141_v2, %v1151_v4  ;;  %v1170_v8 = vadd.f32 %v1169_v5, %v1168_v0  ;;  %v1177_v9 = vadd.f32 %v1176_v6, %v1175_v1 }
 0x163   : > { %1158 = vst.msk [vmem:[%s586_s18] sm:$0x3] %vm1156_vm2, %v1152_v7 }
 0x164   : > { %v1171_v10 = vrot.slane %v1170_v8, 1  ;;  %v1178_v11 = vrot.slane %v1177_v9, 1 }
 0x166   : > { %v1179_v12 = vadd.f32 %v1178_v11, %v1177_v9  ;;  %v1172_v13 = vadd.f32 %v1171_v10, %v1170_v8 }
 0x168   : > { %v1182_v14 = vrot.slane %v1179_v12, 7 }
 0x16a   : > { %v1183_v15 = vsel %vm1124_vm1, %v1172_v13, %v1182_v14 }
 0x16b   : > { %1185 = vst.msk [vmem:[%s595_s10] sm:$0x3] %vm1156_vm2, %v1183_v15 }
 0x16c PF: > { %s15_s21 = sadd.s32 1, %s1830_s21   ;;  %s2277_s15 = smov %s1810_s16 }
 0x16d   : > { %p12_p0 = scmp.ge.s32.totalorder %s15_s21, 20   ;;  %s2278_s16 = smov %s1909_s28 }
 0x16e   : > { %s2279_s17 = smov %s1822_s19  ;;  %s2280_s18 = smov %s1826_s20 }
 0x16f   : > { %s2281_s19 = smov %s2284_s22  ;;  %s2282_s20 = smov %s2288_s23 }
 0x170   :  { %14 = sbr.rel (!%p12_p0) target bundleno = 4 (0x4), region = 136 }

// kernel: backbone_forward.138
= control target key start
LH: loop header
LB: loop body
LE: loop exit
PB: predicated region body
PF: predicated region fallthrough
CT: control target
= control target key end

     0   :  { %vm28_vm0 = vcmask 1041408   ;;  %vm30_vm1 = vcmask 1045508   ;;  %vm32_vm2 = vcmask 1043456   ;;  %vm71_vm3 = vcmask 1040384   ;;  %s131_s0 = inlined_call_operand.vmem [shape: bf16[2,512], index: 0, kind: input, shape index: {}]   ;;  %s132_s1 = inlined_call_operand.vmem [shape: f32[1,512], index: 1, kind: input, shape index: {}]   ;;  %s133_s2 = inlined_call_operand.vmem [shape: f32[1,512], index: 2, kind: input, shape index: {}]   ;;  %s134_s3 = inlined_call_operand.vmem [shape: bf16[2,512], index: 3, kind: input, shape index: {}]   ;;  %s135_s4 = inlined_call_operand.vmem [shape: bf16[2,512], index: 4, kind: output, shape index: {}]  }
   0x1   :  { %v19_v0 = vld [vmem:[%s132_s1] sm:$0xf]  ;;  %vm75_vm4 = vcmask 1042434  }
   0x2   :  { %v36_v1 = vld [vmem:[%s133_s2] sm:$0xf]  ;;  %v21_v3 = vperm.slane %v19_v0, 0  ;;  %v22_v4 = vperm.slane %v19_v0, 1  ;;  %v23_v5 = vperm.slane %v19_v0, 2  ;;  %v24_v6 = vperm.slane %v19_v0, 3 }
   0x3   :  { %v17_v2 = vld [vmem:[%s131_s0] sm:$0xf]  ;;  %v38_v7 = vperm.slane %v36_v1, 0  ;;  %v39_v8 = vperm.slane %v36_v1, 1  ;;  %v40_v9 = vperm.slane %v36_v1, 2  ;;  %v41_v12 = vperm.slane %v36_v1, 3 }
   0x4   :  { %v25_v10 = vrot.slane %v22_v4, 6  ;;  %v26_v11 = vrot.slane %v23_v5, 4  ;;  %v18_v13 = vunpack.c.l.bf16 %v17_v2  ;;  %v27_v14 = vrot.slane %v24_v6, 2  ;;  %v50_v19 = vld [vmem:[%s134_s3] sm:$0xf] }
   0x5   :  { %v42_v15 = vrot.slane %v39_v8, 6  ;;  %v43_v16 = vrot.slane %v40_v9, 4  ;;  %v44_v18 = vrot.slane %v41_v12, 2  ;;  %v51_v26 = vunpack.c.l.bf16 %v50_v19 }
   0x6   :  { %v29_v17 = vsel %vm28_vm0, %v21_v3, %v25_v10  ;;  %v31_v20 = vsel %vm30_vm1, %v26_v11, %v27_v14 }
   0x7   :  { %v45_v21 = vsel %vm28_vm0, %v38_v7, %v42_v15  ;;  %v33_v22 = vsel %vm32_vm2, %v29_v17, %v31_v20  ;;  %v46_v23 = vsel %vm30_vm1, %v43_v16, %v44_v18 }
   0x8   :  { %v35_v24 = vmul.f32 %v33_v22, %v18_v13  ;;  %v47_v25 = vsel %vm32_vm2, %v45_v21, %v46_v23 }
   0xa   :  { %v49_v27 = vadd.f32 %v47_v25, %v35_v24 }
   0xc   :  { %v52_v28 = vadd.f32 %v51_v26, %v49_v27 }
   0xe   :  { %v53_v29 = vmax.f32 %v52_v28, 0.0 }
  0x10   :  { %55 = vst [vmem:[#allocation1] ss:$4 sm:$0xff] %v53_v29 }
  0x17   :  { %v56_v30 = vld.sshfl [vmem:[#allocation1] sm:$0xff pattern:$0x73625140]  ;;  %v57_v31 = vld.sshfl [vmem:[#allocation1 + $0x8] sm:$0xff pattern:$0x73625140] }
  0x18   :  { %v58_v32 = vld.sshfl [vmem:[#allocation1 + $0x10] sm:$0xff pattern:$0x73625140]  ;;  %v59_v33 = vld.sshfl [vmem:[#allocation1 + $0x18] sm:$0xff pattern:$0x73625140]  ;;  %v64_v34 = vpack.c.bf16 %v57_v31, %v56_v30 }
  0x19   :  { %v65_v35 = vpack.c.bf16 %v59_v33, %v58_v32 }
  0x1a   :  { %v68_v36 = vrot.slane %v64_v34, 3 }
  0x1b   :  { %v69_v37 = vrot.slane %v65_v35, 6  ;;  %v70_v38 = vrot.slane %v65_v35, 1 }
  0x1c   :  { %v74_v39 = vsel %vm71_vm3, %v64_v34, %v68_v36 }
  0x1d   :  { %v78_v40 = vsel %vm75_vm4, %v69_v37, %v70_v38 }
  0x1e   :  { %v79_v41 = vsel %vm28_vm0, %v74_v39, %v78_v40 }
  0x1f   :  { %81 = vst [vmem:[%s135_s4] sm:$0xf] %v79_v41 }

// kernel: backbone_forward.147
= control target key start
LH: loop header
LB: loop body
LE: loop exit
PB: predicated region body
PF: predicated region fallthrough
CT: control target
= control target key end

     0   :  { %s463_s0 = inlined_call_operand.vmem [shape: bf16[2,1,512], index: 0, kind: input, shape index: {}]   ;;  %s464_s1 = inlined_call_operand.vmem [shape: f32[512,128], index: 1, kind: input, shape index: {}]   ;;  %s465_s2 = inlined_call_operand.vmem [shape: f32[1,128], index: 2, kind: input, shape index: {}]   ;;  %s466_s3 = inlined_call_operand.hbm [shape: f32[2,128], index: 3, kind: output, shape index: {}]  }
   0x1   :  { %v68_v0 = vld [vmem:[%s464_s1 + $0x178] sm:$0xff]  ;;  %v67_v2 = vld [vmem:[%s464_s1 + $0x170] sm:$0xff]  ;;  %v66_v6 = vld [vmem:[%s464_s1 + $0x168] sm:$0xff] }
   0x2   :  { %v36_v1 = vld [vmem:[%s464_s1 + $0x78] sm:$0xff]  ;;  %148 = vmatpush.msra.mxu2 %v68_v0  ;;  %v35_v4 = vld [vmem:[%s464_s1 + $0x70] sm:$0xff]  ;;  %v34_v8 = vld [vmem:[%s464_s1 + $0x68] sm:$0xff] }
   0x3   :  { %108 = vmatpush.msra.mxu0 %v36_v1  ;;  %v84_v3 = vld [vmem:[%s464_s1 + $0x1f8] sm:$0xff]  ;;  %v83_v7 = vld [vmem:[%s464_s1 + $0x1f0] sm:$0xff]  ;;  %v82_v10 = vld [vmem:[%s464_s1 + $0x1e8] sm:$0xff] }
   0x4   :  { %v52_v5 = vld [vmem:[%s464_s1 + $0xf8] sm:$0xff]  ;;  %168 = vmatpush.msra.mxu3 %v84_v3  ;;  %149 = vmatpush.msra.mxu2 %v67_v2  ;;  %v51_v9 = vld [vmem:[%s464_s1 + $0xf0] sm:$0xff]  ;;  %v65_v11 = vld [vmem:[%s464_s1 + $0x160] sm:$0xff] }
   0x5   :  { %128 = vmatpush.msra.mxu1 %v52_v5  ;;  %109 = vmatpush.msra.mxu0 %v35_v4  ;;  %v33_v12 = vld [vmem:[%s464_s1 + $0x60] sm:$0xff]  ;;  %v50_v13 = vld [vmem:[%s464_s1 + $0xe8] sm:$0xff]  ;;  %v64_v16 = vld [vmem:[%s464_s1 + $0x158] sm:$0xff] }
   0x6   :  { %169 = vmatpush.msra.mxu3 %v83_v7  ;;  %150 = vmatpush.msra.mxu2 %v66_v6  ;;  %v81_v14 = vld [vmem:[%s464_s1 + $0x1e0] sm:$0xff]  ;;  %v32_v17 = vld [vmem:[%s464_s1 + $0x58] sm:$0xff]  ;;  %v63_v20 = vld [vmem:[%s464_s1 + $0x150] sm:$0xff] }
   0x7   :  { %129 = vmatpush.msra.mxu1 %v51_v9  ;;  %110 = vmatpush.msra.mxu0 %v34_v8  ;;  %v49_v15 = vld [vmem:[%s464_s1 + $0xe0] sm:$0xff]  ;;  %v80_v18 = vld [vmem:[%s464_s1 + $0x1d8] sm:$0xff]  ;;  %v31_v21 = vld [vmem:[%s464_s1 + $0x50] sm:$0xff] }
   0x8   :  { %170 = vmatpush.msra.mxu3 %v82_v10  ;;  %151 = vmatpush.msra.mxu2 %v65_v11  ;;  %v48_v19 = vld [vmem:[%s464_s1 + $0xd8] sm:$0xff]  ;;  %v79_v22 = vld [vmem:[%s464_s1 + $0x1d0] sm:$0xff]  ;;  %v62_v24 = vld [vmem:[%s464_s1 + $0x148] sm:$0xff] }
   0x9   :  { %130 = vmatpush.msra.mxu1 %v50_v13  ;;  %111 = vmatpush.msra.mxu0 %v33_v12  ;;  %v47_v23 = vld [vmem:[%s464_s1 + $0xd0] sm:$0xff]  ;;  %v30_v25 = vld [vmem:[%s464_s1 + $0x48] sm:$0xff]  ;;  %v61_v28 = vld [vmem:[%s464_s1 + $0x140] sm:$0xff] }
   0xa   :  { %171 = vmatpush.msra.mxu3 %v81_v14  ;;  %152 = vmatpush.msra.mxu2 %v64_v16  ;;  %v78_v26 = vld [vmem:[%s464_s1 + $0x1c8] sm:$0xff]  ;;  %v29_v29 = vld [vmem:[%s464_s1 + $0x40] sm:$0xff]  ;;  %v60_v32 = vld [vmem:[%s464_s1 + $0x138] sm:$0xff] }
   0xb   :  { %131 = vmatpush.msra.mxu1 %v49_v15  ;;  %112 = vmatpush.msra.mxu0 %v32_v17  ;;  %v46_v27 = vld [vmem:[%s464_s1 + $0xc8] sm:$0xff]  ;;  %v77_v30 = vld [vmem:[%s464_s1 + $0x1c0] sm:$0xff]  ;;  %v28_v33 = vld [vmem:[%s464_s1 + $0x38] sm:$0xff] }
   0xc   :  { %172 = vmatpush.msra.mxu3 %v80_v18  ;;  %153 = vmatpush.msra.mxu2 %v63_v20  ;;  %v45_v31 = vld [vmem:[%s464_s1 + $0xc0] sm:$0xff]  ;;  %v76_v34 = vld [vmem:[%s464_s1 + $0x1b8] sm:$0xff]  ;;  %v59_v36 = vld [vmem:[%s464_s1 + $0x130] sm:$0xff] }
   0xd   :  { %132 = vmatpush.msra.mxu1 %v48_v19  ;;  %113 = vmatpush.msra.mxu0 %v31_v21  ;;  %v44_v35 = vld [vmem:[%s464_s1 + $0xb8] sm:$0xff]  ;;  %v27_v37 = vld [vmem:[%s464_s1 + $0x30] sm:$0xff]  ;;  %v58_v40 = vld [vmem:[%s464_s1 + $0x128] sm:$0xff] }
   0xe   :  { %173 = vmatpush.msra.mxu3 %v79_v22  ;;  %154 = vmatpush.msra.mxu2 %v62_v24  ;;  %v75_v38 = vld [vmem:[%s464_s1 + $0x1b0] sm:$0xff]  ;;  %v26_v41 = vld [vmem:[%s464_s1 + $0x28] sm:$0xff]  ;;  %v57_v44 = vld [vmem:[%s464_s1 + $0x120] sm:$0xff] }
   0xf   :  { %133 = vmatpush.msra.mxu1 %v47_v23  ;;  %114 = vmatpush.msra.mxu0 %v30_v25  ;;  %v43_v39 = vld [vmem:[%s464_s1 + $0xb0] sm:$0xff]  ;;  %v74_v42 = vld [vmem:[%s464_s1 + $0x1a8] sm:$0xff]  ;;  %v25_v45 = vld [vmem:[%s464_s1 + $0x20] sm:$0xff] }
  0x10   :  { %174 = vmatpush.msra.mxu3 %v78_v26  ;;  %155 = vmatpush.msra.mxu2 %v61_v28  ;;  %v42_v43 = vld [vmem:[%s464_s1 + $0xa8] sm:$0xff]  ;;  %v206_v46 = vld [vmem:[%s463_s0] sm:$0xff]   ;;  %v56_v51 = vld [vmem:[%s464_s1 + $0x118] sm:$0xff] }
  0x11   :  { %134 = vmatpush.msra.mxu1 %v46_v27  ;;  %115 = vmatpush.msra.mxu0 %v29_v29  ;;  %v73_v47 = vld [vmem:[%s464_s1 + $0x1a0] sm:$0xff]  ;;  %v207_v49 = vunpack.c.l.bf16 %v206_v46  ;;  %v208_v50 = vunpack.c.h.bf16 %v206_v46  ;;  %v24_v52 = vld [vmem:[%s464_s1 + $0x18] sm:$0xff] }
  0x12   :  { %175 = vmatpush.msra.mxu3 %v77_v30  ;;  %156 = vmatpush.msra.mxu2 %v60_v32  ;;  %v41_v48 = vld [vmem:[%s464_s1 + $0xa0] sm:$0xff] }
  0x13   :  { %135 = vmatpush.msra.mxu1 %v45_v31  ;;  %116 = vmatpush.msra.mxu0 %v28_v33 }
  0x14   :  { %176 = vmatpush.msra.mxu3 %v76_v34  ;;  %157 = vmatpush.msra.mxu2 %v59_v36 }
  0x15   :  { %136 = vmatpush.msra.mxu1 %v44_v35  ;;  %117 = vmatpush.msra.mxu0 %v27_v37 }
  0x16   :  { %177 = vmatpush.msra.mxu3 %v75_v38  ;;  %158 = vmatpush.msra.mxu2 %v58_v40 }
  0x17   :  { %137 = vmatpush.msra.mxu1 %v43_v39  ;;  %118 = vmatpush.msra.mxu0 %v26_v41 }
  0x18   :  { %178 = vmatpush.msra.mxu3 %v74_v42 }
  0x19   :  { %138 = vmatpush.msra.mxu1 %v42_v43 }
  0x1a   :  { %8 = vsyncpa [#allocation3], 0  ;;  %159 = vmatpush.msra.mxu2 %v57_v44  ;;  %119 = vmatpush.msra.mxu0 %v25_v45  ;;  %v72_v53 = vld [vmem:[%s464_s1 + $0x198] sm:$0xff]  ;;  %v55_v55 = vld [vmem:[%s464_s1 + $0x110] sm:$0xff]  ;;  %v93_v59 = vperm.slane %v207_v49, 4  ;;  %v97_v60 = vperm.slane %v208_v50, 4 }
  0x1b   :  { %v40_v54 = vld [vmem:[%s464_s1 + $0x98] sm:$0xff]  ;;  %179 = vmatpush.msra.mxu3 %v73_v47  ;;  %139 = vmatpush.msra.mxu1 %v41_v48  ;;  %v23_v56 = vld [vmem:[%s464_s1 + $0x10] sm:$0xff]  ;;  %vm99_vm0 = vcmask 1041409   ;;  %v54_v61 = vld [vmem:[%s464_s1 + $0x108] sm:$0xff]  ;;  %v91_v63 = vperm.slane %v207_v49, 0  ;;  %v95_v0 = vperm.slane %v208_v50, 0 }
  0x1c   :  { %160 = vmatpush.msra.mxu2 %v56_v51  ;;  %120 = vmatpush.msra.mxu0 %v24_v52  ;;  %v71_v57 = vld [vmem:[%s464_s1 + $0x190] sm:$0xff]  ;;  %v22_v62 = vld [vmem:[%s464_s1 + $0x8] sm:$0xff]  ;;  %v94_v1 = vperm.slane %v207_v49, 6  ;;  %v98_v2 = vperm.slane %v208_v50, 6  ;;  %v53_v5 = vld [vmem:[%s464_s1 + $0x100] sm:$0xff]  ;;  %v92_v7 = vperm.slane %v207_v49, 2  ;;  %v102_v9 = vsel %vm99_vm0, %v97_v60, %v93_v59 }
  0x1d   :  { %v39_v58 = vld [vmem:[%s464_s1 + $0x90] sm:$0xff]  ;;  %180 = vmatpush.msra.mxu3 %v72_v53  ;;  %140 = vmatpush.msra.mxu1 %v40_v54  ;;  %v70_v3 = vld [vmem:[%s464_s1 + $0x188] sm:$0xff]  ;;  %v21_v6 = vld [vmem:[%s464_s1] sm:$0xff]  ;;  %v96_v8 = vperm.slane %v208_v50, 2  ;;  %v100_v11 = vsel %vm99_vm0, %v95_v0, %v91_v63  ;;  %s237_s7 = smov [#allocation2]   ;;  %s196_s10 = sshll.u32 %s466_s3, 4  ;;  %s197_s10 = int_to_ptr.hbm [resolvable:$true] %s196_s10 }
  0x1e   :  { %161 = vmatpush.msra.mxu2 %v55_v55  ;;  %121 = vmatpush.msra.mxu0 %v23_v56  ;;  %v38_v4 = vld [vmem:[%s464_s1 + $0x88] sm:$0xff]  ;;  %v69_v10 = vld [vmem:[%s464_s1 + $0x180] sm:$0xff]  ;;  %v103_v12 = vsel %vm99_vm0, %v98_v2, %v94_v1  ;;  %s194_s8 = sshll.u32 %s237_s7, 4  ;;  %s195_s8 = int_to_ptr.vmem [resolvable:$true] %s194_s8 }
  0x1f   :  { %181 = vmatpush.msra.mxu3 %v71_v57  ;;  %141 = vmatpush.msra.mxu1 %v39_v58  ;;  %v37_v13 = vld [vmem:[%s464_s1 + $0x80] sm:$0xff]  ;;  %v101_v14 = vsel %vm99_vm0, %v96_v8, %v92_v7 }
  0x20   :  { %162 = vmatpush.msra.mxu2 %v54_v61  ;;  %122 = vmatpush.msra.mxu0 %v22_v62  ;;  %v210_v15 = vld [vmem:[%s465_s2] ss:$0 sm:$0xff] }
  0x21   :  { %182 = vmatpush.msra.mxu3 %v70_v3  ;;  %142 = vmatpush.msra.mxu1 %v38_v4 }
  0x22   :  { %163 = vmatpush.msra.mxu2 %v53_v5  ;;  %123 = vmatpush.msra.mxu0 %v21_v6 }
  0x23   :  { %164 = vmatmul.f32.vlgmr.msra.gmra.mxu2 %v102_v9  ;;  %183 = vmatpush.msra.mxu3 %v69_v10 }
  0x24   :  { %124 = vmatmul.f32.vlgmr.msra.gmra.mxu0 %v100_v11  ;;  %184 = vmatmul.f32.vlgmr.msra.gmra.mxu3 %v103_v12 }
  0x25   :  { %143 = vmatpush.msra.mxu1 %v37_v13 }
  0x26   :  { %144 = vmatmul.f32.vlgmr.msra.gmra.mxu1 %v101_v14 }
  0xa1   :  { %v125_v16 = vpop.f32.mrf.mxu0 }
  0xa2   :  { %v126_v17 = vadd.f32 %v210_v15, %v125_v16 }
  0xa3   :  { %v145_v18 = vpop.f32.mrf.mxu1 }
  0xa4   :  { %v146_v19 = vadd.f32 %v145_v18, %v126_v17 }
  0xa6   :  { %v165_v20 = vpop.f32.mrf.mxu2 }
  0xa7   :  { %v166_v21 = vadd.f32 %v165_v20, %v146_v19  ;;  %v185_v22 = vpop.f32.mrf.mxu3 }
  0xa9   :  { %v186_v23 = vadd.f32 %v185_v22, %v166_v21 }
  0xab   :  { %188 = vst [vmem:[#allocation2] sm:$0x3] %v186_v23 }
  0xac   :  { %199 = dma.vmem_to_hbm [thread:$0]  %s195_s8, 32, %s197_s10, [#allocation3]  }
  0xad   :  { %235 = dma.done.wait [#allocation3], 32  }
  0xae   :  { %236 = vsyncadd [#allocation3], 4294967264 }
  0xaf   :  { %204 = vsyncpa [#allocation3], 1 }

</bundles_post_ra>
